<compile_context>
chip_gen: v7x
topology: tpu7x:2x2x1
jax: 0.10.0
libtpu: 0.0.40
codegen_flags: <defaults>
</compile_context>

<pallas_src>
import jax
import jax.numpy as jnp
from jax.experimental import pallas as pl
from jax.experimental.pallas import tpu as pltpu


def _round_up(x, m):
    return ((x + m - 1) // m) * m


# ----------------------------------------------------------------------------
# Main decoder-loop kernel (single invocation, in-kernel time loop)
# ----------------------------------------------------------------------------
def _decoder_kernel(
    # per-step inputs, fully VMEM resident
    pn_char_ref, pn_bert_ref,                      # (T_dec, B, P)
    # constants
    mem_ref, pmem_ref, bert_ref, pbert_ref,        # (B, Tp, E), (B, Tp, attn)
    maskmem_ref, maskbert_ref,                     # (B, Tp)
    # attention_rnn (char): gate-major, piece-split weights
    arnn_wx_ref, arnn_wc_ref, arnn_whh_ref, arnn_b_ref,   # (4,P,A),(4,E,A),(4,A,A),(4,1,A)
    # attention_rnn_bert
    brnn_wx_ref, brnn_wc_ref, brnn_whh_ref, brnn_b_ref,
    # decoder_rnn: pieces [h_c, ctx_c, h_b, ctx_b]
    drnn_whc_ref, drnn_wcc_ref, drnn_whb_ref, drnn_wcb_ref, drnn_whh_ref, drnn_b_ref,
    # location-sensitive attention (char): query W, fused conv*loc W, v
    aq_w_ref, awcomb_ref, av_ref,                  # (A,attn), (2,K,attn), (1,attn)
    # location-sensitive attention (bert)
    bq_w_ref, bwcomb_ref, bv_ref,
    # projection (+gate folded in as last column), piece-split [h_d, ctx_c, ctx_b]
    pg_wd_ref, pg_wc_ref, pg_wb_ref, pg_b_ref,     # (D,M+1),(E,M+1),(E,M+1),(1,M+1)
    # outputs
    melgate_ref,                                   # (T_dec, B, M+1)
    align_ref, alignb_ref,                         # (T_dec, B, Tp_enc/Tp_bert)
):
    T_dec = pn_char_ref.shape[0]
    B = pn_char_ref.shape[1]
    A = arnn_whh_ref.shape[-1]
    D = drnn_whh_ref.shape[-1]
    E = mem_ref.shape[-1]
    Tp_e = mem_ref.shape[1]
    Tp_b = bert_ref.shape[1]

    def lstm_cell(pieces, piece_w_refs, h, c, whh_ref, b_ref):
        # PyTorch nn.LSTMCell, gate order i, f, g, o; weights gate-major so each
        # gate is an un-sliced (B, H) matmul; concat is replaced by summed
        # per-piece GEMMs.
        def gate(g):
            acc = b_ref[g] + jnp.dot(h, whh_ref[g], preferred_element_type=jnp.float32)
            for x, wref in zip(pieces, piece_w_refs):
                acc = acc + jnp.dot(x, wref[g], preferred_element_type=jnp.float32)
            return acc
        i = jax.nn.sigmoid(gate(0))
        f = jax.nn.sigmoid(gate(1))
        g_ = jnp.tanh(gate(2))
        o = jax.nn.sigmoid(gate(3))
        c_new = f * c + i * g_
        h_new = o * jnp.tanh(c_new)
        return h_new, c_new

    def location_attention(query_h, mem_r, pmem_r, w_prev, wcum_prev, mask_r,
                           wq_r, wcomb_r, v_r):
        mem3 = mem_r[...]                                   # (B, T, E)
        pmem3 = pmem_r[...]                                 # (B, T, attn)
        T_ = mem3.shape[1]
        attn_dim = pmem3.shape[-1]
        wcomb = wcomb_r[...]                                # (2, K, attn)
        K = wcomb.shape[1]
        pad = (K - 1) // 2

        # processed query: (B, attn)
        pq = jnp.dot(query_h, wq_r[...], preferred_element_type=jnp.float32)

        # location features with the conv already fused into the location
        # linear layer: ploc[b,t,:] = sum_{c,k} w_chan_c[b, t+k-pad] * wcomb[c,k,:]
        pos = jax.lax.broadcasted_iota(jnp.int32, (1, T_), 1)
        ploc = jnp.zeros((B, T_, attn_dim), jnp.float32)
        for k in range(K):
            off = k - pad
            valid = jnp.logical_and(pos + off >= 0, pos + off < T_)
            for c, chan in enumerate((w_prev, wcum_prev)):
                shifted = pltpu.roll(chan, shift=(-off) % T_, axis=1)   # (B, T)
                shifted = jnp.where(valid, shifted, 0.0)
                ploc = ploc + shifted[:, :, None] * wcomb[c, k].reshape(1, 1, attn_dim)

        # energies = v . tanh(Wq q + processed_memory + location_term)
        scores = jnp.tanh(pq[:, None, :] + pmem3 + ploc)               # (B, T, attn)
        e = jnp.sum(scores * v_r[...].reshape(1, 1, attn_dim), axis=-1)  # (B, T)
        e = jnp.where(mask_r[...] > 0.5, e, -1e9)                      # masked_fill
        m = jnp.max(e, axis=-1, keepdims=True)
        p = jnp.exp(e - m)
        w = p / jnp.sum(p, axis=-1, keepdims=True)                     # softmax
        # context as a batched matmul: (B,1,T) @ (B,T,E) -> (B,E)
        ctx = jnp.einsum('bqt,bte->bqe', w[:, None, :], mem3,
                         preferred_element_type=jnp.float32)[:, 0]
        return ctx, w

    def step(t, carry):
        (ah, ac, ahb, acb, dh, dc,
         aw, awc, actx, awb, awcb, actxb) = carry

        x_char = pn_char_ref[t]     # (B, P)
        x_bert = pn_bert_ref[t]

        # ---- attention RNNs (p_attention_dropout == 0.0 -> identity) ----
        ah, ac = lstm_cell((x_char, actx), (arnn_wx_ref, arnn_wc_ref),
                           ah, ac, arnn_whh_ref, arnn_b_ref)
        ahb, acb = lstm_cell((x_bert, actxb), (brnn_wx_ref, brnn_wc_ref),
                             ahb, acb, brnn_whh_ref, brnn_b_ref)

        # ---- location-sensitive attentions ----
        actx, aw_new = location_attention(ah, mem_ref, pmem_ref, aw, awc,
                                          maskmem_ref, aq_w_ref, awcomb_ref, av_ref)
        actxb, awb_new = location_attention(ahb, bert_ref, pbert_ref, awb, awcb,
                                            maskbert_ref, bq_w_ref, bwcomb_ref, bv_ref)
        aw = aw_new
        awc = awc + aw_new
        awb = awb_new
        awcb = awcb + awb_new

        # ---- decoder RNN (p_decoder_dropout == 0.0 -> identity) ----
        dh, dc = lstm_cell((ah, actx, ahb, actxb),
                           (drnn_whc_ref, drnn_wcc_ref, drnn_whb_ref, drnn_wcb_ref),
                           dh, dc, drnn_whh_ref, drnn_b_ref)

        # ---- projection with the gate folded in as the last output column ----
        mg = (jnp.dot(dh, pg_wd_ref[...], preferred_element_type=jnp.float32)
              + jnp.dot(actx, pg_wc_ref[...], preferred_element_type=jnp.float32)
              + jnp.dot(actxb, pg_wb_ref[...], preferred_element_type=jnp.float32)
              + pg_b_ref[...])

        melgate_ref[t] = mg
        align_ref[t] = aw
        alignb_ref[t] = awb

        return (ah, ac, ahb, acb, dh, dc, aw, awc, actx, awb, awcb, actxb)

    zeros = lambda *s: jnp.zeros(s, jnp.float32)
    init = (zeros(B, A), zeros(B, A), zeros(B, A), zeros(B, A),   # ah, ac, ahb, acb
            zeros(B, D), zeros(B, D),                             # dh, dc
            zeros(B, Tp_e), zeros(B, Tp_e), zeros(B, E),          # aw, awc, actx
            zeros(B, Tp_b), zeros(B, Tp_b), zeros(B, E))          # awb, awcb, actxb
    jax.lax.fori_loop(0, T_dec, step, init)


def _decoder_loop(inputs, T_dec, B, M, Tp_e, Tp_b):
    out_shapes = (
        jax.ShapeDtypeStruct((T_dec, B, M + 1), jnp.float32),   # mel (+ gate column)
        jax.ShapeDtypeStruct((T_dec, B, Tp_e), jnp.float32),    # alignments (char)
        jax.ShapeDtypeStruct((T_dec, B, Tp_b), jnp.float32),    # alignments (bert)
    )
    vmem = lambda: pl.BlockSpec(memory_space=pltpu.MemorySpace.VMEM)
    fn = pl.pallas_call(
        _decoder_kernel,
        out_shape=out_shapes,
        in_specs=[vmem() for _ in inputs],
        out_specs=(vmem(), vmem(), vmem()),
        compiler_params=pltpu.CompilerParams(
            vmem_limit_bytes=48 * 1024 * 1024),   # above the 16/32 MiB scoped defaults
    )
    return fn(*inputs)


# ----------------------------------------------------------------------------
# Parameter re-layout for the kernel (done once in glue, outside the hot loop)
# ----------------------------------------------------------------------------
def _gate_major(w, H):
    # (in, 4H) [i|f|g|o column blocks] -> (4, in, H)
    return jnp.transpose(w.reshape(w.shape[0], 4, H), (1, 0, 2))


def _prepare_decode_params(params, hp):
    P = hp['prenet_dim']
    A = hp['attention_rnn_dim']
    D = hp['decoder_rnn_dim']
    E = hp['encoder_embedding_dim']

    dp = {}
    # attention RNNs: input pieces are [prenet_out (P), attention_context (E)]
    for tag in ('a', 'b'):
        wih = params[f'{tag}rnn_wih']
        dp[f'{tag}rnn_wx'] = _gate_major(wih[:P], A)
        dp[f'{tag}rnn_wc'] = _gate_major(wih[P:], A)
        dp[f'{tag}rnn_whh'] = _gate_major(params[f'{tag}rnn_whh'], A)
        dp[f'{tag}rnn_b'] = _gate_major(params[f'{tag}rnn_b'], A)
    # decoder RNN: input pieces are [h_char (A), ctx_char (E), h_bert (A), ctx_bert (E)]
    wih = params['drnn_wih']
    o1, o2, o3 = A, A + E, 2 * A + E
    dp['drnn_whc'] = _gate_major(wih[:o1], D)
    dp['drnn_wcc'] = _gate_major(wih[o1:o2], D)
    dp['drnn_whb'] = _gate_major(wih[o2:o3], D)
    dp['drnn_wcb'] = _gate_major(wih[o3:], D)
    dp['drnn_whh'] = _gate_major(params['drnn_whh'], D)
    dp['drnn_b'] = _gate_major(params['drnn_b'], D)
    # location conv fused with the location linear: (2, K, attn)
    dp['awcomb'] = jnp.einsum('fck,fa->cka', params['aconv_w'], params['aloc_w'])
    dp['bwcomb'] = jnp.einsum('fck,fa->cka', params['bconv_w'], params['bloc_w'])
    # projection + gate fused, split over [decoder_hidden (D), ctx_char (E), ctx_bert (E)]
    pg_w = jnp.concatenate([params['proj_w'], jnp.transpose(params['gate_w'])], axis=1)
    dp['pg_wd'] = pg_w[:D]
    dp['pg_wc'] = pg_w[D:D + E]
    dp['pg_wb'] = pg_w[D + E:]
    dp['pg_b'] = jnp.concatenate([params['proj_b'], params['gate_b']], axis=1)
    return dp


# ----------------------------------------------------------------------------
# Decoder.forward glue
# ----------------------------------------------------------------------------
def decoder_forward(params, hp, memory, embeddings, decoder_inputs,
                    memory_lengths, bert_lengths, dropout_key):
    B, T_enc, E = memory.shape
    T_bert = embeddings.shape[1]
    n_mel = hp['n_mel_channels']
    frames = hp['n_frames_per_step']
    M = n_mel * frames
    P = hp['prenet_dim']

    # parse_decoder_inputs: (B, n_mel, T_out) -> (T_dec, B, M)
    di = jnp.transpose(decoder_inputs, (0, 2, 1))
    T_dec = di.shape[1] // frames
    di = di.reshape(B, T_dec, M)
    di = jnp.transpose(di, (1, 0, 2))

    # get_go_frame + teacher forcing: only the T_dec frames actually consumed.
    go = jnp.zeros((1, B, M), jnp.float32)
    dec_in = jnp.concatenate([go, di[:T_dec - 1]], axis=0)   # (T_dec, B, M)

    # Prenets (dropout p=0.5, training=True). These (N,8)@(8,32) matmuls are far
    # below pallas_call fixed cost -> plain jnp (XLA) in the glue.
    k1, k2, k3, k4 = jax.random.split(dropout_key, 4)

    def drop_mask(k):
        return jax.random.bernoulli(k, 0.5, (T_dec, B, P)).astype(jnp.float32) * 2.0

    def prenet(x, w1, w2, m1, m2):
        h = jnp.maximum(jnp.einsum('tbm,mp->tbp', x, w1), 0.0) * m1
        return jnp.maximum(jnp.einsum('tbp,pq->tbq', h, w2), 0.0) * m2

    pn_char = prenet(dec_in, params['pre_c_w1'], params['pre_c_w2'],
                     drop_mask(k1), drop_mask(k2))
    pn_bert = prenet(dec_in, params['pre_b_w1'], params['pre_b_w2'],
                     drop_mask(k3), drop_mask(k4))

    # initialize_decoder_states: processed memories (memory_layer, no bias).
    pmem = jnp.einsum('bte,ea->bta', memory, params['mem_w'])
    pbert = jnp.einsum('bte,ea->bta', embeddings, params['mem_b_w'])

    # Pad encoder / bert time axes to lane-dense multiples of 128; the length
    # mask keeps the padded positions numerically inert.
    Tp_e = _round_up(T_enc, 128)
    Tp_b = _round_up(T_bert, 128)
    mem_p = jnp.pad(memory, ((0, 0), (0, Tp_e - T_enc), (0, 0)))
    pmem_p = jnp.pad(pmem, ((0, 0), (0, Tp_e - T_enc), (0, 0)))
    bert_p = jnp.pad(embeddings, ((0, 0), (0, Tp_b - T_bert), (0, 0)))
    pbert_p = jnp.pad(pbert, ((0, 0), (0, Tp_b - T_bert), (0, 0)))
    mask_mem = (jnp.arange(Tp_e)[None, :] < memory_lengths[:, None]).astype(jnp.float32)
    mask_bert = (jnp.arange(Tp_b)[None, :] < bert_lengths[:, None]).astype(jnp.float32)

    dp = _prepare_decode_params(params, hp)

    inputs = [
        pn_char, pn_bert,
        mem_p, pmem_p, bert_p, pbert_p, mask_mem, mask_bert,
        dp['arnn_wx'], dp['arnn_wc'], dp['arnn_whh'], dp['arnn_b'],
        dp['brnn_wx'], dp['brnn_wc'], dp['brnn_whh'], dp['brnn_b'],
        dp['drnn_whc'], dp['drnn_wcc'], dp['drnn_whb'], dp['drnn_wcb'],
        dp['drnn_whh'], dp['drnn_b'],
        params['aq_w'], dp['awcomb'], params['av'],
        params['bq_w'], dp['bwcomb'], params['bv'],
        dp['pg_wd'], dp['pg_wc'], dp['pg_wb'], dp['pg_b'],
    ]

    melgate, align, align_b = _decoder_loop(inputs, T_dec, B, M, Tp_e, Tp_b)

    # Unpack the fused mel+gate slab, drop the time padding.
    mel = melgate[:, :, :M]                  # (T_dec, B, M)
    gate = melgate[:, :, M]                  # (T_dec, B)
    align = align[:, :, :T_enc]
    align_b = align_b[:, :, :T_bert]

    # parse_decoder_outputs
    alignments = jnp.transpose(align, (1, 0, 2))                       # (B, T_dec, T_enc)
    alignments_bert = jnp.transpose(align_b, (1, 0, 2))                # (B, T_dec, T_bert)
    gate_outputs = jnp.transpose(gate, (1, 0))                         # (B, T_dec)
    mel_outputs = jnp.transpose(mel, (1, 0, 2)).reshape(B, T_dec * frames, n_mel)
    mel_outputs = jnp.transpose(mel_outputs, (0, 2, 1))                # (B, n_mel, T_out)
    return mel_outputs, gate_outputs, alignments, alignments_bert


def init_params(key, hp):
    M = hp['n_mel_channels'] * hp['n_frames_per_step']
    P = hp['prenet_dim']
    A = hp['attention_rnn_dim']
    D = hp['decoder_rnn_dim']
    E = hp['encoder_embedding_dim']
    attn = hp['attention_dim']
    Fn = hp['attention_location_n_filters']
    K = hp['attention_location_kernel_size']

    keys = iter(jax.random.split(key, 32))

    def w(shape, s=0.1):
        return s * jax.random.normal(next(keys), shape, dtype=jnp.float32)

    return dict(
        # prenets (Linear, bias=False), weights stored pre-transposed (in, out)
        pre_c_w1=w((M, P)), pre_c_w2=w((P, P)),
        pre_b_w1=w((M, P)), pre_b_w2=w((P, P)),
        # attention memory layers (Linear enc_dim -> attn_dim, bias=False)
        mem_w=w((E, attn)), mem_b_w=w((E, attn)),
        # attention_rnn / attention_rnn_bert (LSTMCell): W_ih^T, W_hh^T, b_ih+b_hh
        arnn_wih=w((P + E, 4 * A)), arnn_whh=w((A, 4 * A)), arnn_b=w((1, 4 * A)),
        brnn_wih=w((P + E, 4 * A)), brnn_whh=w((A, 4 * A)), brnn_b=w((1, 4 * A)),
        # decoder_rnn (LSTMCell)
        drnn_wih=w((2 * A + 2 * E, 4 * D)), drnn_whh=w((D, 4 * D)), drnn_b=w((1, 4 * D)),
        # location-sensitive attention (char / bert)
        aq_w=w((A, attn)), aconv_w=w((Fn, 2, K)), aloc_w=w((Fn, attn)), av=w((1, attn)),
        bq_w=w((A, attn)), bconv_w=w((Fn, 2, K)), bloc_w=w((Fn, attn)), bv=w((1, attn)),
        # linear_projection + gate_layer
        proj_w=w((D + 2 * E, M)), proj_b=w((1, M)),
        gate_w=w((1, D + 2 * E)), gate_b=w((1, 1)),
    )


if __name__ == "__main__":
    hp = dict(
        n_mel_channels=8, n_frames_per_step=1,
        encoder_embedding_dim=32, attention_rnn_dim=32,
        decoder_rnn_dim=32, prenet_dim=32,
        attention_dim=16, attention_location_n_filters=4,
        attention_location_kernel_size=5,
        max_decoder_steps=100, gate_threshold=0.5,
        p_attention_dropout=0.0, p_decoder_dropout=0.0,   # deterministic decode
        attention='LocationSensitiveAttention',
    )

    key = jax.random.PRNGKey(0)
    kp, km, kb, kd, kdrop = jax.random.split(key, 5)

    B, T_enc, T_bert, T_out = 2, 8, 8, 8
    E = hp['encoder_embedding_dim']
    memory = 0.1 * jax.random.normal(km, (B, T_enc, E), dtype=jnp.float32)
    embeddings = 0.1 * jax.random.normal(kb, (B, T_bert, E), dtype=jnp.float32)
    decoder_inputs = 0.1 * jax.random.normal(
        kd, (B, hp['n_mel_channels'], T_out), dtype=jnp.float32)
    memory_lengths = jnp.array([8, 6], dtype=jnp.int32)
    bert_lengths = jnp.array([8, 5], dtype=jnp.int32)

    params = init_params(kp, hp)

    mel, gate, align, align_b = decoder_forward(
        params, hp, memory, embeddings, decoder_inputs,
        memory_lengths, bert_lengths, kdrop)
    jax.block_until_ready((mel, gate, align, align_b))

    assert mel.shape == (B, hp['n_mel_channels'], T_out)
    assert gate.shape == (B, T_out)
    assert align.shape == (B, T_out, T_enc)
    assert align_b.shape == (B, T_out, T_bert)
    assert bool(jnp.all(jnp.isfinite(mel)))
    assert bool(jnp.all(jnp.isfinite(align)))
    print("KERNEL_OK")
</pallas_src>

<mosaic_0001>
module attributes {stable_mosaic.version = 11 : i64} {
  func.func @_decoder_kernel(%arg0: memref<8x2x32xf32, #tpu.memory_space<vmem>>, %arg1: memref<8x2x32xf32, #tpu.memory_space<vmem>>, %arg2: memref<2x128x32xf32, #tpu.memory_space<vmem>>, %arg3: memref<2x128x16xf32, #tpu.memory_space<vmem>>, %arg4: memref<2x128x32xf32, #tpu.memory_space<vmem>>, %arg5: memref<2x128x16xf32, #tpu.memory_space<vmem>>, %arg6: memref<2x128xf32, #tpu.memory_space<vmem>>, %arg7: memref<2x128xf32, #tpu.memory_space<vmem>>, %arg8: memref<4x32x32xf32, #tpu.memory_space<vmem>>, %arg9: memref<4x32x32xf32, #tpu.memory_space<vmem>>, %arg10: memref<4x32x32xf32, #tpu.memory_space<vmem>>, %arg11: memref<4x1x32xf32, #tpu.memory_space<vmem>>, %arg12: memref<4x32x32xf32, #tpu.memory_space<vmem>>, %arg13: memref<4x32x32xf32, #tpu.memory_space<vmem>>, %arg14: memref<4x32x32xf32, #tpu.memory_space<vmem>>, %arg15: memref<4x1x32xf32, #tpu.memory_space<vmem>>, %arg16: memref<4x32x32xf32, #tpu.memory_space<vmem>>, %arg17: memref<4x32x32xf32, #tpu.memory_space<vmem>>, %arg18: memref<4x32x32xf32, #tpu.memory_space<vmem>>, %arg19: memref<4x32x32xf32, #tpu.memory_space<vmem>>, %arg20: memref<4x32x32xf32, #tpu.memory_space<vmem>>, %arg21: memref<4x1x32xf32, #tpu.memory_space<vmem>>, %arg22: memref<32x16xf32, #tpu.memory_space<vmem>>, %arg23: memref<2x5x16xf32, #tpu.memory_space<vmem>>, %arg24: memref<1x16xf32, #tpu.memory_space<vmem>>, %arg25: memref<32x16xf32, #tpu.memory_space<vmem>>, %arg26: memref<2x5x16xf32, #tpu.memory_space<vmem>>, %arg27: memref<1x16xf32, #tpu.memory_space<vmem>>, %arg28: memref<32x9xf32, #tpu.memory_space<vmem>>, %arg29: memref<32x9xf32, #tpu.memory_space<vmem>>, %arg30: memref<32x9xf32, #tpu.memory_space<vmem>>, %arg31: memref<1x9xf32, #tpu.memory_space<vmem>>, %arg32: memref<8x2x9xf32, #tpu.memory_space<vmem>>, %arg33: memref<8x2x128xf32, #tpu.memory_space<vmem>>, %arg34: memref<8x2x128xf32, #tpu.memory_space<vmem>>) attributes {dimension_semantics = [], scalar_prefetch = 0 : i64, scratch_operands = 0 : i64, tpu.core_type = #tpu.core_type<tc>} {
    %cst = arith.constant 0.000000e+00 : f32
    %0 = vector.broadcast %cst : f32 to vector<2x32xf32>
    %cst_0 = arith.constant 0.000000e+00 : f32
    %1 = vector.broadcast %cst_0 : f32 to vector<2x32xf32>
    %cst_1 = arith.constant 0.000000e+00 : f32
    %2 = vector.broadcast %cst_1 : f32 to vector<2x32xf32>
    %cst_2 = arith.constant 0.000000e+00 : f32
    %3 = vector.broadcast %cst_2 : f32 to vector<2x32xf32>
    %cst_3 = arith.constant 0.000000e+00 : f32
    %4 = vector.broadcast %cst_3 : f32 to vector<2x32xf32>
    %cst_4 = arith.constant 0.000000e+00 : f32
    %5 = vector.broadcast %cst_4 : f32 to vector<2x32xf32>
    %cst_5 = arith.constant 0.000000e+00 : f32
    %6 = vector.broadcast %cst_5 : f32 to vector<2x128xf32>
    %cst_6 = arith.constant 0.000000e+00 : f32
    %7 = vector.broadcast %cst_6 : f32 to vector<2x128xf32>
    %cst_7 = arith.constant 0.000000e+00 : f32
    %8 = vector.broadcast %cst_7 : f32 to vector<2x32xf32>
    %cst_8 = arith.constant 0.000000e+00 : f32
    %9 = vector.broadcast %cst_8 : f32 to vector<2x128xf32>
    %cst_9 = arith.constant 0.000000e+00 : f32
    %10 = vector.broadcast %cst_9 : f32 to vector<2x128xf32>
    %cst_10 = arith.constant 0.000000e+00 : f32
    %11 = vector.broadcast %cst_10 : f32 to vector<2x32xf32>
    %c0_i32 = arith.constant 0 : i32
    %c8_i32 = arith.constant 8 : i32
    %12 = arith.addi %c0_i32, %c8_i32 : i32
    %c1_i32 = arith.constant 1 : i32
    %13:12 = scf.for %arg35 = %c0_i32 to %12 step %c1_i32 iter_args(%arg36 = %0, %arg37 = %1, %arg38 = %2, %arg39 = %3, %arg40 = %4, %arg41 = %5, %arg42 = %6, %arg43 = %7, %arg44 = %8, %arg45 = %9, %arg46 = %10, %arg47 = %11) -> (vector<2x32xf32>, vector<2x32xf32>, vector<2x32xf32>, vector<2x32xf32>, vector<2x32xf32>, vector<2x32xf32>, vector<2x128xf32>, vector<2x128xf32>, vector<2x32xf32>, vector<2x128xf32>, vector<2x128xf32>, vector<2x32xf32>)  : i32 {
      %14 = arith.index_cast %arg35 : i32 to index
      %c0 = arith.constant 0 : index
      %c0_12 = arith.constant 0 : index
      %15 = vector.load %arg0[%14, %c0, %c0_12] : memref<8x2x32xf32, #tpu.memory_space<vmem>>, vector<1x2x32xf32>
      %16 = vector.shape_cast %15 : vector<1x2x32xf32> to vector<2x32xf32>
      %17 = arith.index_cast %arg35 : i32 to index
      %c0_13 = arith.constant 0 : index
      %c0_14 = arith.constant 0 : index
      %18 = vector.load %arg1[%17, %c0_13, %c0_14] : memref<8x2x32xf32, #tpu.memory_space<vmem>>, vector<1x2x32xf32>
      %19 = vector.shape_cast %18 : vector<1x2x32xf32> to vector<2x32xf32>
      %c0_15 = arith.constant 0 : index
      %c0_16 = arith.constant 0 : index
      %c0_17 = arith.constant 0 : index
      %20 = vector.load %arg11[%c0_15, %c0_16, %c0_17] : memref<4x1x32xf32, #tpu.memory_space<vmem>>, vector<1x1x32xf32>
      %21 = vector.shape_cast %20 : vector<1x1x32xf32> to vector<1x32xf32>
      %c0_18 = arith.constant 0 : index
      %c0_19 = arith.constant 0 : index
      %c0_20 = arith.constant 0 : index
      %22 = vector.load %arg10[%c0_18, %c0_19, %c0_20] : memref<4x32x32xf32, #tpu.memory_space<vmem>>, vector<1x32x32xf32>
      %23 = vector.shape_cast %22 : vector<1x32x32xf32> to vector<32x32xf32>
      %cst_21 = arith.constant dense<0.000000e+00> : vector<2x32xf32>
      %24 = tpu.matmul %arg36, %23, %cst_21 {dimension_numbers = #tpu.dot_dimension_numbers<[1], [0], [0], [1], [0, 0, 1, 1], [], []>} : vector<2x32xf32>, vector<32x32xf32>, vector<2x32xf32> -> vector<2x32xf32>
      %25 = vector.broadcast %21 : vector<1x32xf32> to vector<2x32xf32>
      %26 = arith.addf %25, %24 : vector<2x32xf32>
      %c0_22 = arith.constant 0 : index
      %c0_23 = arith.constant 0 : index
      %c0_24 = arith.constant 0 : index
      %27 = vector.load %arg8[%c0_22, %c0_23, %c0_24] : memref<4x32x32xf32, #tpu.memory_space<vmem>>, vector<1x32x32xf32>
      %28 = vector.shape_cast %27 : vector<1x32x32xf32> to vector<32x32xf32>
      %cst_25 = arith.constant dense<0.000000e+00> : vector<2x32xf32>
      %29 = tpu.matmul %16, %28, %cst_25 {dimension_numbers = #tpu.dot_dimension_numbers<[1], [0], [0], [1], [0, 0, 1, 1], [], []>} : vector<2x32xf32>, vector<32x32xf32>, vector<2x32xf32> -> vector<2x32xf32>
      %30 = arith.addf %26, %29 : vector<2x32xf32>
      %c0_26 = arith.constant 0 : index
      %c0_27 = arith.constant 0 : index
      %c0_28 = arith.constant 0 : index
      %31 = vector.load %arg9[%c0_26, %c0_27, %c0_28] : memref<4x32x32xf32, #tpu.memory_space<vmem>>, vector<1x32x32xf32>
      %32 = vector.shape_cast %31 : vector<1x32x32xf32> to vector<32x32xf32>
      %cst_29 = arith.constant dense<0.000000e+00> : vector<2x32xf32>
      %33 = tpu.matmul %arg44, %32, %cst_29 {dimension_numbers = #tpu.dot_dimension_numbers<[1], [0], [0], [1], [0, 0, 1, 1], [], []>} : vector<2x32xf32>, vector<32x32xf32>, vector<2x32xf32> -> vector<2x32xf32>
      %34 = arith.addf %30, %33 : vector<2x32xf32>
      %35 = arith.negf %34 : vector<2x32xf32>
      %36 = math.exp %35 : vector<2x32xf32>
      %cst_30 = arith.constant 1.000000e+00 : f32
      %37 = vector.broadcast %cst_30 : f32 to vector<2x32xf32>
      %38 = arith.addf %37, %36 : vector<2x32xf32>
      %39 = arith.divf %37, %38 : vector<2x32xf32>
      %c1 = arith.constant 1 : index
      %c0_31 = arith.constant 0 : index
      %c0_32 = arith.constant 0 : index
      %40 = vector.load %arg11[%c1, %c0_31, %c0_32] : memref<4x1x32xf32, #tpu.memory_space<vmem>>, vector<1x1x32xf32>
      %41 = vector.shape_cast %40 : vector<1x1x32xf32> to vector<1x32xf32>
      %c1_33 = arith.constant 1 : index
      %c0_34 = arith.constant 0 : index
      %c0_35 = arith.constant 0 : index
      %42 = vector.load %arg10[%c1_33, %c0_34, %c0_35] : memref<4x32x32xf32, #tpu.memory_space<vmem>>, vector<1x32x32xf32>
      %43 = vector.shape_cast %42 : vector<1x32x32xf32> to vector<32x32xf32>
      %cst_36 = arith.constant dense<0.000000e+00> : vector<2x32xf32>
      %44 = tpu.matmul %arg36, %43, %cst_36 {dimension_numbers = #tpu.dot_dimension_numbers<[1], [0], [0], [1], [0, 0, 1, 1], [], []>} : vector<2x32xf32>, vector<32x32xf32>, vector<2x32xf32> -> vector<2x32xf32>
      %45 = vector.broadcast %41 : vector<1x32xf32> to vector<2x32xf32>
      %46 = arith.addf %45, %44 : vector<2x32xf32>
      %c1_37 = arith.constant 1 : index
      %c0_38 = arith.constant 0 : index
      %c0_39 = arith.constant 0 : index
      %47 = vector.load %arg8[%c1_37, %c0_38, %c0_39] : memref<4x32x32xf32, #tpu.memory_space<vmem>>, vector<1x32x32xf32>
      %48 = vector.shape_cast %47 : vector<1x32x32xf32> to vector<32x32xf32>
      %cst_40 = arith.constant dense<0.000000e+00> : vector<2x32xf32>
      %49 = tpu.matmul %16, %48, %cst_40 {dimension_numbers = #tpu.dot_dimension_numbers<[1], [0], [0], [1], [0, 0, 1, 1], [], []>} : vector<2x32xf32>, vector<32x32xf32>, vector<2x32xf32> -> vector<2x32xf32>
      %50 = arith.addf %46, %49 : vector<2x32xf32>
      %c1_41 = arith.constant 1 : index
      %c0_42 = arith.constant 0 : index
      %c0_43 = arith.constant 0 : index
      %51 = vector.load %arg9[%c1_41, %c0_42, %c0_43] : memref<4x32x32xf32, #tpu.memory_space<vmem>>, vector<1x32x32xf32>
      %52 = vector.shape_cast %51 : vector<1x32x32xf32> to vector<32x32xf32>
      %cst_44 = arith.constant dense<0.000000e+00> : vector<2x32xf32>
      %53 = tpu.matmul %arg44, %52, %cst_44 {dimension_numbers = #tpu.dot_dimension_numbers<[1], [0], [0], [1], [0, 0, 1, 1], [], []>} : vector<2x32xf32>, vector<32x32xf32>, vector<2x32xf32> -> vector<2x32xf32>
      %54 = arith.addf %50, %53 : vector<2x32xf32>
      %55 = arith.negf %54 : vector<2x32xf32>
      %56 = math.exp %55 : vector<2x32xf32>
      %cst_45 = arith.constant 1.000000e+00 : f32
      %57 = vector.broadcast %cst_45 : f32 to vector<2x32xf32>
      %58 = arith.addf %57, %56 : vector<2x32xf32>
      %59 = arith.divf %57, %58 : vector<2x32xf32>
      %c2 = arith.constant 2 : index
      %c0_46 = arith.constant 0 : index
      %c0_47 = arith.constant 0 : index
      %60 = vector.load %arg11[%c2, %c0_46, %c0_47] : memref<4x1x32xf32, #tpu.memory_space<vmem>>, vector<1x1x32xf32>
      %61 = vector.shape_cast %60 : vector<1x1x32xf32> to vector<1x32xf32>
      %c2_48 = arith.constant 2 : index
      %c0_49 = arith.constant 0 : index
      %c0_50 = arith.constant 0 : index
      %62 = vector.load %arg10[%c2_48, %c0_49, %c0_50] : memref<4x32x32xf32, #tpu.memory_space<vmem>>, vector<1x32x32xf32>
      %63 = vector.shape_cast %62 : vector<1x32x32xf32> to vector<32x32xf32>
      %cst_51 = arith.constant dense<0.000000e+00> : vector<2x32xf32>
      %64 = tpu.matmul %arg36, %63, %cst_51 {dimension_numbers = #tpu.dot_dimension_numbers<[1], [0], [0], [1], [0, 0, 1, 1], [], []>} : vector<2x32xf32>, vector<32x32xf32>, vector<2x32xf32> -> vector<2x32xf32>
      %65 = vector.broadcast %61 : vector<1x32xf32> to vector<2x32xf32>
      %66 = arith.addf %65, %64 : vector<2x32xf32>
      %c2_52 = arith.constant 2 : index
      %c0_53 = arith.constant 0 : index
      %c0_54 = arith.constant 0 : index
      %67 = vector.load %arg8[%c2_52, %c0_53, %c0_54] : memref<4x32x32xf32, #tpu.memory_space<vmem>>, vector<1x32x32xf32>
      %68 = vector.shape_cast %67 : vector<1x32x32xf32> to vector<32x32xf32>
      %cst_55 = arith.constant dense<0.000000e+00> : vector<2x32xf32>
      %69 = tpu.matmul %16, %68, %cst_55 {dimension_numbers = #tpu.dot_dimension_numbers<[1], [0], [0], [1], [0, 0, 1, 1], [], []>} : vector<2x32xf32>, vector<32x32xf32>, vector<2x32xf32> -> vector<2x32xf32>
      %70 = arith.addf %66, %69 : vector<2x32xf32>
      %c2_56 = arith.constant 2 : index
      %c0_57 = arith.constant 0 : index
      %c0_58 = arith.constant 0 : index
      %71 = vector.load %arg9[%c2_56, %c0_57, %c0_58] : memref<4x32x32xf32, #tpu.memory_space<vmem>>, vector<1x32x32xf32>
      %72 = vector.shape_cast %71 : vector<1x32x32xf32> to vector<32x32xf32>
      %cst_59 = arith.constant dense<0.000000e+00> : vector<2x32xf32>
      %73 = tpu.matmul %arg44, %72, %cst_59 {dimension_numbers = #tpu.dot_dimension_numbers<[1], [0], [0], [1], [0, 0, 1, 1], [], []>} : vector<2x32xf32>, vector<32x32xf32>, vector<2x32xf32> -> vector<2x32xf32>
      %74 = arith.addf %70, %73 : vector<2x32xf32>
      %75 = math.tanh %74 : vector<2x32xf32>
      %c3 = arith.constant 3 : index
      %c0_60 = arith.constant 0 : index
      %c0_61 = arith.constant 0 : index
      %76 = vector.load %arg11[%c3, %c0_60, %c0_61] : memref<4x1x32xf32, #tpu.memory_space<vmem>>, vector<1x1x32xf32>
      %77 = vector.shape_cast %76 : vector<1x1x32xf32> to vector<1x32xf32>
      %c3_62 = arith.constant 3 : index
      %c0_63 = arith.constant 0 : index
      %c0_64 = arith.constant 0 : index
      %78 = vector.load %arg10[%c3_62, %c0_63, %c0_64] : memref<4x32x32xf32, #tpu.memory_space<vmem>>, vector<1x32x32xf32>
      %79 = vector.shape_cast %78 : vector<1x32x32xf32> to vector<32x32xf32>
      %cst_65 = arith.constant dense<0.000000e+00> : vector<2x32xf32>
      %80 = tpu.matmul %arg36, %79, %cst_65 {dimension_numbers = #tpu.dot_dimension_numbers<[1], [0], [0], [1], [0, 0, 1, 1], [], []>} : vector<2x32xf32>, vector<32x32xf32>, vector<2x32xf32> -> vector<2x32xf32>
      %81 = vector.broadcast %77 : vector<1x32xf32> to vector<2x32xf32>
      %82 = arith.addf %81, %80 : vector<2x32xf32>
      %c3_66 = arith.constant 3 : index
      %c0_67 = arith.constant 0 : index
      %c0_68 = arith.constant 0 : index
      %83 = vector.load %arg8[%c3_66, %c0_67, %c0_68] : memref<4x32x32xf32, #tpu.memory_space<vmem>>, vector<1x32x32xf32>
      %84 = vector.shape_cast %83 : vector<1x32x32xf32> to vector<32x32xf32>
      %cst_69 = arith.constant dense<0.000000e+00> : vector<2x32xf32>
      %85 = tpu.matmul %16, %84, %cst_69 {dimension_numbers = #tpu.dot_dimension_numbers<[1], [0], [0], [1], [0, 0, 1, 1], [], []>} : vector<2x32xf32>, vector<32x32xf32>, vector<2x32xf32> -> vector<2x32xf32>
      %86 = arith.addf %82, %85 : vector<2x32xf32>
      %c3_70 = arith.constant 3 : index
      %c0_71 = arith.constant 0 : index
      %c0_72 = arith.constant 0 : index
      %87 = vector.load %arg9[%c3_70, %c0_71, %c0_72] : memref<4x32x32xf32, #tpu.memory_space<vmem>>, vector<1x32x32xf32>
      %88 = vector.shape_cast %87 : vector<1x32x32xf32> to vector<32x32xf32>
      %cst_73 = arith.constant dense<0.000000e+00> : vector<2x32xf32>
      %89 = tpu.matmul %arg44, %88, %cst_73 {dimension_numbers = #tpu.dot_dimension_numbers<[1], [0], [0], [1], [0, 0, 1, 1], [], []>} : vector<2x32xf32>, vector<32x32xf32>, vector<2x32xf32> -> vector<2x32xf32>
      %90 = arith.addf %86, %89 : vector<2x32xf32>
      %91 = arith.negf %90 : vector<2x32xf32>
      %92 = math.exp %91 : vector<2x32xf32>
      %cst_74 = arith.constant 1.000000e+00 : f32
      %93 = vector.broadcast %cst_74 : f32 to vector<2x32xf32>
      %94 = arith.addf %93, %92 : vector<2x32xf32>
      %95 = arith.divf %93, %94 : vector<2x32xf32>
      %96 = arith.mulf %59, %arg37 : vector<2x32xf32>
      %97 = arith.mulf %39, %75 : vector<2x32xf32>
      %98 = arith.addf %96, %97 : vector<2x32xf32>
      %99 = math.tanh %98 : vector<2x32xf32>
      %100 = arith.mulf %95, %99 : vector<2x32xf32>
      %c0_75 = arith.constant 0 : index
      %c0_76 = arith.constant 0 : index
      %c0_77 = arith.constant 0 : index
      %101 = vector.load %arg15[%c0_75, %c0_76, %c0_77] : memref<4x1x32xf32, #tpu.memory_space<vmem>>, vector<1x1x32xf32>
      %102 = vector.shape_cast %101 : vector<1x1x32xf32> to vector<1x32xf32>
      %c0_78 = arith.constant 0 : index
      %c0_79 = arith.constant 0 : index
      %c0_80 = arith.constant 0 : index
      %103 = vector.load %arg14[%c0_78, %c0_79, %c0_80] : memref<4x32x32xf32, #tpu.memory_space<vmem>>, vector<1x32x32xf32>
      %104 = vector.shape_cast %103 : vector<1x32x32xf32> to vector<32x32xf32>
      %cst_81 = arith.constant dense<0.000000e+00> : vector<2x32xf32>
      %105 = tpu.matmul %arg38, %104, %cst_81 {dimension_numbers = #tpu.dot_dimension_numbers<[1], [0], [0], [1], [0, 0, 1, 1], [], []>} : vector<2x32xf32>, vector<32x32xf32>, vector<2x32xf32> -> vector<2x32xf32>
      %106 = vector.broadcast %102 : vector<1x32xf32> to vector<2x32xf32>
      %107 = arith.addf %106, %105 : vector<2x32xf32>
      %c0_82 = arith.constant 0 : index
      %c0_83 = arith.constant 0 : index
      %c0_84 = arith.constant 0 : index
      %108 = vector.load %arg12[%c0_82, %c0_83, %c0_84] : memref<4x32x32xf32, #tpu.memory_space<vmem>>, vector<1x32x32xf32>
      %109 = vector.shape_cast %108 : vector<1x32x32xf32> to vector<32x32xf32>
      %cst_85 = arith.constant dense<0.000000e+00> : vector<2x32xf32>
      %110 = tpu.matmul %19, %109, %cst_85 {dimension_numbers = #tpu.dot_dimension_numbers<[1], [0], [0], [1], [0, 0, 1, 1], [], []>} : vector<2x32xf32>, vector<32x32xf32>, vector<2x32xf32> -> vector<2x32xf32>
      %111 = arith.addf %107, %110 : vector<2x32xf32>
      %c0_86 = arith.constant 0 : index
      %c0_87 = arith.constant 0 : index
      %c0_88 = arith.constant 0 : index
      %112 = vector.load %arg13[%c0_86, %c0_87, %c0_88] : memref<4x32x32xf32, #tpu.memory_space<vmem>>, vector<1x32x32xf32>
      %113 = vector.shape_cast %112 : vector<1x32x32xf32> to vector<32x32xf32>
      %cst_89 = arith.constant dense<0.000000e+00> : vector<2x32xf32>
      %114 = tpu.matmul %arg47, %113, %cst_89 {dimension_numbers = #tpu.dot_dimension_numbers<[1], [0], [0], [1], [0, 0, 1, 1], [], []>} : vector<2x32xf32>, vector<32x32xf32>, vector<2x32xf32> -> vector<2x32xf32>
      %115 = arith.addf %111, %114 : vector<2x32xf32>
      %116 = arith.negf %115 : vector<2x32xf32>
      %117 = math.exp %116 : vector<2x32xf32>
      %cst_90 = arith.constant 1.000000e+00 : f32
      %118 = vector.broadcast %cst_90 : f32 to vector<2x32xf32>
      %119 = arith.addf %118, %117 : vector<2x32xf32>
      %120 = arith.divf %118, %119 : vector<2x32xf32>
      %c1_91 = arith.constant 1 : index
      %c0_92 = arith.constant 0 : index
      %c0_93 = arith.constant 0 : index
      %121 = vector.load %arg15[%c1_91, %c0_92, %c0_93] : memref<4x1x32xf32, #tpu.memory_space<vmem>>, vector<1x1x32xf32>
      %122 = vector.shape_cast %121 : vector<1x1x32xf32> to vector<1x32xf32>
      %c1_94 = arith.constant 1 : index
      %c0_95 = arith.constant 0 : index
      %c0_96 = arith.constant 0 : index
      %123 = vector.load %arg14[%c1_94, %c0_95, %c0_96] : memref<4x32x32xf32, #tpu.memory_space<vmem>>, vector<1x32x32xf32>
      %124 = vector.shape_cast %123 : vector<1x32x32xf32> to vector<32x32xf32>
      %cst_97 = arith.constant dense<0.000000e+00> : vector<2x32xf32>
      %125 = tpu.matmul %arg38, %124, %cst_97 {dimension_numbers = #tpu.dot_dimension_numbers<[1], [0], [0], [1], [0, 0, 1, 1], [], []>} : vector<2x32xf32>, vector<32x32xf32>, vector<2x32xf32> -> vector<2x32xf32>
      %126 = vector.broadcast %122 : vector<1x32xf32> to vector<2x32xf32>
      %127 = arith.addf %126, %125 : vector<2x32xf32>
      %c1_98 = arith.constant 1 : index
      %c0_99 = arith.constant 0 : index
      %c0_100 = arith.constant 0 : index
      %128 = vector.load %arg12[%c1_98, %c0_99, %c0_100] : memref<4x32x32xf32, #tpu.memory_space<vmem>>, vector<1x32x32xf32>
      %129 = vector.shape_cast %128 : vector<1x32x32xf32> to vector<32x32xf32>
      %cst_101 = arith.constant dense<0.000000e+00> : vector<2x32xf32>
      %130 = tpu.matmul %19, %129, %cst_101 {dimension_numbers = #tpu.dot_dimension_numbers<[1], [0], [0], [1], [0, 0, 1, 1], [], []>} : vector<2x32xf32>, vector<32x32xf32>, vector<2x32xf32> -> vector<2x32xf32>
      %131 = arith.addf %127, %130 : vector<2x32xf32>
      %c1_102 = arith.constant 1 : index
      %c0_103 = arith.constant 0 : index
      %c0_104 = arith.constant 0 : index
      %132 = vector.load %arg13[%c1_102, %c0_103, %c0_104] : memref<4x32x32xf32, #tpu.memory_space<vmem>>, vector<1x32x32xf32>
      %133 = vector.shape_cast %132 : vector<1x32x32xf32> to vector<32x32xf32>
      %cst_105 = arith.constant dense<0.000000e+00> : vector<2x32xf32>
      %134 = tpu.matmul %arg47, %133, %cst_105 {dimension_numbers = #tpu.dot_dimension_numbers<[1], [0], [0], [1], [0, 0, 1, 1], [], []>} : vector<2x32xf32>, vector<32x32xf32>, vector<2x32xf32> -> vector<2x32xf32>
      %135 = arith.addf %131, %134 : vector<2x32xf32>
      %136 = arith.negf %135 : vector<2x32xf32>
      %137 = math.exp %136 : vector<2x32xf32>
      %cst_106 = arith.constant 1.000000e+00 : f32
      %138 = vector.broadcast %cst_106 : f32 to vector<2x32xf32>
      %139 = arith.addf %138, %137 : vector<2x32xf32>
      %140 = arith.divf %138, %139 : vector<2x32xf32>
      %c2_107 = arith.constant 2 : index
      %c0_108 = arith.constant 0 : index
      %c0_109 = arith.constant 0 : index
      %141 = vector.load %arg15[%c2_107, %c0_108, %c0_109] : memref<4x1x32xf32, #tpu.memory_space<vmem>>, vector<1x1x32xf32>
      %142 = vector.shape_cast %141 : vector<1x1x32xf32> to vector<1x32xf32>
      %c2_110 = arith.constant 2 : index
      %c0_111 = arith.constant 0 : index
      %c0_112 = arith.constant 0 : index
      %143 = vector.load %arg14[%c2_110, %c0_111, %c0_112] : memref<4x32x32xf32, #tpu.memory_space<vmem>>, vector<1x32x32xf32>
      %144 = vector.shape_cast %143 : vector<1x32x32xf32> to vector<32x32xf32>
      %cst_113 = arith.constant dense<0.000000e+00> : vector<2x32xf32>
      %145 = tpu.matmul %arg38, %144, %cst_113 {dimension_numbers = #tpu.dot_dimension_numbers<[1], [0], [0], [1], [0, 0, 1, 1], [], []>} : vector<2x32xf32>, vector<32x32xf32>, vector<2x32xf32> -> vector<2x32xf32>
      %146 = vector.broadcast %142 : vector<1x32xf32> to vector<2x32xf32>
      %147 = arith.addf %146, %145 : vector<2x32xf32>
      %c2_114 = arith.constant 2 : index
      %c0_115 = arith.constant 0 : index
      %c0_116 = arith.constant 0 : index
      %148 = vector.load %arg12[%c2_114, %c0_115, %c0_116] : memref<4x32x32xf32, #tpu.memory_space<vmem>>, vector<1x32x32xf32>
      %149 = vector.shape_cast %148 : vector<1x32x32xf32> to vector<32x32xf32>
      %cst_117 = arith.constant dense<0.000000e+00> : vector<2x32xf32>
      %150 = tpu.matmul %19, %149, %cst_117 {dimension_numbers = #tpu.dot_dimension_numbers<[1], [0], [0], [1], [0, 0, 1, 1], [], []>} : vector<2x32xf32>, vector<32x32xf32>, vector<2x32xf32> -> vector<2x32xf32>
      %151 = arith.addf %147, %150 : vector<2x32xf32>
      %c2_118 = arith.constant 2 : index
      %c0_119 = arith.constant 0 : index
      %c0_120 = arith.constant 0 : index
      %152 = vector.load %arg13[%c2_118, %c0_119, %c0_120] : memref<4x32x32xf32, #tpu.memory_space<vmem>>, vector<1x32x32xf32>
      %153 = vector.shape_cast %152 : vector<1x32x32xf32> to vector<32x32xf32>
      %cst_121 = arith.constant dense<0.000000e+00> : vector<2x32xf32>
      %154 = tpu.matmul %arg47, %153, %cst_121 {dimension_numbers = #tpu.dot_dimension_numbers<[1], [0], [0], [1], [0, 0, 1, 1], [], []>} : vector<2x32xf32>, vector<32x32xf32>, vector<2x32xf32> -> vector<2x32xf32>
      %155 = arith.addf %151, %154 : vector<2x32xf32>
      %156 = math.tanh %155 : vector<2x32xf32>
      %c3_122 = arith.constant 3 : index
      %c0_123 = arith.constant 0 : index
      %c0_124 = arith.constant 0 : index
      %157 = vector.load %arg15[%c3_122, %c0_123, %c0_124] : memref<4x1x32xf32, #tpu.memory_space<vmem>>, vector<1x1x32xf32>
      %158 = vector.shape_cast %157 : vector<1x1x32xf32> to vector<1x32xf32>
      %c3_125 = arith.constant 3 : index
      %c0_126 = arith.constant 0 : index
      %c0_127 = arith.constant 0 : index
      %159 = vector.load %arg14[%c3_125, %c0_126, %c0_127] : memref<4x32x32xf32, #tpu.memory_space<vmem>>, vector<1x32x32xf32>
      %160 = vector.shape_cast %159 : vector<1x32x32xf32> to vector<32x32xf32>
      %cst_128 = arith.constant dense<0.000000e+00> : vector<2x32xf32>
      %161 = tpu.matmul %arg38, %160, %cst_128 {dimension_numbers = #tpu.dot_dimension_numbers<[1], [0], [0], [1], [0, 0, 1, 1], [], []>} : vector<2x32xf32>, vector<32x32xf32>, vector<2x32xf32> -> vector<2x32xf32>
      %162 = vector.broadcast %158 : vector<1x32xf32> to vector<2x32xf32>
      %163 = arith.addf %162, %161 : vector<2x32xf32>
      %c3_129 = arith.constant 3 : index
      %c0_130 = arith.constant 0 : index
      %c0_131 = arith.constant 0 : index
      %164 = vector.load %arg12[%c3_129, %c0_130, %c0_131] : memref<4x32x32xf32, #tpu.memory_space<vmem>>, vector<1x32x32xf32>
      %165 = vector.shape_cast %164 : vector<1x32x32xf32> to vector<32x32xf32>
      %cst_132 = arith.constant dense<0.000000e+00> : vector<2x32xf32>
      %166 = tpu.matmul %19, %165, %cst_132 {dimension_numbers = #tpu.dot_dimension_numbers<[1], [0], [0], [1], [0, 0, 1, 1], [], []>} : vector<2x32xf32>, vector<32x32xf32>, vector<2x32xf32> -> vector<2x32xf32>
      %167 = arith.addf %163, %166 : vector<2x32xf32>
      %c3_133 = arith.constant 3 : index
      %c0_134 = arith.constant 0 : index
      %c0_135 = arith.constant 0 : index
      %168 = vector.load %arg13[%c3_133, %c0_134, %c0_135] : memref<4x32x32xf32, #tpu.memory_space<vmem>>, vector<1x32x32xf32>
      %169 = vector.shape_cast %168 : vector<1x32x32xf32> to vector<32x32xf32>
      %cst_136 = arith.constant dense<0.000000e+00> : vector<2x32xf32>
      %170 = tpu.matmul %arg47, %169, %cst_136 {dimension_numbers = #tpu.dot_dimension_numbers<[1], [0], [0], [1], [0, 0, 1, 1], [], []>} : vector<2x32xf32>, vector<32x32xf32>, vector<2x32xf32> -> vector<2x32xf32>
      %171 = arith.addf %167, %170 : vector<2x32xf32>
      %172 = arith.negf %171 : vector<2x32xf32>
      %173 = math.exp %172 : vector<2x32xf32>
      %cst_137 = arith.constant 1.000000e+00 : f32
      %174 = vector.broadcast %cst_137 : f32 to vector<2x32xf32>
      %175 = arith.addf %174, %173 : vector<2x32xf32>
      %176 = arith.divf %174, %175 : vector<2x32xf32>
      %177 = arith.mulf %140, %arg39 : vector<2x32xf32>
      %178 = arith.mulf %120, %156 : vector<2x32xf32>
      %179 = arith.addf %177, %178 : vector<2x32xf32>
      %180 = math.tanh %179 : vector<2x32xf32>
      %181 = arith.mulf %176, %180 : vector<2x32xf32>
      %c0_138 = arith.constant 0 : index
      %c0_139 = arith.constant 0 : index
      %c0_140 = arith.constant 0 : index
      %182 = vector.load %arg2[%c0_138, %c0_139, %c0_140] : memref<2x128x32xf32, #tpu.memory_space<vmem>>, vector<2x128x32xf32>
      %c0_141 = arith.constant 0 : index
      %c0_142 = arith.constant 0 : index
      %c0_143 = arith.constant 0 : index
      %183 = vector.load %arg3[%c0_141, %c0_142, %c0_143] : memref<2x128x16xf32, #tpu.memory_space<vmem>>, vector<2x128x16xf32>
      %c0_144 = arith.constant 0 : index
      %c0_145 = arith.constant 0 : index
      %c0_146 = arith.constant 0 : index
      %184 = vector.load %arg23[%c0_144, %c0_145, %c0_146] : memref<2x5x16xf32, #tpu.memory_space<vmem>>, vector<2x5x16xf32>
      %c0_147 = arith.constant 0 : index
      %c0_148 = arith.constant 0 : index
      %185 = vector.load %arg22[%c0_147, %c0_148] : memref<32x16xf32, #tpu.memory_space<vmem>>, vector<32x16xf32>
      %cst_149 = arith.constant dense<0.000000e+00> : vector<2x16xf32>
      %186 = tpu.matmul %100, %185, %cst_149 {dimension_numbers = #tpu.dot_dimension_numbers<[1], [0], [0], [1], [0, 0, 1, 1], [], []>} : vector<2x32xf32>, vector<32x16xf32>, vector<2x16xf32> -> vector<2x16xf32>
      %187 = tpu.iota {dimensions = array<i32: 1>} : vector<1x128xi32>
      %cst_150 = arith.constant 0.000000e+00 : f32
      %188 = vector.broadcast %cst_150 : f32 to vector<2x128x16xf32>
      %c-2_i32 = arith.constant -2 : i32
      %189 = vector.broadcast %c-2_i32 : i32 to vector<1x128xi32>
      %190 = arith.addi %187, %189 : vector<1x128xi32>
      %c0_i32_151 = arith.constant 0 : i32
      %191 = vector.broadcast %c0_i32_151 : i32 to vector<1x128xi32>
      %192 = arith.cmpi sge, %190, %191 : vector<1x128xi32>
      %c-2_i32_152 = arith.constant -2 : i32
      %193 = vector.broadcast %c-2_i32_152 : i32 to vector<1x128xi32>
      %194 = arith.addi %187, %193 : vector<1x128xi32>
      %c128_i32 = arith.constant 128 : i32
      %195 = vector.broadcast %c128_i32 : i32 to vector<1x128xi32>
      %196 = arith.cmpi slt, %194, %195 : vector<1x128xi32>
      %197 = arith.andi %192, %196 : vector<1x128xi1>
      %c2_i32 = arith.constant 2 : i32
      %198 = tpu.dynamic_rotate %arg42 by %c2_i32 dim 1 : vector<2x128xf32>, i32 -> vector<2x128xf32>
      %cst_153 = arith.constant 0.000000e+00 : f32
      %199 = vector.shape_cast %197 : vector<1x128xi1> to vector<1x128xi1>
      %200 = vector.broadcast %199 : vector<1x128xi1> to vector<2x128xi1>
      %201 = vector.broadcast %cst_153 : f32 to vector<2x128xf32>
      %202 = arith.select %200, %198, %201 : vector<2x128xi1>, vector<2x128xf32>
      %203 = vector.shape_cast %202 : vector<2x128xf32> to vector<2x128x1xf32>
      %204 = vector.extract_strided_slice %184 {offsets = [0, 0, 0], sizes = [1, 1, 16], strides = [1, 1, 1]} : vector<2x5x16xf32> to vector<1x1x16xf32>
      %205 = vector.shape_cast %204 : vector<1x1x16xf32> to vector<16xf32>
      %206 = vector.shape_cast %205 : vector<16xf32> to vector<1x1x16xf32>
      %207 = vector.broadcast %203 : vector<2x128x1xf32> to vector<2x128x16xf32>
      %208 = vector.broadcast %206 : vector<1x1x16xf32> to vector<2x128x16xf32>
      %209 = arith.mulf %207, %208 : vector<2x128x16xf32>
      %210 = arith.addf %188, %209 : vector<2x128x16xf32>
      %c2_i32_154 = arith.constant 2 : i32
      %211 = tpu.dynamic_rotate %arg43 by %c2_i32_154 dim 1 : vector<2x128xf32>, i32 -> vector<2x128xf32>
      %cst_155 = arith.constant 0.000000e+00 : f32
      %212 = vector.shape_cast %197 : vector<1x128xi1> to vector<1x128xi1>
      %213 = vector.broadcast %212 : vector<1x128xi1> to vector<2x128xi1>
      %214 = vector.broadcast %cst_155 : f32 to vector<2x128xf32>
      %215 = arith.select %213, %211, %214 : vector<2x128xi1>, vector<2x128xf32>
      %216 = vector.shape_cast %215 : vector<2x128xf32> to vector<2x128x1xf32>
      %217 = vector.extract_strided_slice %184 {offsets = [1, 0, 0], sizes = [1, 1, 16], strides = [1, 1, 1]} : vector<2x5x16xf32> to vector<1x1x16xf32>
      %218 = vector.shape_cast %217 : vector<1x1x16xf32> to vector<16xf32>
      %219 = vector.shape_cast %218 : vector<16xf32> to vector<1x1x16xf32>
      %220 = vector.broadcast %216 : vector<2x128x1xf32> to vector<2x128x16xf32>
      %221 = vector.broadcast %219 : vector<1x1x16xf32> to vector<2x128x16xf32>
      %222 = arith.mulf %220, %221 : vector<2x128x16xf32>
      %223 = arith.addf %210, %222 : vector<2x128x16xf32>
      %c-1_i32 = arith.constant -1 : i32
      %224 = vector.broadcast %c-1_i32 : i32 to vector<1x128xi32>
      %225 = arith.addi %187, %224 : vector<1x128xi32>
      %c0_i32_156 = arith.constant 0 : i32
      %226 = vector.broadcast %c0_i32_156 : i32 to vector<1x128xi32>
      %227 = arith.cmpi sge, %225, %226 : vector<1x128xi32>
      %c-1_i32_157 = arith.constant -1 : i32
      %228 = vector.broadcast %c-1_i32_157 : i32 to vector<1x128xi32>
      %229 = arith.addi %187, %228 : vector<1x128xi32>
      %c128_i32_158 = arith.constant 128 : i32
      %230 = vector.broadcast %c128_i32_158 : i32 to vector<1x128xi32>
      %231 = arith.cmpi slt, %229, %230 : vector<1x128xi32>
      %232 = arith.andi %227, %231 : vector<1x128xi1>
      %c1_i32_159 = arith.constant 1 : i32
      %233 = tpu.dynamic_rotate %arg42 by %c1_i32_159 dim 1 : vector<2x128xf32>, i32 -> vector<2x128xf32>
      %cst_160 = arith.constant 0.000000e+00 : f32
      %234 = vector.shape_cast %232 : vector<1x128xi1> to vector<1x128xi1>
      %235 = vector.broadcast %234 : vector<1x128xi1> to vector<2x128xi1>
      %236 = vector.broadcast %cst_160 : f32 to vector<2x128xf32>
      %237 = arith.select %235, %233, %236 : vector<2x128xi1>, vector<2x128xf32>
      %238 = vector.shape_cast %237 : vector<2x128xf32> to vector<2x128x1xf32>
      %239 = vector.extract_strided_slice %184 {offsets = [0, 1, 0], sizes = [1, 1, 16], strides = [1, 1, 1]} : vector<2x5x16xf32> to vector<1x1x16xf32>
      %240 = vector.shape_cast %239 : vector<1x1x16xf32> to vector<16xf32>
      %241 = vector.shape_cast %240 : vector<16xf32> to vector<1x1x16xf32>
      %242 = vector.broadcast %238 : vector<2x128x1xf32> to vector<2x128x16xf32>
      %243 = vector.broadcast %241 : vector<1x1x16xf32> to vector<2x128x16xf32>
      %244 = arith.mulf %242, %243 : vector<2x128x16xf32>
      %245 = arith.addf %223, %244 : vector<2x128x16xf32>
      %c1_i32_161 = arith.constant 1 : i32
      %246 = tpu.dynamic_rotate %arg43 by %c1_i32_161 dim 1 : vector<2x128xf32>, i32 -> vector<2x128xf32>
      %cst_162 = arith.constant 0.000000e+00 : f32
      %247 = vector.shape_cast %232 : vector<1x128xi1> to vector<1x128xi1>
      %248 = vector.broadcast %247 : vector<1x128xi1> to vector<2x128xi1>
      %249 = vector.broadcast %cst_162 : f32 to vector<2x128xf32>
      %250 = arith.select %248, %246, %249 : vector<2x128xi1>, vector<2x128xf32>
      %251 = vector.shape_cast %250 : vector<2x128xf32> to vector<2x128x1xf32>
      %252 = vector.extract_strided_slice %184 {offsets = [1, 1, 0], sizes = [1, 1, 16], strides = [1, 1, 1]} : vector<2x5x16xf32> to vector<1x1x16xf32>
      %253 = vector.shape_cast %252 : vector<1x1x16xf32> to vector<16xf32>
      %254 = vector.shape_cast %253 : vector<16xf32> to vector<1x1x16xf32>
      %255 = vector.broadcast %251 : vector<2x128x1xf32> to vector<2x128x16xf32>
      %256 = vector.broadcast %254 : vector<1x1x16xf32> to vector<2x128x16xf32>
      %257 = arith.mulf %255, %256 : vector<2x128x16xf32>
      %258 = arith.addf %245, %257 : vector<2x128x16xf32>
      %c0_i32_163 = arith.constant 0 : i32
      %259 = vector.broadcast %c0_i32_163 : i32 to vector<1x128xi32>
      %260 = arith.addi %187, %259 : vector<1x128xi32>
      %c0_i32_164 = arith.constant 0 : i32
      %261 = vector.broadcast %c0_i32_164 : i32 to vector<1x128xi32>
      %262 = arith.cmpi sge, %260, %261 : vector<1x128xi32>
      %c0_i32_165 = arith.constant 0 : i32
      %263 = vector.broadcast %c0_i32_165 : i32 to vector<1x128xi32>
      %264 = arith.addi %187, %263 : vector<1x128xi32>
      %c128_i32_166 = arith.constant 128 : i32
      %265 = vector.broadcast %c128_i32_166 : i32 to vector<1x128xi32>
      %266 = arith.cmpi slt, %264, %265 : vector<1x128xi32>
      %267 = arith.andi %262, %266 : vector<1x128xi1>
      %c0_i32_167 = arith.constant 0 : i32
      %268 = tpu.dynamic_rotate %arg42 by %c0_i32_167 dim 1 : vector<2x128xf32>, i32 -> vector<2x128xf32>
      %cst_168 = arith.constant 0.000000e+00 : f32
      %269 = vector.shape_cast %267 : vector<1x128xi1> to vector<1x128xi1>
      %270 = vector.broadcast %269 : vector<1x128xi1> to vector<2x128xi1>
      %271 = vector.broadcast %cst_168 : f32 to vector<2x128xf32>
      %272 = arith.select %270, %268, %271 : vector<2x128xi1>, vector<2x128xf32>
      %273 = vector.shape_cast %272 : vector<2x128xf32> to vector<2x128x1xf32>
      %274 = vector.extract_strided_slice %184 {offsets = [0, 2, 0], sizes = [1, 1, 16], strides = [1, 1, 1]} : vector<2x5x16xf32> to vector<1x1x16xf32>
      %275 = vector.shape_cast %274 : vector<1x1x16xf32> to vector<16xf32>
      %276 = vector.shape_cast %275 : vector<16xf32> to vector<1x1x16xf32>
      %277 = vector.broadcast %273 : vector<2x128x1xf32> to vector<2x128x16xf32>
      %278 = vector.broadcast %276 : vector<1x1x16xf32> to vector<2x128x16xf32>
      %279 = arith.mulf %277, %278 : vector<2x128x16xf32>
      %280 = arith.addf %258, %279 : vector<2x128x16xf32>
      %c0_i32_169 = arith.constant 0 : i32
      %281 = tpu.dynamic_rotate %arg43 by %c0_i32_169 dim 1 : vector<2x128xf32>, i32 -> vector<2x128xf32>
      %cst_170 = arith.constant 0.000000e+00 : f32
      %282 = vector.shape_cast %267 : vector<1x128xi1> to vector<1x128xi1>
      %283 = vector.broadcast %282 : vector<1x128xi1> to vector<2x128xi1>
      %284 = vector.broadcast %cst_170 : f32 to vector<2x128xf32>
      %285 = arith.select %283, %281, %284 : vector<2x128xi1>, vector<2x128xf32>
      %286 = vector.shape_cast %285 : vector<2x128xf32> to vector<2x128x1xf32>
      %287 = vector.extract_strided_slice %184 {offsets = [1, 2, 0], sizes = [1, 1, 16], strides = [1, 1, 1]} : vector<2x5x16xf32> to vector<1x1x16xf32>
      %288 = vector.shape_cast %287 : vector<1x1x16xf32> to vector<16xf32>
      %289 = vector.shape_cast %288 : vector<16xf32> to vector<1x1x16xf32>
      %290 = vector.broadcast %286 : vector<2x128x1xf32> to vector<2x128x16xf32>
      %291 = vector.broadcast %289 : vector<1x1x16xf32> to vector<2x128x16xf32>
      %292 = arith.mulf %290, %291 : vector<2x128x16xf32>
      %293 = arith.addf %280, %292 : vector<2x128x16xf32>
      %c1_i32_171 = arith.constant 1 : i32
      %294 = vector.broadcast %c1_i32_171 : i32 to vector<1x128xi32>
      %295 = arith.addi %187, %294 : vector<1x128xi32>
      %c0_i32_172 = arith.constant 0 : i32
      %296 = vector.broadcast %c0_i32_172 : i32 to vector<1x128xi32>
      %297 = arith.cmpi sge, %295, %296 : vector<1x128xi32>
      %c1_i32_173 = arith.constant 1 : i32
      %298 = vector.broadcast %c1_i32_173 : i32 to vector<1x128xi32>
      %299 = arith.addi %187, %298 : vector<1x128xi32>
      %c128_i32_174 = arith.constant 128 : i32
      %300 = vector.broadcast %c128_i32_174 : i32 to vector<1x128xi32>
      %301 = arith.cmpi slt, %299, %300 : vector<1x128xi32>
      %302 = arith.andi %297, %301 : vector<1x128xi1>
      %c127_i32 = arith.constant 127 : i32
      %303 = tpu.dynamic_rotate %arg42 by %c127_i32 dim 1 : vector<2x128xf32>, i32 -> vector<2x128xf32>
      %cst_175 = arith.constant 0.000000e+00 : f32
      %304 = vector.shape_cast %302 : vector<1x128xi1> to vector<1x128xi1>
      %305 = vector.broadcast %304 : vector<1x128xi1> to vector<2x128xi1>
      %306 = vector.broadcast %cst_175 : f32 to vector<2x128xf32>
      %307 = arith.select %305, %303, %306 : vector<2x128xi1>, vector<2x128xf32>
      %308 = vector.shape_cast %307 : vector<2x128xf32> to vector<2x128x1xf32>
      %309 = vector.extract_strided_slice %184 {offsets = [0, 3, 0], sizes = [1, 1, 16], strides = [1, 1, 1]} : vector<2x5x16xf32> to vector<1x1x16xf32>
      %310 = vector.shape_cast %309 : vector<1x1x16xf32> to vector<16xf32>
      %311 = vector.shape_cast %310 : vector<16xf32> to vector<1x1x16xf32>
      %312 = vector.broadcast %308 : vector<2x128x1xf32> to vector<2x128x16xf32>
      %313 = vector.broadcast %311 : vector<1x1x16xf32> to vector<2x128x16xf32>
      %314 = arith.mulf %312, %313 : vector<2x128x16xf32>
      %315 = arith.addf %293, %314 : vector<2x128x16xf32>
      %c127_i32_176 = arith.constant 127 : i32
      %316 = tpu.dynamic_rotate %arg43 by %c127_i32_176 dim 1 : vector<2x128xf32>, i32 -> vector<2x128xf32>
      %cst_177 = arith.constant 0.000000e+00 : f32
      %317 = vector.shape_cast %302 : vector<1x128xi1> to vector<1x128xi1>
      %318 = vector.broadcast %317 : vector<1x128xi1> to vector<2x128xi1>
      %319 = vector.broadcast %cst_177 : f32 to vector<2x128xf32>
      %320 = arith.select %318, %316, %319 : vector<2x128xi1>, vector<2x128xf32>
      %321 = vector.shape_cast %320 : vector<2x128xf32> to vector<2x128x1xf32>
      %322 = vector.extract_strided_slice %184 {offsets = [1, 3, 0], sizes = [1, 1, 16], strides = [1, 1, 1]} : vector<2x5x16xf32> to vector<1x1x16xf32>
      %323 = vector.shape_cast %322 : vector<1x1x16xf32> to vector<16xf32>
      %324 = vector.shape_cast %323 : vector<16xf32> to vector<1x1x16xf32>
      %325 = vector.broadcast %321 : vector<2x128x1xf32> to vector<2x128x16xf32>
      %326 = vector.broadcast %324 : vector<1x1x16xf32> to vector<2x128x16xf32>
      %327 = arith.mulf %325, %326 : vector<2x128x16xf32>
      %328 = arith.addf %315, %327 : vector<2x128x16xf32>
      %c2_i32_178 = arith.constant 2 : i32
      %329 = vector.broadcast %c2_i32_178 : i32 to vector<1x128xi32>
      %330 = arith.addi %187, %329 : vector<1x128xi32>
      %c0_i32_179 = arith.constant 0 : i32
      %331 = vector.broadcast %c0_i32_179 : i32 to vector<1x128xi32>
      %332 = arith.cmpi sge, %330, %331 : vector<1x128xi32>
      %c2_i32_180 = arith.constant 2 : i32
      %333 = vector.broadcast %c2_i32_180 : i32 to vector<1x128xi32>
      %334 = arith.addi %187, %333 : vector<1x128xi32>
      %c128_i32_181 = arith.constant 128 : i32
      %335 = vector.broadcast %c128_i32_181 : i32 to vector<1x128xi32>
      %336 = arith.cmpi slt, %334, %335 : vector<1x128xi32>
      %337 = arith.andi %332, %336 : vector<1x128xi1>
      %c126_i32 = arith.constant 126 : i32
      %338 = tpu.dynamic_rotate %arg42 by %c126_i32 dim 1 : vector<2x128xf32>, i32 -> vector<2x128xf32>
      %cst_182 = arith.constant 0.000000e+00 : f32
      %339 = vector.shape_cast %337 : vector<1x128xi1> to vector<1x128xi1>
      %340 = vector.broadcast %339 : vector<1x128xi1> to vector<2x128xi1>
      %341 = vector.broadcast %cst_182 : f32 to vector<2x128xf32>
      %342 = arith.select %340, %338, %341 : vector<2x128xi1>, vector<2x128xf32>
      %343 = vector.shape_cast %342 : vector<2x128xf32> to vector<2x128x1xf32>
      %344 = vector.extract_strided_slice %184 {offsets = [0, 4, 0], sizes = [1, 1, 16], strides = [1, 1, 1]} : vector<2x5x16xf32> to vector<1x1x16xf32>
      %345 = vector.shape_cast %344 : vector<1x1x16xf32> to vector<16xf32>
      %346 = vector.shape_cast %345 : vector<16xf32> to vector<1x1x16xf32>
      %347 = vector.broadcast %343 : vector<2x128x1xf32> to vector<2x128x16xf32>
      %348 = vector.broadcast %346 : vector<1x1x16xf32> to vector<2x128x16xf32>
      %349 = arith.mulf %347, %348 : vector<2x128x16xf32>
      %350 = arith.addf %328, %349 : vector<2x128x16xf32>
      %c126_i32_183 = arith.constant 126 : i32
      %351 = tpu.dynamic_rotate %arg43 by %c126_i32_183 dim 1 : vector<2x128xf32>, i32 -> vector<2x128xf32>
      %cst_184 = arith.constant 0.000000e+00 : f32
      %352 = vector.shape_cast %337 : vector<1x128xi1> to vector<1x128xi1>
      %353 = vector.broadcast %352 : vector<1x128xi1> to vector<2x128xi1>
      %354 = vector.broadcast %cst_184 : f32 to vector<2x128xf32>
      %355 = arith.select %353, %351, %354 : vector<2x128xi1>, vector<2x128xf32>
      %356 = vector.shape_cast %355 : vector<2x128xf32> to vector<2x128x1xf32>
      %357 = vector.extract_strided_slice %184 {offsets = [1, 4, 0], sizes = [1, 1, 16], strides = [1, 1, 1]} : vector<2x5x16xf32> to vector<1x1x16xf32>
      %358 = vector.shape_cast %357 : vector<1x1x16xf32> to vector<16xf32>
      %359 = vector.shape_cast %358 : vector<16xf32> to vector<1x1x16xf32>
      %360 = vector.broadcast %356 : vector<2x128x1xf32> to vector<2x128x16xf32>
      %361 = vector.broadcast %359 : vector<1x1x16xf32> to vector<2x128x16xf32>
      %362 = arith.mulf %360, %361 : vector<2x128x16xf32>
      %363 = arith.addf %350, %362 : vector<2x128x16xf32>
      %364 = vector.shape_cast %186 : vector<2x16xf32> to vector<2x1x16xf32>
      %365 = vector.broadcast %364 : vector<2x1x16xf32> to vector<2x128x16xf32>
      %366 = arith.addf %365, %183 : vector<2x128x16xf32>
      %367 = arith.addf %366, %363 : vector<2x128x16xf32>
      %368 = math.tanh %367 : vector<2x128x16xf32>
      %c0_185 = arith.constant 0 : index
      %c0_186 = arith.constant 0 : index
      %369 = vector.load %arg24[%c0_185, %c0_186] : memref<1x16xf32, #tpu.memory_space<vmem>>, vector<1x16xf32>
      %370 = vector.shape_cast %369 : vector<1x16xf32> to vector<1x1x16xf32>
      %371 = vector.broadcast %370 : vector<1x1x16xf32> to vector<2x128x16xf32>
      %372 = arith.mulf %368, %371 : vector<2x128x16xf32>
      %cst_187 = arith.constant dense<0.000000e+00> : vector<2x128xf32>
      %373 = vector.multi_reduction <add>, %372, %cst_187 [2] : vector<2x128x16xf32> to vector<2x128xf32>
      %c0_188 = arith.constant 0 : index
      %c0_189 = arith.constant 0 : index
      %374 = vector.load %arg6[%c0_188, %c0_189] : memref<2x128xf32, #tpu.memory_space<vmem>>, vector<2x128xf32>
      %cst_190 = arith.constant 5.000000e-01 : f32
      %375 = vector.broadcast %cst_190 : f32 to vector<2x128xf32>
      %376 = arith.cmpf ogt, %374, %375 : vector<2x128xf32>
      %cst_191 = arith.constant -1.000000e+09 : f32
      %377 = vector.broadcast %cst_191 : f32 to vector<2x128xf32>
      %378 = arith.select %376, %373, %377 : vector<2x128xi1>, vector<2x128xf32>
      %cst_192 = arith.constant dense<0xFF800000> : vector<2xf32>
      %379 = vector.multi_reduction <maximumf>, %378, %cst_192 [1] : vector<2x128xf32> to vector<2xf32>
      %380 = vector.shape_cast %379 : vector<2xf32> to vector<2x1xf32>
      %381 = vector.broadcast %380 : vector<2x1xf32> to vector<2x128xf32>
      %382 = arith.subf %378, %381 : vector<2x128xf32>
      %383 = math.exp %382 : vector<2x128xf32>
      %cst_193 = arith.constant dense<0.000000e+00> : vector<2xf32>
      %384 = vector.multi_reduction <add>, %383, %cst_193 [1] : vector<2x128xf32> to vector<2xf32>
      %385 = vector.shape_cast %384 : vector<2xf32> to vector<2x1xf32>
      %386 = vector.broadcast %385 : vector<2x1xf32> to vector<2x128xf32>
      %387 = arith.divf %383, %386 : vector<2x128xf32>
      %388 = vector.shape_cast %387 : vector<2x128xf32> to vector<2x1x128xf32>
      "tpu.trace_start"() <{level = 10 : i32, message = "bqt,bte->bqe"}> : () -> ()
      %cst_194 = arith.constant dense<0.000000e+00> : vector<2x1x32xf32>
      %389 = tpu.matmul %388, %182, %cst_194 {dimension_numbers = #tpu.dot_dimension_numbers<[2], [1], [1], [2], [0, 0, 0, 1, 1, 2], [0], [0]>} : vector<2x1x128xf32>, vector<2x128x32xf32>, vector<2x1x32xf32> -> vector<2x1x32xf32>
      "tpu.trace_stop"() : () -> ()
      %390 = vector.shape_cast %389 : vector<2x1x32xf32> to vector<2x32xf32>
      %c0_195 = arith.constant 0 : index
      %c0_196 = arith.constant 0 : index
      %c0_197 = arith.constant 0 : index
      %391 = vector.load %arg4[%c0_195, %c0_196, %c0_197] : memref<2x128x32xf32, #tpu.memory_space<vmem>>, vector<2x128x32xf32>
      %c0_198 = arith.constant 0 : index
      %c0_199 = arith.constant 0 : index
      %c0_200 = arith.constant 0 : index
      %392 = vector.load %arg5[%c0_198, %c0_199, %c0_200] : memref<2x128x16xf32, #tpu.memory_space<vmem>>, vector<2x128x16xf32>
      %c0_201 = arith.constant 0 : index
      %c0_202 = arith.constant 0 : index
      %c0_203 = arith.constant 0 : index
      %393 = vector.load %arg26[%c0_201, %c0_202, %c0_203] : memref<2x5x16xf32, #tpu.memory_space<vmem>>, vector<2x5x16xf32>
      %c0_204 = arith.constant 0 : index
      %c0_205 = arith.constant 0 : index
      %394 = vector.load %arg25[%c0_204, %c0_205] : memref<32x16xf32, #tpu.memory_space<vmem>>, vector<32x16xf32>
      %cst_206 = arith.constant dense<0.000000e+00> : vector<2x16xf32>
      %395 = tpu.matmul %181, %394, %cst_206 {dimension_numbers = #tpu.dot_dimension_numbers<[1], [0], [0], [1], [0, 0, 1, 1], [], []>} : vector<2x32xf32>, vector<32x16xf32>, vector<2x16xf32> -> vector<2x16xf32>
      %396 = tpu.iota {dimensions = array<i32: 1>} : vector<1x128xi32>
      %cst_207 = arith.constant 0.000000e+00 : f32
      %397 = vector.broadcast %cst_207 : f32 to vector<2x128x16xf32>
      %c-2_i32_208 = arith.constant -2 : i32
      %398 = vector.broadcast %c-2_i32_208 : i32 to vector<1x128xi32>
      %399 = arith.addi %396, %398 : vector<1x128xi32>
      %c0_i32_209 = arith.constant 0 : i32
      %400 = vector.broadcast %c0_i32_209 : i32 to vector<1x128xi32>
      %401 = arith.cmpi sge, %399, %400 : vector<1x128xi32>
      %c-2_i32_210 = arith.constant -2 : i32
      %402 = vector.broadcast %c-2_i32_210 : i32 to vector<1x128xi32>
      %403 = arith.addi %396, %402 : vector<1x128xi32>
      %c128_i32_211 = arith.constant 128 : i32
      %404 = vector.broadcast %c128_i32_211 : i32 to vector<1x128xi32>
      %405 = arith.cmpi slt, %403, %404 : vector<1x128xi32>
      %406 = arith.andi %401, %405 : vector<1x128xi1>
      %c2_i32_212 = arith.constant 2 : i32
      %407 = tpu.dynamic_rotate %arg45 by %c2_i32_212 dim 1 : vector<2x128xf32>, i32 -> vector<2x128xf32>
      %cst_213 = arith.constant 0.000000e+00 : f32
      %408 = vector.shape_cast %406 : vector<1x128xi1> to vector<1x128xi1>
      %409 = vector.broadcast %408 : vector<1x128xi1> to vector<2x128xi1>
      %410 = vector.broadcast %cst_213 : f32 to vector<2x128xf32>
      %411 = arith.select %409, %407, %410 : vector<2x128xi1>, vector<2x128xf32>
      %412 = vector.shape_cast %411 : vector<2x128xf32> to vector<2x128x1xf32>
      %413 = vector.extract_strided_slice %393 {offsets = [0, 0, 0], sizes = [1, 1, 16], strides = [1, 1, 1]} : vector<2x5x16xf32> to vector<1x1x16xf32>
      %414 = vector.shape_cast %413 : vector<1x1x16xf32> to vector<16xf32>
      %415 = vector.shape_cast %414 : vector<16xf32> to vector<1x1x16xf32>
      %416 = vector.broadcast %412 : vector<2x128x1xf32> to vector<2x128x16xf32>
      %417 = vector.broadcast %415 : vector<1x1x16xf32> to vector<2x128x16xf32>
      %418 = arith.mulf %416, %417 : vector<2x128x16xf32>
      %419 = arith.addf %397, %418 : vector<2x128x16xf32>
      %c2_i32_214 = arith.constant 2 : i32
      %420 = tpu.dynamic_rotate %arg46 by %c2_i32_214 dim 1 : vector<2x128xf32>, i32 -> vector<2x128xf32>
      %cst_215 = arith.constant 0.000000e+00 : f32
      %421 = vector.shape_cast %406 : vector<1x128xi1> to vector<1x128xi1>
      %422 = vector.broadcast %421 : vector<1x128xi1> to vector<2x128xi1>
      %423 = vector.broadcast %cst_215 : f32 to vector<2x128xf32>
      %424 = arith.select %422, %420, %423 : vector<2x128xi1>, vector<2x128xf32>
      %425 = vector.shape_cast %424 : vector<2x128xf32> to vector<2x128x1xf32>
      %426 = vector.extract_strided_slice %393 {offsets = [1, 0, 0], sizes = [1, 1, 16], strides = [1, 1, 1]} : vector<2x5x16xf32> to vector<1x1x16xf32>
      %427 = vector.shape_cast %426 : vector<1x1x16xf32> to vector<16xf32>
      %428 = vector.shape_cast %427 : vector<16xf32> to vector<1x1x16xf32>
      %429 = vector.broadcast %425 : vector<2x128x1xf32> to vector<2x128x16xf32>
      %430 = vector.broadcast %428 : vector<1x1x16xf32> to vector<2x128x16xf32>
      %431 = arith.mulf %429, %430 : vector<2x128x16xf32>
      %432 = arith.addf %419, %431 : vector<2x128x16xf32>
      %c-1_i32_216 = arith.constant -1 : i32
      %433 = vector.broadcast %c-1_i32_216 : i32 to vector<1x128xi32>
      %434 = arith.addi %396, %433 : vector<1x128xi32>
      %c0_i32_217 = arith.constant 0 : i32
      %435 = vector.broadcast %c0_i32_217 : i32 to vector<1x128xi32>
      %436 = arith.cmpi sge, %434, %435 : vector<1x128xi32>
      %c-1_i32_218 = arith.constant -1 : i32
      %437 = vector.broadcast %c-1_i32_218 : i32 to vector<1x128xi32>
      %438 = arith.addi %396, %437 : vector<1x128xi32>
      %c128_i32_219 = arith.constant 128 : i32
      %439 = vector.broadcast %c128_i32_219 : i32 to vector<1x128xi32>
      %440 = arith.cmpi slt, %438, %439 : vector<1x128xi32>
      %441 = arith.andi %436, %440 : vector<1x128xi1>
      %c1_i32_220 = arith.constant 1 : i32
      %442 = tpu.dynamic_rotate %arg45 by %c1_i32_220 dim 1 : vector<2x128xf32>, i32 -> vector<2x128xf32>
      %cst_221 = arith.constant 0.000000e+00 : f32
      %443 = vector.shape_cast %441 : vector<1x128xi1> to vector<1x128xi1>
      %444 = vector.broadcast %443 : vector<1x128xi1> to vector<2x128xi1>
      %445 = vector.broadcast %cst_221 : f32 to vector<2x128xf32>
      %446 = arith.select %444, %442, %445 : vector<2x128xi1>, vector<2x128xf32>
      %447 = vector.shape_cast %446 : vector<2x128xf32> to vector<2x128x1xf32>
      %448 = vector.extract_strided_slice %393 {offsets = [0, 1, 0], sizes = [1, 1, 16], strides = [1, 1, 1]} : vector<2x5x16xf32> to vector<1x1x16xf32>
      %449 = vector.shape_cast %448 : vector<1x1x16xf32> to vector<16xf32>
      %450 = vector.shape_cast %449 : vector<16xf32> to vector<1x1x16xf32>
      %451 = vector.broadcast %447 : vector<2x128x1xf32> to vector<2x128x16xf32>
      %452 = vector.broadcast %450 : vector<1x1x16xf32> to vector<2x128x16xf32>
      %453 = arith.mulf %451, %452 : vector<2x128x16xf32>
      %454 = arith.addf %432, %453 : vector<2x128x16xf32>
      %c1_i32_222 = arith.constant 1 : i32
      %455 = tpu.dynamic_rotate %arg46 by %c1_i32_222 dim 1 : vector<2x128xf32>, i32 -> vector<2x128xf32>
      %cst_223 = arith.constant 0.000000e+00 : f32
      %456 = vector.shape_cast %441 : vector<1x128xi1> to vector<1x128xi1>
      %457 = vector.broadcast %456 : vector<1x128xi1> to vector<2x128xi1>
      %458 = vector.broadcast %cst_223 : f32 to vector<2x128xf32>
      %459 = arith.select %457, %455, %458 : vector<2x128xi1>, vector<2x128xf32>
      %460 = vector.shape_cast %459 : vector<2x128xf32> to vector<2x128x1xf32>
      %461 = vector.extract_strided_slice %393 {offsets = [1, 1, 0], sizes = [1, 1, 16], strides = [1, 1, 1]} : vector<2x5x16xf32> to vector<1x1x16xf32>
      %462 = vector.shape_cast %461 : vector<1x1x16xf32> to vector<16xf32>
      %463 = vector.shape_cast %462 : vector<16xf32> to vector<1x1x16xf32>
      %464 = vector.broadcast %460 : vector<2x128x1xf32> to vector<2x128x16xf32>
      %465 = vector.broadcast %463 : vector<1x1x16xf32> to vector<2x128x16xf32>
      %466 = arith.mulf %464, %465 : vector<2x128x16xf32>
      %467 = arith.addf %454, %466 : vector<2x128x16xf32>
      %c0_i32_224 = arith.constant 0 : i32
      %468 = vector.broadcast %c0_i32_224 : i32 to vector<1x128xi32>
      %469 = arith.addi %396, %468 : vector<1x128xi32>
      %c0_i32_225 = arith.constant 0 : i32
      %470 = vector.broadcast %c0_i32_225 : i32 to vector<1x128xi32>
      %471 = arith.cmpi sge, %469, %470 : vector<1x128xi32>
      %c0_i32_226 = arith.constant 0 : i32
      %472 = vector.broadcast %c0_i32_226 : i32 to vector<1x128xi32>
      %473 = arith.addi %396, %472 : vector<1x128xi32>
      %c128_i32_227 = arith.constant 128 : i32
      %474 = vector.broadcast %c128_i32_227 : i32 to vector<1x128xi32>
      %475 = arith.cmpi slt, %473, %474 : vector<1x128xi32>
      %476 = arith.andi %471, %475 : vector<1x128xi1>
      %c0_i32_228 = arith.constant 0 : i32
      %477 = tpu.dynamic_rotate %arg45 by %c0_i32_228 dim 1 : vector<2x128xf32>, i32 -> vector<2x128xf32>
      %cst_229 = arith.constant 0.000000e+00 : f32
      %478 = vector.shape_cast %476 : vector<1x128xi1> to vector<1x128xi1>
      %479 = vector.broadcast %478 : vector<1x128xi1> to vector<2x128xi1>
      %480 = vector.broadcast %cst_229 : f32 to vector<2x128xf32>
      %481 = arith.select %479, %477, %480 : vector<2x128xi1>, vector<2x128xf32>
      %482 = vector.shape_cast %481 : vector<2x128xf32> to vector<2x128x1xf32>
      %483 = vector.extract_strided_slice %393 {offsets = [0, 2, 0], sizes = [1, 1, 16], strides = [1, 1, 1]} : vector<2x5x16xf32> to vector<1x1x16xf32>
      %484 = vector.shape_cast %483 : vector<1x1x16xf32> to vector<16xf32>
      %485 = vector.shape_cast %484 : vector<16xf32> to vector<1x1x16xf32>
      %486 = vector.broadcast %482 : vector<2x128x1xf32> to vector<2x128x16xf32>
      %487 = vector.broadcast %485 : vector<1x1x16xf32> to vector<2x128x16xf32>
      %488 = arith.mulf %486, %487 : vector<2x128x16xf32>
      %489 = arith.addf %467, %488 : vector<2x128x16xf32>
      %c0_i32_230 = arith.constant 0 : i32
      %490 = tpu.dynamic_rotate %arg46 by %c0_i32_230 dim 1 : vector<2x128xf32>, i32 -> vector<2x128xf32>
      %cst_231 = arith.constant 0.000000e+00 : f32
      %491 = vector.shape_cast %476 : vector<1x128xi1> to vector<1x128xi1>
      %492 = vector.broadcast %491 : vector<1x128xi1> to vector<2x128xi1>
      %493 = vector.broadcast %cst_231 : f32 to vector<2x128xf32>
      %494 = arith.select %492, %490, %493 : vector<2x128xi1>, vector<2x128xf32>
      %495 = vector.shape_cast %494 : vector<2x128xf32> to vector<2x128x1xf32>
      %496 = vector.extract_strided_slice %393 {offsets = [1, 2, 0], sizes = [1, 1, 16], strides = [1, 1, 1]} : vector<2x5x16xf32> to vector<1x1x16xf32>
      %497 = vector.shape_cast %496 : vector<1x1x16xf32> to vector<16xf32>
      %498 = vector.shape_cast %497 : vector<16xf32> to vector<1x1x16xf32>
      %499 = vector.broadcast %495 : vector<2x128x1xf32> to vector<2x128x16xf32>
      %500 = vector.broadcast %498 : vector<1x1x16xf32> to vector<2x128x16xf32>
      %501 = arith.mulf %499, %500 : vector<2x128x16xf32>
      %502 = arith.addf %489, %501 : vector<2x128x16xf32>
      %c1_i32_232 = arith.constant 1 : i32
      %503 = vector.broadcast %c1_i32_232 : i32 to vector<1x128xi32>
      %504 = arith.addi %396, %503 : vector<1x128xi32>
      %c0_i32_233 = arith.constant 0 : i32
      %505 = vector.broadcast %c0_i32_233 : i32 to vector<1x128xi32>
      %506 = arith.cmpi sge, %504, %505 : vector<1x128xi32>
      %c1_i32_234 = arith.constant 1 : i32
      %507 = vector.broadcast %c1_i32_234 : i32 to vector<1x128xi32>
      %508 = arith.addi %396, %507 : vector<1x128xi32>
      %c128_i32_235 = arith.constant 128 : i32
      %509 = vector.broadcast %c128_i32_235 : i32 to vector<1x128xi32>
      %510 = arith.cmpi slt, %508, %509 : vector<1x128xi32>
      %511 = arith.andi %506, %510 : vector<1x128xi1>
      %c127_i32_236 = arith.constant 127 : i32
      %512 = tpu.dynamic_rotate %arg45 by %c127_i32_236 dim 1 : vector<2x128xf32>, i32 -> vector<2x128xf32>
      %cst_237 = arith.constant 0.000000e+00 : f32
      %513 = vector.shape_cast %511 : vector<1x128xi1> to vector<1x128xi1>
      %514 = vector.broadcast %513 : vector<1x128xi1> to vector<2x128xi1>
      %515 = vector.broadcast %cst_237 : f32 to vector<2x128xf32>
      %516 = arith.select %514, %512, %515 : vector<2x128xi1>, vector<2x128xf32>
      %517 = vector.shape_cast %516 : vector<2x128xf32> to vector<2x128x1xf32>
      %518 = vector.extract_strided_slice %393 {offsets = [0, 3, 0], sizes = [1, 1, 16], strides = [1, 1, 1]} : vector<2x5x16xf32> to vector<1x1x16xf32>
      %519 = vector.shape_cast %518 : vector<1x1x16xf32> to vector<16xf32>
      %520 = vector.shape_cast %519 : vector<16xf32> to vector<1x1x16xf32>
      %521 = vector.broadcast %517 : vector<2x128x1xf32> to vector<2x128x16xf32>
      %522 = vector.broadcast %520 : vector<1x1x16xf32> to vector<2x128x16xf32>
      %523 = arith.mulf %521, %522 : vector<2x128x16xf32>
      %524 = arith.addf %502, %523 : vector<2x128x16xf32>
      %c127_i32_238 = arith.constant 127 : i32
      %525 = tpu.dynamic_rotate %arg46 by %c127_i32_238 dim 1 : vector<2x128xf32>, i32 -> vector<2x128xf32>
      %cst_239 = arith.constant 0.000000e+00 : f32
      %526 = vector.shape_cast %511 : vector<1x128xi1> to vector<1x128xi1>
      %527 = vector.broadcast %526 : vector<1x128xi1> to vector<2x128xi1>
      %528 = vector.broadcast %cst_239 : f32 to vector<2x128xf32>
      %529 = arith.select %527, %525, %528 : vector<2x128xi1>, vector<2x128xf32>
      %530 = vector.shape_cast %529 : vector<2x128xf32> to vector<2x128x1xf32>
      %531 = vector.extract_strided_slice %393 {offsets = [1, 3, 0], sizes = [1, 1, 16], strides = [1, 1, 1]} : vector<2x5x16xf32> to vector<1x1x16xf32>
      %532 = vector.shape_cast %531 : vector<1x1x16xf32> to vector<16xf32>
      %533 = vector.shape_cast %532 : vector<16xf32> to vector<1x1x16xf32>
      %534 = vector.broadcast %530 : vector<2x128x1xf32> to vector<2x128x16xf32>
      %535 = vector.broadcast %533 : vector<1x1x16xf32> to vector<2x128x16xf32>
      %536 = arith.mulf %534, %535 : vector<2x128x16xf32>
      %537 = arith.addf %524, %536 : vector<2x128x16xf32>
      %c2_i32_240 = arith.constant 2 : i32
      %538 = vector.broadcast %c2_i32_240 : i32 to vector<1x128xi32>
      %539 = arith.addi %396, %538 : vector<1x128xi32>
      %c0_i32_241 = arith.constant 0 : i32
      %540 = vector.broadcast %c0_i32_241 : i32 to vector<1x128xi32>
      %541 = arith.cmpi sge, %539, %540 : vector<1x128xi32>
      %c2_i32_242 = arith.constant 2 : i32
      %542 = vector.broadcast %c2_i32_242 : i32 to vector<1x128xi32>
      %543 = arith.addi %396, %542 : vector<1x128xi32>
      %c128_i32_243 = arith.constant 128 : i32
      %544 = vector.broadcast %c128_i32_243 : i32 to vector<1x128xi32>
      %545 = arith.cmpi slt, %543, %544 : vector<1x128xi32>
      %546 = arith.andi %541, %545 : vector<1x128xi1>
      %c126_i32_244 = arith.constant 126 : i32
      %547 = tpu.dynamic_rotate %arg45 by %c126_i32_244 dim 1 : vector<2x128xf32>, i32 -> vector<2x128xf32>
      %cst_245 = arith.constant 0.000000e+00 : f32
      %548 = vector.shape_cast %546 : vector<1x128xi1> to vector<1x128xi1>
      %549 = vector.broadcast %548 : vector<1x128xi1> to vector<2x128xi1>
      %550 = vector.broadcast %cst_245 : f32 to vector<2x128xf32>
      %551 = arith.select %549, %547, %550 : vector<2x128xi1>, vector<2x128xf32>
      %552 = vector.shape_cast %551 : vector<2x128xf32> to vector<2x128x1xf32>
      %553 = vector.extract_strided_slice %393 {offsets = [0, 4, 0], sizes = [1, 1, 16], strides = [1, 1, 1]} : vector<2x5x16xf32> to vector<1x1x16xf32>
      %554 = vector.shape_cast %553 : vector<1x1x16xf32> to vector<16xf32>
      %555 = vector.shape_cast %554 : vector<16xf32> to vector<1x1x16xf32>
      %556 = vector.broadcast %552 : vector<2x128x1xf32> to vector<2x128x16xf32>
      %557 = vector.broadcast %555 : vector<1x1x16xf32> to vector<2x128x16xf32>
      %558 = arith.mulf %556, %557 : vector<2x128x16xf32>
      %559 = arith.addf %537, %558 : vector<2x128x16xf32>
      %c126_i32_246 = arith.constant 126 : i32
      %560 = tpu.dynamic_rotate %arg46 by %c126_i32_246 dim 1 : vector<2x128xf32>, i32 -> vector<2x128xf32>
      %cst_247 = arith.constant 0.000000e+00 : f32
      %561 = vector.shape_cast %546 : vector<1x128xi1> to vector<1x128xi1>
      %562 = vector.broadcast %561 : vector<1x128xi1> to vector<2x128xi1>
      %563 = vector.broadcast %cst_247 : f32 to vector<2x128xf32>
      %564 = arith.select %562, %560, %563 : vector<2x128xi1>, vector<2x128xf32>
      %565 = vector.shape_cast %564 : vector<2x128xf32> to vector<2x128x1xf32>
      %566 = vector.extract_strided_slice %393 {offsets = [1, 4, 0], sizes = [1, 1, 16], strides = [1, 1, 1]} : vector<2x5x16xf32> to vector<1x1x16xf32>
      %567 = vector.shape_cast %566 : vector<1x1x16xf32> to vector<16xf32>
      %568 = vector.shape_cast %567 : vector<16xf32> to vector<1x1x16xf32>
      %569 = vector.broadcast %565 : vector<2x128x1xf32> to vector<2x128x16xf32>
      %570 = vector.broadcast %568 : vector<1x1x16xf32> to vector<2x128x16xf32>
      %571 = arith.mulf %569, %570 : vector<2x128x16xf32>
      %572 = arith.addf %559, %571 : vector<2x128x16xf32>
      %573 = vector.shape_cast %395 : vector<2x16xf32> to vector<2x1x16xf32>
      %574 = vector.broadcast %573 : vector<2x1x16xf32> to vector<2x128x16xf32>
      %575 = arith.addf %574, %392 : vector<2x128x16xf32>
      %576 = arith.addf %575, %572 : vector<2x128x16xf32>
      %577 = math.tanh %576 : vector<2x128x16xf32>
      %c0_248 = arith.constant 0 : index
      %c0_249 = arith.constant 0 : index
      %578 = vector.load %arg27[%c0_248, %c0_249] : memref<1x16xf32, #tpu.memory_space<vmem>>, vector<1x16xf32>
      %579 = vector.shape_cast %578 : vector<1x16xf32> to vector<1x1x16xf32>
      %580 = vector.broadcast %579 : vector<1x1x16xf32> to vector<2x128x16xf32>
      %581 = arith.mulf %577, %580 : vector<2x128x16xf32>
      %cst_250 = arith.constant dense<0.000000e+00> : vector<2x128xf32>
      %582 = vector.multi_reduction <add>, %581, %cst_250 [2] : vector<2x128x16xf32> to vector<2x128xf32>
      %c0_251 = arith.constant 0 : index
      %c0_252 = arith.constant 0 : index
      %583 = vector.load %arg7[%c0_251, %c0_252] : memref<2x128xf32, #tpu.memory_space<vmem>>, vector<2x128xf32>
      %cst_253 = arith.constant 5.000000e-01 : f32
      %584 = vector.broadcast %cst_253 : f32 to vector<2x128xf32>
      %585 = arith.cmpf ogt, %583, %584 : vector<2x128xf32>
      %cst_254 = arith.constant -1.000000e+09 : f32
      %586 = vector.broadcast %cst_254 : f32 to vector<2x128xf32>
      %587 = arith.select %585, %582, %586 : vector<2x128xi1>, vector<2x128xf32>
      %cst_255 = arith.constant dense<0xFF800000> : vector<2xf32>
      %588 = vector.multi_reduction <maximumf>, %587, %cst_255 [1] : vector<2x128xf32> to vector<2xf32>
      %589 = vector.shape_cast %588 : vector<2xf32> to vector<2x1xf32>
      %590 = vector.broadcast %589 : vector<2x1xf32> to vector<2x128xf32>
      %591 = arith.subf %587, %590 : vector<2x128xf32>
      %592 = math.exp %591 : vector<2x128xf32>
      %cst_256 = arith.constant dense<0.000000e+00> : vector<2xf32>
      %593 = vector.multi_reduction <add>, %592, %cst_256 [1] : vector<2x128xf32> to vector<2xf32>
      %594 = vector.shape_cast %593 : vector<2xf32> to vector<2x1xf32>
      %595 = vector.broadcast %594 : vector<2x1xf32> to vector<2x128xf32>
      %596 = arith.divf %592, %595 : vector<2x128xf32>
      %597 = vector.shape_cast %596 : vector<2x128xf32> to vector<2x1x128xf32>
      "tpu.trace_start"() <{level = 10 : i32, message = "bqt,bte->bqe"}> : () -> ()
      %cst_257 = arith.constant dense<0.000000e+00> : vector<2x1x32xf32>
      %598 = tpu.matmul %597, %391, %cst_257 {dimension_numbers = #tpu.dot_dimension_numbers<[2], [1], [1], [2], [0, 0, 0, 1, 1, 2], [0], [0]>} : vector<2x1x128xf32>, vector<2x128x32xf32>, vector<2x1x32xf32> -> vector<2x1x32xf32>
      "tpu.trace_stop"() : () -> ()
      %599 = vector.shape_cast %598 : vector<2x1x32xf32> to vector<2x32xf32>
      %600 = arith.addf %arg43, %387 : vector<2x128xf32>
      %601 = arith.addf %arg46, %596 : vector<2x128xf32>
      %c0_258 = arith.constant 0 : index
      %c0_259 = arith.constant 0 : index
      %c0_260 = arith.constant 0 : index
      %602 = vector.load %arg21[%c0_258, %c0_259, %c0_260] : memref<4x1x32xf32, #tpu.memory_space<vmem>>, vector<1x1x32xf32>
      %603 = vector.shape_cast %602 : vector<1x1x32xf32> to vector<1x32xf32>
      %c0_261 = arith.constant 0 : index
      %c0_262 = arith.constant 0 : index
      %c0_263 = arith.constant 0 : index
      %604 = vector.load %arg20[%c0_261, %c0_262, %c0_263] : memref<4x32x32xf32, #tpu.memory_space<vmem>>, vector<1x32x32xf32>
      %605 = vector.shape_cast %604 : vector<1x32x32xf32> to vector<32x32xf32>
      %cst_264 = arith.constant dense<0.000000e+00> : vector<2x32xf32>
      %606 = tpu.matmul %arg40, %605, %cst_264 {dimension_numbers = #tpu.dot_dimension_numbers<[1], [0], [0], [1], [0, 0, 1, 1], [], []>} : vector<2x32xf32>, vector<32x32xf32>, vector<2x32xf32> -> vector<2x32xf32>
      %607 = vector.broadcast %603 : vector<1x32xf32> to vector<2x32xf32>
      %608 = arith.addf %607, %606 : vector<2x32xf32>
      %c0_265 = arith.constant 0 : index
      %c0_266 = arith.constant 0 : index
      %c0_267 = arith.constant 0 : index
      %609 = vector.load %arg16[%c0_265, %c0_266, %c0_267] : memref<4x32x32xf32, #tpu.memory_space<vmem>>, vector<1x32x32xf32>
      %610 = vector.shape_cast %609 : vector<1x32x32xf32> to vector<32x32xf32>
      %cst_268 = arith.constant dense<0.000000e+00> : vector<2x32xf32>
      %611 = tpu.matmul %100, %610, %cst_268 {dimension_numbers = #tpu.dot_dimension_numbers<[1], [0], [0], [1], [0, 0, 1, 1], [], []>} : vector<2x32xf32>, vector<32x32xf32>, vector<2x32xf32> -> vector<2x32xf32>
      %612 = arith.addf %608, %611 : vector<2x32xf32>
      %c0_269 = arith.constant 0 : index
      %c0_270 = arith.constant 0 : index
      %c0_271 = arith.constant 0 : index
      %613 = vector.load %arg17[%c0_269, %c0_270, %c0_271] : memref<4x32x32xf32, #tpu.memory_space<vmem>>, vector<1x32x32xf32>
      %614 = vector.shape_cast %613 : vector<1x32x32xf32> to vector<32x32xf32>
      %cst_272 = arith.constant dense<0.000000e+00> : vector<2x32xf32>
      %615 = tpu.matmul %390, %614, %cst_272 {dimension_numbers = #tpu.dot_dimension_numbers<[1], [0], [0], [1], [0, 0, 1, 1], [], []>} : vector<2x32xf32>, vector<32x32xf32>, vector<2x32xf32> -> vector<2x32xf32>
      %616 = arith.addf %612, %615 : vector<2x32xf32>
      %c0_273 = arith.constant 0 : index
      %c0_274 = arith.constant 0 : index
      %c0_275 = arith.constant 0 : index
      %617 = vector.load %arg18[%c0_273, %c0_274, %c0_275] : memref<4x32x32xf32, #tpu.memory_space<vmem>>, vector<1x32x32xf32>
      %618 = vector.shape_cast %617 : vector<1x32x32xf32> to vector<32x32xf32>
      %cst_276 = arith.constant dense<0.000000e+00> : vector<2x32xf32>
      %619 = tpu.matmul %181, %618, %cst_276 {dimension_numbers = #tpu.dot_dimension_numbers<[1], [0], [0], [1], [0, 0, 1, 1], [], []>} : vector<2x32xf32>, vector<32x32xf32>, vector<2x32xf32> -> vector<2x32xf32>
      %620 = arith.addf %616, %619 : vector<2x32xf32>
      %c0_277 = arith.constant 0 : index
      %c0_278 = arith.constant 0 : index
      %c0_279 = arith.constant 0 : index
      %621 = vector.load %arg19[%c0_277, %c0_278, %c0_279] : memref<4x32x32xf32, #tpu.memory_space<vmem>>, vector<1x32x32xf32>
      %622 = vector.shape_cast %621 : vector<1x32x32xf32> to vector<32x32xf32>
      %cst_280 = arith.constant dense<0.000000e+00> : vector<2x32xf32>
      %623 = tpu.matmul %599, %622, %cst_280 {dimension_numbers = #tpu.dot_dimension_numbers<[1], [0], [0], [1], [0, 0, 1, 1], [], []>} : vector<2x32xf32>, vector<32x32xf32>, vector<2x32xf32> -> vector<2x32xf32>
      %624 = arith.addf %620, %623 : vector<2x32xf32>
      %625 = arith.negf %624 : vector<2x32xf32>
      %626 = math.exp %625 : vector<2x32xf32>
      %cst_281 = arith.constant 1.000000e+00 : f32
      %627 = vector.broadcast %cst_281 : f32 to vector<2x32xf32>
      %628 = arith.addf %627, %626 : vector<2x32xf32>
      %629 = arith.divf %627, %628 : vector<2x32xf32>
      %c1_282 = arith.constant 1 : index
      %c0_283 = arith.constant 0 : index
      %c0_284 = arith.constant 0 : index
      %630 = vector.load %arg21[%c1_282, %c0_283, %c0_284] : memref<4x1x32xf32, #tpu.memory_space<vmem>>, vector<1x1x32xf32>
      %631 = vector.shape_cast %630 : vector<1x1x32xf32> to vector<1x32xf32>
      %c1_285 = arith.constant 1 : index
      %c0_286 = arith.constant 0 : index
      %c0_287 = arith.constant 0 : index
      %632 = vector.load %arg20[%c1_285, %c0_286, %c0_287] : memref<4x32x32xf32, #tpu.memory_space<vmem>>, vector<1x32x32xf32>
      %633 = vector.shape_cast %632 : vector<1x32x32xf32> to vector<32x32xf32>
      %cst_288 = arith.constant dense<0.000000e+00> : vector<2x32xf32>
      %634 = tpu.matmul %arg40, %633, %cst_288 {dimension_numbers = #tpu.dot_dimension_numbers<[1], [0], [0], [1], [0, 0, 1, 1], [], []>} : vector<2x32xf32>, vector<32x32xf32>, vector<2x32xf32> -> vector<2x32xf32>
      %635 = vector.broadcast %631 : vector<1x32xf32> to vector<2x32xf32>
      %636 = arith.addf %635, %634 : vector<2x32xf32>
      %c1_289 = arith.constant 1 : index
      %c0_290 = arith.constant 0 : index
      %c0_291 = arith.constant 0 : index
      %637 = vector.load %arg16[%c1_289, %c0_290, %c0_291] : memref<4x32x32xf32, #tpu.memory_space<vmem>>, vector<1x32x32xf32>
      %638 = vector.shape_cast %637 : vector<1x32x32xf32> to vector<32x32xf32>
      %cst_292 = arith.constant dense<0.000000e+00> : vector<2x32xf32>
      %639 = tpu.matmul %100, %638, %cst_292 {dimension_numbers = #tpu.dot_dimension_numbers<[1], [0], [0], [1], [0, 0, 1, 1], [], []>} : vector<2x32xf32>, vector<32x32xf32>, vector<2x32xf32> -> vector<2x32xf32>
      %640 = arith.addf %636, %639 : vector<2x32xf32>
      %c1_293 = arith.constant 1 : index
      %c0_294 = arith.constant 0 : index
      %c0_295 = arith.constant 0 : index
      %641 = vector.load %arg17[%c1_293, %c0_294, %c0_295] : memref<4x32x32xf32, #tpu.memory_space<vmem>>, vector<1x32x32xf32>
      %642 = vector.shape_cast %641 : vector<1x32x32xf32> to vector<32x32xf32>
      %cst_296 = arith.constant dense<0.000000e+00> : vector<2x32xf32>
      %643 = tpu.matmul %390, %642, %cst_296 {dimension_numbers = #tpu.dot_dimension_numbers<[1], [0], [0], [1], [0, 0, 1, 1], [], []>} : vector<2x32xf32>, vector<32x32xf32>, vector<2x32xf32> -> vector<2x32xf32>
      %644 = arith.addf %640, %643 : vector<2x32xf32>
      %c1_297 = arith.constant 1 : index
      %c0_298 = arith.constant 0 : index
      %c0_299 = arith.constant 0 : index
      %645 = vector.load %arg18[%c1_297, %c0_298, %c0_299] : memref<4x32x32xf32, #tpu.memory_space<vmem>>, vector<1x32x32xf32>
      %646 = vector.shape_cast %645 : vector<1x32x32xf32> to vector<32x32xf32>
      %cst_300 = arith.constant dense<0.000000e+00> : vector<2x32xf32>
      %647 = tpu.matmul %181, %646, %cst_300 {dimension_numbers = #tpu.dot_dimension_numbers<[1], [0], [0], [1], [0, 0, 1, 1], [], []>} : vector<2x32xf32>, vector<32x32xf32>, vector<2x32xf32> -> vector<2x32xf32>
      %648 = arith.addf %644, %647 : vector<2x32xf32>
      %c1_301 = arith.constant 1 : index
      %c0_302 = arith.constant 0 : index
      %c0_303 = arith.constant 0 : index
      %649 = vector.load %arg19[%c1_301, %c0_302, %c0_303] : memref<4x32x32xf32, #tpu.memory_space<vmem>>, vector<1x32x32xf32>
      %650 = vector.shape_cast %649 : vector<1x32x32xf32> to vector<32x32xf32>
      %cst_304 = arith.constant dense<0.000000e+00> : vector<2x32xf32>
      %651 = tpu.matmul %599, %650, %cst_304 {dimension_numbers = #tpu.dot_dimension_numbers<[1], [0], [0], [1], [0, 0, 1, 1], [], []>} : vector<2x32xf32>, vector<32x32xf32>, vector<2x32xf32> -> vector<2x32xf32>
      %652 = arith.addf %648, %651 : vector<2x32xf32>
      %653 = arith.negf %652 : vector<2x32xf32>
      %654 = math.exp %653 : vector<2x32xf32>
      %cst_305 = arith.constant 1.000000e+00 : f32
      %655 = vector.broadcast %cst_305 : f32 to vector<2x32xf32>
      %656 = arith.addf %655, %654 : vector<2x32xf32>
      %657 = arith.divf %655, %656 : vector<2x32xf32>
      %c2_306 = arith.constant 2 : index
      %c0_307 = arith.constant 0 : index
      %c0_308 = arith.constant 0 : index
      %658 = vector.load %arg21[%c2_306, %c0_307, %c0_308] : memref<4x1x32xf32, #tpu.memory_space<vmem>>, vector<1x1x32xf32>
      %659 = vector.shape_cast %658 : vector<1x1x32xf32> to vector<1x32xf32>
      %c2_309 = arith.constant 2 : index
      %c0_310 = arith.constant 0 : index
      %c0_311 = arith.constant 0 : index
      %660 = vector.load %arg20[%c2_309, %c0_310, %c0_311] : memref<4x32x32xf32, #tpu.memory_space<vmem>>, vector<1x32x32xf32>
      %661 = vector.shape_cast %660 : vector<1x32x32xf32> to vector<32x32xf32>
      %cst_312 = arith.constant dense<0.000000e+00> : vector<2x32xf32>
      %662 = tpu.matmul %arg40, %661, %cst_312 {dimension_numbers = #tpu.dot_dimension_numbers<[1], [0], [0], [1], [0, 0, 1, 1], [], []>} : vector<2x32xf32>, vector<32x32xf32>, vector<2x32xf32> -> vector<2x32xf32>
      %663 = vector.broadcast %659 : vector<1x32xf32> to vector<2x32xf32>
      %664 = arith.addf %663, %662 : vector<2x32xf32>
      %c2_313 = arith.constant 2 : index
      %c0_314 = arith.constant 0 : index
      %c0_315 = arith.constant 0 : index
      %665 = vector.load %arg16[%c2_313, %c0_314, %c0_315] : memref<4x32x32xf32, #tpu.memory_space<vmem>>, vector<1x32x32xf32>
      %666 = vector.shape_cast %665 : vector<1x32x32xf32> to vector<32x32xf32>
      %cst_316 = arith.constant dense<0.000000e+00> : vector<2x32xf32>
      %667 = tpu.matmul %100, %666, %cst_316 {dimension_numbers = #tpu.dot_dimension_numbers<[1], [0], [0], [1], [0, 0, 1, 1], [], []>} : vector<2x32xf32>, vector<32x32xf32>, vector<2x32xf32> -> vector<2x32xf32>
      %668 = arith.addf %664, %667 : vector<2x32xf32>
      %c2_317 = arith.constant 2 : index
      %c0_318 = arith.constant 0 : index
      %c0_319 = arith.constant 0 : index
      %669 = vector.load %arg17[%c2_317, %c0_318, %c0_319] : memref<4x32x32xf32, #tpu.memory_space<vmem>>, vector<1x32x32xf32>
      %670 = vector.shape_cast %669 : vector<1x32x32xf32> to vector<32x32xf32>
      %cst_320 = arith.constant dense<0.000000e+00> : vector<2x32xf32>
      %671 = tpu.matmul %390, %670, %cst_320 {dimension_numbers = #tpu.dot_dimension_numbers<[1], [0], [0], [1], [0, 0, 1, 1], [], []>} : vector<2x32xf32>, vector<32x32xf32>, vector<2x32xf32> -> vector<2x32xf32>
      %672 = arith.addf %668, %671 : vector<2x32xf32>
      %c2_321 = arith.constant 2 : index
      %c0_322 = arith.constant 0 : index
      %c0_323 = arith.constant 0 : index
      %673 = vector.load %arg18[%c2_321, %c0_322, %c0_323] : memref<4x32x32xf32, #tpu.memory_space<vmem>>, vector<1x32x32xf32>
      %674 = vector.shape_cast %673 : vector<1x32x32xf32> to vector<32x32xf32>
      %cst_324 = arith.constant dense<0.000000e+00> : vector<2x32xf32>
      %675 = tpu.matmul %181, %674, %cst_324 {dimension_numbers = #tpu.dot_dimension_numbers<[1], [0], [0], [1], [0, 0, 1, 1], [], []>} : vector<2x32xf32>, vector<32x32xf32>, vector<2x32xf32> -> vector<2x32xf32>
      %676 = arith.addf %672, %675 : vector<2x32xf32>
      %c2_325 = arith.constant 2 : index
      %c0_326 = arith.constant 0 : index
      %c0_327 = arith.constant 0 : index
      %677 = vector.load %arg19[%c2_325, %c0_326, %c0_327] : memref<4x32x32xf32, #tpu.memory_space<vmem>>, vector<1x32x32xf32>
      %678 = vector.shape_cast %677 : vector<1x32x32xf32> to vector<32x32xf32>
      %cst_328 = arith.constant dense<0.000000e+00> : vector<2x32xf32>
      %679 = tpu.matmul %599, %678, %cst_328 {dimension_numbers = #tpu.dot_dimension_numbers<[1], [0], [0], [1], [0, 0, 1, 1], [], []>} : vector<2x32xf32>, vector<32x32xf32>, vector<2x32xf32> -> vector<2x32xf32>
      %680 = arith.addf %676, %679 : vector<2x32xf32>
      %681 = math.tanh %680 : vector<2x32xf32>
      %c3_329 = arith.constant 3 : index
      %c0_330 = arith.constant 0 : index
      %c0_331 = arith.constant 0 : index
      %682 = vector.load %arg21[%c3_329, %c0_330, %c0_331] : memref<4x1x32xf32, #tpu.memory_space<vmem>>, vector<1x1x32xf32>
      %683 = vector.shape_cast %682 : vector<1x1x32xf32> to vector<1x32xf32>
      %c3_332 = arith.constant 3 : index
      %c0_333 = arith.constant 0 : index
      %c0_334 = arith.constant 0 : index
      %684 = vector.load %arg20[%c3_332, %c0_333, %c0_334] : memref<4x32x32xf32, #tpu.memory_space<vmem>>, vector<1x32x32xf32>
      %685 = vector.shape_cast %684 : vector<1x32x32xf32> to vector<32x32xf32>
      %cst_335 = arith.constant dense<0.000000e+00> : vector<2x32xf32>
      %686 = tpu.matmul %arg40, %685, %cst_335 {dimension_numbers = #tpu.dot_dimension_numbers<[1], [0], [0], [1], [0, 0, 1, 1], [], []>} : vector<2x32xf32>, vector<32x32xf32>, vector<2x32xf32> -> vector<2x32xf32>
      %687 = vector.broadcast %683 : vector<1x32xf32> to vector<2x32xf32>
      %688 = arith.addf %687, %686 : vector<2x32xf32>
      %c3_336 = arith.constant 3 : index
      %c0_337 = arith.constant 0 : index
      %c0_338 = arith.constant 0 : index
      %689 = vector.load %arg16[%c3_336, %c0_337, %c0_338] : memref<4x32x32xf32, #tpu.memory_space<vmem>>, vector<1x32x32xf32>
      %690 = vector.shape_cast %689 : vector<1x32x32xf32> to vector<32x32xf32>
      %cst_339 = arith.constant dense<0.000000e+00> : vector<2x32xf32>
      %691 = tpu.matmul %100, %690, %cst_339 {dimension_numbers = #tpu.dot_dimension_numbers<[1], [0], [0], [1], [0, 0, 1, 1], [], []>} : vector<2x32xf32>, vector<32x32xf32>, vector<2x32xf32> -> vector<2x32xf32>
      %692 = arith.addf %688, %691 : vector<2x32xf32>
      %c3_340 = arith.constant 3 : index
      %c0_341 = arith.constant 0 : index
      %c0_342 = arith.constant 0 : index
      %693 = vector.load %arg17[%c3_340, %c0_341, %c0_342] : memref<4x32x32xf32, #tpu.memory_space<vmem>>, vector<1x32x32xf32>
      %694 = vector.shape_cast %693 : vector<1x32x32xf32> to vector<32x32xf32>
      %cst_343 = arith.constant dense<0.000000e+00> : vector<2x32xf32>
      %695 = tpu.matmul %390, %694, %cst_343 {dimension_numbers = #tpu.dot_dimension_numbers<[1], [0], [0], [1], [0, 0, 1, 1], [], []>} : vector<2x32xf32>, vector<32x32xf32>, vector<2x32xf32> -> vector<2x32xf32>
      %696 = arith.addf %692, %695 : vector<2x32xf32>
      %c3_344 = arith.constant 3 : index
      %c0_345 = arith.constant 0 : index
      %c0_346 = arith.constant 0 : index
      %697 = vector.load %arg18[%c3_344, %c0_345, %c0_346] : memref<4x32x32xf32, #tpu.memory_space<vmem>>, vector<1x32x32xf32>
      %698 = vector.shape_cast %697 : vector<1x32x32xf32> to vector<32x32xf32>
      %cst_347 = arith.constant dense<0.000000e+00> : vector<2x32xf32>
      %699 = tpu.matmul %181, %698, %cst_347 {dimension_numbers = #tpu.dot_dimension_numbers<[1], [0], [0], [1], [0, 0, 1, 1], [], []>} : vector<2x32xf32>, vector<32x32xf32>, vector<2x32xf32> -> vector<2x32xf32>
      %700 = arith.addf %696, %699 : vector<2x32xf32>
      %c3_348 = arith.constant 3 : index
      %c0_349 = arith.constant 0 : index
      %c0_350 = arith.constant 0 : index
      %701 = vector.load %arg19[%c3_348, %c0_349, %c0_350] : memref<4x32x32xf32, #tpu.memory_space<vmem>>, vector<1x32x32xf32>
      %702 = vector.shape_cast %701 : vector<1x32x32xf32> to vector<32x32xf32>
      %cst_351 = arith.constant dense<0.000000e+00> : vector<2x32xf32>
      %703 = tpu.matmul %599, %702, %cst_351 {dimension_numbers = #tpu.dot_dimension_numbers<[1], [0], [0], [1], [0, 0, 1, 1], [], []>} : vector<2x32xf32>, vector<32x32xf32>, vector<2x32xf32> -> vector<2x32xf32>
      %704 = arith.addf %700, %703 : vector<2x32xf32>
      %705 = arith.negf %704 : vector<2x32xf32>
      %706 = math.exp %705 : vector<2x32xf32>
      %cst_352 = arith.constant 1.000000e+00 : f32
      %707 = vector.broadcast %cst_352 : f32 to vector<2x32xf32>
      %708 = arith.addf %707, %706 : vector<2x32xf32>
      %709 = arith.divf %707, %708 : vector<2x32xf32>
      %710 = arith.mulf %657, %arg41 : vector<2x32xf32>
      %711 = arith.mulf %629, %681 : vector<2x32xf32>
      %712 = arith.addf %710, %711 : vector<2x32xf32>
      %713 = math.tanh %712 : vector<2x32xf32>
      %714 = arith.mulf %709, %713 : vector<2x32xf32>
      %c0_353 = arith.constant 0 : index
      %c0_354 = arith.constant 0 : index
      %715 = vector.load %arg28[%c0_353, %c0_354] : memref<32x9xf32, #tpu.memory_space<vmem>>, vector<32x9xf32>
      %cst_355 = arith.constant dense<0.000000e+00> : vector<2x9xf32>
      %716 = tpu.matmul %714, %715, %cst_355 {dimension_numbers = #tpu.dot_dimension_numbers<[1], [0], [0], [1], [0, 0, 1, 1], [], []>} : vector<2x32xf32>, vector<32x9xf32>, vector<2x9xf32> -> vector<2x9xf32>
      %c0_356 = arith.constant 0 : index
      %c0_357 = arith.constant 0 : index
      %717 = vector.load %arg29[%c0_356, %c0_357] : memref<32x9xf32, #tpu.memory_space<vmem>>, vector<32x9xf32>
      %cst_358 = arith.constant dense<0.000000e+00> : vector<2x9xf32>
      %718 = tpu.matmul %390, %717, %cst_358 {dimension_numbers = #tpu.dot_dimension_numbers<[1], [0], [0], [1], [0, 0, 1, 1], [], []>} : vector<2x32xf32>, vector<32x9xf32>, vector<2x9xf32> -> vector<2x9xf32>
      %719 = arith.addf %716, %718 : vector<2x9xf32>
      %c0_359 = arith.constant 0 : index
      %c0_360 = arith.constant 0 : index
      %720 = vector.load %arg30[%c0_359, %c0_360] : memref<32x9xf32, #tpu.memory_space<vmem>>, vector<32x9xf32>
      %cst_361 = arith.constant dense<0.000000e+00> : vector<2x9xf32>
      %721 = tpu.matmul %599, %720, %cst_361 {dimension_numbers = #tpu.dot_dimension_numbers<[1], [0], [0], [1], [0, 0, 1, 1], [], []>} : vector<2x32xf32>, vector<32x9xf32>, vector<2x9xf32> -> vector<2x9xf32>
      %722 = arith.addf %719, %721 : vector<2x9xf32>
      %c0_362 = arith.constant 0 : index
      %c0_363 = arith.constant 0 : index
      %723 = vector.load %arg31[%c0_362, %c0_363] : memref<1x9xf32, #tpu.memory_space<vmem>>, vector<1x9xf32>
      %724 = vector.broadcast %723 : vector<1x9xf32> to vector<2x9xf32>
      %725 = arith.addf %722, %724 : vector<2x9xf32>
      %726 = arith.index_cast %arg35 : i32 to index
      %c0_364 = arith.constant 0 : index
      %c0_365 = arith.constant 0 : index
      %727 = vector.load %arg32[%726, %c0_364, %c0_365] : memref<8x2x9xf32, #tpu.memory_space<vmem>>, vector<1x2x9xf32>
      %728 = vector.shape_cast %727 : vector<1x2x9xf32> to vector<2x9xf32>
      %729 = vector.shape_cast %725 : vector<2x9xf32> to vector<1x2x9xf32>
      tpu.vector_store %arg32[%726, %c0_364, %c0_365], %729 {strides = array<i32>} : memref<8x2x9xf32, #tpu.memory_space<vmem>>, vector<1x2x9xf32>,
      %730 = arith.index_cast %arg35 : i32 to index
      %c0_366 = arith.constant 0 : index
      %c0_367 = arith.constant 0 : index
      %731 = vector.load %arg33[%730, %c0_366, %c0_367] : memref<8x2x128xf32, #tpu.memory_space<vmem>>, vector<1x2x128xf32>
      %732 = vector.shape_cast %731 : vector<1x2x128xf32> to vector<2x128xf32>
      %733 = vector.shape_cast %387 : vector<2x128xf32> to vector<1x2x128xf32>
      tpu.vector_store %arg33[%730, %c0_366, %c0_367], %733 {strides = array<i32>} : memref<8x2x128xf32, #tpu.memory_space<vmem>>, vector<1x2x128xf32>,
      %734 = arith.index_cast %arg35 : i32 to index
      %c0_368 = arith.constant 0 : index
      %c0_369 = arith.constant 0 : index
      %735 = vector.load %arg34[%734, %c0_368, %c0_369] : memref<8x2x128xf32, #tpu.memory_space<vmem>>, vector<1x2x128xf32>
      %736 = vector.shape_cast %735 : vector<1x2x128xf32> to vector<2x128xf32>
      %737 = vector.shape_cast %596 : vector<2x128xf32> to vector<1x2x128xf32>
      tpu.vector_store %arg34[%734, %c0_368, %c0_369], %737 {strides = array<i32>} : memref<8x2x128xf32, #tpu.memory_space<vmem>>, vector<1x2x128xf32>,
      scf.yield %100, %98, %181, %179, %714, %712, %387, %600, %390, %596, %601, %599 : vector<2x32xf32>, vector<2x32xf32>, vector<2x32xf32>, vector<2x32xf32>, vector<2x32xf32>, vector<2x32xf32>, vector<2x128xf32>, vector<2x128xf32>, vector<2x32xf32>, vector<2x128xf32>, vector<2x128xf32>, vector<2x32xf32>
    }
    %c8_i32_11 = arith.constant 8 : i32
    return
  }
}

</mosaic_0001>

<bundles_post_ra>
// kernel: tpu_custom_call.1
= control target key start
LH: loop header
LB: loop body
LE: loop exit
PB: predicated region body
PF: predicated region fallthrough
CT: control target
= control target key end

     0   :  { %s12270_s6 = smov 1   ;;  %s12271_s10 = smov 2   ;;  %s17915_s0 = inlined_call_operand.smem [shape: u32[35], index: -1, kind: input, shape index: {}] }
   0x1   :  { %s12334_s5 = sld [smem:[%s17915_s0]]   ;;  %s12272_s14 = smov 3  }
   0x2   :  { %s12339_s9 = sld [smem:[%s17915_s0 + %s12270_s6]]   ;;  %s12273_s18 = smov 4  }
   0x3   :  { %s12344_s13 = sld [smem:[%s17915_s0 + %s12271_s10]]   ;;  %s12274_s22 = smov 5  }
   0x4   :  { %s12349_s17 = sld [smem:[%s17915_s0 + %s12272_s14]]   ;;  %s12275_s26 = smov 6  }
   0x5   :  { %s12354_s21 = sld [smem:[%s17915_s0 + %s12273_s18]]   ;;  %s12276_s30 = smov 7  }
   0x6   :  { %s12359_s25 = sld [smem:[%s17915_s0 + %s12274_s22]]   ;;  %s12277_s4 = smov 8  }
   0x7   :  { %s12364_s29 = sld [smem:[%s17915_s0 + %s12275_s26]]   ;;  %s12278_s10 = smov 9  }
   0x8   :  { %s12369_s3 = sld [smem:[%s17915_s0 + %s12276_s30]]   ;;  %s12279_s15 = smov 10  }
   0x9   :  { %18037 = sst [smem:[#allocation24_spill]] %s12344_s13  ;;  %s12280_s20 = smov 11  }
   0xa   :  { %18038 = sst [smem:[#allocation25_spill]] %s12349_s17  ;;  %s12281_s26 = smov 12  }
   0xb   :  { %18039 = sst [smem:[#allocation26_spill]] %s12354_s21  ;;  %s12282_s1 = smov 13  }
   0xc   :  { %18040 = sst [smem:[#allocation27_spill]] %s12359_s25  ;;  %s12283_s7 = smov 14  }
   0xd   :  { %s12374_s8 = sld [smem:[%s17915_s0 + %s12277_s4]]   ;;  %s12285_s22 = smov 16  }
   0xe   :  { %s12379_s14 = sld [smem:[%s17915_s0 + %s12278_s10]]   ;;  %s12286_s28 = smov 17  }
   0xf   :  { %s12384_s19 = sld [smem:[%s17915_s0 + %s12279_s15]]   ;;  %s12284_s15 = smov 15  }
  0x10   :  { %s12389_s24 = sld [smem:[%s17915_s0 + %s12280_s20]]  }
  0x11   :  { %s12394_s30 = sld [smem:[%s17915_s0 + %s12281_s26]]  }
  0x12   :  { %s12399_s6 = sld [smem:[%s17915_s0 + %s12282_s1]]  }
  0x13   :  { %s12404_s12 = sld [smem:[%s17915_s0 + %s12283_s7]]   ;;  %s12287_s7 = smov 18  }
  0x14   :  { %s12409_s20 = sld [smem:[%s17915_s0 + %s12284_s15]]   ;;  %s12288_s15 = smov 19  }
  0x15   :  { %s12414_s27 = sld [smem:[%s17915_s0 + %s12285_s22]]   ;;  %s12289_s22 = smov 20  }
  0x16   :  { %s12419_s4 = sld [smem:[%s17915_s0 + %s12286_s28]]   ;;  %s12290_s28 = smov 21  }
  0x17   :  { %s12424_s21 = sld [smem:[%s17915_s0 + %s12287_s7]]   ;;  %s12291_s7 = smov 22  }
  0x18   :  { %s12429_s25 = sld [smem:[%s17915_s0 + %s12288_s15]]   ;;  %s12292_s15 = smov 23  }
  0x1b   :  { %18041 = sst [smem:[#allocation28_spill]] %s12414_s27 }
  0x1c   :  { %18042 = sst [smem:[#allocation29_spill]] %s12419_s4 }
  0x1d   :  { %18043 = sst [smem:[#allocation30_spill]] %s12424_s21 }
  0x1e   :  { %18044 = sst [smem:[#allocation31_spill]] %s12429_s25 }
  0x1f   :  { %s12434_s27 = sld [smem:[%s17915_s0 + %s12289_s22]]   ;;  %s12293_s22 = smov 24  }
  0x20   :  { %s12439_s4 = sld [smem:[%s17915_s0 + %s12290_s28]]   ;;  %s12294_s28 = smov 25  }
  0x21   :  { %s12444_s21 = sld [smem:[%s17915_s0 + %s12291_s7]]   ;;  %s12295_s7 = smov 26  }
  0x22   :  { %s12449_s25 = sld [smem:[%s17915_s0 + %s12292_s15]]   ;;  %s12296_s15 = smov 27  }
  0x23   :  { %s12459_s13 = sld [smem:[%s17915_s0 + %s12294_s28]]   ;;  %s12298_s28 = smov 29  }
  0x24   :  { %s12464_s17 = sld [smem:[%s17915_s0 + %s12295_s7]]   ;;  %s12299_s7 = smov 30  }
  0x25   :  { %18045 = sst [smem:[#allocation32_spill]] %s12434_s27 }
  0x26   :  { %s12454_s27 = sld [smem:[%s17915_s0 + %s12293_s22]]   ;;  %s12297_s22 = smov 28  }
  0x28   :  { %18046 = sst [smem:[#allocation33_spill]] %s12449_s25 }
  0x29   :  { %18048 = sst [smem:[#allocation35_spill]] %s12459_s13 }
  0x2a   :  { %18049 = sst [smem:[#allocation36_spill]] %s12464_s17 }
  0x2b   :  { %s12469_s25 = sld [smem:[%s17915_s0 + %s12296_s15]]   ;;  %s12300_s15 = smov 31  }
  0x2c   :  { %18047 = sst [smem:[#allocation34_spill]] %s12454_s27 }
  0x2d   :  { %s12474_s27 = sld [smem:[%s17915_s0 + %s12297_s22]]   ;;  %s12301_s22 = smov 32  }
  0x2e   :  { %s12479_s13 = sld [smem:[%s17915_s0 + %s12298_s28]]   ;;  %s12302_s28 = smov 33  }
  0x2f   :  { %s12484_s17 = sld [smem:[%s17915_s0 + %s12299_s7]]   ;;  %s12303_s7 = smov 34  }
  0x31   :  { %18050 = sst [smem:[#allocation37_spill]] %s12469_s25 }
  0x32   :  { %s12489_s25 = sld [smem:[%s17915_s0 + %s12300_s15]]  }
  0x33   :  { %18051 = sst [smem:[#allocation38_spill]] %s12474_s27 }
  0x34   :  { %18052 = sst [smem:[#allocation39_spill]] %s12479_s13 }
  0x35   :  { %18053 = sst [smem:[#allocation40_spill]] %s12484_s17 }
  0x36   :  { %s12494_s27 = sld [smem:[%s17915_s0 + %s12301_s22]]  }
  0x37   :  { %s12499_s13 = sld [smem:[%s17915_s0 + %s12302_s28]]  }
  0x38   :  { %s12504_s17 = sld [smem:[%s17915_s0 + %s12303_s7]]  }
  0x3c   :  { %18054 = sst [smem:[#allocation41_spill]] %s12494_s27 }
  0x3d   :  { %18055 = sst [smem:[#allocation42_spill]] %s12499_s13 }
  0x3e   :  { %18056 = sst [smem:[#allocation43_spill]] %s12504_s17 }
  0x3f   :  { %75 = vsyncpa [#allocation3], 0 }
  0x40   :  { %76 = vsyncpa [#allocation6], 0 }
  0x41   :  { %77 = vsyncpa [#allocation9], 0 }
  0x42   :  { %78 = vsyncpa [#allocation12], 0 }
  0x43   :  { %79 = vsyncpa [#allocation4], 0 }
  0x44   :  { %80 = vsyncpa [#allocation16], 0  ;;  %s12304_s15 = smov [#allocation5]   ;;  %s12305_s18 = smov [#allocation8]  }
  0x45   :  { %s98_s16 = sshll.u32 %s12304_s15, 4  ;;  %s129_s22 = sshll.u32 %s12305_s18, 4  ;;  %s99_s16 = int_to_ptr.vmem [resolvable:$true] %s98_s16  ;;  %s130_s22 = int_to_ptr.vmem [resolvable:$true] %s129_s22 }
  0x46   :  { %s11918_s23 = scalar_lea.hbm %s12339_s9, 256 }
  0x47   :  { %p11919_p0 = scmp.ne.s32.totalorder %s12339_s9, %s11918_s23  ;;  %p11922_p1 = scmp.lt.u32.totalorder %s11918_s23, %s12339_s9 }
  0x49   :  { %p11924_p2 = pnand %p11922_p1, %p11919_p0 }
  0x4b   :  { %11927 = shalt.err (!%p11924_p2)
}
  0x4c   :  { %s11928_s0 = scalar_lea.vmem %s99_s16, 256  ;;  %p11933_p4 = scmp.lt.s32.totalorder %s99_s16, %s99_s16 }
  0x4d   :  { %p11929_p3 = scmp.ne.s32.totalorder %s99_s16, %s11928_s0  ;;  %p11934_p5 = scmp.lt.s32.totalorder %s11928_s0, %s11928_s0 }
  0x4f   :  { %p11935_p6 = por %p11934_p5, %p11933_p4 }
  0x51   :  { %p11936_p7 = pnand %p11935_p6, %p11929_p3 }
  0x53   :  { %11939 = shalt.err (!%p11936_p7)
}
  0x54   :  { %s18029_s26 = smov 32   ;;  %s18031_s28 = smov 2  }
  0x55   :  { %104 = dma.hbm_to_vmem [thread:$0]  %s12339_s9, 256, %s99_s16, [#allocation6], %s18029_s26, %s18029_s26, %s18031_s28  }
  0x56   :  { %s11940_s1 = scalar_lea.hbm %s12369_s3, 32 }
  0x57   :  { %p11941_p8 = scmp.ne.s32.totalorder %s12369_s3, %s11940_s1  ;;  %p11944_p9 = scmp.lt.u32.totalorder %s11940_s1, %s12369_s3 }
  0x59   :  { %p11946_p10 = pnand %p11944_p9, %p11941_p8 }
  0x5b   :  { %11949 = shalt.err (!%p11946_p10)
}
  0x5c   :  { %s11950_s2 = scalar_lea.vmem %s130_s22, 32  ;;  %p11955_p12 = scmp.lt.s32.totalorder %s130_s22, %s130_s22 }
  0x5d   :  { %p11951_p11 = scmp.ne.s32.totalorder %s130_s22, %s11950_s2  ;;  %p11956_p13 = scmp.lt.s32.totalorder %s11950_s2, %s11950_s2 }
  0x5f   :  { %p11957_p0 = por %p11956_p13, %p11955_p12 }
  0x61   :  { %p11958_p1 = pnand %p11957_p0, %p11951_p11 }
  0x63   :  { %11961 = shalt.err (!%p11958_p1)
}
  0x64   :  { %132 = dma.hbm_to_vmem [thread:$0]  %s12369_s3, 32, %s130_s22, [#allocation9]  }
  0x65   :  { %s12308_s7 = smov [#allocation11]   ;;  %s12309_s9 = smov [#allocation2]  }
  0x66   :  { %s162_s10 = sshll.u32 %s12308_s7, 4  ;;  %s86_s11 = sshll.u32 %s12309_s9, 4  ;;  %s163_s10 = int_to_ptr.vmem [resolvable:$true] %s162_s10  ;;  %s12517_s11 = int_to_ptr.vmem [resolvable:$true] %s86_s11 }
  0x67   :  { %s11962_s15 = scalar_lea.hbm %s12409_s20, 64 }
  0x68   :  { %p11963_p2 = scmp.ne.s32.totalorder %s12409_s20, %s11962_s15  ;;  %p11966_p3 = scmp.lt.u32.totalorder %s11962_s15, %s12409_s20 }
  0x6a   :  { %p11968_p4 = pnand %p11966_p3, %p11963_p2 }
  0x6c   :  { %11971 = shalt.err (!%p11968_p4)
}
  0x6d   :  { %s11972_s16 = scalar_lea.vmem %s163_s10, 64  ;;  %p11977_p6 = scmp.lt.s32.totalorder %s163_s10, %s163_s10 }
  0x6e   :  { %p11973_p5 = scmp.ne.s32.totalorder %s163_s10, %s11972_s16  ;;  %p11978_p7 = scmp.lt.s32.totalorder %s11972_s16, %s11972_s16 }
  0x70   :  { %p11979_p8 = por %p11978_p7, %p11977_p6 }
  0x72   :  { %p11980_p9 = pnand %p11979_p8, %p11973_p5 }
  0x74   :  { %11983 = shalt.err (!%p11980_p9)
}
  0x75   :  { %s12310_s3 = smov 16   ;;  %s12311_s18 = smov 1  }
  0x76   :  { %168 = dma.hbm_to_vmem [thread:$0]  %s12409_s20, 64, %s163_s10, [#allocation12], %s12310_s3, %s12310_s3, %s12311_s18  }
  0x77   :  { %s11984_s22 = scalar_lea.hbm %s12334_s5, 256 }
  0x78   :  { %p11985_p10 = scmp.ne.s32.totalorder %s12334_s5, %s11984_s22  ;;  %p11988_p11 = scmp.lt.u32.totalorder %s11984_s22, %s12334_s5 }
  0x7a   :  { %p11990_p12 = pnand %p11988_p11, %p11985_p10 }
  0x7c   :  { %11993 = shalt.err (!%p11990_p12)
}
  0x7d   :  { %s11994_s23 = scalar_lea.vmem %s12517_s11, 256  ;;  %p11999_p0 = scmp.lt.s32.totalorder %s12517_s11, %s12517_s11 }
  0x7e   :  { %p11995_p13 = scmp.ne.s32.totalorder %s12517_s11, %s11994_s23  ;;  %p12000_p1 = scmp.lt.s32.totalorder %s11994_s23, %s11994_s23 }
  0x80   :  { %p12001_p2 = por %p12000_p1, %p11999_p0 }
  0x82   :  { %p12002_p3 = pnand %p12001_p2, %p11995_p13 }
  0x84   :  { %12005 = shalt.err (!%p12002_p3)
}
  0x85   :  { %92 = dma.hbm_to_vmem [thread:$0]  %s12334_s5, 256, %s12517_s11, [#allocation3], %s18029_s26, %s18029_s26, %s18031_s28  }
  0x86   :  { %s12312_s20 = smov [#allocation7]   ;;  %s12313_s1 = smov [#allocation10]  }
  0x87   :  { %s119_s0 = sshll.u32 %s12312_s20, 4  ;;  %s144_s2 = sshll.u32 %s12313_s1, 4  ;;  %s120_s0 = int_to_ptr.vmem [resolvable:$true] %s119_s0  ;;  %s12538_s2 = int_to_ptr.vmem [resolvable:$true] %s144_s2 }
  0x88   :  { %s12006_s7 = scalar_lea.hbm %s12364_s29, 32 }
  0x89   :  { %p12007_p4 = scmp.ne.s32.totalorder %s12364_s29, %s12006_s7  ;;  %p12010_p5 = scmp.lt.u32.totalorder %s12006_s7, %s12364_s29 }
  0x8b   :  { %p12012_p6 = pnand %p12010_p5, %p12007_p4 }
  0x8d   :  { %12015 = shalt.err (!%p12012_p6)
}
  0x8e   :  { %s12016_s10 = scalar_lea.vmem %s120_s0, 32  ;;  %p12021_p8 = scmp.lt.s32.totalorder %s120_s0, %s120_s0 }
  0x8f   :  { %p12017_p7 = scmp.ne.s32.totalorder %s120_s0, %s12016_s10  ;;  %p12022_p9 = scmp.lt.s32.totalorder %s12016_s10, %s12016_s10 }
  0x91   :  { %p12023_p10 = por %p12022_p9, %p12021_p8 }
  0x93   :  { %p12024_p11 = pnand %p12023_p10, %p12017_p7 }
  0x95   :  { %12027 = shalt.err (!%p12024_p11)
}
  0x96   :  { %122 = dma.hbm_to_vmem [thread:$0]  %s12364_s29, 32, %s120_s0, [#allocation6]  }
  0x97   :  { %s12028_s5 = scalar_lea.hbm %s12389_s24, 64 }
  0x98   :  { %p12029_p12 = scmp.ne.s32.totalorder %s12389_s24, %s12028_s5  ;;  %p12032_p13 = scmp.lt.u32.totalorder %s12028_s5, %s12389_s24 }
  0x9a   :  { %p12034_p0 = pnand %p12032_p13, %p12029_p12 }
  0x9c   :  { %12037 = shalt.err (!%p12034_p0)
}
  0x9d   :  { %s12038_s9 = scalar_lea.vmem %s12538_s2, 64  ;;  %p12043_p2 = scmp.lt.s32.totalorder %s12538_s2, %s12538_s2 }
  0x9e   :  { %p12039_p1 = scmp.ne.s32.totalorder %s12538_s2, %s12038_s9  ;;  %p12044_p3 = scmp.lt.s32.totalorder %s12038_s9, %s12038_s9 }
  0xa0   :  { %p12045_p4 = por %p12044_p3, %p12043_p2 }
  0xa2   :  { %p12046_p5 = pnand %p12045_p4, %p12039_p1 }
  0xa4   :  { %12049 = shalt.err (!%p12046_p5)
}
  0xa5   :  { %150 = dma.hbm_to_vmem [thread:$0]  %s12389_s24, 64, %s12538_s2, [#allocation9], %s12310_s3, %s12310_s3, %s12311_s18  }
  0xa6   :  { %s12314_s29 = smov [#allocation13]   ;;  %s12050_s15 = scalar_lea.hbm %s12439_s4, 64 }
  0xa7   :  { %s184_s11 = sshll.u32 %s12314_s29, 4  ;;  %p12051_p6 = scmp.ne.s32.totalorder %s12439_s4, %s12050_s15  ;;  %s185_s11 = int_to_ptr.vmem [resolvable:$true] %s184_s11 }
  0xa8   :  { %p12054_p7 = scmp.lt.u32.totalorder %s12050_s15, %s12439_s4 }
  0xaa   :  { %p12056_p8 = pnand %p12054_p7, %p12051_p6 }
  0xac   :  { %12059 = shalt.err (!%p12056_p8)
}
  0xad   :  { %s12060_s16 = scalar_lea.vmem %s185_s11, 64  ;;  %p12065_p10 = scmp.lt.s32.totalorder %s185_s11, %s185_s11 }
  0xae   :  { %p12061_p9 = scmp.ne.s32.totalorder %s185_s11, %s12060_s16  ;;  %p12066_p11 = scmp.lt.s32.totalorder %s12060_s16, %s12060_s16 }
  0xb0   :  { %p12067_p12 = por %p12066_p11, %p12065_p10 }
  0xb2   :  { %p12068_p13 = pnand %p12067_p12, %p12061_p9 }
  0xb4   :  { %12071 = shalt.err (!%p12068_p13)
}
  0xb5   :  { %190 = dma.hbm_to_vmem [thread:$0]  %s12439_s4, 64, %s185_s11, [#allocation12], %s12310_s3, %s12310_s3, %s12311_s18  }
  0xb6   :  { %12198 = dma.done.wait [#allocation3], 256  }
  0xb7   :  { %12199 = vsyncadd [#allocation3], 4294967040 }
  0xb8   :  { %12200 = dma.done.wait [#allocation6], 288  }
  0xb9   :  { %12201 = vsyncadd [#allocation6], 4294967008 }
  0xba   :  { %12202 = dma.done.wait [#allocation9], 96  }
  0xbb   :  { %12203 = vsyncadd [#allocation9], 4294967200 }
  0xbc   :  { %12204 = dma.done.wait [#allocation12], 128  }
  0xbd   :  { %12205 = vsyncadd [#allocation12], 4294967168  ;;  %v12563_v0 = vmov 0.0   ;;  %v12565_v1 = vmov 0.0   ;;  %v12567_v2 = vmov 0.0   ;;  %v12569_v3 = vmov 0.0  }
  0xbe   :  { %v12571_v4 = vmov 0.0   ;;  %v12573_v5 = vmov 0.0   ;;  %v12575_v6 = vmov 0.0   ;;  %v12577_v7 = vmov 0.0   ;;  %s12591_s24 = smov 0  }
  0xbf   :  { %v12579_v8 = vmov 0.0   ;;  %v12581_v9 = vmov 0.0   ;;  %v12583_v10 = vmov 0.0   ;;  %v12585_v11 = vmov 0.0  }
  0xc0   :  { %v12587_v12 = vmov 0.0   ;;  %v12589_v13 = vmov 0.0  }
  0xc1 LB: > { %18057 = vst [vmem:[#allocation44_spill] sm:$0xff] %v12220_v2  ;;  %18058 = vst [vmem:[#allocation45_spill] sm:$0xff] %v12224_v3  ;;  %v2354_v14 = vlaneseq  ;;  %s12315_s4 = smov 2   ;;  %s12316_s3 = smov 1   ;;  %v258_v15 = vld [vmem:[%s12384_s19] sm:$0xff]  ;;  %v259_v16 = vld [vmem:[%s12384_s19 + $0x8] sm:$0xff]  ;;  %s12268_s24 = sphi %s12591_s24, %s237_s24   ;;  %v12264_v13 = vphi %v12589_v13, %v19149_v13   ;;  %v12260_v12 = vphi %v12587_v12, %v19186_v12   ;;  %v12256_v11 = vphi %v12585_v11, %v19156_v11   ;;  %v12252_v10 = vphi %v12583_v10, %v19185_v10   ;;  %v12248_v9 = vphi %v12581_v9, %v19184_v9   ;;  %v12244_v8 = vphi %v12579_v8, %v9506_v8   ;;  %v12240_v7 = vphi %v12577_v7, %v19183_v7   ;;  %v12236_v6 = vphi %v12575_v6, %v19182_v6   ;;  %v12232_v5 = vphi %v12573_v5, %v19181_v5   ;;  %v12228_v4 = vphi %v12571_v4, %v19180_v4   ;;  %v12224_v3 = vphi %v12569_v3, %v17587_v3   ;;  %v12220_v2 = vphi %v12567_v2, %v19179_v2   ;;  %v12216_v1 = vphi %v12565_v1, %v17696_v1   ;;  %v12212_v0 = vphi %v12563_v0, %v17701_v0  }
  0xc2   : > { %18059 = vst [vmem:[#allocation46_spill] sm:$0xff] %v12236_v6  ;;  %18060 = vst [vmem:[#allocation47_spill] sm:$0xff] %v12244_v8  ;;  %2360 = vrot.lane.b32.xlu0 %v12240_v7, %s12315_s4  ;;  %2776 = vrot.lane.b32.xlu1 %v12240_v7, %s12316_s3  ;;  %v9898_v17 = vld [vmem:[%s12384_s19 + $0x20] sm:$0xff]  ;;  %v9899_v18 = vld [vmem:[%s12384_s19 + $0x28] sm:$0xff]  ;;  %v17936_v19 = vmov 0.0|0.0   ;;  %v11091_v20 = vpack.c.bf16 %v259_v16, %v258_v15  ;;  %s12318_s18 = smov 127  }
  0xc3   : > { %18061 = vst [vmem:[#allocation48_spill] sm:$0xff] %v12248_v9  ;;  %11090 = vmatprep.subr.bf16.mxu0 %v17936_v19  ;;  %11108 = vmatprep.subr.bf16.mxu1 %v17936_v19  ;;  %v11109_v21 = vpack.c.bf16 %v9899_v18, %v9898_v17  ;;  %v12649_v22 = vshrl.u32 %v2354_v14, 7  ;;  %v260_v23 = vld [vmem:[%s12384_s19 + $0x10] sm:$0xff]  ;;  %v261_v24 = vld [vmem:[%s12384_s19 + $0x18] sm:$0xff]  ;;  %v343_v30 = vld [vmem:[%s12374_s8] sm:$0xff]  ;;  %vm17978_vm0 = vcmask 261120  }
  0xc4   : > { %11092 = vmatpush3.bf16.msra.mxu0 %v11091_v20  ;;  %v9900_v25 = vld [vmem:[%s12384_s19 + $0x30] sm:$0xff]  ;;  %v11094_v26 = vpack.c.bf16 %v261_v24, %v260_v23  ;;  %v9901_v27 = vld [vmem:[%s12384_s19 + $0x38] sm:$0xff]  ;;  %v344_v31 = vld [vmem:[%s12374_s8 + $0x8] sm:$0xff]  ;;  %vm17979_vm1 = vmmov 0   ;;  %v17933_v34 = vmov 0.0   ;;  %s12321_s22 = smov 126  }
  0xc5   : > { %18062 = vst [vmem:[#allocation49_spill] sm:$0xff] %v12649_v22  ;;  %11110 = vmatpush3.bf16.msra.mxu1 %v11109_v21  ;;  %11093 = vmatprep.subr.bf16.mxu0 %v17936_v19  ;;  %v11112_v28 = vpack.c.bf16 %v9901_v27, %v9900_v25  ;;  %v12662_v29 = vsub.s32 0, %v12649_v22  ;;  %v9904_v32 = vld [vmem:[%s12374_s8 + $0x20] sm:$0xff]  ;;  %v9905_v33 = vld [vmem:[%s12374_s8 + $0x28] sm:$0xff]  ;;  %v11097_v35 = vpack.c.bf16 %v344_v31, %v343_v30  ;;  %v345_v38 = vld [vmem:[%s12374_s8 + $0x10] sm:$0xff]  ;;  %s12701_s23 = sshll.u32 %s12268_s24, 1 }
  0xc6   : > { %2567 = vrot.lane.b32.xlu0 %v12236_v6, %s12315_s4  ;;  %2983 = vrot.lane.b32.xlu1 %v12236_v6, %s12316_s3  ;;  %v11115_v36 = vpack.c.bf16 %v9905_v33, %v9904_v32  ;;  %v346_v39 = vld [vmem:[%s12374_s8 + $0x18] sm:$0xff]  ;;  %v9906_v40 = vld [vmem:[%s12374_s8 + $0x30] sm:$0xff]  ;;  %s253_s20 = scalar_lea.vmem [#allocation2], %s12701_s23  ;;  %v427_v57 = vrot.slane %v12228_v4, 7  ;;  %vm18028_vm2 = vcmask 1041409   ;;  %s255_s0 = scalar_lea.vmem [#allocation5], %s12701_s23 }
  0xc7   : > { %11111 = vmatprep.subr.bf16.mxu1 %v17936_v19  ;;  %18063 = vst [vmem:[#allocation50_spill] sm:$0xff] %v12662_v29  ;;  %10419 = vmatprep.mubr.msk.f32.mxu0 %vm17979_vm1, %v17933_v34  ;;  %v12679_v37 = vrot.slane %v12240_v7, %v12662_v29  ;;  %v11100_v41 = vpack.c.bf16 %v346_v39, %v345_v38  ;;  %v9907_v42 = vld [vmem:[%s12374_s8 + $0x38] sm:$0xff]  ;;  %v421_v44 = vld [vmem:[%s12379_s14] sm:$0xff]  ;;  %v422_v45 = vld [vmem:[%s12379_s14 + $0x8] sm:$0xff]  ;;  %s18259_s1 = sld [smem:[#allocation33_spill]]  ;;  %vm17976_vm7 = vcmask 130048  }
  0xc8   : > { %11095 = vmatpush3.bf16.msra.mxu0 %v11094_v26  ;;  %10452 = vmatprep.mubr.msk.f32.mxu1 %vm17979_vm1, %v17933_v34  ;;  %v11118_v43 = vpack.c.bf16 %v9907_v42, %v9906_v40  ;;  %v9909_v46 = vld [vmem:[%s12379_s14 + $0x20] sm:$0xff]  ;;  %v11103_v47 = vpack.c.bf16 %v422_v45, %v421_v44  ;;  %v9910_v48 = vld [vmem:[%s12379_s14 + $0x28] sm:$0xff]  ;;  %v423_v51 = vld [vmem:[%s12379_s14 + $0x10] sm:$0xff]  ;;  %v12736_v63 = vsel %vm18028_vm2, %v427_v57, %v12232_v5  ;;  %s18424_s2 = sld [smem:[#allocation25_spill]]  ;;  %s18486_s7 = sld [smem:[#allocation34_spill]]  ;;  %vm4739_vm8 = vcmask 130112  }
  0xc9   : > { %11113 = vmatpush3.bf16.msra.mxu1 %v11112_v28  ;;  %11096 = vmatprep.subr.bf16.mxu0 %v17936_v19  ;;  %v12711_v49 = vld [vmem:[%s253_s20] sm:$0x3]  ;;  %v11121_v50 = vpack.c.bf16 %v9910_v48, %v9909_v46  ;;  %v424_v52 = vld [vmem:[%s12379_s14 + $0x18] sm:$0xff]  ;;  %v9911_v53 = vld [vmem:[%s12379_s14 + $0x30] sm:$0xff]  ;;  %v12804_v48 = vand.u32 127, %v2354_v14  ;;  %vm4746_vm9 = vcmask 195712  }
  0xca   : > { %3603 = vrot.lane.b32.xlu0 %v12240_v7, %s12318_s18  ;;  %3810 = vrot.lane.b32.xlu1 %v12236_v6, %s12318_s18  ;;  %v11106_v54 = vpack.c.bf16 %v424_v52, %v423_v51  ;;  %v9912_v55 = vld [vmem:[%s12379_s14 + $0x38] sm:$0xff]  ;;  %v9915_v58 = vld [vmem:[%s12384_s19 + $0x40] sm:$0xff]  ;;  %v12813_v52 = vsub.s32 1, %v12649_v22  ;;  %vm4753_vm10 = vcmask 261312   ;;  %vm4760_vm11 = vcmask 326912   ;;  %s18610_s10 = sld [smem:[#allocation24_spill]] }
  0xcb   : > { %11114 = vmatprep.subr.bf16.mxu1 %v17936_v19  ;;  %10420 = vmatmul.mubr.msk.f32.vlgmr.msra.gmra.mrb[0].mxu0 %vm17978_vm0, %v12264_v13  ;;  %v11124_v56 = vpack.c.bf16 %v9912_v55, %v9911_v53  ;;  %v9916_v59 = vld [vmem:[%s12384_s19 + $0x48] sm:$0xff]  ;;  %v9931_v60 = vld [vmem:[%s12384_s19 + $0x60] sm:$0xff]  ;;  %v9917_v4 = vld [vmem:[%s12384_s19 + $0x50] sm:$0xff]  ;;  %18064 = vst [vmem:[#allocation51_spill] sm:$0xff] %v12804_v48  ;;  %vm4767_vm12 = vcmask 392512   ;;  %vm4774_vm13 = vcmask 458112  }
  0xcc   : > { %11098 = vmatpush3.bf16.msra.mxu0 %v11097_v35  ;;  %10453 = vmatmul.mubr.msk.f32.vlgmr.msra.gmra.mrb[0].mxu1 %vm17978_vm0, %v12264_v13  ;;  %v11127_v61 = vpack.c.bf16 %v9916_v59, %v9915_v58  ;;  %v9932_v62 = vld [vmem:[%s12384_s19 + $0x68] sm:$0xff]  ;;  %v9918_v16 = vld [vmem:[%s12384_s19 + $0x58] sm:$0xff]  ;;  %v9933_v17 = vld [vmem:[%s12384_s19 + $0x70] sm:$0xff]  ;;  %18066 = vst [vmem:[#allocation53_spill] sm:$0xff] %v12813_v52  ;;  %v12840_v58 = vadd.s32 4294967295, %v12804_v48  ;;  %v13024_v8 = vrot.slane %v12236_v6, %v12813_v52  ;;  %vm4781_vm14 = vcmask 523712  }
  0xcd   : > { %11116 = vmatpush3.bf16.msra.mxu1 %v11115_v36  ;;  %11099 = vmatprep.subr.bf16.mxu0 %v17936_v19  ;;  %v11145_v15 = vpack.c.bf16 %v9932_v62, %v9931_v60  ;;  %v11130_v18 = vpack.c.bf16 %v9918_v16, %v9917_v4  ;;  %v9934_v5 = vld [vmem:[%s12384_s19 + $0x78] sm:$0xff]  ;;  %v9921_v21 = vld [vmem:[%s12374_s8 + $0x40] sm:$0xff]  ;;  %v9922_v23 = vld [vmem:[%s12374_s8 + $0x48] sm:$0xff]  ;;  %vm17982_vm15 = vcmask 589312   ;;  %s18634_s5 = sld [smem:[#allocation35_spill]]  ;;  %s9746_s9 = scalar_lea.vmem [#allocation15], %s12701_s23 }
  0xce   : > { %4019 = vrot.lane.b32.xlu0 %v12240_v7, %s12321_s22  ;;  %4226 = vrot.lane.b32.xlu1 %v12236_v6, %s12321_s22  ;;  %v11148_v20 = vpack.c.bf16 %v9934_v5, %v9933_v17  ;;  %v9937_v24 = vld [vmem:[%s12374_s8 + $0x60] sm:$0xff]  ;;  %v11133_v25 = vpack.c.bf16 %v9922_v23, %v9921_v21  ;;  %v9938_v26 = vld [vmem:[%s12374_s8 + $0x68] sm:$0xff]  ;;  %18067 = vst [vmem:[#allocation54_spill] sm:$0xff] %v12840_v58  ;;  %vm2773_vm4 = vcmp.ge.s32.totalorder %v12840_v58, 0  ;;  %s18809_s29 = sld [smem:[#allocation36_spill]]  ;;  %s18870_s11 = sld [smem:[#allocation27_spill]] }
  0xcf   : > { %11117 = vmatprep.subr.bf16.mxu1 %v17936_v19  ;;  %10430 = vmatprep.mubr.msk.f32.mxu0 %vm17979_vm1, %v17933_v34  ;;  %v11151_v27 = vpack.c.bf16 %v9938_v26, %v9937_v24  ;;  %v9923_v28 = vld [vmem:[%s12374_s8 + $0x50] sm:$0xff]  ;;  %v9924_v30 = vld [vmem:[%s12374_s8 + $0x58] sm:$0xff]  ;;  %v9926_v36 = vld [vmem:[%s12379_s14 + $0x40] sm:$0xff]  ;;  %v12905_v5 = vrot.slane %v12240_v7, %v12813_v52  ;;  %s18941_s15 = sld [smem:[#allocation37_spill]]  ;;  %s19134_s16 = sld [smem:[#allocation26_spill]] }
  0xd0   : > { %11101 = vmatpush3.bf16.msra.mxu0 %v11100_v41  ;;  %10463 = vmatprep.mubr.msk.f32.mxu1 %vm17979_vm1, %v17933_v34  ;;  %v9939_v31 = vld [vmem:[%s12374_s8 + $0x70] sm:$0xff]  ;;  %v11136_v32 = vpack.c.bf16 %v9924_v30, %v9923_v28  ;;  %v9940_v33 = vld [vmem:[%s12374_s8 + $0x78] sm:$0xff]  ;;  %v9942_v38 = vld [vmem:[%s12379_s14 + $0x60] sm:$0xff]  ;;  %s19148_s20 = sld [smem:[#allocation30_spill]]  ;;  %s9743_s28 = scalar_lea.vmem [#allocation14], %s12701_s23 }
  0xd1   : > { %11119 = vmatpush3.bf16.msra.mxu1 %v11118_v43  ;;  %11102 = vmatprep.subr.bf16.mxu0 %v17936_v19  ;;  %v11154_v35 = vpack.c.bf16 %v9940_v33, %v9939_v31  ;;  %v9943_v40 = vld [vmem:[%s12379_s14 + $0x68] sm:$0xff]  ;;  %v9928_v42 = vld [vmem:[%s12379_s14 + $0x50] sm:$0xff]  ;;  %v9929_v43 = vld [vmem:[%s12379_s14 + $0x58] sm:$0xff]  ;;  %s19173_s26 = sld [smem:[#allocation38_spill]]  ;;  %s237_s24 = sadd.s32 1, %s12268_s24  }
  0xd2   : > { %3199 = vbcast.lane.b32.xlu0 %v12679_v37, 256  ;;  %3203 = vbcast.lane.b32.xlu1 %v12679_v37, 264  ;;  %v11157_v41 = vpack.c.bf16 %v9943_v40, %v9942_v38  ;;  %v9944_v44 = vld [vmem:[%s12379_s14 + $0x70] sm:$0xff]  ;;  %v11142_v45 = vpack.c.bf16 %v9929_v43, %v9928_v42  ;;  %v9945_v46 = vld [vmem:[%s12379_s14 + $0x78] sm:$0xff]  ;;  %v1236_v26 = vld [vmem:[%s12404_s12] sm:$0xff]  ;;  %p17839_p0 = scmp.ge.s32.totalorder %s237_s24, 8  }
  0xd3   : > { %11120 = vmatprep.subr.bf16.mxu1 %v17936_v19  ;;  %10431 = vmatmul.mubr.msk.f32.vlgmr.msra.gmra.mrb[0].mxu0 %vm17978_vm0, %v12711_v49  ;;  %v1239_v33 = vld [vmem:[%s12404_s12 + $0x18] sm:$0xff]  ;;  %v1320_v38 = vld [vmem:[%s12394_s30] sm:$0xff]  ;;  %v9983_v3 = vld [vmem:[%s12399_s6 + $0x50] sm:$0xff]  ;;  %s12324_s17 = smov (%p17839_p0), [#allocation14]  }
  0xd4   : > { %11104 = vmatpush3.bf16.msra.mxu0 %v11103_v47  ;;  %10464 = vmatmul.mubr.msk.f32.vlgmr.msra.gmra.mrb[0].mxu1 %vm17978_vm0, %v12711_v49  ;;  %v11160_v47 = vpack.c.bf16 %v9945_v46, %v9944_v44  ;;  %v9894_v43 = vld [vmem:[#allocation10] ss:$0 sm:$0xff]  ;;  %v9984_v2 = vld [vmem:[%s12399_s6 + $0x58] sm:$0xff]  ;;  %s9755_s27 = sshll.u32 (%p17839_p0), %s12324_s17, 4  ;;  %s17887_s27 = int_to_ptr.vmem [resolvable:$true] %s9755_s27 }
  0xd5   : > { %11122 = vmatpush3.bf16.msra.mxu1 %v11121_v50  ;;  %11105 = vmatprep.subr.bf16.mxu0 %v17936_v19 }
  0xd6   : > { %11123 = vmatprep.subr.bf16.mxu1 %v17936_v19  ;;  %10441 = vmatprep.mubr.msk.f32.mxu0 %vm17979_vm1, %v17933_v34 }
  0xd7   : > { %10474 = vmatprep.mubr.msk.f32.mxu1 %vm17979_vm1, %v17933_v34 }
  0xd8   : > { %11107 = vmatpush3.bf16.msra.mxu0 %v11106_v54 }
  0xd9   : > { %11125 = vmatpush3.bf16.msra.mxu1 %v11124_v56  ;;  %11126 = vmatprep.subr.bf16.mxu0 %v17936_v19 }
  0xda   : > { %11144 = vmatprep.subr.bf16.mxu1 %v17936_v19 }
  0xdb   : > { %10442 = vmatmul.mubr.msk.f32.vlgmr.msra.gmra.mrb[0].mxu0 %vm17978_vm0, %v12736_v63 }
  0xdc   : > { %10475 = vmatmul.mubr.msk.f32.vlgmr.msra.gmra.mrb[0].mxu1 %vm17978_vm0, %v12736_v63  ;;  %11128 = vmatpush3.bf16.msra.mxu0 %v11127_v61 }
  0xdd   : > { %11146 = vmatpush3.bf16.msra.mxu1 %v11145_v15  ;;  %11129 = vmatprep.subr.bf16.mxu0 %v17936_v19 }
  0xde   : > { %11147 = vmatprep.subr.bf16.mxu1 %v17936_v19  ;;  %10485 = vmatprep.mubr.msk.f32.mxu0 %vm17979_vm1, %v17933_v34 }
  0xdf   : > { %10518 = vmatprep.mubr.msk.f32.mxu1 %vm17979_vm1, %v17933_v34 }
  0xe0   : > { %11131 = vmatpush3.bf16.msra.mxu0 %v11130_v18 }
  0xe1   : > { %11149 = vmatpush3.bf16.msra.mxu1 %v11148_v20  ;;  %11132 = vmatprep.subr.bf16.mxu0 %v17936_v19 }
  0xe2   : > { %11150 = vmatprep.subr.bf16.mxu1 %v17936_v19 }
  0xe3   : > { %10486 = vmatmul.mubr.msk.f32.vlgmr.msra.gmra.mrb[2].mxu0 %vm17978_vm0, %v12264_v13 }
  0xe4   : > { %10519 = vmatmul.mubr.msk.f32.vlgmr.msra.gmra.mrb[2].mxu1 %vm17978_vm0, %v12264_v13  ;;  %11134 = vmatpush3.bf16.msra.mxu0 %v11133_v25  ;;  %v9927_v13 = vld [vmem:[%s12379_s14 + $0x48] sm:$0xff] }
  0xe5   : > { %11152 = vmatpush3.bf16.msra.mxu1 %v11151_v27  ;;  %11135 = vmatprep.subr.bf16.mxu0 %v17936_v19  ;;  %v11139_v39 = vpack.c.bf16 %v9927_v13, %v9926_v36  ;;  %v1237_v27 = vld [vmem:[%s12404_s12 + $0x8] sm:$0xff] }
  0xe6   : > { %11153 = vmatprep.subr.bf16.mxu1 %v17936_v19  ;;  %10496 = vmatprep.mubr.msk.f32.mxu0 %vm17979_vm1, %v17933_v34  ;;  %v11163_v31 = vpack.c.bf16 %v1237_v27, %v1236_v26 }
  0xe7   : > { %10529 = vmatprep.mubr.msk.f32.mxu1 %vm17979_vm1, %v17933_v34 }
  0xe8   : > { %11137 = vmatpush3.bf16.msra.mxu0 %v11136_v32  ;;  %v1238_v32 = vld [vmem:[%s12404_s12 + $0x10] sm:$0xff] }
  0xe9   : > { %11155 = vmatpush3.bf16.msra.mxu1 %v11154_v35  ;;  %11138 = vmatprep.subr.bf16.mxu0 %v17936_v19  ;;  %v11166_v13 = vpack.c.bf16 %v1239_v33, %v1238_v32  ;;  %v1399_v32 = vld [vmem:[%s12399_s6 + $0x8] sm:$0xff] }
  0xea   : > { %11156 = vmatprep.subr.bf16.mxu1 %v17936_v19 }
  0xeb   : > { %10497 = vmatmul.mubr.msk.f32.vlgmr.msra.gmra.mrb[2].mxu0 %vm17978_vm0, %v12711_v49 }
  0xec   : > { %10530 = vmatmul.mubr.msk.f32.vlgmr.msra.gmra.mrb[2].mxu1 %vm17978_vm0, %v12711_v49  ;;  %11140 = vmatpush3.bf16.msra.mxu0 %v11139_v39  ;;  %v12807_v49 = vadd.s32 4294967294, %v12804_v48  ;;  %v1321_v39 = vld [vmem:[%s12394_s30 + $0x8] sm:$0xff] }
  0xed   : > { %11158 = vmatpush3.bf16.msra.mxu1 %v11157_v41  ;;  %11141 = vmatprep.subr.bf16.mxu0 %v17936_v19  ;;  %v11169_v42 = vpack.c.bf16 %v1321_v39, %v1320_v38  ;;  %v12976_v39 = vld [vmem:[%s255_s0] sm:$0x3]  ;;  %s19152_s0 = sld [smem:[#allocation31_spill]] }
  0xee   : > { %11159 = vmatprep.subr.bf16.mxu1 %v17936_v19  ;;  %10507 = vmatprep.mubr.msk.f32.mxu0 %vm17979_vm1, %v17933_v34  ;;  %18065 = vst [vmem:[#allocation52_spill] sm:$0xff] %v12807_v49  ;;  %vm2357_vm3 = vcmp.ge.s32.totalorder %v12807_v49, 0  ;;  %v18068_v49 = vmov 0.0|0.0  }
  0xef   : > { %10540 = vmatprep.mubr.msk.f32.mxu1 %vm17979_vm1, %v17933_v34 }
  0xf0   : > { %11143 = vmatpush3.bf16.msra.mxu0 %v11142_v45  ;;  %v9903_v45 = vld [vmem:[#allocation10 + $0x1] ss:$0 sm:$0xff] }
  0xf1   : > { %11161 = vmatpush3.bf16.msra.mxu1 %v11160_v47  ;;  %11162 = vmatprep.subr.bf16.mxu0 %v17936_v19 }
  0xf2   : > { %11180 = vmatprep.subr.bf16.mxu1 %v17936_v19 }
  0xf3   : > { %10508 = vmatmul.mubr.msk.f32.vlgmr.msra.gmra.mrb[2].mxu0 %vm17978_vm0, %v12736_v63 }
  0xf4   : > { %10541 = vmatmul.mubr.msk.f32.vlgmr.msra.gmra.mrb[2].mxu1 %vm17978_vm0, %v12736_v63  ;;  %10551 = vmatprep.mubr.msk.f32.mxu0 %vm17979_vm1, %v17933_v34 }
  0xf5   : > { %10584 = vmatprep.mubr.msk.f32.mxu1 %vm17979_vm1, %v17933_v34  ;;  %11164 = vmatpush3.bf16.msra.mxu0 %v11163_v31  ;;  %v1398_v31 = vld [vmem:[%s12399_s6] sm:$0xff] }
  0xf6   : > { %11165 = vmatprep.subr.bf16.mxu0 %v17936_v19  ;;  %v11175_v38 = vpack.c.bf16 %v1399_v32, %v1398_v31 }
  0xf9   : > { %11167 = vmatpush3.bf16.msra.mxu0 %v11166_v13 }
  0xfa   : > { %11168 = vmatprep.subr.bf16.mxu0 %v17936_v19 }
  0xfc   : > { %10552 = vmatmul.mubr.msk.f32.vlgmr.msra.gmra.mrb[4].mxu0 %vm17978_vm0, %v12256_v11 }
  0xfd   : > { %11170 = vmatpush3.bf16.msra.mxu0 %v11169_v42  ;;  %10562 = vmatprep.mubr.msk.f32.mxu0 %vm17979_vm1, %v17933_v34  ;;  %v1400_v42 = vld [vmem:[%s12399_s6 + $0x10] sm:$0xff] }
  0xfe   : > { %11171 = vmatprep.subr.bf16.mxu0 %v17936_v19 }
 0x134   : > { %v2361_v50 = vpop.permute.xlu0 %2360  ;;  %v2777_v59 = vpop.permute.xlu1 %2776 }
 0x135   : > { %v2364_v51 = vsel %vm2357_vm3, %v2361_v50, 0.0  ;;  %v2780_v60 = vsel %vm2773_vm4, %v2777_v59, 0.0  ;;  %v1323_v59 = vld [vmem:[%s12394_s30 + $0x18] sm:$0xff] }
 0x136   : > { %v12816_v53 = vrot.slane %v2364_v51, %v12662_v29  ;;  %v12823_v55 = vrot.slane %v2364_v51, %v12813_v52  ;;  %v12850_v61 = vrot.slane %v2780_v60, %v12662_v29  ;;  %v12857_v62 = vrot.slane %v2780_v60, %v12813_v52 }
 0x138   : > { %2374 = vbcast.lane.b32.xlu1 %v12816_v53, 264  ;;  %2370 = vbcast.lane.b32.xlu0 %v12816_v53, 256  ;;  %v2568_v14 = vpop.permute.xlu0 %2567  ;;  %v2984_v63 = vpop.permute.xlu1 %2983 }
 0x139   : > { %v2569_v54 = vsel %vm2357_vm3, %v2568_v14, 0.0  ;;  %v2985_v15 = vsel %vm2773_vm4, %v2984_v63, 0.0 }
 0x13a   : > { %v12828_v56 = vrot.slane %v2569_v54, %v12662_v29  ;;  %v12833_v57 = vrot.slane %v2569_v54, %v12813_v52  ;;  %v12874_v4 = vrot.slane %v2985_v15, %v12662_v29  ;;  %v12881_v16 = vrot.slane %v2985_v15, %v12813_v52  ;;  %v1322_v54 = vld [vmem:[%s12394_s30 + $0x10] sm:$0xff] }
 0x13b   : > { %v11172_v60 = vpack.c.bf16 %v1323_v59, %v1322_v54  ;;  %v9971_v54 = vld [vmem:[%s12404_s12 + $0x48] sm:$0xff] }
 0x13c   : > { %2441 = vbcast.lane.b32.xlu1 %v12823_v55, 264  ;;  %2437 = vbcast.lane.b32.xlu0 %v12823_v55, 256  ;;  %v12899_v17 = vpop.permute.xlu1 %3810  ;;  %v12901_v18 = vpop.permute.xlu0 %3603 }
 0x13d   : > { %11173 = vmatpush3.bf16.msra.mxu0 %v11172_v60 }
 0x13e   : > { %11174 = vmatprep.subr.bf16.mxu0 %v17936_v19 }
 0x140   : > { %2579 = vbcast.lane.b32.xlu1 %v12828_v56, 264  ;;  %2575 = vbcast.lane.b32.xlu0 %v12828_v56, 256  ;;  %v12909_v20 = vpop.permute.xlu1 %4226  ;;  %v12911_v21 = vpop.permute.xlu0 %4019 }
 0x141   : > { %10563 = vmatmul.mubr.msk.f32.vlgmr.msra.gmra.mrb[4].mxu0 %vm17978_vm0, %v12976_v39 }
 0x142   : > { %11176 = vmatpush3.bf16.msra.mxu0 %v11175_v38  ;;  %10573 = vmatprep.mubr.msk.f32.mxu0 %vm17979_vm1, %v17933_v34  ;;  %v9936_v38 = vld [vmem:[#allocation10 + $0x3] ss:$0 sm:$0xff] }
 0x143   : > { %11177 = vmatprep.subr.bf16.mxu0 %v17936_v19 }
 0x144   : > { %2646 = vbcast.lane.b32.xlu1 %v12833_v57, 264  ;;  %2642 = vbcast.lane.b32.xlu0 %v12833_v57, 256  ;;  %v12917_v7 = vpop.permute.xlu1 %3203  ;;  %v12919_v23 = vpop.permute.xlu0 %3199 }
 0x148   : > { %2445 = vbcast.lane.b32.xlu1 %v12823_v55, 272  ;;  %2378 = vbcast.lane.b32.xlu0 %v12816_v53, 272 }
 0x14c   : > { %2650 = vbcast.lane.b32.xlu1 %v12833_v57, 272  ;;  %2583 = vbcast.lane.b32.xlu0 %v12828_v56, 272 }
 0x150   : > { %2449 = vbcast.lane.b32.xlu1 %v12823_v55, 280  ;;  %2382 = vbcast.lane.b32.xlu0 %v12816_v53, 280 }
 0x154   : > { %2654 = vbcast.lane.b32.xlu1 %v12833_v57, 280  ;;  %2587 = vbcast.lane.b32.xlu0 %v12828_v56, 280 }
 0x158   : > { %2790 = vbcast.lane.b32.xlu1 %v12850_v61, 264  ;;  %2786 = vbcast.lane.b32.xlu0 %v12850_v61, 256 }
 0x15c   : > { %2857 = vbcast.lane.b32.xlu1 %v12857_v62, 264  ;;  %2853 = vbcast.lane.b32.xlu0 %v12857_v62, 256 }
 0x160   : > { %2453 = vbcast.lane.b32.xlu1 %v12823_v55, 288  ;;  %2386 = vbcast.lane.b32.xlu0 %v12816_v53, 288 }
 0x164   : > { %2658 = vbcast.lane.b32.xlu1 %v12833_v57, 288  ;;  %2591 = vbcast.lane.b32.xlu0 %v12828_v56, 288 }
 0x168   : > { %2861 = vbcast.lane.b32.xlu1 %v12857_v62, 272  ;;  %2794 = vbcast.lane.b32.xlu0 %v12850_v61, 272 }
 0x16c   : > { %2457 = vbcast.lane.b32.xlu1 %v12823_v55, 296  ;;  %2390 = vbcast.lane.b32.xlu0 %v12816_v53, 296 }
 0x170   : > { %2662 = vbcast.lane.b32.xlu1 %v12833_v57, 296  ;;  %2595 = vbcast.lane.b32.xlu0 %v12828_v56, 296 }
 0x174   : > { %2865 = vbcast.lane.b32.xlu1 %v12857_v62, 280  ;;  %2798 = vbcast.lane.b32.xlu0 %v12850_v61, 280 }
 0x178   : > { %2995 = vbcast.lane.b32.xlu1 %v12874_v4, 264  ;;  %2991 = vbcast.lane.b32.xlu0 %v12874_v4, 256 }
 0x17c   : > { %3062 = vbcast.lane.b32.xlu1 %v12881_v16, 264  ;;  %3058 = vbcast.lane.b32.xlu0 %v12881_v16, 256 }
 0x180   : > { %2461 = vbcast.lane.b32.xlu1 %v12823_v55, 304  ;;  %2394 = vbcast.lane.b32.xlu0 %v12816_v53, 304 }
 0x184   : > { %2666 = vbcast.lane.b32.xlu1 %v12833_v57, 304  ;;  %2599 = vbcast.lane.b32.xlu0 %v12828_v56, 304 }
 0x188   : > { %2869 = vbcast.lane.b32.xlu1 %v12857_v62, 288  ;;  %2802 = vbcast.lane.b32.xlu0 %v12850_v61, 288 }
 0x18c   : > { %3066 = vbcast.lane.b32.xlu1 %v12881_v16, 272  ;;  %2999 = vbcast.lane.b32.xlu0 %v12874_v4, 272 }
 0x190   : > { %2465 = vbcast.lane.b32.xlu1 %v12823_v55, 312  ;;  %2398 = vbcast.lane.b32.xlu0 %v12816_v53, 312 }
 0x194   : > { %2670 = vbcast.lane.b32.xlu1 %v12833_v57, 312  ;;  %2603 = vbcast.lane.b32.xlu0 %v12828_v56, 312 }
 0x198   : > { %2873 = vbcast.lane.b32.xlu1 %v12857_v62, 296  ;;  %2806 = vbcast.lane.b32.xlu0 %v12850_v61, 296 }
 0x19c   : > { %3070 = vbcast.lane.b32.xlu1 %v12881_v16, 280  ;;  %3003 = vbcast.lane.b32.xlu0 %v12874_v4, 280 }
 0x1a0   : > { %3270 = vbcast.lane.b32.xlu1 %v12905_v5, 264  ;;  %3266 = vbcast.lane.b32.xlu0 %v12905_v5, 256 }
 0x1a4   : > { %2469 = vbcast.lane.b32.xlu1 %v12823_v55, 320  ;;  %2402 = vbcast.lane.b32.xlu0 %v12816_v53, 320 }
 0x1a8   : > { %2674 = vbcast.lane.b32.xlu1 %v12833_v57, 320  ;;  %2607 = vbcast.lane.b32.xlu0 %v12828_v56, 320 }
 0x1aa   : > { %v12923_v24 = vpop.permute.xlu1 %2374  ;;  %v12925_v25 = vpop.permute.xlu0 %2370 }
 0x1ac   : > { %2877 = vbcast.lane.b32.xlu1 %v12857_v62, 304  ;;  %2810 = vbcast.lane.b32.xlu0 %v12850_v61, 304 }
 0x1ae   : > { %v12931_v28 = vpop.permute.xlu1 %2441  ;;  %v12933_v30 = vpop.permute.xlu0 %2437 }
 0x1af   : > { %v498_v44 = vpop.f32.mrb[0].mxu0  ;;  %v740_v46 = vpop.f32.mrb[0].mxu1 }
 0x1b0   : > { %3074 = vbcast.lane.b32.xlu1 %v12881_v16, 288  ;;  %3007 = vbcast.lane.b32.xlu0 %v12874_v4, 288  ;;  %v11480_v51 = vadd.f32 %v9894_v43, %v498_v44  ;;  %v11481_v14 = vadd.f32 %v9903_v45, %v740_v46  ;;  %v10443_v63 = vpop.f32.mrb[1].mxu0  ;;  %v10476_v15 = vpop.f32.mrb[1].mxu1  ;;  %v1401_v43 = vld [vmem:[%s12399_s6 + $0x18] sm:$0xff] }
 0x1b1   : > { %v11178_v46 = vpack.c.bf16 %v1401_v43, %v1400_v42  ;;  %v9972_v42 = vld [vmem:[%s12404_s12 + $0x50] sm:$0xff]  ;;  %v9973_v43 = vld [vmem:[%s12404_s12 + $0x58] sm:$0xff] }
 0x1b2   : > { %v12939_v35 = vpop.permute.xlu1 %2579  ;;  %v12941_v36 = vpop.permute.xlu0 %2575  ;;  %v9897_v26 = vmul.f32 -1.442695, %v11480_v51  ;;  %v9914_v27 = vmul.f32 -1.442695, %v11481_v14  ;;  %v1404_v51 = vrot.slane %v12212_v0, 7  ;;  %v9970_v14 = vld [vmem:[%s12404_s12 + $0x40] sm:$0xff]  ;;  %v13007_v0 = vrot.slane %v12236_v6, %v12662_v29 }
 0x1b3   : > { %11179 = vmatpush3.bf16.msra.mxu0 %v11178_v46  ;;  %v11199_v63 = vpack.c.bf16 %v9971_v54, %v9970_v14  ;;  %v11202_v14 = vpack.c.bf16 %v9973_v43, %v9972_v42 }
 0x1b4   : > { %3274 = vbcast.lane.b32.xlu1 %v12905_v5, 272  ;;  %3207 = vbcast.lane.b32.xlu0 %v12679_v37, 272  ;;  %11732 = vpow2.f32 %v9897_v26  ;;  %v13003_v15 = vsel %vm18028_vm2, %v1404_v51, %v12216_v1 }
 0x1b5   : > { %11734 = vpow2.f32 %v9914_v27  ;;  %11198 = vmatprep.subr.bf16.mxu0 %v17936_v19  ;;  %v9920_v27 = vld [vmem:[#allocation10 + $0x2] ss:$0 sm:$0xff] }
 0x1b6   : > { %v12948_v40 = vpop.permute.xlu1 %2646  ;;  %v12950_v41 = vpop.permute.xlu0 %2642  ;;  %10574 = vmatmul.mubr.msk.f32.vlgmr.msra.gmra.mrb[4].mxu0 %vm17978_vm0, %v13003_v15 }
 0x1b7   : > { %11200 = vmatpush3.bf16.msra.mxu0 %v11199_v63  ;;  %10617 = vmatprep.mubr.msk.f32.mxu0 %vm17979_vm1, %v17933_v34  ;;  %v9977_v34 = vld [vmem:[%s12394_s30 + $0x48] sm:$0xff] }
 0x1b8   : > { %2473 = vbcast.lane.b32.xlu1 %v12823_v55, 328  ;;  %2406 = vbcast.lane.b32.xlu0 %v12816_v53, 328 }
 0x1b9   : > { %11201 = vmatprep.subr.bf16.mxu0 %v17936_v19 }
 0x1ba   : > { %v12957_v47 = vpop.permute.xlu1 %2445  ;;  %v12959_v50 = vpop.permute.xlu0 %2378 }
 0x1bb   : > { %11203 = vmatpush3.bf16.msra.mxu0 %v11202_v14  ;;  %v18070_v14 = vmov 0.0  }
 0x1bc   : > { %2678 = vbcast.lane.b32.xlu1 %v12833_v57, 328  ;;  %2611 = vbcast.lane.b32.xlu0 %v12828_v56, 328 }
 0x1bd   : > { %11204 = vmatprep.subr.bf16.mxu0 %v18068_v49 }
 0x1be   : > { %v12970_v33 = vpop.permute.xlu1 %2650  ;;  %v12972_v13 = vpop.permute.xlu0 %2583  ;;  %10618 = vmatmul.mubr.msk.f32.vlgmr.msra.gmra.mrb[6].mxu0 %vm17978_vm0, %v12256_v11 }
 0x1bf   : > { %v11733_v26 = vpop.eup %11732  ;;  %10628 = vmatprep.mubr.msk.f32.mxu0 %vm17979_vm1, %v18070_v14 }
 0x1c0   : > { %2881 = vbcast.lane.b32.xlu1 %v12857_v62, 312  ;;  %2814 = vbcast.lane.b32.xlu0 %v12850_v61, 312  ;;  %v11735_v31 = vpop.eup %11734  ;;  %v506_v32 = vadd.f32 1.0, %v11733_v26 }
 0x1c1   : > { %v748_v51 = vadd.f32 1.0, %v11735_v31 }
 0x1c2   : > { %v12984_v44 = vpop.permute.xlu1 %2449  ;;  %v12986_v45 = vpop.permute.xlu0 %2382  ;;  %11736 = vrcp.f32 %v506_v32  ;;  %v9976_v32 = vld [vmem:[%s12394_s30 + $0x40] sm:$0xff] }
 0x1c3   : > { %11738 = vrcp.f32 %v748_v51  ;;  %v11205_v58 = vpack.c.bf16 %v9977_v34, %v9976_v32 }
 0x1c4   : > { %3078 = vbcast.lane.b32.xlu1 %v12881_v16, 296  ;;  %3011 = vbcast.lane.b32.xlu0 %v12874_v4, 296 }
 0x1c5   : > { %11206 = vmatpush3.bf16.msra.mxu0 %v11205_v58 }
 0x1c6   : > { %v12996_v59 = vpop.permute.xlu1 %2654  ;;  %v12998_v60 = vpop.permute.xlu0 %2587  ;;  %11207 = vmatprep.subr.bf16.mxu0 %v18068_v49 }
 0x1c7   : > { %v982_v54 = vpop.f32.mrb[2].mxu0  ;;  %v1219_v26 = vpop.f32.mrb[2].mxu1 }
 0x1c8   : > { %3278 = vbcast.lane.b32.xlu1 %v12905_v5, 280  ;;  %3211 = vbcast.lane.b32.xlu0 %v12679_v37, 280  ;;  %v11482_v63 = vadd.f32 %v9920_v27, %v982_v54  ;;  %v11483_v31 = vadd.f32 %v9936_v38, %v1219_v26  ;;  %v10509_v42 = vpop.f32.mrb[3].mxu0  ;;  %v10542_v43 = vpop.f32.mrb[3].mxu1  ;;  %v9978_v27 = vld [vmem:[%s12394_s30 + $0x50] sm:$0xff]  ;;  %v9979_v38 = vld [vmem:[%s12394_s30 + $0x58] sm:$0xff] }
 0x1c9   : > { %v11208_v34 = vpack.c.bf16 %v9979_v38, %v9978_v27  ;;  %v9981_v26 = vld [vmem:[%s12399_s6 + $0x40] sm:$0xff] }
 0x1ca   : > { %v13015_v1 = vpop.permute.xlu1 %2790  ;;  %v13017_v46 = vpop.permute.xlu0 %2786  ;;  %11740 = vtanh.f32 %v11482_v63  ;;  %v9947_v6 = vmul.f32 -1.442695, %v11483_v31  ;;  %v9982_v63 = vld [vmem:[%s12399_s6 + $0x48] sm:$0xff] }
 0x1cb   : > { %11209 = vmatpush3.bf16.msra.mxu0 %v11208_v34  ;;  %v11211_v58 = vpack.c.bf16 %v9982_v63, %v9981_v26 }
 0x1cc   : > { %3406 = vbcast.lane.b32.xlu1 %v13007_v0, 264  ;;  %3402 = vbcast.lane.b32.xlu0 %v13007_v0, 256  ;;  %11742 = vpow2.f32 %v9947_v6  ;;  %v11737_v6 = vpop.eup %11736 }
 0x1cd   : > { %v11739_v31 = vpop.eup %11738  ;;  %11210 = vmatprep.subr.bf16.mxu0 %v18068_v49 }
 0x1ce   : > { %v13030_v9 = vpop.permute.xlu1 %2857  ;;  %v13032_v19 = vpop.permute.xlu0 %2853  ;;  %v1230_v32 = vmul.f32 %v12260_v12, %v11739_v31  ;;  %10629 = vmatmul.mubr.msk.f32.vlgmr.msra.gmra.mrb[6].mxu0 %vm17978_vm0, %v12976_v39  ;;  %v11214_v12 = vpack.c.bf16 %v9984_v2, %v9983_v3  ;;  %v2277_v31 = vld [vmem:[%s12444_s21] sm:$0xff] }
 0x1cf   : > { %11212 = vmatpush3.bf16.msra.mxu0 %v11211_v58  ;;  %10639 = vmatprep.mubr.msk.f32.mxu0 %vm17979_vm1, %v18070_v14 }
 0x1d0   : > { %3473 = vbcast.lane.b32.xlu1 %v13024_v8, 264  ;;  %3469 = vbcast.lane.b32.xlu0 %v13024_v8, 256 }
 0x1d1   : > { %11213 = vmatprep.subr.bf16.mxu0 %v18068_v49 }
 0x1d2   : > { %v13041_v51 = vpop.permute.xlu1 %2453  ;;  %v13043_v54 = vpop.permute.xlu0 %2386 }
 0x1d3   : > { %18069 = vst [vmem:[#allocation55_spill] sm:$0xff] %v13043_v54  ;;  %11215 = vmatpush3.bf16.msra.mxu0 %v11214_v12 }
 0x1d4   : > { %2477 = vbcast.lane.b32.xlu1 %v12823_v55, 336  ;;  %2410 = vbcast.lane.b32.xlu0 %v12816_v53, 336  ;;  %v11741_v27 = vpop.eup %11740 }
 0x1d5   : > { %v1231_v38 = vmul.f32 %v11741_v27, %v11737_v6  ;;  %v2278_v27 = vld [vmem:[%s12444_s21 + $0x8] sm:$0xff]  ;;  %11234 = vmatprep.subr.bf16.mxu0 %v18068_v49 }
 0x1d6   : > { %v13052_v42 = vpop.permute.xlu1 %2658  ;;  %v13054_v43 = vpop.permute.xlu0 %2591  ;;  %v11235_v3 = vpack.c.bf16 %v2278_v27, %v2277_v31  ;;  %10640 = vmatmul.mubr.msk.f32.vlgmr.msra.gmra.mrb[6].mxu0 %vm17978_vm0, %v13003_v15 }
 0x1d7   : > { %v11743_v54 = vpop.eup %11742  ;;  %v13070_v63 = vadd.f32 %v1231_v38, %v1230_v32   ;;  %v2280_v32 = vld [vmem:[%s12444_s21 + $0x18] sm:$0xff]  ;;  %10683 = vmatprep.mubr.msk.f32.mxu0 %vm17979_vm1, %v18070_v14 }
 0x1d8   : > { %2682 = vbcast.lane.b32.xlu1 %v12833_v57, 336  ;;  %2615 = vbcast.lane.b32.xlu0 %v12828_v56, 336  ;;  %v1227_v6 = vadd.f32 1.0, %v11743_v54  ;;  %v2279_v54 = vld [vmem:[%s12444_s21 + $0x10] sm:$0xff] }
 0x1d9   : > { %18072 = vst [vmem:[#allocation57_spill] sm:$0xff] %v13070_v63  ;;  %11744 = vtanh.f32 %v13070_v63  ;;  %11236 = vmatpush3.bf16.msra.mxu0 %v11235_v3 }
 0x1da   : > { %v13064_v34 = vpop.permute.xlu1 %2861  ;;  %v13066_v26 = vpop.permute.xlu0 %2794  ;;  %11746 = vrcp.f32 %v1227_v6  ;;  %11237 = vmatprep.subr.bf16.mxu0 %v18068_v49 }
 0x1db   : > { %18071 = vst [vmem:[#allocation56_spill] sm:$0xff] %v13066_v26 }
 0x1dc   : > { %2885 = vbcast.lane.b32.xlu1 %v12857_v62, 320  ;;  %2818 = vbcast.lane.b32.xlu0 %v12850_v61, 320 }
 0x1de   : > { %v13078_v58 = vpop.permute.xlu1 %2457  ;;  %v13080_v2 = vpop.permute.xlu0 %2390 }
 0x1df   : > { %18073 = vst [vmem:[#allocation58_spill] sm:$0xff] %v13078_v58  ;;  %18074 = vst [vmem:[#allocation59_spill] sm:$0xff] %v13080_v2  ;;  %v11238_v2 = vpack.c.bf16 %v2280_v32, %v2279_v54 }
 0x1e0   : > { %3082 = vbcast.lane.b32.xlu1 %v12881_v16, 304  ;;  %3015 = vbcast.lane.b32.xlu0 %v12874_v4, 304 }
 0x1e1   : > { %11239 = vmatpush3.bf16.msra.mxu0 %v11238_v2 }
 0x1e2   : > { %v13089_v38 = vpop.permute.xlu1 %2662  ;;  %v13091_v63 = vpop.permute.xlu0 %2595  ;;  %11264 = vmatprep.subr.bf16.mxu0 %v18068_v49 }
 0x1e3   : > { %18075 = vst [vmem:[#allocation60_spill] sm:$0xff] %v13089_v38  ;;  %18076 = vst [vmem:[#allocation61_spill] sm:$0xff] %v13091_v63  ;;  %v11745_v31 = vpop.eup %11744 }
 0x1e4   : > { %3282 = vbcast.lane.b32.xlu1 %v12905_v5, 288  ;;  %3215 = vbcast.lane.b32.xlu0 %v12679_v37, 288  ;;  %v11747_v27 = vpop.eup %11746 }
 0x1e5   : > { %v13105_v3 = vmul.f32 %v11747_v27, %v11745_v31  }
 0x1e6   : > { %v13098_v12 = vpop.permute.xlu1 %2865  ;;  %v13100_v6 = vpop.permute.xlu0 %2798 }
 0x1e7   : > { %18077 = vst [vmem:[#allocation62_spill] sm:$0xff] %v13098_v12  ;;  %18078 = vst [vmem:[#allocation63_spill] sm:$0xff] %v13100_v6  ;;  %v18080_v54 = vmov %v13105_v3 }
 0x1e8   : > { %3477 = vbcast.lane.b32.xlu1 %v13024_v8, 272  ;;  %3410 = vbcast.lane.b32.xlu0 %v13007_v0, 272  ;;  %18079 = vst [vmem:[#allocation64_spill] sm:$0xff] %v13105_v3 }
 0x1e9   : > { %10684 = vmatmul.mubr.msk.f32.vlgmr.msra.gmra.mrb[8].mxu0 %vm17978_vm0, %v18080_v54 }
 0x1ea   : > { %v13107_v32 = vpop.permute.xlu1 %2995  ;;  %v13109_v63 = vpop.permute.xlu0 %2991  ;;  %10753 = vmatprep.mubr.msk.f32.mxu0 %vm17979_vm1, %v18070_v14 }
 0x1eb   : > { %18081 = vst [vmem:[#allocation65_spill] sm:$0xff] %v13109_v63 }
 0x1ec   : > { %2481 = vbcast.lane.b32.xlu1 %v12823_v55, 344  ;;  %2414 = vbcast.lane.b32.xlu0 %v12816_v53, 344 }
 0x1ee   : > { %v13117_v2 = vpop.permute.xlu1 %3062  ;;  %v13119_v6 = vpop.permute.xlu0 %3058 }
 0x1ef   : > { %18082 = vst [vmem:[#allocation66_spill] sm:$0xff] %v13117_v2  ;;  %18083 = vst [vmem:[#allocation67_spill] sm:$0xff] %v13119_v6  ;;  %v13134_v2 = vadd.s32 1, %v12804_v48 }
 0x1f0   : > { %2686 = vbcast.lane.b32.xlu1 %v12833_v57, 344  ;;  %2619 = vbcast.lane.b32.xlu0 %v12828_v56, 344 }
 0x1f1   : > { %18088 = vst [vmem:[#allocation72_spill] sm:$0xff] %v13134_v2  ;;  %vm17981_vm5 = vcmp.lt.s32.totalorder %v13134_v2, 128 }
 0x1f2   : > { %v13123_v31 = vpop.permute.xlu1 %2461  ;;  %v13125_v27 = vpop.permute.xlu0 %2394 }
 0x1f3   : > { %18084 = vst [vmem:[#allocation68_spill] sm:$0xff] %v13123_v31  ;;  %18085 = vst [vmem:[#allocation69_spill] sm:$0xff] %v13125_v27 }
 0x1f4   : > { %2889 = vbcast.lane.b32.xlu1 %v12857_v62, 328  ;;  %2822 = vbcast.lane.b32.xlu0 %v12850_v61, 328 }
 0x1f6   : > { %v13129_v3 = vpop.permute.xlu1 %2666  ;;  %v13131_v54 = vpop.permute.xlu0 %2599 }
 0x1f7   : > { %18086 = vst [vmem:[#allocation70_spill] sm:$0xff] %v13129_v3  ;;  %18087 = vst [vmem:[#allocation71_spill] sm:$0xff] %v13131_v54  ;;  %v3607_v3 = vsel %vm17981_vm5, %v12901_v18, 0.0 }
 0x1f8   : > { %3086 = vbcast.lane.b32.xlu1 %v12881_v16, 312  ;;  %3019 = vbcast.lane.b32.xlu0 %v12874_v4, 312 }
 0x1fa   : > { %v13138_v6 = vpop.permute.xlu1 %2869  ;;  %v13140_v31 = vpop.permute.xlu0 %2802 }
 0x1fb   : > { %18089 = vst [vmem:[#allocation73_spill] sm:$0xff] %v13138_v6  ;;  %18090 = vst [vmem:[#allocation74_spill] sm:$0xff] %v13140_v31  ;;  %v13155_v31 = vrot.slane %v3607_v3, %v12662_v29 }
 0x1fc   : > { %3286 = vbcast.lane.b32.xlu1 %v12905_v5, 296  ;;  %3219 = vbcast.lane.b32.xlu0 %v12679_v37, 296 }
 0x1fe   : > { %v13145_v27 = vpop.permute.xlu1 %3066  ;;  %v13147_v54 = vpop.permute.xlu0 %2999 }
 0x1ff   : > { %18091 = vst [vmem:[#allocation75_spill] sm:$0xff] %v13145_v27  ;;  %18092 = vst [vmem:[#allocation76_spill] sm:$0xff] %v13147_v54  ;;  %v13164_v54 = vrot.slane %v3607_v3, %v12813_v52 }
 0x200   : > { %3481 = vbcast.lane.b32.xlu1 %v13024_v8, 280  ;;  %3414 = vbcast.lane.b32.xlu0 %v13007_v0, 280 }
 0x202   : > { %v13157_v6 = vpop.permute.xlu1 %2465  ;;  %v13159_v12 = vpop.permute.xlu0 %2398 }
 0x203   : > { %18093 = vst [vmem:[#allocation77_spill] sm:$0xff] %v13157_v6  ;;  %18094 = vst [vmem:[#allocation78_spill] sm:$0xff] %v13159_v12 }
 0x204   : > { %3617 = vbcast.lane.b32.xlu1 %v13155_v31, 264  ;;  %3613 = vbcast.lane.b32.xlu0 %v13155_v31, 256 }
 0x206   : > { %v13166_v27 = vpop.permute.xlu1 %2670  ;;  %v13168_v18 = vpop.permute.xlu0 %2603 }
 0x207   : > { %18095 = vst [vmem:[#allocation79_spill] sm:$0xff] %v13166_v27  ;;  %18096 = vst [vmem:[#allocation80_spill] sm:$0xff] %v13168_v18 }
 0x208   : > { %3684 = vbcast.lane.b32.xlu1 %v13164_v54, 264  ;;  %3680 = vbcast.lane.b32.xlu0 %v13164_v54, 256 }
 0x20a   : > { %v13172_v58 = vpop.permute.xlu1 %2873  ;;  %v13174_v6 = vpop.permute.xlu0 %2806 }
 0x20b   : > { %18097 = vst [vmem:[#allocation81_spill] sm:$0xff] %v13172_v58  ;;  %18098 = vst [vmem:[#allocation82_spill] sm:$0xff] %v13174_v6 }
 0x20c   : > { %2485 = vbcast.lane.b32.xlu1 %v12823_v55, 352  ;;  %2418 = vbcast.lane.b32.xlu0 %v12816_v53, 352 }
 0x20e   : > { %v13178_v12 = vpop.permute.xlu1 %3070  ;;  %v13180_v3 = vpop.permute.xlu0 %3003 }
 0x20f   : > { %18099 = vst [vmem:[#allocation83_spill] sm:$0xff] %v13178_v12  ;;  %18100 = vst [vmem:[#allocation84_spill] sm:$0xff] %v13180_v3 }
 0x210   : > { %2690 = vbcast.lane.b32.xlu1 %v12833_v57, 352  ;;  %2623 = vbcast.lane.b32.xlu0 %v12828_v56, 352 }
 0x212   : > { %v13184_v18 = vpop.permute.xlu1 %3270  ;;  %v13186_v27 = vpop.permute.xlu0 %3266 }
 0x213   : > { %18101 = vst [vmem:[#allocation85_spill] sm:$0xff] %v13184_v18  ;;  %18102 = vst [vmem:[#allocation86_spill] sm:$0xff] %v13186_v27 }
 0x214   : > { %2893 = vbcast.lane.b32.xlu1 %v12857_v62, 336  ;;  %2826 = vbcast.lane.b32.xlu0 %v12850_v61, 336 }
 0x216   : > { %v13190_v6 = vpop.permute.xlu1 %2469  ;;  %v13192_v58 = vpop.permute.xlu0 %2402 }
 0x217   : > { %18103 = vst [vmem:[#allocation87_spill] sm:$0xff] %v13190_v6  ;;  %18104 = vst [vmem:[#allocation88_spill] sm:$0xff] %v13192_v58 }
 0x218   : > { %3090 = vbcast.lane.b32.xlu1 %v12881_v16, 320  ;;  %3023 = vbcast.lane.b32.xlu0 %v12874_v4, 320 }
 0x21a   : > { %v13196_v3 = vpop.permute.xlu1 %2674  ;;  %v13198_v12 = vpop.permute.xlu0 %2607 }
 0x21b   : > { %18105 = vst [vmem:[#allocation89_spill] sm:$0xff] %v13196_v3  ;;  %18106 = vst [vmem:[#allocation90_spill] sm:$0xff] %v13198_v12 }
 0x21c   : > { %3290 = vbcast.lane.b32.xlu1 %v12905_v5, 304  ;;  %3223 = vbcast.lane.b32.xlu0 %v12679_v37, 304 }
 0x21e   : > { %v13202_v27 = vpop.permute.xlu1 %2877  ;;  %v13204_v18 = vpop.permute.xlu0 %2810 }
 0x21f   : > { %18107 = vst [vmem:[#allocation91_spill] sm:$0xff] %v13202_v27  ;;  %18108 = vst [vmem:[#allocation92_spill] sm:$0xff] %v13204_v18 }
 0x220   : > { %3485 = vbcast.lane.b32.xlu1 %v13024_v8, 288  ;;  %3418 = vbcast.lane.b32.xlu0 %v13007_v0, 288 }
 0x222   : > { %v13208_v58 = vpop.permute.xlu1 %3074  ;;  %v13210_v6 = vpop.permute.xlu0 %3007 }
 0x223   : > { %18109 = vst [vmem:[#allocation93_spill] sm:$0xff] %v13208_v58  ;;  %18110 = vst [vmem:[#allocation94_spill] sm:$0xff] %v13210_v6 }
 0x224   : > { %3688 = vbcast.lane.b32.xlu1 %v13164_v54, 272  ;;  %3621 = vbcast.lane.b32.xlu0 %v13155_v31, 272 }
 0x226   : > { %v13214_v12 = vpop.permute.xlu1 %3274  ;;  %v13216_v3 = vpop.permute.xlu0 %3207 }
 0x227   : > { %18111 = vst [vmem:[#allocation95_spill] sm:$0xff] %v13214_v12  ;;  %18112 = vst [vmem:[#allocation96_spill] sm:$0xff] %v13216_v3 }
 0x228   : > { %2489 = vbcast.lane.b32.xlu1 %v12823_v55, 360  ;;  %2422 = vbcast.lane.b32.xlu0 %v12816_v53, 360 }
 0x22a   : > { %v13220_v18 = vpop.permute.xlu1 %2473  ;;  %v13222_v27 = vpop.permute.xlu0 %2406 }
 0x22b   : > { %18113 = vst [vmem:[#allocation97_spill] sm:$0xff] %v13220_v18  ;;  %18114 = vst [vmem:[#allocation98_spill] sm:$0xff] %v13222_v27 }
 0x22c   : > { %2694 = vbcast.lane.b32.xlu1 %v12833_v57, 360  ;;  %2627 = vbcast.lane.b32.xlu0 %v12828_v56, 360 }
 0x22e   : > { %v13226_v6 = vpop.permute.xlu1 %2678  ;;  %v13228_v58 = vpop.permute.xlu0 %2611 }
 0x22f   : > { %18115 = vst [vmem:[#allocation99_spill] sm:$0xff] %v13226_v6  ;;  %18116 = vst [vmem:[#allocation100_spill] sm:$0xff] %v13228_v58  ;;  %v9953_v58 = vld [vmem:[%s12404_s12 + $0x20] sm:$0xff]  ;;  %v9954_v6 = vld [vmem:[%s12404_s12 + $0x28] sm:$0xff] }
 0x230   : > { %2897 = vbcast.lane.b32.xlu1 %v12857_v62, 344  ;;  %2830 = vbcast.lane.b32.xlu0 %v12850_v61, 344 }
 0x232   : > { %v13232_v3 = vpop.permute.xlu1 %2881  ;;  %v13234_v18 = vpop.permute.xlu0 %2814 }
 0x233   : > { %18117 = vst [vmem:[#allocation101_spill] sm:$0xff] %v13232_v3  ;;  %18118 = vst [vmem:[#allocation102_spill] sm:$0xff] %v13234_v18  ;;  %v11181_v18 = vpack.c.bf16 %v9954_v6, %v9953_v58  ;;  %v3812_v58 = vsel %vm17981_vm5, %v12899_v17, 0.0  ;;  %v9959_v6 = vld [vmem:[%s12394_s30 + $0x20] sm:$0xff]  ;;  %v9961_v17 = vld [vmem:[%s12394_s30 + $0x30] sm:$0xff]  ;;  %vm4823_vm5 = vcmask 917312  }
 0x234   : > { %3094 = vbcast.lane.b32.xlu1 %v12881_v16, 328  ;;  %3027 = vbcast.lane.b32.xlu0 %v12874_v4, 328 }
 0x235   : > { %11182 = vmatpush3.bf16.msra.mxu1 %v11181_v18  ;;  %v9960_v18 = vld [vmem:[%s12394_s30 + $0x28] sm:$0xff] }
 0x236   : > { %v13238_v27 = vpop.permute.xlu1 %3078  ;;  %v13240_v12 = vpop.permute.xlu0 %3011  ;;  %11183 = vmatprep.subr.bf16.mxu1 %v18068_v49 }
 0x237   : > { %18119 = vst [vmem:[#allocation103_spill] sm:$0xff] %v13238_v27  ;;  %18120 = vst [vmem:[#allocation104_spill] sm:$0xff] %v13240_v12  ;;  %v9955_v27 = vld [vmem:[%s12404_s12 + $0x30] sm:$0xff]  ;;  %v9956_v12 = vld [vmem:[%s12404_s12 + $0x38] sm:$0xff] }
 0x238   : > { %3294 = vbcast.lane.b32.xlu1 %v12905_v5, 312  ;;  %3227 = vbcast.lane.b32.xlu0 %v12679_v37, 312 }
 0x23a   : > { %v13246_v38 = vpop.permute.xlu1 %3278  ;;  %v13248_v3 = vpop.permute.xlu0 %3211 }
 0x23b   : > { %18121 = vst [vmem:[#allocation105_spill] sm:$0xff] %v13246_v38  ;;  %18122 = vst [vmem:[#allocation106_spill] sm:$0xff] %v13248_v3  ;;  %v11184_v38 = vpack.c.bf16 %v9956_v12, %v9955_v27  ;;  %v11187_v12 = vpack.c.bf16 %v9960_v18, %v9959_v6  ;;  %v13281_v27 = vrot.slane %v3812_v58, %v12813_v52  ;;  %v9964_v18 = vld [vmem:[%s12399_s6 + $0x20] sm:$0xff] }
 0x23c   : > { %3489 = vbcast.lane.b32.xlu1 %v13024_v8, 296  ;;  %3422 = vbcast.lane.b32.xlu0 %v13007_v0, 296 }
 0x23d   : > { %11185 = vmatpush3.bf16.msra.mxu1 %v11184_v38  ;;  %v9962_v38 = vld [vmem:[%s12394_s30 + $0x38] sm:$0xff] }
 0x23e   : > { %v13254_v63 = vpop.permute.xlu1 %3406  ;;  %v13256_v26 = vpop.permute.xlu0 %3402  ;;  %11186 = vmatprep.subr.bf16.mxu1 %v18068_v49  ;;  %v11190_v6 = vpack.c.bf16 %v9962_v38, %v9961_v17  ;;  %v9966_v17 = vld [vmem:[%s12399_s6 + $0x30] sm:$0xff]  ;;  %v9967_v38 = vld [vmem:[%s12399_s6 + $0x38] sm:$0xff] }
 0x23f   : > { %18123 = vst [vmem:[#allocation107_spill] sm:$0xff] %v13254_v63  ;;  %18124 = vst [vmem:[#allocation108_spill] sm:$0xff] %v13256_v26  ;;  %v13267_v63 = vrot.slane %v3812_v58, %v12662_v29  ;;  %v9965_v58 = vld [vmem:[%s12399_s6 + $0x28] sm:$0xff] }
 0x240   : > { %3692 = vbcast.lane.b32.xlu1 %v13164_v54, 280  ;;  %3625 = vbcast.lane.b32.xlu0 %v13155_v31, 280 }
 0x241   : > { %10585 = vmatmul.mubr.msk.f32.vlgmr.msra.gmra.mrb[4].mxu1 %vm17978_vm0, %v12256_v11 }
 0x242   : > { %v13269_v26 = vpop.permute.xlu1 %3473  ;;  %v13271_v3 = vpop.permute.xlu0 %3469  ;;  %11188 = vmatpush3.bf16.msra.mxu1 %v11187_v12  ;;  %10595 = vmatprep.mubr.msk.f32.mxu1 %vm17979_vm1, %v18070_v14  ;;  %v11193_v12 = vpack.c.bf16 %v9965_v58, %v9964_v18  ;;  %v9986_v18 = vld [vmem:[%s12404_s12 + $0x60] sm:$0xff]  ;;  %v9987_v58 = vld [vmem:[%s12404_s12 + $0x68] sm:$0xff] }
 0x243   : > { %18125 = vst [vmem:[#allocation109_spill] sm:$0xff] %v13269_v26  ;;  %18126 = vst [vmem:[#allocation110_spill] sm:$0xff] %v13271_v3  ;;  %11189 = vmatprep.subr.bf16.mxu1 %v18068_v49 }
 0x244   : > { %3822 = vbcast.lane.b32.xlu1 %v13267_v63, 264  ;;  %3818 = vbcast.lane.b32.xlu0 %v13267_v63, 256 }
 0x246   : > { %v13283_v2 = vpop.permute.xlu1 %2477  ;;  %v13285_v3 = vpop.permute.xlu0 %2410  ;;  %11191 = vmatpush3.bf16.msra.mxu1 %v11190_v6  ;;  %v11196_v6 = vpack.c.bf16 %v9967_v38, %v9966_v17  ;;  %v9988_v17 = vld [vmem:[%s12404_s12 + $0x70] sm:$0xff]  ;;  %v9989_v38 = vld [vmem:[%s12404_s12 + $0x78] sm:$0xff] }
 0x247   : > { %18127 = vst [vmem:[#allocation111_spill] sm:$0xff] %v13283_v2  ;;  %18128 = vst [vmem:[#allocation112_spill] sm:$0xff] %v13285_v3  ;;  %11192 = vmatprep.subr.bf16.mxu1 %v18068_v49 }
 0x248   : > { %3889 = vbcast.lane.b32.xlu1 %v13281_v27, 264  ;;  %3885 = vbcast.lane.b32.xlu0 %v13281_v27, 256 }
 0x249   : > { %10596 = vmatmul.mubr.msk.f32.vlgmr.msra.gmra.mrb[4].mxu1 %vm17978_vm0, %v12976_v39 }
 0x24a   : > { %v13294_v26 = vpop.permute.xlu1 %2682  ;;  %v13296_v2 = vpop.permute.xlu0 %2615  ;;  %11194 = vmatpush3.bf16.msra.mxu1 %v11193_v12  ;;  %10606 = vmatprep.mubr.msk.f32.mxu1 %vm17979_vm1, %v18070_v14  ;;  %v11217_v12 = vpack.c.bf16 %v9987_v58, %v9986_v18  ;;  %v9992_v18 = vld [vmem:[%s12394_s30 + $0x60] sm:$0xff]  ;;  %v9993_v58 = vld [vmem:[%s12394_s30 + $0x68] sm:$0xff] }
 0x24b   : > { %18129 = vst [vmem:[#allocation113_spill] sm:$0xff] %v13294_v26  ;;  %18130 = vst [vmem:[#allocation114_spill] sm:$0xff] %v13296_v2  ;;  %11195 = vmatprep.subr.bf16.mxu1 %v18068_v49 }
 0x24c   : > { %2493 = vbcast.lane.b32.xlu1 %v12823_v55, 368  ;;  %2426 = vbcast.lane.b32.xlu0 %v12816_v53, 368 }
 0x24e   : > { %v13305_v3 = vpop.permute.xlu1 %2885  ;;  %v13307_v26 = vpop.permute.xlu0 %2818  ;;  %11197 = vmatpush3.bf16.msra.mxu1 %v11196_v6  ;;  %v11220_v6 = vpack.c.bf16 %v9989_v38, %v9988_v17  ;;  %v9994_v17 = vld [vmem:[%s12394_s30 + $0x70] sm:$0xff]  ;;  %v9995_v38 = vld [vmem:[%s12394_s30 + $0x78] sm:$0xff] }
 0x24f   : > { %18131 = vst [vmem:[#allocation115_spill] sm:$0xff] %v13305_v3  ;;  %18132 = vst [vmem:[#allocation116_spill] sm:$0xff] %v13307_v26  ;;  %11216 = vmatprep.subr.bf16.mxu1 %v18068_v49 }
 0x250   : > { %2698 = vbcast.lane.b32.xlu1 %v12833_v57, 368  ;;  %2631 = vbcast.lane.b32.xlu0 %v12828_v56, 368 }
 0x251   : > { %10607 = vmatmul.mubr.msk.f32.vlgmr.msra.gmra.mrb[4].mxu1 %vm17978_vm0, %v13003_v15 }
 0x252   : > { %v13316_v2 = vpop.permute.xlu1 %3082  ;;  %v13318_v3 = vpop.permute.xlu0 %3015  ;;  %11218 = vmatpush3.bf16.msra.mxu1 %v11217_v12  ;;  %10650 = vmatprep.mubr.msk.f32.mxu1 %vm17979_vm1, %v18070_v14  ;;  %v11223_v12 = vpack.c.bf16 %v9993_v58, %v9992_v18  ;;  %v9998_v18 = vld [vmem:[%s12399_s6 + $0x68] sm:$0xff] }
 0x253   : > { %18133 = vst [vmem:[#allocation117_spill] sm:$0xff] %v13316_v2  ;;  %18134 = vst [vmem:[#allocation118_spill] sm:$0xff] %v13318_v3  ;;  %11219 = vmatprep.subr.bf16.mxu1 %v18068_v49 }
 0x254   : > { %2901 = vbcast.lane.b32.xlu1 %v12857_v62, 352  ;;  %2834 = vbcast.lane.b32.xlu0 %v12850_v61, 352 }
 0x256   : > { %v13327_v26 = vpop.permute.xlu1 %3282  ;;  %v13329_v2 = vpop.permute.xlu0 %3215  ;;  %11221 = vmatpush3.bf16.msra.mxu1 %v11220_v6  ;;  %v11226_v6 = vpack.c.bf16 %v9995_v38, %v9994_v17  ;;  %v9999_v17 = vld [vmem:[%s12399_s6 + $0x70] sm:$0xff]  ;;  %v10000_v38 = vld [vmem:[%s12399_s6 + $0x78] sm:$0xff] }
 0x257   : > { %18135 = vst [vmem:[#allocation119_spill] sm:$0xff] %v13327_v26  ;;  %18136 = vst [vmem:[#allocation120_spill] sm:$0xff] %v13329_v2  ;;  %11222 = vmatprep.subr.bf16.mxu1 %v18068_v49 }
 0x258   : > { %3098 = vbcast.lane.b32.xlu1 %v12881_v16, 336  ;;  %3031 = vbcast.lane.b32.xlu0 %v12874_v4, 336 }
 0x259   : > { %10651 = vmatmul.mubr.msk.f32.vlgmr.msra.gmra.mrb[6].mxu1 %vm17978_vm0, %v12256_v11  ;;  %v9997_v11 = vld [vmem:[%s12399_s6 + $0x60] sm:$0xff] }
 0x25a   : > { %v13338_v3 = vpop.permute.xlu1 %3477  ;;  %v13340_v26 = vpop.permute.xlu0 %3410  ;;  %11224 = vmatpush3.bf16.msra.mxu1 %v11223_v12  ;;  %10661 = vmatprep.mubr.msk.f32.mxu1 %vm17979_vm1, %v18070_v14  ;;  %v11229_v12 = vpack.c.bf16 %v9998_v18, %v9997_v11 }
 0x25b   : > { %18137 = vst [vmem:[#allocation121_spill] sm:$0xff] %v13338_v3  ;;  %18138 = vst [vmem:[#allocation122_spill] sm:$0xff] %v13340_v26  ;;  %11225 = vmatprep.subr.bf16.mxu1 %v18068_v49 }
 0x25c   : > { %3298 = vbcast.lane.b32.xlu1 %v12905_v5, 320  ;;  %3231 = vbcast.lane.b32.xlu0 %v12679_v37, 320 }
 0x25e   : > { %v13349_v2 = vpop.permute.xlu1 %2481  ;;  %v13351_v3 = vpop.permute.xlu0 %2414  ;;  %11227 = vmatpush3.bf16.msra.mxu1 %v11226_v6 }
 0x25f   : > { %18139 = vst [vmem:[#allocation123_spill] sm:$0xff] %v13349_v2  ;;  %18140 = vst [vmem:[#allocation124_spill] sm:$0xff] %v13351_v3  ;;  %11228 = vmatprep.subr.bf16.mxu1 %v18068_v49 }
 0x260   : > { %3493 = vbcast.lane.b32.xlu1 %v13024_v8, 304  ;;  %3426 = vbcast.lane.b32.xlu0 %v13007_v0, 304 }
 0x261   : > { %10662 = vmatmul.mubr.msk.f32.vlgmr.msra.gmra.mrb[6].mxu1 %vm17978_vm0, %v12976_v39 }
 0x262   : > { %v13360_v58 = vpop.permute.xlu1 %2686  ;;  %v13362_v2 = vpop.permute.xlu0 %2619  ;;  %11230 = vmatpush3.bf16.msra.mxu1 %v11229_v12  ;;  %10672 = vmatprep.mubr.msk.f32.mxu1 %vm17979_vm1, %v18070_v14 }
 0x263   : > { %18141 = vst [vmem:[#allocation125_spill] sm:$0xff] %v13360_v58  ;;  %v11232_v58 = vpack.c.bf16 %v10000_v38, %v9999_v17  ;;  %11231 = vmatprep.subr.bf16.mxu1 %v18068_v49  ;;  %v13420_v38 = vadd.s32 2, %v12804_v48 }
 0x264   : > { %3696 = vbcast.lane.b32.xlu1 %v13164_v54, 288  ;;  %3629 = vbcast.lane.b32.xlu0 %v13155_v31, 288 }
 0x265   : > { %18152 = vst [vmem:[#allocation136_spill] sm:$0xff] %v13420_v38  ;;  %vm17977_vm6 = vcmp.lt.s32.totalorder %v13420_v38, 128 }
 0x266   : > { %v13371_v3 = vpop.permute.xlu1 %2889  ;;  %v13373_v26 = vpop.permute.xlu0 %2822  ;;  %11233 = vmatpush3.bf16.msra.mxu1 %v11232_v58  ;;  %v4023_v48 = vsel %vm17977_vm6, %v12911_v21, 0.0 }
 0x267   : > { %11240 = vmatprep.subr.bf16.mxu1 %v18068_v49 }
 0x268   : > { %3893 = vbcast.lane.b32.xlu1 %v13281_v27, 272  ;;  %3826 = vbcast.lane.b32.xlu0 %v13267_v63, 272 }
 0x269   : > { %10673 = vmatmul.mubr.msk.f32.vlgmr.msra.gmra.mrb[6].mxu1 %vm17978_vm0, %v13003_v15  ;;  %vm17984_vm0 = vcmask 786112  }
 0x26a   : > { %v13380_v6 = vpop.permute.xlu1 %3086  ;;  %v13382_v39 = vpop.permute.xlu0 %3019  ;;  %10718 = vmatprep.mubr.msk.f32.mxu1 %vm17979_vm1, %v18070_v14  ;;  %vm4816_vm1 = vcmask 851712  }
 0x26c   : > { %2497 = vbcast.lane.b32.xlu1 %v12823_v55, 376  ;;  %2430 = vbcast.lane.b32.xlu0 %v12816_v53, 376 }
 0x26e   : > { %v13389_v11 = vpop.permute.xlu1 %3286  ;;  %v13391_v18 = vpop.permute.xlu0 %3219 }
 0x26f   : > { %18142 = vst [vmem:[#allocation126_spill] sm:$0xff] %v13389_v11  ;;  %18143 = vst [vmem:[#allocation127_spill] sm:$0xff] %v13391_v18 }
 0x270   : > { %2702 = vbcast.lane.b32.xlu1 %v12833_v57, 376  ;;  %2635 = vbcast.lane.b32.xlu0 %v12828_v56, 376 }
 0x272   : > { %v13397_v58 = vpop.permute.xlu1 %3481  ;;  %v13399_v12 = vpop.permute.xlu0 %3414 }
 0x273   : > { %18144 = vst [vmem:[#allocation128_spill] sm:$0xff] %v13397_v58  ;;  %18145 = vst [vmem:[#allocation129_spill] sm:$0xff] %v13399_v12 }
 0x274   : > { %2905 = vbcast.lane.b32.xlu1 %v12857_v62, 360  ;;  %2838 = vbcast.lane.b32.xlu0 %v12850_v61, 360 }
 0x276   : > { %v13403_v53 = vpop.permute.xlu1 %3617  ;;  %v13405_v55 = vpop.permute.xlu0 %3613 }
 0x277   : > { %18146 = vst [vmem:[#allocation130_spill] sm:$0xff] %v13403_v53  ;;  %18147 = vst [vmem:[#allocation131_spill] sm:$0xff] %v13405_v55 }
 0x278   : > { %3102 = vbcast.lane.b32.xlu1 %v12881_v16, 344  ;;  %3035 = vbcast.lane.b32.xlu0 %v12874_v4, 344 }
 0x27a   : > { %v13409_v15 = vpop.permute.xlu1 %3684  ;;  %v13411_v57 = vpop.permute.xlu0 %3680 }
 0x27b   : > { %18148 = vst [vmem:[#allocation132_spill] sm:$0xff] %v13409_v15  ;;  %18149 = vst [vmem:[#allocation133_spill] sm:$0xff] %v13411_v57 }
 0x27c   : > { %3302 = vbcast.lane.b32.xlu1 %v12905_v5, 328  ;;  %3235 = vbcast.lane.b32.xlu0 %v12679_v37, 328 }
 0x27e   : > { %v13415_v56 = vpop.permute.xlu1 %2485  ;;  %v13417_v17 = vpop.permute.xlu0 %2418 }
 0x27f   : > { %18150 = vst [vmem:[#allocation134_spill] sm:$0xff] %v13415_v56  ;;  %18151 = vst [vmem:[#allocation135_spill] sm:$0xff] %v13417_v17 }
 0x280   : > { %3497 = vbcast.lane.b32.xlu1 %v13024_v8, 312  ;;  %3430 = vbcast.lane.b32.xlu0 %v13007_v0, 312 }
 0x282   : > { %v13424_v14 = vpop.permute.xlu1 %2690  ;;  %v13426_v49 = vpop.permute.xlu0 %2623 }
 0x283   : > { %18153 = vst [vmem:[#allocation137_spill] sm:$0xff] %v13424_v14  ;;  %18154 = vst [vmem:[#allocation138_spill] sm:$0xff] %v13426_v49  ;;  %v13441_v49 = vrot.slane %v4023_v48, %v12662_v29 }
 0x284   : > { %3700 = vbcast.lane.b32.xlu1 %v13164_v54, 296  ;;  %3633 = vbcast.lane.b32.xlu0 %v13155_v31, 296 }
 0x286   : > { %v13431_v56 = vpop.permute.xlu1 %2893  ;;  %v13433_v17 = vpop.permute.xlu0 %2826 }
 0x287   : > { %18155 = vst [vmem:[#allocation139_spill] sm:$0xff] %v13431_v56  ;;  %18156 = vst [vmem:[#allocation140_spill] sm:$0xff] %v13433_v17  ;;  %v13450_v17 = vrot.slane %v4023_v48, %v12813_v52 }
 0x288   : > { %3897 = vbcast.lane.b32.xlu1 %v13281_v27, 280  ;;  %3830 = vbcast.lane.b32.xlu0 %v13267_v63, 280 }
 0x289   : > { %v1474_v55 = vpop.f32.mrb[4].mxu0 }
 0x28a   : > { %v13443_v14 = vpop.permute.xlu1 %3090  ;;  %v13445_v57 = vpop.permute.xlu0 %3023 }
 0x28b   : > { %18157 = vst [vmem:[#allocation141_spill] sm:$0xff] %v13443_v14  ;;  %18158 = vst [vmem:[#allocation142_spill] sm:$0xff] %v13445_v57 }
 0x28c   : > { %4033 = vbcast.lane.b32.xlu1 %v13441_v49, 264  ;;  %4029 = vbcast.lane.b32.xlu0 %v13441_v49, 256 }
 0x28e   : > { %v13452_v56 = vpop.permute.xlu1 %3290  ;;  %v13454_v21 = vpop.permute.xlu0 %3223 }
 0x28f   : > { %18159 = vst [vmem:[#allocation143_spill] sm:$0xff] %v13452_v56  ;;  %18160 = vst [vmem:[#allocation144_spill] sm:$0xff] %v13454_v21 }
 0x290   : > { %4100 = vbcast.lane.b32.xlu1 %v13450_v17, 264  ;;  %4096 = vbcast.lane.b32.xlu0 %v13450_v17, 256 }
 0x292   : > { %v13458_v15 = vpop.permute.xlu1 %3485  ;;  %v13460_v14 = vpop.permute.xlu0 %3418 }
 0x293   : > { %18161 = vst [vmem:[#allocation145_spill] sm:$0xff] %v13458_v15  ;;  %18162 = vst [vmem:[#allocation146_spill] sm:$0xff] %v13460_v14 }
 0x294   : > { %2909 = vbcast.lane.b32.xlu1 %v12857_v62, 368  ;;  %2842 = vbcast.lane.b32.xlu0 %v12850_v61, 368 }
 0x296   : > { %v13464_v57 = vpop.permute.xlu1 %3688  ;;  %v13466_v48 = vpop.permute.xlu0 %3621 }
 0x297   : > { %18163 = vst [vmem:[#allocation147_spill] sm:$0xff] %v13464_v57  ;;  %18164 = vst [vmem:[#allocation148_spill] sm:$0xff] %v13466_v48 }
 0x298   : > { %3106 = vbcast.lane.b32.xlu1 %v12881_v16, 352  ;;  %3039 = vbcast.lane.b32.xlu0 %v12874_v4, 352 }
 0x29a   : > { %v13470_v21 = vpop.permute.xlu1 %2489  ;;  %v13472_v56 = vpop.permute.xlu0 %2422 }
 0x29b   : > { %18165 = vst [vmem:[#allocation149_spill] sm:$0xff] %v13470_v21  ;;  %18166 = vst [vmem:[#allocation150_spill] sm:$0xff] %v13472_v56 }
 0x29c   : > { %3306 = vbcast.lane.b32.xlu1 %v12905_v5, 336  ;;  %3239 = vbcast.lane.b32.xlu0 %v12679_v37, 336 }
 0x29e   : > { %v13476_v14 = vpop.permute.xlu1 %2694  ;;  %v13478_v15 = vpop.permute.xlu0 %2627 }
 0x29f   : > { %18167 = vst [vmem:[#allocation151_spill] sm:$0xff] %v13476_v14  ;;  %18168 = vst [vmem:[#allocation152_spill] sm:$0xff] %v13478_v15 }
 0x2a0   : > { %3501 = vbcast.lane.b32.xlu1 %v13024_v8, 320  ;;  %3434 = vbcast.lane.b32.xlu0 %v13007_v0, 320 }
 0x2a2   : > { %v13482_v48 = vpop.permute.xlu1 %2897  ;;  %v13484_v57 = vpop.permute.xlu0 %2830 }
 0x2a3   : > { %18169 = vst [vmem:[#allocation153_spill] sm:$0xff] %v13482_v48  ;;  %18170 = vst [vmem:[#allocation154_spill] sm:$0xff] %v13484_v57 }
 0x2a4   : > { %3704 = vbcast.lane.b32.xlu1 %v13164_v54, 304  ;;  %3637 = vbcast.lane.b32.xlu0 %v13155_v31, 304 }
 0x2a6   : > { %v13488_v56 = vpop.permute.xlu1 %3094  ;;  %v13490_v21 = vpop.permute.xlu0 %3027 }
 0x2a7   : > { %18171 = vst [vmem:[#allocation155_spill] sm:$0xff] %v13488_v56  ;;  %18172 = vst [vmem:[#allocation156_spill] sm:$0xff] %v13490_v21 }
 0x2a8   : > { %3901 = vbcast.lane.b32.xlu1 %v13281_v27, 288  ;;  %3834 = vbcast.lane.b32.xlu0 %v13267_v63, 288 }
 0x2aa   : > { %v13494_v15 = vpop.permute.xlu1 %3294  ;;  %v13496_v14 = vpop.permute.xlu0 %3227 }
 0x2ab   : > { %18173 = vst [vmem:[#allocation157_spill] sm:$0xff] %v13494_v15  ;;  %18174 = vst [vmem:[#allocation158_spill] sm:$0xff] %v13496_v14 }
 0x2ac   : > { %4104 = vbcast.lane.b32.xlu1 %v13450_v17, 272  ;;  %4037 = vbcast.lane.b32.xlu0 %v13441_v49, 272 }
 0x2ae   : > { %v13500_v57 = vpop.permute.xlu1 %3489  ;;  %v13502_v48 = vpop.permute.xlu0 %3422 }
 0x2af   : > { %18175 = vst [vmem:[#allocation159_spill] sm:$0xff] %v13500_v57  ;;  %18176 = vst [vmem:[#allocation160_spill] sm:$0xff] %v13502_v48  ;;  %v9949_v48 = vld [vmem:[#allocation11] ss:$0 sm:$0xff] }
 0x2b0   : > { %2913 = vbcast.lane.b32.xlu1 %v12857_v62, 376  ;;  %2846 = vbcast.lane.b32.xlu0 %v12850_v61, 376  ;;  %v10575_v62 = vpop.f32.mrb[5].mxu0 }
 0x2b1   : > { %v1958_v61 = vpop.f32.mrb[6].mxu0 }
 0x2b2   : > { %v13506_v21 = vpop.permute.xlu1 %3692  ;;  %v13508_v56 = vpop.permute.xlu0 %3625 }
 0x2b3   : > { %18177 = vst [vmem:[#allocation161_spill] sm:$0xff] %v13506_v21  ;;  %18178 = vst [vmem:[#allocation162_spill] sm:$0xff] %v13508_v56  ;;  %v11484_v56 = vadd.f32 %v9949_v48, %v1474_v55  ;;  %v10641_v53 = vpop.f32.mrb[7].mxu0  ;;  %v9975_v55 = vld [vmem:[#allocation11 + $0x2] ss:$0 sm:$0xff] }
 0x2b4   : > { %3110 = vbcast.lane.b32.xlu1 %v12881_v16, 360  ;;  %3043 = vbcast.lane.b32.xlu0 %v12874_v4, 360 }
 0x2b6   : > { %v13512_v14 = vpop.permute.xlu1 %3822  ;;  %v13514_v15 = vpop.permute.xlu0 %3818 }
 0x2b7   : > { %18179 = vst [vmem:[#allocation163_spill] sm:$0xff] %v13512_v14  ;;  %18180 = vst [vmem:[#allocation164_spill] sm:$0xff] %v13514_v15  ;;  %v9952_v14 = vmul.f32 -1.442695, %v11484_v56  ;;  %v11486_v56 = vadd.f32 %v9975_v55, %v1958_v61 }
 0x2b8   : > { %3310 = vbcast.lane.b32.xlu1 %v12905_v5, 344  ;;  %3243 = vbcast.lane.b32.xlu0 %v12679_v37, 344 }
 0x2b9   : > { %11748 = vpow2.f32 %v9952_v14 }
 0x2ba   : > { %v13518_v57 = vpop.permute.xlu1 %3889  ;;  %v13520_v21 = vpop.permute.xlu0 %3885  ;;  %11750 = vtanh.f32 %v11486_v56 }
 0x2bb   : > { %18181 = vst [vmem:[#allocation165_spill] sm:$0xff] %v13518_v57  ;;  %18182 = vst [vmem:[#allocation166_spill] sm:$0xff] %v13520_v21 }
 0x2bc   : > { %3505 = vbcast.lane.b32.xlu1 %v13024_v8, 328  ;;  %3438 = vbcast.lane.b32.xlu0 %v13007_v0, 328  ;;  %v13528_v58 = vpop.f32.mrb[8].mxu0 }
 0x2bd   : > { %18185 = vst [vmem:[#allocation169_spill] sm:$0xff] %v13528_v58  ;;  %v10685_v62 = vpop.f32.mrb[9].mxu0 }
 0x2be   : > { %v13524_v15 = vpop.permute.xlu1 %2493  ;;  %v13526_v12 = vpop.permute.xlu0 %2426 }
 0x2bf   : > { %18183 = vst [vmem:[#allocation167_spill] sm:$0xff] %v13524_v15  ;;  %18184 = vst [vmem:[#allocation168_spill] sm:$0xff] %v13526_v12  ;;  %v4228_v12 = vsel %vm17977_vm6, %v12909_v20, 0.0  ;;  %vm17985_vm6 = vcmask 720512  }
 0x2c0   : > { %3708 = vbcast.lane.b32.xlu1 %v13164_v54, 312  ;;  %3641 = vbcast.lane.b32.xlu0 %v13155_v31, 312  ;;  %v13557_v20 = vrot.slane %v4228_v12, %v12813_v52 }
 0x2c2   : > { %v13532_v21 = vpop.permute.xlu1 %2698  ;;  %v13534_v53 = vpop.permute.xlu0 %2631 }
 0x2c3   : > { %18186 = vst [vmem:[#allocation170_spill] sm:$0xff] %v13532_v21  ;;  %18187 = vst [vmem:[#allocation171_spill] sm:$0xff] %v13534_v53  ;;  %v11749_v15 = vpop.eup %11748  ;;  %v13548_v53 = vrot.slane %v4228_v12, %v12662_v29 }
 0x2c4   : > { %3905 = vbcast.lane.b32.xlu1 %v13281_v27, 296  ;;  %3838 = vbcast.lane.b32.xlu0 %v13267_v63, 296  ;;  %v1482_v62 = vadd.f32 1.0, %v11749_v15 }
 0x2c6   : > { %v13538_v48 = vpop.permute.xlu1 %2901  ;;  %v13540_v14 = vpop.permute.xlu0 %2834  ;;  %11752 = vrcp.f32 %v1482_v62 }
 0x2c7   : > { %18188 = vst [vmem:[#allocation172_spill] sm:$0xff] %v13538_v48  ;;  %18189 = vst [vmem:[#allocation173_spill] sm:$0xff] %v13540_v14  ;;  %v11751_v62 = vpop.eup %11750 }
 0x2c8   : > { %4108 = vbcast.lane.b32.xlu1 %v13450_v17, 280  ;;  %4041 = vbcast.lane.b32.xlu0 %v13441_v49, 280 }
 0x2ca   : > { %v13550_v21 = vpop.permute.xlu1 %3098  ;;  %v13552_v61 = vpop.permute.xlu0 %3031 }
 0x2cb   : > { %18190 = vst [vmem:[#allocation174_spill] sm:$0xff] %v13550_v21  ;;  %18191 = vst [vmem:[#allocation175_spill] sm:$0xff] %v13552_v61 }
 0x2cc   : > { %4238 = vbcast.lane.b32.xlu1 %v13548_v53, 264  ;;  %4234 = vbcast.lane.b32.xlu0 %v13548_v53, 256 }
 0x2ce   : > { %v13559_v55 = vpop.permute.xlu1 %3298  ;;  %v13561_v38 = vpop.permute.xlu0 %3231 }
 0x2cf   : > { %18192 = vst [vmem:[#allocation176_spill] sm:$0xff] %v13559_v55  ;;  %18193 = vst [vmem:[#allocation177_spill] sm:$0xff] %v13561_v38 }
 0x2d0   : > { %4305 = vbcast.lane.b32.xlu1 %v13557_v20, 264  ;;  %4301 = vbcast.lane.b32.xlu0 %v13557_v20, 256  ;;  %v11753_v61 = vpop.eup %11752 }
 0x2d1   : > { %v13575_v55 = vmul.f32 %v11753_v61, %v11751_v62 }
 0x2d2   : > { %v13565_v15 = vpop.permute.xlu1 %3493  ;;  %v13567_v56 = vpop.permute.xlu0 %3426 }
 0x2d3   : > { %18194 = vst [vmem:[#allocation178_spill] sm:$0xff] %v13565_v15  ;;  %18195 = vst [vmem:[#allocation179_spill] sm:$0xff] %v13567_v56 }
 0x2d4   : > { %3114 = vbcast.lane.b32.xlu1 %v12881_v16, 368  ;;  %3047 = vbcast.lane.b32.xlu0 %v12874_v4, 368 }
 0x2d6   : > { %v13571_v12 = vpop.permute.xlu1 %3696  ;;  %v13573_v21 = vpop.permute.xlu0 %3629 }
 0x2d7   : > { %18196 = vst [vmem:[#allocation180_spill] sm:$0xff] %v13571_v12  ;;  %18197 = vst [vmem:[#allocation181_spill] sm:$0xff] %v13573_v21 }
 0x2d8   : > { %3314 = vbcast.lane.b32.xlu1 %v12905_v5, 352  ;;  %3247 = vbcast.lane.b32.xlu0 %v12679_v37, 352 }
 0x2da   : > { %v13579_v38 = vpop.permute.xlu1 %3893  ;;  %v13581_v15 = vpop.permute.xlu0 %3826 }
 0x2db   : > { %18198 = vst [vmem:[#allocation182_spill] sm:$0xff] %v13579_v38  ;;  %18199 = vst [vmem:[#allocation183_spill] sm:$0xff] %v13581_v15 }
 0x2dc   : > { %3509 = vbcast.lane.b32.xlu1 %v13024_v8, 336  ;;  %3442 = vbcast.lane.b32.xlu0 %v13007_v0, 336 }
 0x2de   : > { %v13585_v56 = vpop.permute.xlu1 %2497  ;;  %v13587_v14 = vpop.permute.xlu0 %2430 }
 0x2df   : > { %18200 = vst [vmem:[#allocation184_spill] sm:$0xff] %v13585_v56  ;;  %18201 = vst [vmem:[#allocation185_spill] sm:$0xff] %v13587_v14 }
 0x2e0   : > { %3712 = vbcast.lane.b32.xlu1 %v13164_v54, 320  ;;  %3645 = vbcast.lane.b32.xlu0 %v13155_v31, 320 }
 0x2e2   : > { %v13591_v61 = vpop.permute.xlu1 %2702  ;;  %v13593_v62 = vpop.permute.xlu0 %2635 }
 0x2e3   : > { %18202 = vst [vmem:[#allocation186_spill] sm:$0xff] %v13591_v61  ;;  %18203 = vst [vmem:[#allocation187_spill] sm:$0xff] %v13593_v62 }
 0x2e4   : > { %3909 = vbcast.lane.b32.xlu1 %v13281_v27, 304  ;;  %3842 = vbcast.lane.b32.xlu0 %v13267_v63, 304 }
 0x2e6   : > { %v13597_v15 = vpop.permute.xlu1 %2905  ;;  %v13599_v38 = vpop.permute.xlu0 %2838 }
 0x2e7   : > { %18204 = vst [vmem:[#allocation188_spill] sm:$0xff] %v13597_v15  ;;  %18205 = vst [vmem:[#allocation189_spill] sm:$0xff] %v13599_v38 }
 0x2e8   : > { %4112 = vbcast.lane.b32.xlu1 %v13450_v17, 288  ;;  %4045 = vbcast.lane.b32.xlu0 %v13441_v49, 288 }
 0x2ea   : > { %v13603_v14 = vpop.permute.xlu1 %3102  ;;  %v13605_v56 = vpop.permute.xlu0 %3035 }
 0x2eb   : > { %18206 = vst [vmem:[#allocation190_spill] sm:$0xff] %v13603_v14  ;;  %18207 = vst [vmem:[#allocation191_spill] sm:$0xff] %v13605_v56 }
 0x2ec   : > { %4309 = vbcast.lane.b32.xlu1 %v13557_v20, 272  ;;  %4242 = vbcast.lane.b32.xlu0 %v13548_v53, 272 }
 0x2ee   : > { %v13609_v62 = vpop.permute.xlu1 %3302  ;;  %v13611_v61 = vpop.permute.xlu0 %3235 }
 0x2ef   : > { %18208 = vst [vmem:[#allocation192_spill] sm:$0xff] %v13609_v62  ;;  %18209 = vst [vmem:[#allocation193_spill] sm:$0xff] %v13611_v61 }
 0x2f0   : > { %3118 = vbcast.lane.b32.xlu1 %v12881_v16, 376  ;;  %3051 = vbcast.lane.b32.xlu0 %v12874_v4, 376 }
 0x2f2   : > { %v13615_v38 = vpop.permute.xlu1 %3497  ;;  %v13617_v15 = vpop.permute.xlu0 %3430 }
 0x2f3   : > { %18210 = vst [vmem:[#allocation194_spill] sm:$0xff] %v13615_v38  ;;  %18211 = vst [vmem:[#allocation195_spill] sm:$0xff] %v13617_v15 }
 0x2f4   : > { %3318 = vbcast.lane.b32.xlu1 %v12905_v5, 360  ;;  %3251 = vbcast.lane.b32.xlu0 %v12679_v37, 360 }
 0x2f6   : > { %v13621_v56 = vpop.permute.xlu1 %3700  ;;  %v13623_v14 = vpop.permute.xlu0 %3633 }
 0x2f7   : > { %18212 = vst [vmem:[#allocation196_spill] sm:$0xff] %v13621_v56  ;;  %18213 = vst [vmem:[#allocation197_spill] sm:$0xff] %v13623_v14 }
 0x2f8   : > { %3513 = vbcast.lane.b32.xlu1 %v13024_v8, 344  ;;  %3446 = vbcast.lane.b32.xlu0 %v13007_v0, 344 }
 0x2fa   : > { %v13627_v61 = vpop.permute.xlu1 %3897  ;;  %v13629_v16 = vpop.permute.xlu0 %3830 }
 0x2fb   : > { %18214 = vst [vmem:[#allocation198_spill] sm:$0xff] %v13627_v61  ;;  %18215 = vst [vmem:[#allocation199_spill] sm:$0xff] %v13629_v16 }
 0x2fc   : > { %3716 = vbcast.lane.b32.xlu1 %v13164_v54, 328  ;;  %3649 = vbcast.lane.b32.xlu0 %v13155_v31, 328 }
 0x2fe   : > { %v13633_v4 = vpop.permute.xlu1 %4033  ;;  %v13635_v62 = vpop.permute.xlu0 %4029 }
 0x2ff   : > { %18216 = vst [vmem:[#allocation200_spill] sm:$0xff] %v13633_v4  ;;  %18217 = vst [vmem:[#allocation201_spill] sm:$0xff] %v13635_v62 }
 0x300   : > { %3913 = vbcast.lane.b32.xlu1 %v13281_v27, 312  ;;  %3846 = vbcast.lane.b32.xlu0 %v13267_v63, 312 }
 0x302   : > { %v13639_v14 = vpop.permute.xlu1 %4100  ;;  %v13641_v56 = vpop.permute.xlu0 %4096 }
 0x303   : > { %18218 = vst [vmem:[#allocation202_spill] sm:$0xff] %v13639_v14  ;;  %18219 = vst [vmem:[#allocation203_spill] sm:$0xff] %v13641_v56 }
 0x304   : > { %4116 = vbcast.lane.b32.xlu1 %v13450_v17, 296  ;;  %4049 = vbcast.lane.b32.xlu0 %v13441_v49, 296 }
 0x306   : > { %v13645_v16 = vpop.permute.xlu1 %2909  ;;  %v13647_v61 = vpop.permute.xlu0 %2842 }
 0x307   : > { %18220 = vst [vmem:[#allocation204_spill] sm:$0xff] %v13645_v16  ;;  %18221 = vst [vmem:[#allocation205_spill] sm:$0xff] %v13647_v61 }
 0x308   : > { %4313 = vbcast.lane.b32.xlu1 %v13557_v20, 280  ;;  %4246 = vbcast.lane.b32.xlu0 %v13548_v53, 280 }
 0x30a   : > { %v13651_v15 = vpop.permute.xlu1 %3106  ;;  %v13653_v38 = vpop.permute.xlu0 %3039 }
 0x30b   : > { %18222 = vst [vmem:[#allocation206_spill] sm:$0xff] %v13651_v15  ;;  %18223 = vst [vmem:[#allocation207_spill] sm:$0xff] %v13653_v38 }
 0x30c   : > { %3322 = vbcast.lane.b32.xlu1 %v12905_v5, 368  ;;  %3255 = vbcast.lane.b32.xlu0 %v12679_v37, 368 }
 0x30e   : > { %v13657_v14 = vpop.permute.xlu1 %3306  ;;  %v13659_v56 = vpop.permute.xlu0 %3239 }
 0x30f   : > { %18224 = vst [vmem:[#allocation208_spill] sm:$0xff] %v13657_v14  ;;  %18225 = vst [vmem:[#allocation209_spill] sm:$0xff] %v13659_v56 }
 0x310   : > { %3517 = vbcast.lane.b32.xlu1 %v13024_v8, 352  ;;  %3450 = vbcast.lane.b32.xlu0 %v13007_v0, 352 }
 0x312   : > { %v13663_v61 = vpop.permute.xlu1 %3501  ;;  %v13665_v16 = vpop.permute.xlu0 %3434 }
 0x313   : > { %18226 = vst [vmem:[#allocation210_spill] sm:$0xff] %v13663_v61  ;;  %18227 = vst [vmem:[#allocation211_spill] sm:$0xff] %v13665_v16 }
 0x314   : > { %3720 = vbcast.lane.b32.xlu1 %v13164_v54, 336  ;;  %3653 = vbcast.lane.b32.xlu0 %v13155_v31, 336 }
 0x316   : > { %v13669_v38 = vpop.permute.xlu1 %3704  ;;  %v13671_v15 = vpop.permute.xlu0 %3637 }
 0x317   : > { %18228 = vst [vmem:[#allocation212_spill] sm:$0xff] %v13669_v38  ;;  %18229 = vst [vmem:[#allocation213_spill] sm:$0xff] %v13671_v15 }
 0x318   : > { %3917 = vbcast.lane.b32.xlu1 %v13281_v27, 320  ;;  %3850 = vbcast.lane.b32.xlu0 %v13267_v63, 320 }
 0x31a   : > { %v13675_v56 = vpop.permute.xlu1 %3901  ;;  %v13677_v14 = vpop.permute.xlu0 %3834 }
 0x31b   : > { %18230 = vst [vmem:[#allocation214_spill] sm:$0xff] %v13675_v56  ;;  %18231 = vst [vmem:[#allocation215_spill] sm:$0xff] %v13677_v14 }
 0x31c   : > { %4120 = vbcast.lane.b32.xlu1 %v13450_v17, 304  ;;  %4053 = vbcast.lane.b32.xlu0 %v13441_v49, 304 }
 0x31e   : > { %v13681_v16 = vpop.permute.xlu1 %4104  ;;  %v13683_v61 = vpop.permute.xlu0 %4037 }
 0x31f   : > { %18232 = vst [vmem:[#allocation216_spill] sm:$0xff] %v13681_v16  ;;  %18233 = vst [vmem:[#allocation217_spill] sm:$0xff] %v13683_v61 }
 0x320   : > { %4317 = vbcast.lane.b32.xlu1 %v13557_v20, 288  ;;  %4250 = vbcast.lane.b32.xlu0 %v13548_v53, 288 }
 0x322   : > { %v13687_v15 = vpop.permute.xlu1 %2913  ;;  %v13689_v38 = vpop.permute.xlu0 %2846 }
 0x323   : > { %18234 = vst [vmem:[#allocation218_spill] sm:$0xff] %v13687_v15  ;;  %18235 = vst [vmem:[#allocation219_spill] sm:$0xff] %v13689_v38 }
 0x324   : > { %3326 = vbcast.lane.b32.xlu1 %v12905_v5, 376  ;;  %3259 = vbcast.lane.b32.xlu0 %v12679_v37, 376  ;;  %v9958_v37 = vld [vmem:[#allocation11 + $0x1] ss:$0 sm:$0xff] }
 0x326   : > { %v13693_v14 = vpop.permute.xlu1 %3110  ;;  %v13695_v56 = vpop.permute.xlu0 %3043 }
 0x327   : > { %18236 = vst [vmem:[#allocation220_spill] sm:$0xff] %v13693_v14  ;;  %18237 = vst [vmem:[#allocation221_spill] sm:$0xff] %v13695_v56  ;;  %v1716_v56 = vpop.f32.mrb[4].mxu1 }
 0x328   : > { %3521 = vbcast.lane.b32.xlu1 %v13024_v8, 360  ;;  %3454 = vbcast.lane.b32.xlu0 %v13007_v0, 360  ;;  %v11485_v14 = vadd.f32 %v9958_v37, %v1716_v56  ;;  %v10608_v15 = vpop.f32.mrb[5].mxu1 }
 0x32a   : > { %v13699_v16 = vpop.permute.xlu1 %3310  ;;  %v13701_v61 = vpop.permute.xlu0 %3243 }
 0x32b   : > { %18238 = vst [vmem:[#allocation222_spill] sm:$0xff] %v13699_v16  ;;  %18239 = vst [vmem:[#allocation223_spill] sm:$0xff] %v13701_v61  ;;  %v9969_v61 = vmul.f32 -1.442695, %v11485_v14 }
 0x32c   : > { %3724 = vbcast.lane.b32.xlu1 %v13164_v54, 344  ;;  %3657 = vbcast.lane.b32.xlu0 %v13155_v31, 344 }
 0x32d   : > { %11754 = vpow2.f32 %v9969_v61 }
 0x32e   : > { %v13705_v38 = vpop.permute.xlu1 %3505  ;;  %v13707_v5 = vpop.permute.xlu0 %3438 }
 0x32f   : > { %18240 = vst [vmem:[#allocation224_spill] sm:$0xff] %v13705_v38  ;;  %18241 = vst [vmem:[#allocation225_spill] sm:$0xff] %v13707_v5 }
 0x330   : > { %3921 = vbcast.lane.b32.xlu1 %v13281_v27, 328  ;;  %3854 = vbcast.lane.b32.xlu0 %v13267_v63, 328 }
 0x332   : > { %v13711_v4 = vpop.permute.xlu1 %3708  ;;  %v13713_v16 = vpop.permute.xlu0 %3641 }
 0x333   : > { %18242 = vst [vmem:[#allocation226_spill] sm:$0xff] %v13711_v4  ;;  %18243 = vst [vmem:[#allocation227_spill] sm:$0xff] %v13713_v16  ;;  %v9991_v16 = vld [vmem:[#allocation11 + $0x3] ss:$0 sm:$0xff] }
 0x334   : > { %4124 = vbcast.lane.b32.xlu1 %v13450_v17, 312  ;;  %4057 = vbcast.lane.b32.xlu0 %v13441_v49, 312 }
 0x336   : > { %v13717_v38 = vpop.permute.xlu1 %3905  ;;  %v13719_v5 = vpop.permute.xlu0 %3838 }
 0x337   : > { %18244 = vst [vmem:[#allocation228_spill] sm:$0xff] %v13717_v38  ;;  %18245 = vst [vmem:[#allocation229_spill] sm:$0xff] %v13719_v5  ;;  %v11755_v61 = vpop.eup %11754 }
 0x338   : > { %4321 = vbcast.lane.b32.xlu1 %v13557_v20, 296  ;;  %4254 = vbcast.lane.b32.xlu0 %v13548_v53, 296  ;;  %v1724_v5 = vadd.f32 1.0, %v11755_v61 }
 0x33a   : > { %v13723_v56 = vpop.permute.xlu1 %4108  ;;  %v13725_v15 = vpop.permute.xlu0 %4041  ;;  %11756 = vrcp.f32 %v1724_v5 }
 0x33b   : > { %18246 = vst [vmem:[#allocation230_spill] sm:$0xff] %v13723_v56  ;;  %18247 = vst [vmem:[#allocation231_spill] sm:$0xff] %v13725_v15 }
 0x33c   : > { %3525 = vbcast.lane.b32.xlu1 %v13024_v8, 368  ;;  %3458 = vbcast.lane.b32.xlu0 %v13007_v0, 368  ;;  %v2195_v38 = vpop.f32.mrb[6].mxu1 }
 0x33d   : > { %v11487_v4 = vadd.f32 %v9991_v16, %v2195_v38  ;;  %v10674_v56 = vpop.f32.mrb[7].mxu1 }
 0x33e   : > { %v13729_v14 = vpop.permute.xlu1 %4238  ;;  %v13731_v37 = vpop.permute.xlu0 %4234 }
 0x33f   : > { %18248 = vst [vmem:[#allocation232_spill] sm:$0xff] %v13729_v14  ;;  %18249 = vst [vmem:[#allocation233_spill] sm:$0xff] %v13731_v37  ;;  %v10002_v14 = vmul.f32 -1.442695, %v11487_v4 }
 0x340   : > { %3728 = vbcast.lane.b32.xlu1 %v13164_v54, 352  ;;  %3661 = vbcast.lane.b32.xlu0 %v13155_v31, 352 }
 0x341   : > { %11758 = vpow2.f32 %v10002_v14 }
 0x342   : > { %v13735_v21 = vpop.permute.xlu1 %4305  ;;  %v13737_v15 = vpop.permute.xlu0 %4301 }
 0x343   : > { %18250 = vst [vmem:[#allocation234_spill] sm:$0xff] %v13735_v21  ;;  %18251 = vst [vmem:[#allocation235_spill] sm:$0xff] %v13737_v15 }
 0x344   : > { %3925 = vbcast.lane.b32.xlu1 %v13281_v27, 336  ;;  %3858 = vbcast.lane.b32.xlu0 %v13267_v63, 336  ;;  %v11757_v56 = vpop.eup %11756 }
 0x345   : > { %v2206_v4 = vmul.f32 %v12252_v10, %v11757_v56 }
 0x346   : > { %v13741_v37 = vpop.permute.xlu1 %3114  ;;  %v13743_v12 = vpop.permute.xlu0 %3047 }
 0x347   : > { %18252 = vst [vmem:[#allocation236_spill] sm:$0xff] %v13741_v37  ;;  %18253 = vst [vmem:[#allocation237_spill] sm:$0xff] %v13743_v12  ;;  %v13759_v10 = vadd.f32 %v13575_v55, %v2206_v4  }
 0x348   : > { %4128 = vbcast.lane.b32.xlu1 %v13450_v17, 320  ;;  %4061 = vbcast.lane.b32.xlu0 %v13441_v49, 320 }
 0x349   : > { %18258 = vst [vmem:[#allocation242_spill] sm:$0xff] %v13759_v10  ;;  %11760 = vtanh.f32 %v13759_v10  ;;  %v13783_v10 = vld [vmem:[%s18259_s1] sm:$0x1f] }
 0x34a   : > { %v13747_v38 = vpop.permute.xlu1 %3314  ;;  %v13749_v16 = vpop.permute.xlu0 %3247  ;;  %18265 = vst [vmem:[#allocation248_spill] sm:$0xff] %v13783_v10  ;;  %v13801_v37 = vrot.slane %v13783_v10, %v12662_v29 }
 0x34b   : > { %18254 = vst [vmem:[#allocation238_spill] sm:$0xff] %v13747_v38  ;;  %18255 = vst [vmem:[#allocation239_spill] sm:$0xff] %v13749_v16  ;;  %v11759_v14 = vpop.eup %11758 }
 0x34c   : > { %4325 = vbcast.lane.b32.xlu1 %v13557_v20, 304  ;;  %4258 = vbcast.lane.b32.xlu0 %v13548_v53, 304  ;;  %v2203_v56 = vadd.f32 1.0, %v11759_v14 }
 0x34e   : > { %v13754_v5 = vpop.permute.xlu1 %3509  ;;  %v13756_v61 = vpop.permute.xlu0 %3442  ;;  %11762 = vrcp.f32 %v2203_v56 }
 0x34f   : > { %18256 = vst [vmem:[#allocation240_spill] sm:$0xff] %v13754_v5  ;;  %18257 = vst [vmem:[#allocation241_spill] sm:$0xff] %v13756_v61 }
 0x350   : > { %3529 = vbcast.lane.b32.xlu1 %v13024_v8, 376  ;;  %3462 = vbcast.lane.b32.xlu0 %v13007_v0, 376  ;;  %v13777_v8 = vsub.s32 2, %v12649_v22  ;;  %v13780_v0 = vld [vmem:[%s18259_s1 + $0x8] sm:$0x1f] }
 0x351   : > { %v13791_v56 = vrot.slane %v13780_v0, %v12662_v29 }
 0x352   : > { %v13763_v16 = vpop.permute.xlu1 %3712  ;;  %v13765_v38 = vpop.permute.xlu0 %3645  ;;  %18264 = vst [vmem:[#allocation247_spill] sm:$0xff] %v13777_v8  ;;  %v13797_v12 = vrot.slane %v13783_v10, %v13777_v8 }
 0x353   : > { %18260 = vst [vmem:[#allocation243_spill] sm:$0xff] %v13763_v16  ;;  %18261 = vst [vmem:[#allocation244_spill] sm:$0xff] %v13765_v38  ;;  %v11761_v5 = vpop.eup %11760 }
 0x354   : > { %3732 = vbcast.lane.b32.xlu1 %v13164_v54, 360  ;;  %3665 = vbcast.lane.b32.xlu0 %v13155_v31, 360  ;;  %v13819_v21 = vmul.f32 %v13797_v12, %v12919_v23 }
 0x356   : > { %v13770_v55 = vpop.permute.xlu1 %3909  ;;  %v13772_v4 = vpop.permute.xlu0 %3842 }
 0x357   : > { %18262 = vst [vmem:[#allocation245_spill] sm:$0xff] %v13770_v55  ;;  %18263 = vst [vmem:[#allocation246_spill] sm:$0xff] %v13772_v4  ;;  %v2709_v4 = vmul.f32 %v13791_v56, %v12939_v35  ;;  %v2504_v35 = vmul.f32 %v13801_v37, %v12923_v24  ;;  %v2726_v24 = vmul.f32 %v13791_v56, %v12970_v33 }
 0x358   : > { %3929 = vbcast.lane.b32.xlu1 %v13281_v27, 344  ;;  %3862 = vbcast.lane.b32.xlu0 %v13267_v63, 344  ;;  %v11763_v55 = vpop.eup %11762  ;;  %v2521_v33 = vmul.f32 %v13801_v37, %v12957_v47 }
 0x35a   : > { %v13785_v14 = vpop.permute.xlu1 %4112  ;;  %v13787_v61 = vpop.permute.xlu0 %4045 }
 0x35b   : > { %18266 = vst [vmem:[#allocation249_spill] sm:$0xff] %v13785_v14  ;;  %18267 = vst [vmem:[#allocation250_spill] sm:$0xff] %v13787_v61  ;;  %v13811_v14 = vmul.f32 %v11763_v55, %v11761_v5   ;;  %v13815_v61 = vmul.f32 %v13797_v12, %v12917_v7  ;;  %v2724_v5 = vmul.f32 %v13791_v56, %v12950_v41 }
 0x35c   : > { %4132 = vbcast.lane.b32.xlu1 %v13450_v17, 328  ;;  %4065 = vbcast.lane.b32.xlu0 %v13441_v49, 328  ;;  %v13831_v7 = vrot.slane %v13783_v10, %v12813_v52  ;;  %v13845_v41 = vrot.slane %v13780_v0, %v12813_v52  ;;  %v2727_v52 = vmul.f32 %v13791_v56, %v12996_v59 }
 0x35d   : > { %18270 = vst [vmem:[#allocation253_spill] sm:$0xff] %v13811_v14  ;;  %v2520_v14 = vmul.f32 %v13801_v37, %v12931_v28  ;;  %v13871_v59 = vrot.slane %v13780_v0, %v13777_v8 }
 0x35e   : > { %v13803_v38 = vpop.permute.xlu1 %4309  ;;  %v13805_v16 = vpop.permute.xlu0 %4242 }
 0x35f   : > { %18268 = vst [vmem:[#allocation251_spill] sm:$0xff] %v13803_v38  ;;  %18269 = vst [vmem:[#allocation252_spill] sm:$0xff] %v13805_v16  ;;  %v2708_v38 = vmul.f32 %v13791_v56, %v12941_v36  ;;  %v2725_v16 = vmul.f32 %v13791_v56, %v12948_v40  ;;  %v2503_v36 = vmul.f32 %v13801_v37, %v12925_v25 }
 0x360   : > { %4329 = vbcast.lane.b32.xlu1 %v13557_v20, 312  ;;  %4262 = vbcast.lane.b32.xlu0 %v13548_v53, 312  ;;  %v2710_v40 = vmul.f32 %v13791_v56, %v12972_v13  ;;  %v2505_v13 = vmul.f32 %v13801_v37, %v12959_v50  ;;  %v2522_v50 = vmul.f32 %v13801_v37, %v12984_v44 }
 0x361   : > { %v2740_v25 = vadd.f32 %v2708_v38, %v2503_v36  ;;  %v2757_v15 = vadd.f32 %v2725_v16, %v2520_v14  ;;  %v2758_v36 = vadd.f32 %v2726_v24, %v2521_v33  ;;  %v2506_v16 = vmul.f32 %v13801_v37, %v12986_v45  ;;  %v18277_v33 = vld [vmem:[#allocation55_spill] sm:$0xff] }
 0x362   : > { %v13833_v55 = vpop.permute.xlu1 %3118  ;;  %v13835_v23 = vpop.permute.xlu0 %3051  ;;  %v2742_v47 = vadd.f32 %v2710_v40, %v2505_v13  ;;  %v2759_v14 = vadd.f32 %v2727_v52, %v2522_v50  ;;  %v2935_v44 = vmul.f32 %v13831_v7, %v13032_v19  ;;  %v2712_v45 = vmul.f32 %v13791_v56, %v13054_v43  ;;  %v18278_v13 = vld [vmem:[#allocation56_spill] sm:$0xff]  ;;  %v18280_v50 = vld [vmem:[#allocation60_spill] sm:$0xff] }
 0x363   : > { %18271 = vst [vmem:[#allocation254_spill] sm:$0xff] %v13833_v55  ;;  %18272 = vst [vmem:[#allocation255_spill] sm:$0xff] %v13835_v23  ;;  %v2519_v55 = vmul.f32 %v13801_v37, %v12933_v30  ;;  %v2741_v23 = vadd.f32 %v2709_v4, %v2504_v35  ;;  %v2711_v30 = vmul.f32 %v13791_v56, %v12998_v60 }
 0x364   : > { %3736 = vbcast.lane.b32.xlu1 %v13164_v54, 368  ;;  %3669 = vbcast.lane.b32.xlu0 %v13155_v31, 368  ;;  %v2920_v4 = vmul.f32 %v13831_v7, %v13015_v1  ;;  %v2919_v60 = vmul.f32 %v13831_v7, %v13017_v46  ;;  %v2936_v1 = vmul.f32 %v13831_v7, %v13030_v9 }
 0x365   : > { %v2756_v28 = vadd.f32 %v2724_v5, %v2519_v55  ;;  %v2728_v5 = vmul.f32 %v13791_v56, %v13052_v42  ;;  %v2743_v55 = vadd.f32 %v2711_v30, %v2506_v16  ;;  %v2523_v46 = vmul.f32 %v13801_v37, %v13041_v51 }
 0x366   : > { %v13863_v35 = vpop.permute.xlu1 %3318  ;;  %v13865_v38 = vpop.permute.xlu0 %3251  ;;  %v2952_v24 = vadd.f32 %v2920_v4, %v2741_v23  ;;  %v3125_v9 = vmul.f32 %v13845_v41, %v13107_v32  ;;  %v2507_v19 = vmul.f32 %v13801_v37, %v18277_v33  ;;  %v2937_v42 = vmul.f32 %v13831_v7, %v13064_v34  ;;  %v18279_v23 = vld [vmem:[#allocation65_spill] sm:$0xff] }
 0x367   : > { %18273 = vst [vmem:[#allocation256_spill] sm:$0xff] %v13863_v35  ;;  %18274 = vst [vmem:[#allocation257_spill] sm:$0xff] %v13865_v38  ;;  %v2921_v43 = vmul.f32 %v13831_v7, %v18278_v13  ;;  %v3124_v30 = vmul.f32 %v13845_v41, %v18279_v23  ;;  %v2951_v51 = vadd.f32 %v2919_v60, %v2740_v25  ;;  %v18283_v38 = vld [vmem:[#allocation62_spill] sm:$0xff]  ;;  %v18289_v35 = vld [vmem:[#allocation67_spill] sm:$0xff] }
 0x368   : > { %3933 = vbcast.lane.b32.xlu1 %v13281_v27, 352  ;;  %3866 = vbcast.lane.b32.xlu0 %v13267_v63, 352  ;;  %v2968_v4 = vadd.f32 %v2936_v1, %v2757_v15  ;;  %v2729_v32 = vmul.f32 %v13791_v56, %v18280_v50  ;;  %v2967_v16 = vadd.f32 %v2935_v44, %v2756_v28  ;;  %v18284_v15 = vld [vmem:[#allocation63_spill] sm:$0xff] }
 0x369   : > { %v2760_v33 = vadd.f32 %v2728_v5, %v2523_v46  ;;  %v2744_v8 = vadd.f32 %v2712_v45, %v2507_v19  ;;  %v2938_v25 = vmul.f32 %v13831_v7, %v18283_v38  ;;  %v2922_v60 = vmul.f32 %v13831_v7, %v18284_v15  ;;  %v18287_v5 = vld [vmem:[#allocation59_spill] sm:$0xff]  ;;  %v18288_v19 = vld [vmem:[#allocation66_spill] sm:$0xff] }
 0x36a   : > { %v13891_v40 = vpop.permute.xlu1 %3513  ;;  %v13893_v52 = vpop.permute.xlu0 %3446  ;;  %v3157_v1 = vadd.f32 %v3125_v9, %v2952_v24  ;;  %v2969_v28 = vadd.f32 %v2937_v42, %v2758_v36  ;;  %v2953_v44 = vadd.f32 %v2921_v43, %v2742_v47  ;;  %v2508_v45 = vmul.f32 %v13801_v37, %v18287_v5  ;;  %v18291_v36 = vld [vmem:[#allocation70_spill] sm:$0xff]  ;;  %v18292_v24 = vld [vmem:[#allocation71_spill] sm:$0xff]  ;;  %v18293_v42 = vld [vmem:[#allocation73_spill] sm:$0xff] }
 0x36b   : > { %18275 = vst [vmem:[#allocation258_spill] sm:$0xff] %v13891_v40  ;;  %18276 = vst [vmem:[#allocation259_spill] sm:$0xff] %v13893_v52  ;;  %v18281_v52 = vld [vmem:[#allocation58_spill] sm:$0xff]  ;;  %v18282_v40 = vld [vmem:[#allocation61_spill] sm:$0xff]  ;;  %v3156_v46 = vadd.f32 %v3124_v30, %v2951_v51  ;;  %v3140_v38 = vmul.f32 %v13845_v41, %v18289_v35  ;;  %v13926_v15 = vsub.s32 3, %v12649_v22  ;;  %v2730_v47 = vmul.f32 %v13791_v56, %v18291_v36 }
 0x36c   : > { %4136 = vbcast.lane.b32.xlu1 %v13450_v17, 336  ;;  %4069 = vbcast.lane.b32.xlu0 %v13441_v49, 336  ;;  %v2524_v34 = vmul.f32 %v13801_v37, %v18281_v52  ;;  %v2713_v13 = vmul.f32 %v13791_v56, %v18282_v40  ;;  %v3141_v40 = vmul.f32 %v13845_v41, %v18288_v19  ;;  %v18294_v30 = vld [vmem:[#allocation74_spill] sm:$0xff]  ;;  %v18297_v36 = vld [vmem:[#allocation68_spill] sm:$0xff] }
 0x36d   : > { %18290 = vst [vmem:[#allocation65_spill] sm:$0xff] %v13926_v15  ;;  %v2714_v9 = vmul.f32 %v13791_v56, %v18292_v24  ;;  %v2939_v43 = vmul.f32 %v13831_v7, %v18293_v42  ;;  %v2923_v51 = vmul.f32 %v13831_v7, %v18294_v30  ;;  %v13939_v5 = vadd.f32 %v13815_v61, %v3157_v1  ;;  %v18298_v24 = vld [vmem:[#allocation69_spill] sm:$0xff]  ;;  %v18299_v42 = vld [vmem:[#allocation75_spill] sm:$0xff]  ;;  %v18301_v30 = vld [vmem:[#allocation76_spill] sm:$0xff] }
 0x36e   : > { %v13915_v23 = vpop.permute.xlu1 %3716  ;;  %v13917_v50 = vpop.permute.xlu0 %3649  ;;  %v2761_v52 = vadd.f32 %v2729_v32, %v2524_v34  ;;  %v2745_v35 = vadd.f32 %v2713_v13, %v2508_v45  ;;  %v2970_v32 = vadd.f32 %v2938_v25, %v2759_v14  ;;  %v2954_v34 = vadd.f32 %v2922_v60, %v2743_v55 }
 0x36f   : > { %18285 = vst [vmem:[#allocation55_spill] sm:$0xff] %v13915_v23  ;;  %18286 = vst [vmem:[#allocation56_spill] sm:$0xff] %v13917_v50  ;;  %v2525_v23 = vmul.f32 %v13801_v37, %v18297_v36  ;;  %v2509_v62 = vmul.f32 %v13801_v37, %v18298_v24  ;;  %v3142_v48 = vmul.f32 %v13845_v41, %v18299_v42  ;;  %v18302_v24 = vld [vmem:[#allocation79_spill] sm:$0xff]  ;;  %v18311_v42 = vld [vmem:[#allocation84_spill] sm:$0xff] }
 0x370   : > { %4333 = vbcast.lane.b32.xlu1 %v13557_v20, 320  ;;  %4266 = vbcast.lane.b32.xlu0 %v13548_v53, 320  ;;  %v13952_v13 = vadd.f32 %v13819_v21, %v3156_v46  ;;  %v3173_v14 = vadd.f32 %v3141_v40, %v2968_v4  ;;  %v3172_v55 = vadd.f32 %v3140_v38, %v2967_v16  ;;  %v18303_v4 = vld [vmem:[#allocation80_spill] sm:$0xff]  ;;  %v18304_v46 = vld [vmem:[#allocation81_spill] sm:$0xff] }
 0x371   : > { %v13956_v61 = vrot.slane %v13783_v10, %v13926_v15  ;;  %v2762_v25 = vadd.f32 %v2730_v47, %v2525_v23  ;;  %v2746_v60 = vadd.f32 %v2714_v9, %v2509_v62  ;;  %v2971_v1 = vadd.f32 %v2939_v43, %v2760_v33  ;;  %v18307_v62 = vld [vmem:[#allocation77_spill] sm:$0xff]  ;;  %v18308_v33 = vld [vmem:[#allocation82_spill] sm:$0xff]  ;;  %v18309_v47 = vld [vmem:[#allocation83_spill] sm:$0xff] }
 0x372   : > { %v13941_v19 = vpop.permute.xlu1 %3913  ;;  %v13943_v50 = vpop.permute.xlu0 %3846  ;;  %v2955_v45 = vadd.f32 %v2923_v51, %v2744_v8  ;;  %v3126_v36 = vmul.f32 %v13845_v41, %v18301_v30  ;;  %v2731_v21 = vmul.f32 %v13791_v56, %v18302_v24  ;;  %v2715_v16 = vmul.f32 %v13791_v56, %v18303_v4  ;;  %v18310_v43 = vld [vmem:[#allocation78_spill] sm:$0xff]  ;;  %v18312_v24 = vld [vmem:[#allocation85_spill] sm:$0xff] }
 0x373   : > { %18295 = vst [vmem:[#allocation60_spill] sm:$0xff] %v13941_v19  ;;  %18296 = vst [vmem:[#allocation58_spill] sm:$0xff] %v13943_v50  ;;  %v2940_v40 = vmul.f32 %v13831_v7, %v18304_v46  ;;  %v2526_v8 = vmul.f32 %v13801_v37, %v18307_v62  ;;  %v2924_v23 = vmul.f32 %v13831_v7, %v18308_v33  ;;  %v18314_v46 = vld [vmem:[#allocation89_spill] sm:$0xff]  ;;  %v18315_v33 = vld [vmem:[#allocation90_spill] sm:$0xff] }
 0x374   : > { %18300 = vst [vmem:[#allocation61_spill] sm:$0xff] %v13956_v61  ;;  %3740 = vbcast.lane.b32.xlu1 %v13164_v54, 376  ;;  %3673 = vbcast.lane.b32.xlu0 %v13155_v31, 376  ;;  %v3174_v31 = vadd.f32 %v3142_v48, %v2969_v28  ;;  %v3143_v9 = vmul.f32 %v13845_v41, %v18309_v47  ;;  %v18313_v48 = vld [vmem:[#allocation86_spill] sm:$0xff] }
 0x375   : > { %v2510_v51 = vmul.f32 %v13801_v37, %v18310_v43  ;;  %v3127_v30 = vmul.f32 %v13845_v41, %v18311_v42  ;;  %v3349_v4 = vmul.f32 %v13797_v12, %v18312_v24  ;;  %v3348_v28 = vmul.f32 %v13797_v12, %v18313_v48  ;;  %v18316_v43 = vld [vmem:[#allocation91_spill] sm:$0xff] }
 0x376   : > { %v13968_v38 = vpop.permute.xlu1 %4116  ;;  %v13970_v54 = vpop.permute.xlu0 %4049  ;;  %v2732_v62 = vmul.f32 %v13791_v56, %v18314_v46  ;;  %v2716_v47 = vmul.f32 %v13791_v56, %v18315_v33  ;;  %v2941_v50 = vmul.f32 %v13831_v7, %v18316_v43  ;;  %v3158_v42 = vadd.f32 %v3126_v36, %v2953_v44  ;;  %v18319_v48 = vld [vmem:[#allocation87_spill] sm:$0xff]  ;;  %v18320_v46 = vld [vmem:[#allocation88_spill] sm:$0xff] }
 0x377   : > { %18305 = vst [vmem:[#allocation62_spill] sm:$0xff] %v13968_v38  ;;  %18306 = vst [vmem:[#allocation63_spill] sm:$0xff] %v13970_v54  ;;  %v2763_v19 = vadd.f32 %v2731_v21, %v2526_v8  ;;  %v2747_v38 = vadd.f32 %v2715_v16, %v2510_v51  ;;  %v2972_v24 = vadd.f32 %v2940_v40, %v2761_v52  ;;  %v18321_v43 = vld [vmem:[#allocation92_spill] sm:$0xff]  ;;  %v18322_v21 = vld [vmem:[#allocation93_spill] sm:$0xff] }
 0x378   : > { %3937 = vbcast.lane.b32.xlu1 %v13281_v27, 360  ;;  %3870 = vbcast.lane.b32.xlu0 %v13267_v63, 360  ;;  %v2956_v57 = vadd.f32 %v2924_v23, %v2745_v35  ;;  %v3175_v58 = vadd.f32 %v3143_v9, %v2970_v32  ;;  %v2527_v10 = vmul.f32 %v13801_v37, %v18319_v48  ;;  %v18324_v40 = vld [vmem:[#allocation95_spill] sm:$0xff]  ;;  %v18325_v23 = vld [vmem:[#allocation96_spill] sm:$0xff] }
 0x379   : > { %v2511_v22 = vmul.f32 %v13801_v37, %v18320_v46  ;;  %v3159_v33 = vadd.f32 %v3127_v30, %v2954_v34  ;;  %v14002_v61 = vadd.f32 %v3349_v4, %v3173_v14  ;;  %v2925_v44 = vmul.f32 %v13831_v7, %v18321_v43  ;;  %v18323_v14 = vld [vmem:[#allocation94_spill] sm:$0xff]  ;;  %v18330_v30 = vld [vmem:[#allocation101_spill] sm:$0xff]  ;;  %v18332_v48 = vld [vmem:[#allocation103_spill] sm:$0xff] }
 0x37a   : > { %v13994_v54 = vpop.permute.xlu1 %4313  ;;  %v13996_v29 = vpop.permute.xlu0 %4246  ;;  %v14008_v52 = vadd.f32 %v3348_v28, %v3172_v55  ;;  %v14010_v35 = vadd.f32 %v2732_v62, %v2527_v10  ;;  %v14014_v36 = vadd.f32 %v2941_v50, %v2762_v25  ;;  %v3144_v34 = vmul.f32 %v13845_v41, %v18322_v21  ;;  %v18329_v25 = vld [vmem:[#allocation100_spill] sm:$0xff]  ;;  %v18331_v28 = vld [vmem:[#allocation102_spill] sm:$0xff] }
 0x37b   : > { %18317 = vst [vmem:[#allocation59_spill] sm:$0xff] %v13994_v54  ;;  %18318 = vst [vmem:[#allocation66_spill] sm:$0xff] %v13996_v29  ;;  %v14012_v32 = vadd.f32 %v2716_v47, %v2511_v22  ;;  %v3128_v16 = vmul.f32 %v13845_v41, %v18323_v14  ;;  %v3350_v8 = vmul.f32 %v13797_v12, %v18324_v40  ;;  %v18328_v22 = vld [vmem:[#allocation99_spill] sm:$0xff]  ;;  %v18333_v43 = vld [vmem:[#allocation104_spill] sm:$0xff] }
 0x37c   : > { %4140 = vbcast.lane.b32.xlu1 %v13450_v17, 344  ;;  %4073 = vbcast.lane.b32.xlu0 %v13441_v49, 344  ;;  %v3334_v9 = vmul.f32 %v13797_v12, %v18325_v23  ;;  %v2733_v50 = vmul.f32 %v13791_v56, %v18328_v22  ;;  %v2717_v51 = vmul.f32 %v13791_v56, %v18329_v25  ;;  %v18334_v14 = vld [vmem:[#allocation97_spill] sm:$0xff]  ;;  %v18335_v23 = vld [vmem:[#allocation98_spill] sm:$0xff] }
 0x37d   : > { %v2942_v4 = vmul.f32 %v13831_v7, %v18330_v30  ;;  %v2926_v62 = vmul.f32 %v13831_v7, %v18331_v28  ;;  %v2957_v47 = vadd.f32 %v2925_v44, %v2746_v60  ;;  %v3145_v46 = vmul.f32 %v13845_v41, %v18332_v48  ;;  %v18336_v25 = vld [vmem:[#allocation105_spill] sm:$0xff]  ;;  %v18337_v60 = vld [vmem:[#allocation106_spill] sm:$0xff] }
 0x37e   : > { %v14024_v55 = vpop.permute.xlu1 %3322  ;;  %v14026_v10 = vpop.permute.xlu0 %3255  ;;  %v3129_v21 = vmul.f32 %v13845_v41, %v18333_v43  ;;  %v2528_v40 = vmul.f32 %v13801_v37, %v18334_v14  ;;  %v2512_v22 = vmul.f32 %v13801_v37, %v18335_v23  ;;  %v3351_v30 = vmul.f32 %v13797_v12, %v18336_v25 }
 0x37f   : > { %18326 = vst [vmem:[#allocation67_spill] sm:$0xff] %v14024_v55  ;;  %18327 = vst [vmem:[#allocation70_spill] sm:$0xff] %v14026_v10  ;;  %v3335_v44 = vmul.f32 %v13797_v12, %v18337_v60  ;;  %v3176_v28 = vadd.f32 %v3144_v34, %v2971_v1  ;;  %v3160_v48 = vadd.f32 %v3128_v16, %v2955_v45  ;;  %v18343_v16 = vld [vmem:[#allocation110_spill] sm:$0xff]  ;;  %v18351_v60 = vld [vmem:[#allocation117_spill] sm:$0xff] }
 0x380   : > { %4337 = vbcast.lane.b32.xlu1 %v13557_v20, 328  ;;  %4270 = vbcast.lane.b32.xlu0 %v13548_v53, 328  ;;  %v3382_v10 = vadd.f32 %v3350_v8, %v3174_v31  ;;  %v3366_v43 = vadd.f32 %v3334_v9, %v3158_v42  ;;  %v14054_v29 = vadd.f32 %v2733_v50, %v2528_v40  ;;  %v18341_v42 = vld [vmem:[#allocation108_spill] sm:$0xff]  ;;  %v18344_v9 = vld [vmem:[#allocation111_spill] sm:$0xff] }
 0x381   : > { %v14056_v14 = vadd.f32 %v2717_v51, %v2512_v22  ;;  %v14058_v18 = vadd.f32 %v2942_v4, %v2763_v19  ;;  %v14060_v23 = vadd.f32 %v2926_v62, %v2747_v38  ;;  %v14062_v25 = vadd.f32 %v3145_v46, %v2972_v24  ;;  %v18340_v19 = vld [vmem:[#allocation107_spill] sm:$0xff]  ;;  %v18345_v51 = vld [vmem:[#allocation113_spill] sm:$0xff]  ;;  %v18348_v62 = vld [vmem:[#allocation114_spill] sm:$0xff] }
 0x382   : > { %v14050_v55 = vpop.permute.xlu1 %3517  ;;  %v14052_v54 = vpop.permute.xlu0 %3450  ;;  %v14064_v11 = vadd.f32 %v3129_v21, %v2956_v57  ;;  %v14068_v1 = vrot.slane %v13780_v0, %v13926_v15  ;;  %v14072_v45 = vadd.f32 %v3351_v30, %v3175_v58  ;;  %v14074_v31 = vadd.f32 %v3335_v44, %v3159_v33  ;;  %v18342_v57 = vld [vmem:[#allocation109_spill] sm:$0xff]  ;;  %v18349_v21 = vld [vmem:[#allocation115_spill] sm:$0xff]  ;;  %v18350_v22 = vld [vmem:[#allocation116_spill] sm:$0xff] }
 0x383   : > { %18338 = vst [vmem:[#allocation71_spill] sm:$0xff] %v14050_v55  ;;  %18339 = vst [vmem:[#allocation73_spill] sm:$0xff] %v14052_v54  ;;  %v3536_v38 = vmul.f32 %v13871_v59, %v18340_v19  ;;  %v3535_v24 = vmul.f32 %v13871_v59, %v18341_v42  ;;  %v3552_v34 = vmul.f32 %v13871_v59, %v18342_v57  ;;  %v18352_v19 = vld [vmem:[#allocation118_spill] sm:$0xff]  ;;  %v18353_v57 = vld [vmem:[#allocation119_spill] sm:$0xff] }
 0x384   : > { %3941 = vbcast.lane.b32.xlu1 %v13281_v27, 368  ;;  %3874 = vbcast.lane.b32.xlu0 %v13267_v63, 368  ;;  %v3551_v8 = vmul.f32 %v13871_v59, %v18343_v16  ;;  %v2529_v50 = vmul.f32 %v13801_v37, %v18344_v9  ;;  %v2734_v58 = vmul.f32 %v13791_v56, %v18345_v51  ;;  %v18354_v9 = vld [vmem:[#allocation120_spill] sm:$0xff]  ;;  %v18356_v15 = vld [vmem:[#allocation121_spill] sm:$0xff]  ;;  %v18357_v54 = vld [vmem:[#allocation122_spill] sm:$0xff] }
 0x385   : > { %v2718_v46 = vmul.f32 %v13791_v56, %v18348_v62  ;;  %v2943_v40 = vmul.f32 %v13831_v7, %v18349_v21  ;;  %v2927_v30 = vmul.f32 %v13831_v7, %v18350_v22  ;;  %v3146_v44 = vmul.f32 %v13845_v41, %v18351_v60  ;;  %v18355_v21 = vld [vmem:[#allocation112_spill] sm:$0xff] }
 0x386   : > { %v14088_v33 = vpop.permute.xlu1 %3720  ;;  %v14090_v4 = vpop.permute.xlu0 %3653  ;;  %v3130_v42 = vmul.f32 %v13845_v41, %v18352_v19  ;;  %v3352_v16 = vmul.f32 %v13797_v12, %v18353_v57  ;;  %v3336_v51 = vmul.f32 %v13797_v12, %v18354_v9  ;;  %v3568_v62 = vadd.f32 %v3536_v38, %v13939_v5 }
 0x387   : > { %18346 = vst [vmem:[#allocation74_spill] sm:$0xff] %v14088_v33  ;;  %18347 = vst [vmem:[#allocation68_spill] sm:$0xff] %v14090_v4  ;;  %v2513_v22 = vmul.f32 %v13801_v37, %v18355_v21  ;;  %v3553_v60 = vmul.f32 %v13871_v59, %v18356_v15  ;;  %v3537_v19 = vmul.f32 %v13871_v59, %v18357_v54 }
 0x388   : > { %4144 = vbcast.lane.b32.xlu1 %v13450_v17, 352  ;;  %4077 = vbcast.lane.b32.xlu0 %v13441_v49, 352  ;;  %v3567_v57 = vadd.f32 %v3535_v24, %v13952_v13  ;;  %v3584_v55 = vadd.f32 %v3552_v34, %v14002_v61  ;;  %v3583_v9 = vadd.f32 %v3551_v8, %v14008_v52  ;;  %v18360_v34 = vld [vmem:[#allocation125_spill] sm:$0xff]  ;;  %v18362_v8 = vld [vmem:[#allocation124_spill] sm:$0xff] }
 0x389   : > { %v14118_v4 = vadd.f32 %v2734_v58, %v2529_v50  ;;  %v14124_v38 = vadd.f32 %v2718_v46, %v2513_v22  ;;  %v14127_v21 = vadd.f32 %v2943_v40, %v14010_v35  ;;  %v14130_v15 = vadd.f32 %v2927_v30, %v14012_v32  ;;  %v18363_v40 = vld [vmem:[#allocation126_spill] sm:$0xff] }
 0x38a   : > { %v14120_v33 = vpop.permute.xlu1 %3917  ;;  %v14122_v5 = vpop.permute.xlu0 %3850  ;;  %v14133_v13 = vadd.f32 %v3146_v44, %v14014_v36  ;;  %v14135_v61 = vadd.f32 %v3130_v42, %v2957_v47  ;;  %v14137_v54 = vadd.f32 %v3352_v16, %v3176_v28  ;;  %v14139_v52 = vadd.f32 %v3336_v51, %v3160_v48  ;;  %v18361_v47 = vld [vmem:[#allocation123_spill] sm:$0xff] }
 0x38b   : > { %18358 = vst [vmem:[#allocation69_spill] sm:$0xff] %v14120_v33  ;;  %18359 = vst [vmem:[#allocation75_spill] sm:$0xff] %v14122_v5  ;;  %v14143_v24 = vadd.f32 %v3553_v60, %v3382_v10  ;;  %v14145_v35 = vadd.f32 %v3537_v19, %v3366_v43  ;;  %v2735_v32 = vmul.f32 %v13791_v56, %v18360_v34  ;;  %v18364_v44 = vld [vmem:[#allocation127_spill] sm:$0xff]  ;;  %v18368_v60 = vld [vmem:[#allocation61_spill] sm:$0xff] }
 0x38c   : > { %4341 = vbcast.lane.b32.xlu1 %v13557_v20, 336  ;;  %4274 = vbcast.lane.b32.xlu0 %v13548_v53, 336  ;;  %v2719_v36 = vmul.f32 %v13791_v56, %v13362_v2  ;;  %v2530_v28 = vmul.f32 %v13801_v37, %v18361_v47  ;;  %v2514_v48 = vmul.f32 %v13801_v37, %v18362_v8  ;;  %v18369_v34 = vld [vmem:[#allocation131_spill] sm:$0xff]  ;;  %v18388_v5 = vld [vmem:[#allocation146_spill] sm:$0xff] }
 0x38d   : > { %v2944_v50 = vmul.f32 %v13831_v7, %v13371_v3  ;;  %v2928_v10 = vmul.f32 %v13831_v7, %v13373_v26  ;;  %v3147_v46 = vmul.f32 %v13845_v41, %v13380_v6  ;;  %v3131_v2 = vmul.f32 %v13845_v41, %v13382_v39  ;;  %v18365_v3 = vld [vmem:[#allocation128_spill] sm:$0xff]  ;;  %v18366_v26 = vld [vmem:[#allocation129_spill] sm:$0xff]  ;;  %v18367_v39 = vld [vmem:[#allocation130_spill] sm:$0xff] }
 0x38e   : > { %v14159_v43 = vpop.permute.xlu1 %4120  ;;  %v14161_v58 = vpop.permute.xlu0 %4053  ;;  %v3353_v30 = vmul.f32 %v13797_v12, %v18363_v40  ;;  %v3337_v42 = vmul.f32 %v13797_v12, %v18364_v44  ;;  %v3554_v16 = vmul.f32 %v13871_v59, %v18365_v3  ;;  %v3538_v51 = vmul.f32 %v13871_v59, %v18366_v26  ;;  %v18370_v44 = vld [vmem:[#allocation132_spill] sm:$0xff] }
 0x38f   : > { %v14177_v6 = vadd.f32 %v2735_v32, %v2530_v28  ;;  %v14179_v22 = vadd.f32 %v2719_v36, %v2514_v48  ;;  %v3747_v19 = vmul.f32 %v18368_v60, %v18367_v39  ;;  %v3746_v47 = vmul.f32 %v18368_v60, %v18369_v34 }
 0x390   : > { %3945 = vbcast.lane.b32.xlu1 %v13281_v27, 376  ;;  %3878 = vbcast.lane.b32.xlu0 %v13267_v63, 376  ;;  %v14186_v8 = vadd.f32 %v2944_v50, %v14054_v29  ;;  %v14189_v40 = vadd.f32 %v2928_v10, %v14056_v14  ;;  %v3763_v27 = vmul.f32 %v18368_v60, %v18370_v44  ;;  %v12322_v63 = vmov 1966171168   ;;  %v18371_v14 = vld [vmem:[#allocation133_spill] sm:$0xff] }
 0x391   : > { %v4433_v32 = vunpack.c.l.s4 %v12322_v63  ;;  %v14198_v48 = vadd.f32 %v3147_v46, %v14058_v18  ;;  %v14201_v3 = vadd.f32 %v3131_v2, %v14060_v23  ;;  %v14204_v29 = vadd.f32 %v3353_v30, %v14062_v25  ;;  %v18372_v18 = vld [vmem:[#allocation49_spill] sm:$0xff]  ;;  %v18374_v2 = vld [vmem:[#allocation137_spill] sm:$0xff] }
 0x392   : > { %v14193_v28 = vpop.permute.xlu1 %4317  ;;  %v14195_v36 = vpop.permute.xlu0 %4250  ;;  %v3762_v50 = vmul.f32 %v18368_v60, %v18371_v14  ;;  %v14209_v10 = vadd.f32 %v3337_v42, %v14064_v11  ;;  %v14212_v26 = vadd.f32 %v3554_v16, %v14072_v45  ;;  %v14215_v39 = vadd.f32 %v3538_v51, %v14074_v31  ;;  %v18375_v30 = vld [vmem:[#allocation138_spill] sm:$0xff]  ;;  %v18376_v31 = vld [vmem:[#allocation139_spill] sm:$0xff]  ;;  %v18377_v51 = vld [vmem:[#allocation140_spill] sm:$0xff] }
 0x393   : > { %v14218_v46 = vsub.s32 4, %v18372_v18  ;;  %v14222_v23 = vadd.f32 %v3747_v19, %v3568_v62  ;;  %v14224_v25 = vadd.f32 %v3746_v47, %v3567_v57  ;;  %v2736_v11 = vmul.f32 %v13791_v56, %v18374_v2  ;;  %v18380_v19 = vld [vmem:[#allocation134_spill] sm:$0xff]  ;;  %v18381_v14 = vld [vmem:[#allocation135_spill] sm:$0xff] }
 0x394   : > { %4148 = vbcast.lane.b32.xlu1 %v13450_v17, 360  ;;  %4081 = vbcast.lane.b32.xlu0 %v13441_v49, 360  ;;  %v2720_v45 = vmul.f32 %v13791_v56, %v18375_v30  ;;  %v14230_v42 = vadd.f32 %v3763_v27, %v3584_v55  ;;  %v2945_v16 = vmul.f32 %v13831_v7, %v18376_v31  ;;  %v4434_v44 = vunpack.c.0.s8 %v4433_v32  ;;  %v18382_v27 = vld [vmem:[#allocation141_spill] sm:$0xff]  ;;  %v18383_v30 = vld [vmem:[#allocation142_spill] sm:$0xff] }
 0x395   : > { %18373 = vst [vmem:[#allocation76_spill] sm:$0xff] %v14218_v46  ;;  %v2929_v34 = vmul.f32 %v13831_v7, %v18377_v51  ;;  %v14240_v57 = vadd.f32 %v3762_v50, %v3583_v9  ;;  %v2531_v47 = vmul.f32 %v13801_v37, %v18380_v19  ;;  %v2515_v55 = vmul.f32 %v13801_v37, %v18381_v14  ;;  %v18384_v51 = vld [vmem:[#allocation143_spill] sm:$0xff]  ;;  %v18386_v19 = vld [vmem:[#allocation144_spill] sm:$0xff] }
 0x396   : > { %v14236_v63 = vpop.permute.xlu1 %3326  ;;  %v14238_v62 = vpop.permute.xlu0 %3259  ;;  %v3148_v2 = vmul.f32 %v13845_v41, %v18382_v27  ;;  %v3132_v31 = vmul.f32 %v13845_v41, %v18383_v30  ;;  %v3354_v32 = vmul.f32 %v13797_v12, %v18384_v51  ;;  %v3338_v14 = vmul.f32 %v13797_v12, %v18386_v19  ;;  %v18387_v27 = vld [vmem:[#allocation145_spill] sm:$0xff]  ;;  %v18393_v19 = vld [vmem:[#allocation147_spill] sm:$0xff] }
 0x397   : > { %18378 = vst [vmem:[#allocation79_spill] sm:$0xff] %v14236_v63  ;;  %18379 = vst [vmem:[#allocation80_spill] sm:$0xff] %v14238_v62  ;;  %v18385_v63 = vld [vmem:[#allocation248_spill] sm:$0xff]  ;;  %v14258_v9 = vadd.f32 %v2736_v11, %v2531_v47  ;;  %v14260_v50 = vadd.f32 %v2720_v45, %v2515_v55  ;;  %v3555_v30 = vmul.f32 %v13871_v59, %v18387_v27 }
 0x398   : > { %v14254_v62 = vrot.slane %v18385_v63, %v14218_v46  ;;  %4345 = vbcast.lane.b32.xlu1 %v13557_v20, 344  ;;  %4278 = vbcast.lane.b32.xlu0 %v13548_v53, 344  ;;  %v14267_v51 = vadd.f32 %v2945_v16, %v14118_v4  ;;  %v14270_v63 = vadd.f32 %v2929_v34, %v14124_v38  ;;  %v18394_v16 = vld [vmem:[#allocation148_spill] sm:$0xff]  ;;  %v18395_v34 = vld [vmem:[#allocation151_spill] sm:$0xff] }
 0x399   : > { %v3539_v33 = vmul.f32 %v13871_v59, %v18388_v5  ;;  %v14275_v11 = vsub.s32 %v4434_v44, %v18372_v18  ;;  %v14282_v55 = vadd.f32 %v3148_v2, %v14127_v21  ;;  %v3764_v4 = vmul.f32 %v18368_v60, %v18393_v19  ;;  %v18397_v18 = vld [vmem:[#allocation152_spill] sm:$0xff]  ;;  %v18398_v19 = vld [vmem:[#allocation149_spill] sm:$0xff] }
 0x39a   : > { %v14277_v45 = vpop.permute.xlu1 %3521  ;;  %v14279_v47 = vpop.permute.xlu0 %3454  ;;  %v3748_v38 = vmul.f32 %v18368_v60, %v18394_v16  ;;  %v2737_v27 = vmul.f32 %v13791_v56, %v18395_v34  ;;  %v14291_v5 = vadd.f32 %v3132_v31, %v14130_v15  ;;  %v14294_v44 = vadd.f32 %v3354_v32, %v14133_v13  ;;  %v18399_v31 = vld [vmem:[#allocation153_spill] sm:$0xff]  ;;  %v18401_v34 = vld [vmem:[#allocation154_spill] sm:$0xff] }
 0x39b   : > { %18389 = vst [vmem:[#allocation81_spill] sm:$0xff] %v14275_v11  ;;  %18390 = vst [vmem:[#allocation77_spill] sm:$0xff] %v14277_v45  ;;  %v14301_v21 = vadd.f32 %v3338_v14, %v14135_v61  ;;  %v14304_v2 = vadd.f32 %v3555_v30, %v14137_v54  ;;  %v2532_v15 = vmul.f32 %v13801_v37, %v18398_v19  ;;  %v18402_v61 = vld [vmem:[#allocation169_spill] sm:$0xff] }
 0x39c   : > { %18391 = vst [vmem:[#allocation82_spill] sm:$0xff] %v14279_v47  ;;  %18392 = vst [vmem:[#allocation83_spill] sm:$0xff] %v14282_v55  ;;  %v2721_v47 = vmul.f32 %v13791_v56, %v18397_v18  ;;  %4152 = vbcast.lane.b32.xlu1 %v13450_v17, 368  ;;  %4085 = vbcast.lane.b32.xlu0 %v13441_v49, 368  ;;  %v2946_v13 = vmul.f32 %v13831_v7, %v18399_v31  ;;  %v18400_v18 = vld [vmem:[#allocation150_spill] sm:$0xff] }
 0x39d   : > { %18396 = vst [vmem:[#allocation78_spill] sm:$0xff] %v14291_v5  ;;  %v14311_v32 = vadd.f32 %v3539_v33, %v14139_v52  ;;  %v2516_v16 = vmul.f32 %v13801_v37, %v18400_v18  ;;  %v2930_v45 = vmul.f32 %v13831_v7, %v18401_v34  ;;  %v4438_v14 = vrot.slane %v18402_v61, %v14275_v11  ;;  %v18406_v52 = vld [vmem:[#allocation155_spill] sm:$0xff]  ;;  %v18408_v34 = vld [vmem:[#allocation156_spill] sm:$0xff] }
 0x39e   : > { %v14319_v54 = vpop.permute.xlu1 %3724  ;;  %v14321_v30 = vpop.permute.xlu0 %3657  ;;  %v14324_v19 = vadd.f32 %v3764_v4, %v14143_v24  ;;  %v14327_v31 = vadd.f32 %v3748_v38, %v14145_v35  ;;  %v14329_v33 = vadd.f32 %v2737_v27, %v2532_v15  ;;  %v3149_v18 = vmul.f32 %v13845_v41, %v18406_v52  ;;  %v18410_v35 = vld [vmem:[#allocation157_spill] sm:$0xff]  ;;  %v18411_v38 = vld [vmem:[#allocation158_spill] sm:$0xff]  ;;  %v18412_v15 = vld [vmem:[#allocation159_spill] sm:$0xff] }
 0x39f   : > { %18403 = vst [vmem:[#allocation84_spill] sm:$0xff] %v14319_v54  ;;  %18404 = vst [vmem:[#allocation85_spill] sm:$0xff] %v14321_v30  ;;  %v14333_v5 = vadd.f32 %v2721_v47, %v2516_v16  ;;  %v3133_v61 = vmul.f32 %v13845_v41, %v18408_v34  ;;  %v4439_v55 = vcombine.high %v4438_v14, %v4438_v14  ;;  %v18414_v52 = vld [vmem:[#allocation160_spill] sm:$0xff]  ;;  %v18415_v30 = vld [vmem:[#allocation161_spill] sm:$0xff] }
 0x3a0   : > { %18405 = vst [vmem:[#allocation86_spill] sm:$0xff] %v14329_v33  ;;  %4349 = vbcast.lane.b32.xlu1 %v13557_v20, 352  ;;  %4282 = vbcast.lane.b32.xlu0 %v13548_v53, 352  ;;  %v14340_v24 = vadd.f32 %v2946_v13, %v14177_v6  ;;  %v3355_v4 = vmul.f32 %v13797_v12, %v18410_v35  ;;  %v18416_v6 = vld [vmem:[#allocation162_spill] sm:$0xff] }
 0x3a1   : > { %18407 = vst [vmem:[#allocation89_spill] sm:$0xff] %v14333_v5  ;;  %v3339_v27 = vmul.f32 %v13797_v12, %v18411_v38  ;;  %v3556_v47 = vmul.f32 %v13871_v59, %v18412_v15  ;;  %v14349_v16 = vadd.f32 %v2930_v45, %v14179_v22  ;;  %v3540_v34 = vmul.f32 %v13871_v59, %v18414_v52  ;;  %v18420_v15 = vld [vmem:[#allocation163_spill] sm:$0xff]  ;;  %v18421_v45 = vld [vmem:[#allocation164_spill] sm:$0xff]  ;;  %v18423_v5 = vld [vmem:[#allocation165_spill] sm:$0xff] }
 0x3a2   : > { %18409 = vst [vmem:[#allocation90_spill] sm:$0xff] %v14340_v24  ;;  %v3765_v54 = vmul.f32 %v18368_v60, %v18415_v30  ;;  %v3749_v13 = vmul.f32 %v18368_v60, %v18416_v6  ;;  %v14357_v24 = vpop.permute.xlu1 %3921  ;;  %v14359_v35 = vpop.permute.xlu0 %3854  ;;  %v14362_v38 = vadd.f32 %v3149_v18, %v14186_v8  ;;  %v3952_v22 = vmul.f32 %v14068_v1, %v18420_v15 }
 0x3a3   : > { %18413 = vst [vmem:[#allocation91_spill] sm:$0xff] %v14349_v16  ;;  %18417 = vst [vmem:[#allocation87_spill] sm:$0xff] %v14357_v24  ;;  %v3951_v16 = vmul.f32 %v14068_v1, %v18421_v45  ;;  %v4446_v52 = vrot.slane %v4438_v14, %v14275_v11  ;;  %v14370_v30 = vadd.f32 %v3133_v61, %v14189_v40  ;;  %v18425_v40 = vld [vmem:[#allocation166_spill] sm:$0xff]  ;;  %v18431_v45 = vld [vmem:[#allocation172_spill] sm:$0xff] }
 0x3a4   : > { %18418 = vst [vmem:[#allocation88_spill] sm:$0xff] %v14359_v35  ;;  %18419 = vst [vmem:[#allocation92_spill] sm:$0xff] %v14362_v38  ;;  %v3968_v6 = vmul.f32 %v14068_v1, %v18423_v5  ;;  %v4453_v24 = vrot.slane %v4439_v55, %v14275_v11  ;;  %4156 = vbcast.lane.b32.xlu1 %v13450_v17, 376  ;;  %4089 = vbcast.lane.b32.xlu0 %v13441_v49, 376 }
 0x3a5   : > { %18422 = vst [vmem:[#allocation93_spill] sm:$0xff] %v14370_v30  ;;  %v14378_v8 = vadd.f32 %v3355_v4, %v14198_v48  ;;  %v14381_v18 = vadd.f32 %v3339_v27, %v14201_v3  ;;  %v14384_v14 = vadd.f32 %v3556_v47, %v14204_v29  ;;  %v3967_v5 = vmul.f32 %v14068_v1, %v18425_v40  ;;  %v18426_v48 = vld [vmem:[#allocation170_spill] sm:$0xff]  ;;  %v18427_v27 = vld [vmem:[#allocation171_spill] sm:$0xff] }
 0x3a6   : > { %v14389_v55 = vadd.f32 %v3540_v34, %v14209_v10  ;;  %v14392_v17 = vadd.f32 %v3765_v54, %v14212_v26  ;;  %v14395_v49 = vadd.f32 %v3749_v13, %v14215_v39  ;;  %v2738_v3 = vmul.f32 %v13791_v56, %v18426_v48  ;;  %v14399_v61 = vpop.permute.xlu1 %4124  ;;  %v14401_v29 = vpop.permute.xlu0 %4057  ;;  %v18428_v54 = vld [vmem:[#allocation50_spill] sm:$0xff]  ;;  %v18433_v48 = vld [vmem:[#allocation173_spill] sm:$0xff] }
 0x3a7   : > { %v14404_v4 = vadd.f32 %v3952_v22, %v14222_v23  ;;  %v3983_v10 = vadd.f32 %v3951_v16, %v14224_v25  ;;  %v2722_v26 = vmul.f32 %v13791_v56, %v18427_v27  ;;  %v14410_v47 = vrot.slane %v4446_v52, %v18428_v54  ;;  %v18429_v34 = vld [vmem:[#allocation167_spill] sm:$0xff]  ;;  %v2244_v23 = vld [vmem:[%s18424_s2 + $0x8] sm:$0xff] }
 0x3a8   : > { %v14413_v39 = vadd.f32 %v3968_v6, %v14230_v42  ;;  %v2533_v13 = vmul.f32 %v13801_v37, %v18429_v34  ;;  %v14418_v15 = vrot.slane %v4453_v24, %v18428_v54  ;;  %v2243_v22 = vld [vmem:[%s18424_s2] sm:$0xff]  ;;  %4353 = vbcast.lane.b32.xlu1 %v13557_v20, 360  ;;  %4286 = vbcast.lane.b32.xlu0 %v13548_v53, 360  ;;  %v18430_v16 = vld [vmem:[#allocation168_spill] sm:$0xff]  ;;  %v18434_v34 = vld [vmem:[#allocation174_spill] sm:$0xff] }
 0x3a9   : > { %v14425_v25 = vadd.f32 %v3967_v5, %v14240_v57  ;;  %v2517_v42 = vmul.f32 %v13801_v37, %v18430_v16  ;;  %v2947_v52 = vmul.f32 %v13831_v7, %v18431_v45  ;;  %v14433_v6 = vrot.slane %v13780_v0, %v14218_v46  ;;  %v2260_v24 = vld [vmem:[%s18424_s2 + $0x88] sm:$0xff]  ;;  %v18435_v5 = vld [vmem:[#allocation175_spill] sm:$0xff]  ;;  %v18437_v0 = vld [vmem:[#allocation178_spill] sm:$0xff] }
 0x3aa   : > { %v14436_v40 = vadd.f32 %v2738_v3, %v2533_v13  ;;  %v2931_v27 = vmul.f32 %v13831_v7, %v18433_v48  ;;  %v3150_v57 = vmul.f32 %v13845_v41, %v18434_v34  ;;  %v3134_v11 = vmul.f32 %v13845_v41, %v18435_v5  ;;  %v2259_v16 = vld [vmem:[%s18424_s2 + $0x80] sm:$0xff]  ;;  %v14445_v54 = vpop.permute.xlu1 %4321  ;;  %v14447_v45 = vpop.permute.xlu0 %4254 }
 0x3ab   : > { %v14449_v35 = vadd.f32 %v2722_v26, %v2517_v42  ;;  %v3557_v3 = vmul.f32 %v13871_v59, %v18437_v0  ;;  %v14454_v13 = vadd.f32 %v14410_v47, %v2244_v23  ;;  %v4464_v48 = vadd.f32 %v14410_v47, %v2243_v22  ;;  %v18438_v46 = vld [vmem:[#allocation179_spill] sm:$0xff]  ;;  %v18441_v23 = vld [vmem:[#allocation180_spill] sm:$0xff]  ;;  %v18442_v22 = vld [vmem:[#allocation181_spill] sm:$0xff] }
 0x3ac   : > { %18432 = vst [vmem:[#allocation94_spill] sm:$0xff] %v14436_v40  ;;  %v3541_v34 = vmul.f32 %v13871_v59, %v18438_v46  ;;  %v18439_v40 = vld [vmem:[#allocation201_spill] sm:$0xff]  ;;  %v14462_v30 = vadd.f32 %v14418_v15, %v2260_v24  ;;  %4357 = vbcast.lane.b32.xlu1 %v13557_v20, 368  ;;  %4290 = vbcast.lane.b32.xlu0 %v13548_v53, 368 }
 0x3ad   : > { %18436 = vst [vmem:[#allocation95_spill] sm:$0xff] %v14449_v35  ;;  %v4162_v5 = vmul.f32 %v14254_v62, %v18439_v40  ;;  %v14467_v26 = vadd.f32 %v2947_v52, %v14258_v9  ;;  %v3766_v42 = vmul.f32 %v18368_v60, %v18441_v23  ;;  %v3750_v0 = vmul.f32 %v18368_v60, %v18442_v22  ;;  %v18446_v9 = vld [vmem:[#allocation233_spill] sm:$0xff] }
 0x3ae   : > { %v14474_v46 = vadd.f32 %v14418_v15, %v2259_v16  ;;  %v14477_v40 = vadd.f32 %v2931_v27, %v14260_v50  ;;  %v14480_v24 = vadd.f32 %v3150_v57, %v14267_v51  ;;  %v14483_v35 = vadd.f32 %v3134_v11, %v14270_v63  ;;  %v14487_v23 = vpop.permute.xlu1 %3525  ;;  %v14489_v22 = vpop.permute.xlu0 %3458  ;;  %v18449_v16 = vld [vmem:[#allocation176_spill] sm:$0xff]  ;;  %v18450_v51 = vld [vmem:[#allocation182_spill] sm:$0xff]  ;;  %v18451_v11 = vld [vmem:[#allocation183_spill] sm:$0xff] }
 0x3af   : > { %18440 = vst [vmem:[#allocation96_spill] sm:$0xff] %v14467_v26  ;;  %v4367_v52 = vmul.f32 %v14433_v6, %v18446_v9  ;;  %18447 = vst [vmem:[#allocation102_spill] sm:$0xff] %v14487_v23  ;;  %v14493_v26 = vmul.f32 %v13797_v12, %v18449_v16  ;;  %v14496_v50 = vadd.f32 %v3557_v3, %v14294_v44  ;;  %v18452_v9 = vld [vmem:[#allocation200_spill] sm:$0xff]  ;;  %v18453_v3 = vld [vmem:[#allocation194_spill] sm:$0xff] }
 0x3b0   : > { %18443 = vst [vmem:[#allocation99_spill] sm:$0xff] %v14477_v40  ;;  %18444 = vst [vmem:[#allocation100_spill] sm:$0xff] %v14480_v24  ;;  %v3969_v63 = vmul.f32 %v14068_v1, %v18450_v51  ;;  %v3953_v27 = vmul.f32 %v14068_v1, %v18451_v11  ;;  %v3573_v57 = vadd.f32 %v3541_v34, %v14301_v21  ;;  %4361 = vbcast.lane.b32.xlu1 %v13557_v20, 376  ;;  %v2261_v21 = vld [vmem:[%s18424_s2 + $0x90] sm:$0xff]  ;;  %v18455_v24 = vld [vmem:[#allocation196_spill] sm:$0xff] }
 0x3b1   : > { %18445 = vst [vmem:[#allocation101_spill] sm:$0xff] %v14483_v35  ;;  %18448 = vst [vmem:[#allocation103_spill] sm:$0xff] %v14489_v22  ;;  %v4163_v23 = vmul.f32 %v14254_v62, %v18452_v9  ;;  %v4194_v35 = vadd.f32 %v4162_v5, %v3983_v10  ;;  %4294 = vbcast.lane.b32.xlu0 %v13548_v53, 376  ;;  %v3798_v16 = vadd.f32 %v3766_v42, %v14304_v2  ;;  %v18454_v22 = vld [vmem:[#allocation195_spill] sm:$0xff]  ;;  %v2245_v34 = vld [vmem:[%s18424_s2 + $0x10] sm:$0xff] }
 0x3b2   : > { %v14509_v44 = vadd.f32 %v3750_v0, %v14311_v32  ;;  %v3558_v51 = vmul.f32 %v13871_v59, %v18453_v3  ;;  %v3542_v11 = vmul.f32 %v13871_v59, %v18454_v22  ;;  %v3767_v10 = vmul.f32 %v18368_v60, %v18455_v24  ;;  %v18456_v5 = vld [vmem:[#allocation197_spill] sm:$0xff]  ;;  %v18457_v53 = vld [vmem:[#allocation232_spill] sm:$0xff]  ;;  %v14523_v42 = vpop.permute.xlu1 %3728  ;;  %v14525_v0 = vpop.permute.xlu0 %3661  ;;  %v18460_v3 = vld [vmem:[#allocation198_spill] sm:$0xff] }
 0x3b3   : > { %v3751_v20 = vmul.f32 %v18368_v60, %v18456_v5  ;;  %v4368_v2 = vmul.f32 %v14433_v6, %v18457_v53  ;;  %v4399_v32 = vadd.f32 %v4367_v52, %v4194_v35  ;;  %18458 = vst [vmem:[#allocation104_spill] sm:$0xff] %v14523_v42  ;;  %18459 = vst [vmem:[#allocation97_spill] sm:$0xff] %v14525_v0  ;;  %v18461_v24 = vld [vmem:[#allocation203_spill] sm:$0xff]  ;;  %v18468_v0 = vld [vmem:[#allocation234_spill] sm:$0xff] }
 0x3b4   : > { %v4001_v9 = vadd.f32 %v3969_v63, %v14324_v19  ;;  %v3985_v22 = vadd.f32 %v3953_v27, %v14327_v31  ;;  %v3970_v40 = vmul.f32 %v14068_v1, %v18460_v3  ;;  %v4178_v38 = vmul.f32 %v14254_v62, %v18461_v24  ;;  %v18462_v5 = vld [vmem:[#allocation199_spill] sm:$0xff]  ;;  %v18463_v63 = vld [vmem:[#allocation202_spill] sm:$0xff] }
 0x3b5   : > { %v3954_v33 = vmul.f32 %v14068_v1, %v18462_v5  ;;  %v4195_v53 = vadd.f32 %v4163_v23, %v14404_v4  ;;  %v14537_v35 = vadd.f32 %v14418_v15, %v2261_v21  ;;  %v14540_v52 = vadd.f32 %v14410_v47, %v2245_v34  ;;  %v18464_v3 = vld [vmem:[#allocation235_spill] sm:$0xff]  ;;  %v2262_v4 = vld [vmem:[%s18424_s2 + $0x98] sm:$0xff] }
 0x3b6   : > { %v14543_v19 = vadd.f32 %v3558_v51, %v14378_v8  ;;  %v14546_v31 = vadd.f32 %v3542_v11, %v14381_v18  ;;  %v4179_v27 = vmul.f32 %v14254_v62, %v18463_v63  ;;  %v4383_v24 = vmul.f32 %v14433_v6, %v18464_v3  ;;  %v14559_v34 = vpop.permute.xlu1 %3925  ;;  %v14561_v18 = vpop.permute.xlu0 %3858  ;;  %v18467_v63 = vld [vmem:[#allocation217_spill] sm:$0xff] }
 0x3b7   : > { %v14554_v23 = vadd.f32 %v3767_v10, %v14384_v14  ;;  %v14557_v21 = vadd.f32 %v3751_v20, %v14389_v55  ;;  %v4400_v8 = vadd.f32 %v4368_v2, %v4195_v53  ;;  %v4496_v51 = vadd.f32 %v4464_v48, %v4399_v32  ;;  %18465 = vst [vmem:[#allocation98_spill] sm:$0xff] %v14559_v34  ;;  %v18469_v10 = vld [vmem:[#allocation212_spill] sm:$0xff]  ;;  %v18470_v20 = vld [vmem:[#allocation213_spill] sm:$0xff] }
 0x3b8   : > { %18466 = vst [vmem:[#allocation105_spill] sm:$0xff] %v14561_v18  ;;  %v4002_v11 = vadd.f32 %v3970_v40, %v14392_v17  ;;  %v4210_v5 = vadd.f32 %v4178_v38, %v14425_v25  ;;  %v4164_v3 = vmul.f32 %v14254_v62, %v18467_v63  ;;  %v4384_v14 = vmul.f32 %v14433_v6, %v18468_v0  ;;  %v2246_v17 = vld [vmem:[%s18424_s2 + $0x18] sm:$0xff]  ;;  %v2263_v40 = vld [vmem:[%s18424_s2 + $0xa0] sm:$0xff] }
 0x3b9   : > { %v3986_v55 = vadd.f32 %v3954_v33, %v14395_v49  ;;  %v3768_v48 = vmul.f32 %v18368_v60, %v18469_v10  ;;  %v3752_v2 = vmul.f32 %v18368_v60, %v18470_v20  ;;  %v14575_v32 = vadd.f32 %v14418_v15, %v2262_v4  ;;  %v18471_v25 = vld [vmem:[#allocation214_spill] sm:$0xff]  ;;  %v18472_v0 = vld [vmem:[#allocation252_spill] sm:$0xff]  ;;  %v18474_v20 = vld [vmem:[#allocation216_spill] sm:$0xff] }
 0x3ba   : > { %v4211_v38 = vadd.f32 %v4179_v27, %v14413_v39  ;;  %v3971_v53 = vmul.f32 %v14068_v1, %v18471_v25  ;;  %v4415_v63 = vadd.f32 %v4383_v24, %v4210_v5  ;;  %v4369_v33 = vmul.f32 %v14433_v6, %v18472_v0  ;;  %v2247_v49 = vld [vmem:[%s18424_s2 + $0x20] sm:$0xff]  ;;  %v14590_v39 = vpop.permute.xlu1 %4128  ;;  %v14592_v27 = vpop.permute.xlu0 %4061 }
 0x3bb   : > { %v18473_v10 = vld [vmem:[#allocation215_spill] sm:$0xff]  ;;  %v4180_v4 = vmul.f32 %v14254_v62, %v18474_v20  ;;  %v4497_v18 = vadd.f32 %v14454_v13, %v4400_v8  ;;  %11764 = vtanh.f32 %v4496_v51  ;;  %18475 = vst [vmem:[#allocation106_spill] sm:$0xff] %v14590_v39  ;;  %v4196_v24 = vadd.f32 %v4164_v3, %v3985_v22  ;;  %v2264_v51 = vld [vmem:[%s18424_s2 + $0xa8] sm:$0xff]  ;;  %v18477_v3 = vld [vmem:[#allocation251_spill] sm:$0xff] }
 0x3bc   : > { %v3955_v42 = vmul.f32 %v14068_v1, %v18473_v10  ;;  %v4416_v5 = vadd.f32 %v4384_v14, %v4211_v38  ;;  %v4467_v25 = vadd.f32 %v14410_v47, %v2246_v17  ;;  %v14596_v0 = vadd.f32 %v14418_v15, %v2263_v40  ;;  %v18476_v20 = vld [vmem:[#allocation231_spill] sm:$0xff]  ;;  %v2248_v40 = vld [vmem:[%s18424_s2 + $0x28] sm:$0xff] }
 0x3bd   : > { %v14599_v10 = vadd.f32 %v3768_v48, %v14496_v50  ;;  %v3784_v34 = vadd.f32 %v3752_v2, %v3573_v57  ;;  %v4165_v13 = vmul.f32 %v14254_v62, %v18476_v20  ;;  %v14604_v8 = vadd.f32 %v14410_v47, %v2247_v49  ;;  %v18478_v57 = vld [vmem:[#allocation66_spill] sm:$0xff] }
 0x3be   : > { %v4003_v39 = vadd.f32 %v3971_v53, %v3798_v16  ;;  %v4512_v22 = vadd.f32 %v14474_v46, %v4415_v63  ;;  %v4385_v14 = vmul.f32 %v14433_v6, %v18477_v3  ;;  %v4401_v17 = vadd.f32 %v4369_v33, %v4196_v24  ;;  %v14614_v2 = vpop.permute.xlu1 %4325  ;;  %v4259_v49 = vpop.permute.xlu0 %4258  ;;  %v18479_v20 = vld [vmem:[#allocation226_spill] sm:$0xff] }
 0x3bf   : > { %v3987_v38 = vadd.f32 %v3955_v42, %v14509_v44  ;;  %v4212_v50 = vadd.f32 %v4180_v4, %v4001_v9  ;;  %11766 = vtanh.f32 %v4497_v18  ;;  %v4370_v48 = vmul.f32 %v14433_v6, %v18478_v57  ;;  %v18480_v53 = vld [vmem:[#allocation230_spill] sm:$0xff]  ;;  %v18481_v44 = vld [vmem:[#allocation228_spill] sm:$0xff]  ;;  %v18482_v18 = vld [vmem:[#allocation250_spill] sm:$0xff] }
 0x3c0   : > { %v3769_v16 = vmul.f32 %v18368_v60, %v18479_v20  ;;  %v4181_v46 = vmul.f32 %v14254_v62, %v18480_v53  ;;  %v4513_v63 = vadd.f32 %v14462_v30, %v4416_v5  ;;  %v14622_v33 = vadd.f32 %v14418_v15, %v2264_v51  ;;  %v18483_v20 = vld [vmem:[#allocation59_spill] sm:$0xff] }
 0x3c1   : > { %v3972_v42 = vmul.f32 %v14068_v1, %v18481_v44  ;;  %v4197_v9 = vadd.f32 %v4165_v13, %v3986_v55  ;;  %v4166_v4 = vmul.f32 %v14254_v62, %v18482_v18  ;;  %v14629_v24 = vadd.f32 %v14410_v47, %v2248_v40  ;;  %v18484_v5 = vld [vmem:[#allocation227_spill] sm:$0xff]  ;;  %v18485_v55 = vld [vmem:[#allocation229_spill] sm:$0xff] }
 0x3c2   : > { %11768 = vtanh.f32 %v4512_v22  ;;  %v4417_v3 = vadd.f32 %v4385_v14, %v4212_v50  ;;  %v4498_v57 = vadd.f32 %v14540_v52, %v4401_v17  ;;  %v4386_v30 = vmul.f32 %v14433_v6, %v18483_v20  ;;  %v14642_v22 = vpop.permute.xlu1 %3529  ;;  %v14644_v14 = vpop.permute.xlu0 %3462  ;;  %v18489_v50 = vld [vmem:[#allocation249_spill] sm:$0xff] }
 0x3c3   : > { %v14636_v51 = vmul.f32 %v18368_v60, %v18484_v5  ;;  %v3956_v13 = vmul.f32 %v14068_v1, %v18485_v55  ;;  %v4402_v53 = vadd.f32 %v4370_v48, %v4197_v9  ;;  %v4371_v40 = vmul.f32 %v14433_v6, %v14195_v36  ;;  %18487 = vst [vmem:[#allocation107_spill] sm:$0xff] %v14642_v22  ;;  %v18490_v5 = vld [vmem:[#allocation246_spill] sm:$0xff]  ;;  %v18491_v36 = vld [vmem:[#allocation63_spill] sm:$0xff] }
 0x3c4   : > { %18488 = vst [vmem:[#allocation108_spill] sm:$0xff] %v14644_v14  ;;  %v14647_v52 = vadd.f32 %v3769_v16, %v14543_v19  ;;  %v4213_v17 = vadd.f32 %v4181_v46, %v4002_v11  ;;  %11770 = vtanh.f32 %v4513_v63  ;;  %v4182_v44 = vmul.f32 %v14254_v62, %v18489_v50  ;;  %v2249_v22 = vld [vmem:[%s18424_s2 + $0x30] sm:$0xff]  ;;  %v14658_v14 = vld [vmem:[%s18486_s7] ss:$0 sm:$0xff] }
 0x3c5   : > { %v11765_v18 = vpop.eup %11764  ;;  %v4004_v20 = vadd.f32 %v3972_v42, %v14554_v23  ;;  %v3957_v48 = vmul.f32 %v14068_v1, %v18490_v5  ;;  %v4198_v9 = vadd.f32 %v4166_v4, %v3987_v38  ;;  %v4167_v55 = vmul.f32 %v14254_v62, %v18491_v36  ;;  %v18492_v5 = vld [vmem:[#allocation62_spill] sm:$0xff] }
 0x3c6   : > { %v4514_v19 = vadd.f32 %v14537_v35, %v4417_v3  ;;  %11772 = vtanh.f32 %v4498_v57  ;;  %v4418_v11 = vadd.f32 %v4386_v30, %v4213_v17  ;;  %v4387_v16 = vmul.f32 %v14433_v6, %v14193_v28  ;;  %v14666_v42 = vpop.permute.xlu1 %3732  ;;  %v14668_v4 = vpop.permute.xlu0 %3665  ;;  %v18493_v30 = vld [vmem:[#allocation245_spill] sm:$0xff] }
 0x3c7   : > { %v3988_v46 = vadd.f32 %v3956_v13, %v14557_v21  ;;  %v4499_v23 = vadd.f32 %v4467_v25, %v4402_v53  ;;  %v4403_v63 = vadd.f32 %v4371_v40, %v4198_v9  ;;  %v4372_v38 = vmul.f32 %v14433_v6, %v14447_v45 }
 0x3c8   : > { %v4214_v50 = vadd.f32 %v4182_v44, %v4003_v39  ;;  %v4183_v35 = vmul.f32 %v14254_v62, %v18492_v5  ;;  %v4470_v3 = vadd.f32 %v14410_v47, %v2249_v22  ;;  %v4567_v57 = vmul.f32 %v11765_v18, %v14658_v14 }
 0x3c9   : > { %v11767_v28 = vpop.eup %11766  ;;  %v3973_v21 = vmul.f32 %v14068_v1, %v18493_v30  ;;  %v3989_v25 = vadd.f32 %v3957_v48, %v3784_v34  ;;  %v4199_v13 = vadd.f32 %v4167_v55, %v3988_v46  ;;  %v4168_v45 = vmul.f32 %v14254_v62, %v14161_v58 }
 0x3ca   : > { %11774 = vtanh.f32 %v4514_v19  ;;  %v4515_v53 = vadd.f32 %v14575_v32, %v4418_v11  ;;  %v4419_v39 = vadd.f32 %v4387_v16, %v4214_v50  ;;  %v4388_v40 = vmul.f32 %v14433_v6, %v14445_v54  ;;  %v14683_v18 = vpop.permute.xlu1 %3929  ;;  %v14685_v34 = vpop.permute.xlu0 %3862 }
 0x3cb   : > { %11776 = vtanh.f32 %v4499_v23  ;;  %v4500_v22 = vadd.f32 %v14604_v8, %v4403_v63  ;;  %v4404_v17 = vadd.f32 %v4372_v38, %v4199_v13  ;;  %v4373_v44 = vmul.f32 %v14433_v6, %v4259_v49  ;;  %v18494_v8 = vld [vmem:[#allocation60_spill] sm:$0xff]  ;;  %v18495_v49 = vld [vmem:[#allocation58_spill] sm:$0xff]  ;;  %v2265_v23 = vld [vmem:[%s18424_s2 + $0xb0] sm:$0xff] }
 0x3cc   : > { %v11769_v48 = vpop.eup %11768  ;;  %v4215_v58 = vadd.f32 %v4183_v35, %v4004_v20  ;;  %v4184_v32 = vmul.f32 %v14254_v62, %v14159_v43  ;;  %v4600_v9 = vsel %vm17976_vm7, %v4567_v57, 0.0  ;;  %v4568_v54 = vmul.f32 %v11767_v28, %v14658_v14 }
 0x3cd   : > { %v4005_v36 = vadd.f32 %v3973_v21, %v14599_v10  ;;  %v3974_v55 = vmul.f32 %v14068_v1, %v18494_v8  ;;  %v3958_v19 = vmul.f32 %v14068_v1, %v18495_v49  ;;  %v4200_v11 = vadd.f32 %v4168_v45, %v3989_v25  ;;  %v2250_v45 = vld [vmem:[%s18424_s2 + $0x38] sm:$0xff] }
 0x3ce   : > { %v11771_v16 = vpop.eup %11770  ;;  %11778 = vtanh.f32 %v4515_v53  ;;  %v4516_v20 = vadd.f32 %v14596_v0, %v4419_v39  ;;  %v4420_v46 = vadd.f32 %v4388_v40, %v4215_v58  ;;  %v4389_v43 = vmul.f32 %v14433_v6, %v14614_v2  ;;  %v14701_v38 = vpop.permute.xlu1 %4132  ;;  %v18496_v58 = vld [vmem:[#allocation83_spill] sm:$0xff]  ;;  %v2266_v8 = vld [vmem:[%s18424_s2 + $0xb8] sm:$0xff] }
 0x3cf   : > { %11780 = vtanh.f32 %v4500_v22  ;;  %v4501_v63 = vadd.f32 %v14629_v24, %v4404_v17  ;;  %v4405_v10 = vadd.f32 %v4373_v44, %v4200_v11  ;;  %v14703_v50 = vpop.permute.xlu0 %4065  ;;  %v4583_v5 = vmul.f32 %v11769_v48, %v14658_v14 }
 0x3d0   : > { %v11773_v35 = vpop.eup %11772  ;;  %v3785_v0 = vadd.f32 %v14636_v51, %v14546_v31  ;;  %v4216_v57 = vadd.f32 %v4184_v32, %v4005_v36  ;;  %v4185_v28 = vmul.f32 %v14254_v62, %v14399_v61  ;;  %v4169_v2 = vmul.f32 %v14254_v62, %v14401_v29  ;;  %4601 = vadd.xlane.f32.xlu0 %v4600_v9  ;;  %v18497_v9 = vld [vmem:[#allocation177_spill] sm:$0xff] }
 0x3d1   : > { %v4006_v24 = vadd.f32 %v3974_v55, %v14647_v52  ;;  %v4486_v30 = vadd.f32 %v14418_v15, %v2265_v23  ;;  %v4603_v21 = vsel %vm17976_vm7, %v4568_v54, 0.0  ;;  %v4584_v25 = vmul.f32 %v11771_v16, %v14658_v14  ;;  %v18498_v54 = vld [vmem:[#allocation210_spill] sm:$0xff]  ;;  %v18499_v16 = vld [vmem:[#allocation211_spill] sm:$0xff] }
 0x3d2   : > { %v3990_v13 = vadd.f32 %v3958_v19, %v3785_v0  ;;  %11782 = vtanh.f32 %v4516_v20  ;;  %v4517_v31 = vadd.f32 %v14622_v33, %v4420_v46  ;;  %v4421_v51 = vadd.f32 %v4389_v43, %v4216_v57  ;;  %v4330_v53 = vpop.permute.xlu1 %4329 }
 0x3d3   : > { %11784 = vtanh.f32 %v4501_v63  ;;  %v4502_v61 = vadd.f32 %v4470_v3, %v4405_v10  ;;  %v4263_v29 = vpop.permute.xlu0 %4262  ;;  %v4648_v39 = vsel %vm17976_vm7, %v4583_v5, 0.0  ;;  %v4569_v52 = vmul.f32 %v11773_v35, %v14658_v14 }
 0x3d4   : > { %v11775_v40 = vpop.eup %11774  ;;  %v4217_v22 = vadd.f32 %v4185_v28, %v4006_v24  ;;  %v4201_v17 = vadd.f32 %v4169_v2, %v3990_v13  ;;  %v4390_v44 = vmul.f32 %v14433_v6, %v4330_v53  ;;  %v4374_v48 = vmul.f32 %v14433_v6, %v4263_v29  ;;  %4649 = vadd.xlane.f32.xlu0 %v4648_v39  ;;  %v18500_v28 = vld [vmem:[#allocation78_spill] sm:$0xff]  ;;  %v18501_v24 = vld [vmem:[#allocation184_spill] sm:$0xff]  ;;  %v18506_v39 = vld [vmem:[#allocation187_spill] sm:$0xff] }
 0x3d5   : > { %v11777_v33 = vpop.eup %11776  ;;  %v3388_v32 = vadd.f32 %v14493_v26, %v18496_v58  ;;  %v3340_v3 = vmul.f32 %v13797_v12, %v18497_v9  ;;  %v3559_v36 = vmul.f32 %v13871_v59, %v18498_v54  ;;  %v4471_v55 = vadd.f32 %v14410_v47, %v2250_v45  ;;  %4604 = vadd.xlane.f32.xlu1 %v4603_v21  ;;  %v18502_v21 = vld [vmem:[#allocation185_spill] sm:$0xff]  ;;  %v18503_v13 = vld [vmem:[#allocation186_spill] sm:$0xff]  ;;  %v18507_v54 = vld [vmem:[#allocation188_spill] sm:$0xff] }
 0x3d6   : > { %11786 = vtanh.f32 %v4517_v31  ;;  %v4518_v49 = vadd.f32 %v4486_v30, %v4421_v51  ;;  %v4422_v19 = vadd.f32 %v4390_v44, %v4217_v22  ;;  %v4406_v11 = vadd.f32 %v4374_v48, %v4201_v17  ;;  %v14732_v46 = vpop.permute.xlu1 %3736  ;;  %v18504_v51 = vld [vmem:[#allocation243_spill] sm:$0xff] }
 0x3d7   : > { %v3543_v20 = vmul.f32 %v13871_v59, %v18499_v16  ;;  %11788 = vtanh.f32 %v4502_v61  ;;  %v14734_v26 = vpop.permute.xlu0 %3669  ;;  %v4651_v23 = vsel %vm17976_vm7, %v4584_v25, 0.0  ;;  %v4585_v43 = vmul.f32 %v11775_v40, %v14658_v14  ;;  %v18505_v61 = vld [vmem:[#allocation244_spill] sm:$0xff] }
 0x3d8   : > { %v11779_v63 = vpop.eup %11778  ;;  %v4487_v10 = vadd.f32 %v14418_v15, %v2266_v8  ;;  %v4503_v5 = vadd.f32 %v4471_v55, %v4406_v11  ;;  %4652 = vadd.xlane.f32.xlu0 %v4651_v23  ;;  %v4606_v35 = vsel %vm17976_vm7, %v4569_v52, 0.0  ;;  %v4570_v0 = vmul.f32 %v11777_v33, %v14658_v14  ;;  %v18508_v8 = vld [vmem:[#allocation189_spill] sm:$0xff]  ;;  %v18510_v11 = vld [vmem:[#allocation75_spill] sm:$0xff] }
 0x3d9   : > { %v11781_v57 = vpop.eup %11780  ;;  %v3372_v2 = vadd.f32 %v3340_v3, %v18500_v28  ;;  %v2534_v30 = vmul.f32 %v13801_v37, %v18501_v24  ;;  %v2518_v25 = vmul.f32 %v13801_v37, %v18502_v21  ;;  %v2739_v31 = vmul.f32 %v13791_v56, %v18503_v13  ;;  %4607 = vadd.xlane.f32.xlu1 %v4606_v35 }
 0x3da   : > { %v3770_v45 = vmul.f32 %v18368_v60, %v18504_v51  ;;  %v3754_v53 = vmul.f32 %v18368_v60, %v18505_v61  ;;  %11790 = vtanh.f32 %v4518_v49  ;;  %v4519_v29 = vadd.f32 %v4487_v10, %v4422_v19  ;;  %v14754_v40 = vpop.permute.xlu1 %3933  ;;  %v18509_v49 = vld [vmem:[#allocation69_spill] sm:$0xff]  ;;  %v18513_v51 = vld [vmem:[#allocation86_spill] sm:$0xff]  ;;  %v18514_v61 = vld [vmem:[#allocation191_spill] sm:$0xff] }
 0x3db   : > { %v2723_v52 = vmul.f32 %v13791_v56, %v18506_v39  ;;  %11792 = vtanh.f32 %v4503_v5  ;;  %v14756_v22 = vpop.permute.xlu0 %3866  ;;  %v4654_v37 = vsel %vm17976_vm7, %v4585_v43, 0.0  ;;  %v4586_v17 = vmul.f32 %v11779_v63, %v14658_v14  ;;  %v18512_v43 = vld [vmem:[#allocation106_spill] sm:$0xff] }
 0x3dc   : > { %v11783_v44 = vpop.eup %11782  ;;  %v3591_v48 = vadd.f32 %v3559_v36, %v3388_v32  ;;  %v3575_v33 = vadd.f32 %v3543_v20, %v3372_v2  ;;  %4655 = vadd.xlane.f32.xlu0 %v4654_v37  ;;  %v4609_v58 = vsel %vm17976_vm7, %v4570_v0, 0.0  ;;  %v4571_v9 = vmul.f32 %v11781_v57, %v14658_v14  ;;  %v18511_v32 = vld [vmem:[#allocation190_spill] sm:$0xff]  ;;  %v18517_v37 = vld [vmem:[#allocation192_spill] sm:$0xff] }
 0x3dd   : > { %v11785_v3 = vpop.eup %11784  ;;  %v2948_v56 = vmul.f32 %v13831_v7, %v18507_v54  ;;  %v2932_v55 = vmul.f32 %v13831_v7, %v18508_v8  ;;  %v3975_v19 = vmul.f32 %v14068_v1, %v18509_v49  ;;  %v3959_v16 = vmul.f32 %v14068_v1, %v18510_v11  ;;  %4610 = vadd.xlane.f32.xlu1 %v4609_v58  ;;  %v2251_v54 = vld [vmem:[%s18424_s2 + $0x40] sm:$0xff] }
 0x3de   : > { %v3151_v36 = vmul.f32 %v13845_v41, %v18511_v32  ;;  %v3802_v20 = vadd.f32 %v3770_v45, %v3591_v48  ;;  %v3786_v23 = vadd.f32 %v3754_v53, %v3575_v33  ;;  %11794 = vtanh.f32 %v4519_v29  ;;  %v14776_v5 = vpop.permute.xlu1 %4136 }
 0x3df   : > { %v4186_v63 = vmul.f32 %v14254_v62, %v18512_v43  ;;  %v4170_v10 = vmul.f32 %v14254_v62, %v14592_v27  ;;  %v14778_v35 = vpop.permute.xlu0 %4069  ;;  %v4657_v0 = vsel %vm17976_vm7, %v4586_v17, 0.0  ;;  %v4587_v57 = vmul.f32 %v11783_v44, %v14658_v14  ;;  %v18518_v44 = vld [vmem:[#allocation193_spill] sm:$0xff]  ;;  %v18520_v43 = vld [vmem:[#allocation204_spill] sm:$0xff] }
 0x3e0   : > { %v11787_v28 = vpop.eup %11786  ;;  %v14782_v2 = vadd.f32 %v2739_v31, %v2534_v30  ;;  %v14784_v24 = vadd.f32 %v2723_v52, %v2518_v25  ;;  %4658 = vadd.xlane.f32.xlu0 %v4657_v0  ;;  %v4612_v21 = vsel %vm17976_vm7, %v4571_v9, 0.0  ;;  %v4572_v27 = vmul.f32 %v11785_v3, %v14658_v14  ;;  %v18515_v30 = vld [vmem:[#allocation89_spill] sm:$0xff]  ;;  %v18516_v31 = vld [vmem:[#allocation90_spill] sm:$0xff]  ;;  %v2267_v9 = vld [vmem:[%s18424_s2 + $0xc0] sm:$0xff] }
 0x3e1   : > { %v11789_v13 = vpop.eup %11788  ;;  %v14789_v45 = vadd.f32 %v2948_v56, %v18513_v51  ;;  %v3135_v53 = vmul.f32 %v13845_v41, %v18514_v61  ;;  %v4007_v29 = vadd.f32 %v3975_v19, %v3802_v20  ;;  %v3991_v39 = vadd.f32 %v3959_v16, %v3786_v23  ;;  %4613 = vadd.xlane.f32.xlu1 %v4612_v21  ;;  %v18519_v20 = vld [vmem:[#allocation91_spill] sm:$0xff]  ;;  %v18523_v61 = vld [vmem:[#allocation92_spill] sm:$0xff] }
 0x3e2   : > { %v14794_v25 = vadd.f32 %v2932_v55, %v18515_v30  ;;  %v14797_v52 = vadd.f32 %v3151_v36, %v18516_v31  ;;  %v3357_v17 = vmul.f32 %v13797_v12, %v18517_v37  ;;  %v3341_v48 = vmul.f32 %v13797_v12, %v18518_v44  ;;  %v4334_v3 = vpop.permute.xlu1 %4333 }
 0x3e3   : > { %v4218_v33 = vadd.f32 %v4186_v63, %v4007_v29  ;;  %v4202_v58 = vadd.f32 %v4170_v10, %v3991_v39  ;;  %v4267_v56 = vpop.permute.xlu0 %4266  ;;  %v4660_v8 = vsel %vm17976_vm7, %v4587_v57, 0.0  ;;  %v4588_v55 = vmul.f32 %v11787_v28, %v14658_v14  ;;  %v18521_v10 = vld [vmem:[#allocation205_spill] sm:$0xff]  ;;  %v18522_v57 = vld [vmem:[#allocation206_spill] sm:$0xff] }
 0x3e4   : > { %v11791_v49 = vpop.eup %11790  ;;  %v4391_v19 = vmul.f32 %v14433_v6, %v4334_v3  ;;  %v4375_v11 = vmul.f32 %v14433_v6, %v4267_v56  ;;  %4661 = vadd.xlane.f32.xlu0 %v4660_v8  ;;  %v4615_v16 = vsel %vm17976_vm7, %v4572_v27, 0.0  ;;  %v4573_v32 = vmul.f32 %v11789_v13, %v14658_v14 }
 0x3e5   : > { %v11793_v36 = vpop.eup %11792  ;;  %v14812_v23 = vadd.f32 %v3135_v53, %v18519_v20  ;;  %v2949_v63 = vmul.f32 %v13831_v7, %v18520_v43  ;;  %v2933_v0 = vmul.f32 %v13831_v7, %v18521_v10  ;;  %v3152_v28 = vmul.f32 %v13845_v41, %v18522_v57  ;;  %4616 = vadd.xlane.f32.xlu1 %v4615_v16  ;;  %v18524_v53 = vld [vmem:[#allocation93_spill] sm:$0xff]  ;;  %v18530_v16 = vld [vmem:[#allocation208_spill] sm:$0xff] }
 0x3e6   : > { %v4423_v21 = vadd.f32 %v4391_v19, %v4218_v33  ;;  %v4488_v51 = vadd.f32 %v14418_v15, %v2267_v9  ;;  %v4407_v27 = vadd.f32 %v4375_v11, %v4202_v58  ;;  %v4472_v13 = vadd.f32 %v14410_v47, %v2251_v54  ;;  %v14824_v30 = vpop.permute.xlu1 %3740  ;;  %v18526_v54 = vld [vmem:[#allocation94_spill] sm:$0xff]  ;;  %v18528_v19 = vld [vmem:[#allocation96_spill] sm:$0xff]  ;;  %v18533_v10 = vld [vmem:[#allocation209_spill] sm:$0xff] }
 0x3e7   : > { %v3389_v29 = vadd.f32 %v3357_v17, %v18523_v61  ;;  %v3373_v39 = vadd.f32 %v3341_v48, %v18524_v53  ;;  %v14826_v31 = vpop.permute.xlu0 %3673  ;;  %v4663_v37 = vsel %vm17976_vm7, %v4588_v55, 0.0  ;;  %v4589_v44 = vmul.f32 %v11791_v49, %v14658_v14  ;;  %v18527_v48 = vld [vmem:[#allocation95_spill] sm:$0xff]  ;;  %v18531_v43 = vld [vmem:[#allocation224_spill] sm:$0xff] }
 0x3e8   : > { %18525 = vst [vmem:[#allocation109_spill] sm:$0xff] %v14826_v31  ;;  %v11795_v3 = vpop.eup %11794  ;;  %v4520_v56 = vadd.f32 %v4488_v51, %v4423_v21  ;;  %v4504_v33 = vadd.f32 %v4472_v13, %v4407_v27  ;;  %4664 = vadd.xlane.f32.xlu0 %v4663_v37  ;;  %v4618_v58 = vsel %vm17976_vm7, %v4573_v32, 0.0  ;;  %v4574_v9 = vmul.f32 %v11793_v36, %v14658_v14  ;;  %v18529_v55 = vld [vmem:[#allocation207_spill] sm:$0xff]  ;;  %v18532_v36 = vld [vmem:[#allocation225_spill] sm:$0xff]  ;;  %v18535_v27 = vld [vmem:[#allocation218_spill] sm:$0xff] }
 0x3e9   : > { %v14833_v17 = vadd.f32 %v2949_v63, %v18526_v54  ;;  %v14836_v8 = vadd.f32 %v2933_v0, %v18527_v48  ;;  %v14839_v11 = vadd.f32 %v3152_v28, %v18528_v19  ;;  %v3136_v49 = vmul.f32 %v13845_v41, %v18529_v55  ;;  %4619 = vadd.xlane.f32.xlu1 %v4618_v58  ;;  %v18536_v61 = vld [vmem:[#allocation55_spill] sm:$0xff]  ;;  %v18537_v37 = vld [vmem:[#allocation56_spill] sm:$0xff]  ;;  %v18538_v58 = vld [vmem:[#allocation219_spill] sm:$0xff] }
 0x3ea   : > { %v3358_v20 = vmul.f32 %v13797_v12, %v18530_v16  ;;  %v3560_v32 = vmul.f32 %v13871_v59, %v18531_v43  ;;  %v3544_v63 = vmul.f32 %v13871_v59, %v18532_v36  ;;  %11796 = vtanh.f32 %v4520_v56  ;;  %v14851_v57 = vpop.permute.xlu1 %3937  ;;  %v18539_v48 = vld [vmem:[#allocation220_spill] sm:$0xff]  ;;  %v18540_v19 = vld [vmem:[#allocation221_spill] sm:$0xff]  ;;  %v18541_v55 = vld [vmem:[#allocation222_spill] sm:$0xff] }
 0x3eb   : > { %v3342_v0 = vmul.f32 %v13797_v12, %v18533_v10  ;;  %11798 = vtanh.f32 %v4504_v33  ;;  %v14853_v28 = vpop.permute.xlu0 %3870  ;;  %v4666_v21 = vsel %vm17976_vm7, %v4589_v44, 0.0  ;;  %v4590_v51 = vmul.f32 %v11795_v3, %v14658_v14  ;;  %v18542_v10 = vld [vmem:[#allocation87_spill] sm:$0xff] }
 0x3ec   : > { %18534 = vst [vmem:[#allocation110_spill] sm:$0xff] %v14853_v28  ;;  %v2950_v13 = vmul.f32 %v13831_v7, %v18535_v27  ;;  %v3771_v53 = vmul.f32 %v18368_v60, %v18536_v61  ;;  %v3755_v56 = vmul.f32 %v18368_v60, %v18537_v37  ;;  %4667 = vadd.xlane.f32.xlu0 %v4666_v21  ;;  %v4621_v33 = vsel %vm17976_vm7, %v4574_v9, 0.0  ;;  %v18543_v27 = vld [vmem:[#allocation88_spill] sm:$0xff]  ;;  %v18544_v61 = vld [vmem:[#allocation99_spill] sm:$0xff] }
 0x3ed   : > { %v2934_v54 = vmul.f32 %v13831_v7, %v18538_v58  ;;  %v3153_v44 = vmul.f32 %v13845_v41, %v18539_v48  ;;  %v3137_v3 = vmul.f32 %v13845_v41, %v18540_v19  ;;  %v3359_v16 = vmul.f32 %v13797_v12, %v18541_v55  ;;  %4622 = vadd.xlane.f32.xlu1 %v4621_v33  ;;  %v18545_v37 = vld [vmem:[#allocation100_spill] sm:$0xff]  ;;  %v18546_v48 = vld [vmem:[#allocation101_spill] sm:$0xff] }
 0x3ee   : > { %v3592_v43 = vadd.f32 %v3560_v32, %v3389_v29  ;;  %v3576_v36 = vadd.f32 %v3544_v63, %v3373_v39  ;;  %v3976_v21 = vmul.f32 %v14068_v1, %v18542_v10  ;;  %v3960_v9 = vmul.f32 %v14068_v1, %v18543_v27  ;;  %v14879_v28 = vpop.permute.xlu1 %4140 }
 0x3ef   : > { %v3168_v7 = vadd.f32 %v3136_v49, %v18544_v61  ;;  %v3390_v58 = vadd.f32 %v3358_v20, %v18545_v37  ;;  %v3374_v31 = vadd.f32 %v3342_v0, %v18546_v48  ;;  %v14881_v19 = vpop.permute.xlu0 %4073  ;;  %v4669_v29 = vsel %vm17976_vm7, %v4590_v51, 0.0  ;;  %v18552_v48 = vld [vmem:[#allocation240_spill] sm:$0xff] }
 0x3f0   : > { %v3803_v39 = vadd.f32 %v3771_v53, %v3592_v43  ;;  %v3787_v32 = vadd.f32 %v3755_v56, %v3576_v36  ;;  %v4187_v63 = vmul.f32 %v14254_v62, %v14701_v38  ;;  %v4171_v49 = vmul.f32 %v14254_v62, %v14703_v50  ;;  %4670 = vadd.xlane.f32.xlu0 %v4669_v29  ;;  %v18547_v38 = vld [vmem:[#allocation223_spill] sm:$0xff]  ;;  %v2252_v43 = vld [vmem:[%s18424_s2 + $0x48] sm:$0xff] }
 0x3f1   : > { %v14889_v20 = vadd.f32 %v2950_v13, %v14782_v2  ;;  %v14892_v0 = vadd.f32 %v2934_v54, %v14784_v24  ;;  %v14895_v33 = vadd.f32 %v3153_v44, %v14789_v45  ;;  %v14898_v51 = vadd.f32 %v3137_v3, %v14794_v25  ;;  %v18548_v2 = vld [vmem:[#allocation236_spill] sm:$0xff]  ;;  %v18549_v24 = vld [vmem:[#allocation237_spill] sm:$0xff]  ;;  %v18550_v45 = vld [vmem:[#allocation238_spill] sm:$0xff] }
 0x3f2   : > { %v14901_v53 = vadd.f32 %v3359_v16, %v14797_v52  ;;  %v3343_v56 = vmul.f32 %v13797_v12, %v18547_v38  ;;  %v4008_v50 = vadd.f32 %v3976_v21, %v3803_v39  ;;  %v3992_v55 = vadd.f32 %v3960_v9, %v3787_v32  ;;  %v18551_v25 = vld [vmem:[#allocation239_spill] sm:$0xff]  ;;  %v2268_v52 = vld [vmem:[%s18424_s2 + $0xc8] sm:$0xff]  ;;  %v4338_v16 = vpop.permute.xlu1 %4337  ;;  %v18553_v39 = vld [vmem:[#allocation241_spill] sm:$0xff] }
 0x3f3   : > { %v3154_v13 = vmul.f32 %v13845_v41, %v18548_v2  ;;  %v3138_v54 = vmul.f32 %v13845_v41, %v18549_v24  ;;  %v3360_v44 = vmul.f32 %v13797_v12, %v18550_v45  ;;  %v3344_v3 = vmul.f32 %v13797_v12, %v18551_v25  ;;  %v4271_v36 = vpop.permute.xlu0 %4270 }
 0x3f4   : > { %v11797_v10 = vpop.eup %11796  ;;  %v4219_v27 = vadd.f32 %v4187_v63, %v4008_v50  ;;  %v4203_v21 = vadd.f32 %v4171_v49, %v3992_v55  ;;  %v4392_v9 = vmul.f32 %v14433_v6, %v4338_v16  ;;  %v4376_v61 = vmul.f32 %v14433_v6, %v4271_v36 }
 0x3f5   : > { %v11799_v37 = vpop.eup %11798  ;;  %v3561_v29 = vmul.f32 %v13871_v59, %v18552_v48  ;;  %v3545_v32 = vmul.f32 %v13871_v59, %v18553_v39  ;;  %v4473_v38 = vadd.f32 %v14410_v47, %v2252_v43  ;;  %v4591_v2 = vmul.f32 %v11797_v10, %v14658_v14  ;;  %v18557_v39 = vld [vmem:[#allocation98_spill] sm:$0xff] }
 0x3f6   : > { %v4424_v24 = vadd.f32 %v4392_v9, %v4219_v27  ;;  %v4489_v63 = vadd.f32 %v14418_v15, %v2268_v52  ;;  %v4408_v49 = vadd.f32 %v4376_v61, %v4203_v21  ;;  %v4575_v50 = vmul.f32 %v11799_v37, %v14658_v14  ;;  %v14934_v43 = vpop.permute.xlu1 %3941  ;;  %v18555_v52 = vld [vmem:[#allocation74_spill] sm:$0xff]  ;;  %v18556_v27 = vld [vmem:[#allocation68_spill] sm:$0xff] }
 0x3f7   : > { %v14926_v55 = vadd.f32 %v3343_v56, %v14812_v23  ;;  %v14929_v45 = vadd.f32 %v3154_v13, %v14833_v17  ;;  %v14932_v25 = vadd.f32 %v3138_v54, %v14836_v8  ;;  %v14936_v16 = vpop.permute.xlu0 %3874  ;;  %v4672_v36 = vsel %vm17976_vm7, %v4591_v2, 0.0  ;;  %v2269_v56 = vld [vmem:[%s18424_s2 + $0xd0] sm:$0xff]  ;;  %v2270_v13 = vld [vmem:[%s18424_s2 + $0xd8] sm:$0xff] }
 0x3f8   : > { %18554 = vst [vmem:[#allocation111_spill] sm:$0xff] %v14936_v16  ;;  %v3772_v10 = vmul.f32 %v18368_v60, %v18555_v52  ;;  %v3756_v21 = vmul.f32 %v18368_v60, %v18556_v27  ;;  %v4521_v23 = vadd.f32 %v4489_v63, %v4424_v24  ;;  %v4505_v17 = vadd.f32 %v4473_v38, %v4408_v49  ;;  %v2253_v8 = vld [vmem:[%s18424_s2 + $0x50] sm:$0xff]  ;;  %v2254_v24 = vld [vmem:[%s18424_s2 + $0x58] sm:$0xff]  ;;  %v2271_v63 = vld [vmem:[%s18424_s2 + $0xe0] sm:$0xff] }
 0x3f9   : > { %4673 = vadd.xlane.f32.xlu0 %v4672_v36  ;;  %v14947_v54 = vadd.f32 %v3360_v44, %v14839_v11  ;;  %v14949_v9 = vadd.f32 %v3344_v3, %v3168_v7  ;;  %v3593_v61 = vadd.f32 %v3561_v29, %v3390_v58  ;;  %v4624_v37 = vsel %vm17976_vm7, %v4575_v50, 0.0  ;;  %v18558_v52 = vld [vmem:[#allocation105_spill] sm:$0xff]  ;;  %v2255_v50 = vld [vmem:[%s18424_s2 + $0x60] sm:$0xff] }
 0x3fa   : > { %v3577_v48 = vadd.f32 %v3545_v32, %v3374_v31  ;;  %v3977_v2 = vmul.f32 %v14068_v1, %v18557_v39  ;;  %v3961_v38 = vmul.f32 %v14068_v1, %v18558_v52  ;;  %11800 = vtanh.f32 %v4521_v23  ;;  %4625 = vadd.xlane.f32.xlu1 %v4624_v37  ;;  %v14958_v11 = vpop.permute.xlu1 %4144  ;;  %v18559_v36 = vld [vmem:[#allocation254_spill] sm:$0xff]  ;;  %v18560_v23 = vld [vmem:[#allocation255_spill] sm:$0xff]  ;;  %v2272_v37 = vld [vmem:[%s18424_s2 + $0xe8] sm:$0xff] }
 0x3fb   : > { %11802 = vtanh.f32 %v4505_v17  ;;  %v14960_v7 = vpop.permute.xlu0 %4077  ;;  %v4490_v58 = vadd.f32 %v14418_v15, %v2269_v56  ;;  %v4474_v31 = vadd.f32 %v14410_v47, %v2253_v8  ;;  %v14965_v44 = vadd.f32 %v14418_v15, %v2270_v13  ;;  %v18564_v39 = vld [vmem:[#allocation258_spill] sm:$0xff] }
 0x3fc   : > { %v3804_v3 = vadd.f32 %v3772_v10, %v3593_v61  ;;  %v3788_v29 = vadd.f32 %v3756_v21, %v3577_v48  ;;  %v4188_v32 = vmul.f32 %v14254_v62, %v14776_v5  ;;  %v4172_v49 = vmul.f32 %v14254_v62, %v14778_v35  ;;  %v18562_v10 = vld [vmem:[#allocation256_spill] sm:$0xff]  ;;  %v18563_v5 = vld [vmem:[#allocation257_spill] sm:$0xff] }
 0x3fd   : > { %v3155_v27 = vmul.f32 %v13845_v41, %v18559_v36  ;;  %v3139_v17 = vmul.f32 %v13845_v41, %v18560_v23  ;;  %v14977_v56 = vadd.f32 %v14410_v47, %v2254_v24  ;;  %v14980_v8 = vadd.f32 %v14418_v15, %v2271_v63  ;;  %v2256_v48 = vld [vmem:[%s18424_s2 + $0x68] sm:$0xff]  ;;  %v18565_v41 = vld [vmem:[#allocation259_spill] sm:$0xff]  ;;  %v18566_v36 = vld [vmem:[#allocation67_spill] sm:$0xff] }
 0x3fe   : > { %v3361_v21 = vmul.f32 %v13797_v12, %v18562_v10  ;;  %v3345_v13 = vmul.f32 %v13797_v12, %v18563_v5  ;;  %v4009_v35 = vadd.f32 %v3977_v2, %v3804_v3  ;;  %v3993_v61 = vadd.f32 %v3961_v38, %v3788_v29  ;;  %v4342_v23 = vpop.permute.xlu1 %4341 }
 0x3ff   : > { %18561 = vst [vmem:[#allocation113_spill] sm:$0xff] %v14980_v8  ;;  %v3562_v52 = vmul.f32 %v13871_v59, %v18564_v39  ;;  %v3546_v24 = vmul.f32 %v13871_v59, %v18565_v41  ;;  %v3362_v63 = vmul.f32 %v13797_v12, %v18566_v36  ;;  %v4275_v16 = vpop.permute.xlu0 %4274  ;;  %v14995_v10 = vadd.f32 %v14410_v47, %v2255_v50 }
 0x400   : > { %v4220_v8 = vadd.f32 %v4188_v32, %v4009_v35  ;;  %v4204_v5 = vadd.f32 %v4172_v49, %v3993_v61  ;;  %v4393_v2 = vmul.f32 %v14433_v6, %v4342_v23  ;;  %v4377_v38 = vmul.f32 %v14433_v6, %v4275_v16  ;;  %v18567_v61 = vld [vmem:[#allocation70_spill] sm:$0xff] }
 0x401   : > { %v3187_v3 = vadd.f32 %v3155_v27, %v14889_v20  ;;  %v3171_v29 = vadd.f32 %v3139_v17, %v14892_v0  ;;  %v15002_v39 = vadd.f32 %v14418_v15, %v2272_v37  ;;  %v15005_v41 = vadd.f32 %v14410_v47, %v2256_v48  ;;  %v18568_v0 = vld [vmem:[#allocation84_spill] sm:$0xff] }
 0x402   : > { %v3393_v36 = vadd.f32 %v3361_v21, %v14895_v33  ;;  %v3377_v50 = vadd.f32 %v3345_v13, %v14898_v51  ;;  %v4425_v32 = vadd.f32 %v4393_v2, %v4220_v8  ;;  %v4409_v49 = vadd.f32 %v4377_v38, %v4204_v5  ;;  %v15015_v17 = vpop.permute.xlu1 %3945  ;;  %v18569_v51 = vld [vmem:[#allocation85_spill] sm:$0xff]  ;;  %v18572_v5 = vld [vmem:[#allocation79_spill] sm:$0xff] }
 0x403   : > { %v3594_v35 = vadd.f32 %v3562_v52, %v14901_v53  ;;  %v3578_v16 = vadd.f32 %v3546_v24, %v14926_v55  ;;  %v3346_v20 = vmul.f32 %v13797_v12, %v18567_v61  ;;  %v3773_v27 = vmul.f32 %v18368_v60, %v18568_v0  ;;  %v15017_v37 = vpop.permute.xlu0 %3878  ;;  %v18570_v55 = vld [vmem:[#allocation71_spill] sm:$0xff]  ;;  %v18571_v24 = vld [vmem:[#allocation73_spill] sm:$0xff] }
 0x404   : > { %v11801_v48 = vpop.eup %11800  ;;  %v3394_v33 = vadd.f32 %v3362_v63, %v14929_v45  ;;  %v3757_v8 = vmul.f32 %v18368_v60, %v18569_v51  ;;  %v4522_v21 = vadd.f32 %v4490_v58, %v4425_v32  ;;  %v4506_v53 = vadd.f32 %v4474_v31, %v4409_v49 }
 0x405   : > { %v11803_v13 = vpop.eup %11802  ;;  %v3563_v52 = vmul.f32 %v13871_v59, %v18570_v55  ;;  %v3547_v23 = vmul.f32 %v13871_v59, %v18571_v24  ;;  %v3363_v2 = vmul.f32 %v13797_v12, %v18572_v5  ;;  %v4592_v38 = vmul.f32 %v11801_v48, %v14658_v14  ;;  %v18576_v55 = vld [vmem:[#allocation102_spill] sm:$0xff]  ;;  %v18577_v5 = vld [vmem:[#allocation103_spill] sm:$0xff] }
 0x406   : > { %v3978_v45 = vmul.f32 %v14068_v1, %v14683_v18  ;;  %v3962_v63 = vmul.f32 %v14068_v1, %v14685_v34  ;;  %11804 = vtanh.f32 %v4522_v21  ;;  %v4576_v58 = vmul.f32 %v11803_v13, %v14658_v14  ;;  %v15035_v49 = vpop.permute.xlu1 %4148  ;;  %v18574_v21 = vld [vmem:[#allocation77_spill] sm:$0xff] }
 0x407   : > { %v3378_v31 = vadd.f32 %v3346_v20, %v14932_v25  ;;  %v3805_v32 = vadd.f32 %v3773_v27, %v3594_v35  ;;  %11806 = vtanh.f32 %v4506_v53  ;;  %v15037_v61 = vpop.permute.xlu0 %4081  ;;  %v4675_v0 = vsel %vm17976_vm7, %v4592_v38, 0.0  ;;  %v18573_v20 = vld [vmem:[#allocation80_spill] sm:$0xff] }
 0x408   : > { %v3789_v48 = vadd.f32 %v3757_v8, %v3578_v16  ;;  %v4189_v18 = vmul.f32 %v14254_v62, %v14879_v28  ;;  %v4173_v34 = vmul.f32 %v14254_v62, %v14881_v19  ;;  %v4627_v51 = vsel %vm17976_vm7, %v4576_v58, 0.0  ;;  %4676 = vadd.xlane.f32.xlu0 %v4675_v0  ;;  %v18575_v8 = vld [vmem:[#allocation82_spill] sm:$0xff] }
 0x409   : > { %v3595_v25 = vadd.f32 %v3563_v52, %v14947_v54  ;;  %v3579_v35 = vadd.f32 %v3547_v23, %v14949_v9  ;;  %v3347_v27 = vmul.f32 %v13797_v12, %v18573_v20  ;;  %v3564_v53 = vmul.f32 %v13871_v59, %v18574_v21  ;;  %4628 = vadd.xlane.f32.xlu1 %v4627_v51  ;;  %v18578_v9 = vld [vmem:[#allocation104_spill] sm:$0xff]  ;;  %v18579_v12 = vld [vmem:[#allocation97_spill] sm:$0xff] }
 0x40a   : > { %v3395_v16 = vadd.f32 %v3363_v2, %v3187_v3  ;;  %v3548_v28 = vmul.f32 %v13871_v59, %v18575_v8  ;;  %v4010_v13 = vadd.f32 %v3978_v45, %v3805_v32  ;;  %v3994_v19 = vadd.f32 %v3962_v63, %v3789_v48  ;;  %v4346_v38 = vpop.permute.xlu1 %4345  ;;  %v18580_v48 = vld [vmem:[#allocation107_spill] sm:$0xff] }
 0x40b   : > { %v3565_v24 = vmul.f32 %v13871_v59, %v18576_v55  ;;  %v3549_v54 = vmul.f32 %v13871_v59, %v18577_v5  ;;  %v3774_v52 = vmul.f32 %v18368_v60, %v18578_v9  ;;  %v3758_v23 = vmul.f32 %v18368_v60, %v18579_v12  ;;  %v4279_v58 = vpop.permute.xlu0 %4278  ;;  %v18581_v12 = vld [vmem:[#allocation108_spill] sm:$0xff] }
 0x40c   : > { %v4221_v3 = vadd.f32 %v4189_v18, %v4010_v13  ;;  %v4205_v2 = vadd.f32 %v4173_v34, %v3994_v19  ;;  %v4394_v0 = vmul.f32 %v14433_v6, %v4346_v38  ;;  %v4378_v45 = vmul.f32 %v14433_v6, %v4279_v58 }
 0x40d   : > { %v3379_v63 = vadd.f32 %v3347_v27, %v3171_v29  ;;  %v3596_v32 = vadd.f32 %v3564_v53, %v3393_v36  ;;  %v3566_v51 = vmul.f32 %v13871_v59, %v18580_v48  ;;  %v3979_v20 = vmul.f32 %v14068_v1, %v14754_v40 }
 0x40e   : > { %v3580_v21 = vadd.f32 %v3548_v28, %v3377_v50  ;;  %v3963_v8 = vmul.f32 %v14068_v1, %v14756_v22  ;;  %v4426_v55 = vadd.f32 %v4394_v0, %v4221_v3  ;;  %v4410_v5 = vadd.f32 %v4378_v45, %v4205_v2  ;;  %v4153_v29 = vpop.permute.xlu1 %4152  ;;  %v18582_v0 = vld [vmem:[#allocation110_spill] sm:$0xff] }
 0x40f   : > { %v3597_v18 = vadd.f32 %v3565_v24, %v3394_v33  ;;  %v3581_v34 = vadd.f32 %v3549_v54, %v3378_v31  ;;  %v3806_v13 = vadd.f32 %v3774_v52, %v3595_v25  ;;  %v4190_v19 = vmul.f32 %v14254_v62, %v14958_v11  ;;  %v4086_v36 = vpop.permute.xlu0 %4085 }
 0x410   : > { %v11805_v27 = vpop.eup %11804  ;;  %v3790_v53 = vadd.f32 %v3758_v23, %v3579_v35  ;;  %v4174_v9 = vmul.f32 %v14254_v62, %v14960_v7  ;;  %v4523_v40 = vadd.f32 %v14965_v44, %v4426_v55  ;;  %v4507_v50 = vadd.f32 %v14977_v56, %v4410_v5 }
 0x411   : > { %v11807_v22 = vpop.eup %11806  ;;  %v3598_v28 = vadd.f32 %v3566_v51, %v3395_v16  ;;  %v3550_v33 = vmul.f32 %v13871_v59, %v18581_v12  ;;  %v4011_v31 = vadd.f32 %v3979_v20, %v3806_v13  ;;  %v4593_v25 = vmul.f32 %v11805_v27, %v14658_v14  ;;  %v18584_v13 = vld [vmem:[#allocation113_spill] sm:$0xff] }
 0x412   : > { %v3775_v11 = vmul.f32 %v18368_v60, %v14666_v42  ;;  %v3995_v24 = vadd.f32 %v3963_v8, %v3790_v53  ;;  %11808 = vtanh.f32 %v4523_v40  ;;  %v4577_v35 = vmul.f32 %v11807_v22, %v14658_v14  ;;  %v4350_v56 = vpop.permute.xlu1 %4349  ;;  %v18583_v8 = vld [vmem:[#allocation109_spill] sm:$0xff] }
 0x413   : > { %v3759_v7 = vmul.f32 %v18368_v60, %v14668_v4  ;;  %v4222_v44 = vadd.f32 %v4190_v19, %v4011_v31  ;;  %11810 = vtanh.f32 %v4507_v50  ;;  %v4283_v16 = vpop.permute.xlu0 %4282  ;;  %v4678_v54 = vsel %vm17976_vm7, %v4593_v25, 0.0 }
 0x414   : > { %v4206_v59 = vadd.f32 %v4174_v9, %v3995_v24  ;;  %v4395_v52 = vmul.f32 %v14433_v6, %v4350_v56  ;;  %v4379_v23 = vmul.f32 %v14433_v6, %v4283_v16  ;;  %v4630_v42 = vsel %vm17976_vm7, %v4577_v35, 0.0  ;;  %4679 = vadd.xlane.f32.xlu0 %v4678_v54  ;;  %v18585_v9 = vld [vmem:[#allocation111_spill] sm:$0xff]  ;;  %v2273_v56 = vld [vmem:[%s18424_s2 + $0xf0] sm:$0xff] }
 0x415   : > { %v3582_v38 = vadd.f32 %v3550_v33, %v3379_v63  ;;  %v3776_v58 = vmul.f32 %v18368_v60, %v14732_v46  ;;  %v3760_v4 = vmul.f32 %v18368_v60, %v14734_v26  ;;  %v3777_v3 = vmul.f32 %v18368_v60, %v14824_v30  ;;  %4631 = vadd.xlane.f32.xlu1 %v4630_v42  ;;  %v2257_v42 = vld [vmem:[%s18424_s2 + $0x70] sm:$0xff] }
 0x416   : > { %v3980_v2 = vmul.f32 %v14068_v1, %v14851_v57  ;;  %v3964_v45 = vmul.f32 %v14068_v1, %v18582_v0  ;;  %v4427_v48 = vadd.f32 %v4395_v52, %v4222_v44  ;;  %v4411_v51 = vadd.f32 %v4379_v23, %v4206_v59  ;;  %v4157_v55 = vpop.permute.xlu1 %4156 }
 0x417   : > { %v3807_v20 = vadd.f32 %v3775_v11, %v3596_v32  ;;  %v3791_v63 = vadd.f32 %v3759_v7, %v3580_v21  ;;  %v3761_v46 = vmul.f32 %v18368_v60, %v18583_v8  ;;  %v3981_v26 = vmul.f32 %v14068_v1, %v14934_v43  ;;  %v4090_v5 = vpop.permute.xlu0 %4089 }
 0x418   : > { %v4191_v30 = vmul.f32 %v14254_v62, %v15035_v49  ;;  %v4175_v57 = vmul.f32 %v14254_v62, %v15037_v61  ;;  %v4524_v19 = vadd.f32 %v18584_v13, %v4427_v48  ;;  %v4508_v27 = vadd.f32 %v14995_v10, %v4411_v51 }
 0x419   : > { %v3808_v32 = vadd.f32 %v3776_v58, %v3597_v18  ;;  %v3792_v21 = vadd.f32 %v3760_v4, %v3581_v34  ;;  %v3809_v53 = vadd.f32 %v3777_v3, %v3598_v28  ;;  %v3965_v60 = vmul.f32 %v14068_v1, %v18585_v9 }
 0x41a   : > { %v4012_v40 = vadd.f32 %v3980_v2, %v3807_v20  ;;  %v3996_v43 = vadd.f32 %v3964_v45, %v3791_v63  ;;  %v4192_v50 = vmul.f32 %v14254_v62, %v4153_v29  ;;  %11812 = vtanh.f32 %v4524_v19  ;;  %v4354_v61 = vpop.permute.xlu1 %4353  ;;  %v2258_v20 = vld [vmem:[%s18424_s2 + $0x78] sm:$0xff] }
 0x41b   : > { %v3793_v22 = vadd.f32 %v3761_v46, %v3582_v38  ;;  %v4013_v49 = vadd.f32 %v3981_v26, %v3808_v32  ;;  %v4176_v12 = vmul.f32 %v14254_v62, %v4086_v36  ;;  %11814 = vtanh.f32 %v4508_v27  ;;  %v4287_v33 = vpop.permute.xlu0 %4286 }
 0x41c   : > { %v11809_v10 = vpop.eup %11808  ;;  %v4223_v18 = vadd.f32 %v4191_v30, %v4012_v40  ;;  %v4207_v34 = vadd.f32 %v4175_v57, %v3996_v43  ;;  %v4396_v28 = vmul.f32 %v14433_v6, %v4354_v61  ;;  %v4380_v31 = vmul.f32 %v14433_v6, %v4287_v33 }
 0x41d   : > { %v11811_v25 = vpop.eup %11810  ;;  %v3997_v11 = vadd.f32 %v3965_v60, %v3792_v21  ;;  %v3982_v29 = vmul.f32 %v14068_v1, %v15015_v17  ;;  %v3966_v36 = vmul.f32 %v14068_v1, %v15017_v37  ;;  %v4594_v24 = vmul.f32 %v11809_v10, %v14658_v14 }
 0x41e   : > { %v4224_v35 = vadd.f32 %v4192_v50, %v4013_v49  ;;  %v4428_v7 = vadd.f32 %v4396_v28, %v4223_v18  ;;  %v4412_v44 = vadd.f32 %v4380_v31, %v4207_v34  ;;  %v4578_v16 = vmul.f32 %v11811_v25, %v14658_v14  ;;  %v4358_v23 = vpop.permute.xlu1 %4357  ;;  %v11916_v50 = vld [vmem:[%s18486_s7] ss:$0 sm:$0xff] }
 0x41f   : > { %v4208_v54 = vadd.f32 %v4176_v12, %v3997_v11  ;;  %v4193_v59 = vmul.f32 %v14254_v62, %v4157_v55  ;;  %v4177_v52 = vmul.f32 %v14254_v62, %v4090_v5  ;;  %v4291_v38 = vpop.permute.xlu0 %4290  ;;  %v4681_v17 = vsel %vm17976_vm7, %v4594_v24, 0.0 }
 0x420   : > { %v4525_v1 = vadd.f32 %v15002_v39, %v4428_v7  ;;  %v4509_v37 = vadd.f32 %v15005_v41, %v4412_v44  ;;  %v4397_v58 = vmul.f32 %v14433_v6, %v4358_v23  ;;  %v4381_v4 = vmul.f32 %v14433_v6, %v4291_v38  ;;  %4682 = vadd.xlane.f32.xlu0 %v4681_v17  ;;  %v2274_v39 = vld [vmem:[%s18424_s2 + $0xf8] sm:$0xff] }
 0x421   : > { %v4014_v3 = vadd.f32 %v3982_v29, %v3809_v53  ;;  %v3998_v2 = vadd.f32 %v3966_v36, %v3793_v22  ;;  %v4494_v62 = vadd.f32 %v14418_v15, %v2273_v56  ;;  %v4633_v0 = vsel %vm17976_vm7, %v4578_v16, 0.0  ;;  %v18587_v7 = vld [vmem:[#allocation45_spill] sm:$0xff] }
 0x422   : > { %11816 = vtanh.f32 %v4525_v1  ;;  %v4429_v45 = vadd.f32 %v4397_v58, %v4224_v35  ;;  %v4413_v48 = vadd.f32 %v4381_v4, %v4208_v54  ;;  %v4478_v51 = vadd.f32 %v14410_v47, %v2257_v42  ;;  %4634 = vadd.xlane.f32.xlu1 %v4633_v0  ;;  %v4362_v8 = vpop.permute.xlu1 %4361  ;;  %v18586_v35 = vld [vmem:[#allocation44_spill] sm:$0xff] }
 0x423   : > { %v4225_v41 = vadd.f32 %v4193_v59, %v4014_v3  ;;  %v4209_v63 = vadd.f32 %v4177_v52, %v3998_v2  ;;  %11818 = vtanh.f32 %v4509_v37  ;;  %v4295_v46 = vpop.permute.xlu0 %4294  ;;  %v4398_v30 = vmul.f32 %v14433_v6, %v4362_v8 }
 0x424   : > { %v11813_v26 = vpop.eup %11812  ;;  %v4526_v55 = vadd.f32 %v4494_v62, %v4429_v45  ;;  %v4510_v5 = vadd.f32 %v4478_v51, %v4413_v48  ;;  %v4382_v57 = vmul.f32 %v14433_v6, %v4295_v46  ;;  %v4495_v19 = vadd.f32 %v14418_v15, %v2274_v39  ;;  %v18588_v45 = vld [vmem:[#allocation51_spill] sm:$0xff] }
 0x425   : > { %v11815_v13 = vpop.eup %11814  ;;  %v4479_v27 = vadd.f32 %v14410_v47, %v2258_v20  ;;  %v4595_v32 = vmul.f32 %v11813_v26, %v14658_v14  ;;  %v4430_v21 = vadd.f32 %v4398_v30, %v4225_v41  ;;  %v4734_v48 = vadd.s32 4294967288, %v18588_v45 }
 0x426   : > { %11820 = vtanh.f32 %v4526_v55  ;;  %v4414_v53 = vadd.f32 %v4382_v57, %v4209_v63  ;;  %v4579_v9 = vmul.f32 %v11815_v13, %v14658_v14  ;;  %v4741_v51 = vadd.s32 4294967280, %v18588_v45  ;;  %v18589_v63 = vld [vmem:[#allocation49_spill] sm:$0xff] }
 0x427   : > { %11822 = vtanh.f32 %v4510_v5  ;;  %v4684_v60 = vsel %vm17976_vm7, %v4595_v32, 0.0  ;;  %v4527_v40 = vadd.f32 %v4495_v19, %v4430_v21  ;;  %v4748_v20 = vadd.s32 4294967272, %v18588_v45 }
 0x428   : > { %v4511_v43 = vadd.f32 %v4479_v27, %v4414_v53  ;;  %v4636_v6 = vsel %vm17976_vm7, %v4579_v9, 0.0  ;;  %4685 = vadd.xlane.f32.xlu0 %v4684_v60  ;;  %v15199_v8 = vsub.s32 %v18588_v45, %v18589_v63  ;;  %v4755_v46 = vadd.s32 4294967264, %v18588_v45 }
 0x429   : > { %4637 = vadd.xlane.f32.xlu1 %v4636_v6  ;;  %11824 = vtanh.f32 %v4527_v40  ;;  %v15203_v26 = vsub.s32 %v4734_v48, %v18589_v63  ;;  %v4762_v55 = vadd.s32 4294967256, %v18588_v45  ;;  %v4769_v5 = vadd.s32 4294967248, %v18588_v45 }
 0x42a   : > { %11826 = vtanh.f32 %v4511_v43  ;;  %18590 = vst [vmem:[#allocation114_spill] sm:$0xff] %v15199_v8  ;;  %v15208_v30 = vsub.s32 %v4741_v51, %v18589_v63  ;;  %v4776_v57 = vadd.s32 4294967240, %v18588_v45  ;;  %v4783_v13 = vadd.s32 4294967232, %v18588_v45 }
 0x42b   : > { %18591 = vst [vmem:[#allocation115_spill] sm:$0xff] %v15203_v26  ;;  %v15215_v27 = vsub.s32 %v4748_v20, %v18589_v63  ;;  %v4790_v32 = vadd.s32 4294967224, %v18588_v45  ;;  %v4797_v21 = vadd.s32 4294967216, %v18588_v45  ;;  %v15222_v9 = vsub.s32 %v4755_v46, %v18589_v63 }
 0x42c   : > { %v11817_v47 = vpop.eup %11816  ;;  %18592 = vst [vmem:[#allocation116_spill] sm:$0xff] %v15208_v30  ;;  %v4804_v60 = vadd.s32 4294967208, %v18588_v45  ;;  %v4811_v40 = vadd.s32 4294967200, %v18588_v45  ;;  %v15227_v43 = vsub.s32 %v4762_v55, %v18589_v63  ;;  %v15230_v6 = vsub.s32 %v4769_v5, %v18589_v63 }
 0x42d   : > { %v11819_v15 = vpop.eup %11818  ;;  %v4596_v22 = vmul.f32 %v11916_v50, %v11817_v47  ;;  %18593 = vst [vmem:[#allocation117_spill] sm:$0xff] %v15215_v27  ;;  %18594 = vst [vmem:[#allocation118_spill] sm:$0xff] %v15222_v9  ;;  %v4818_v47 = vadd.s32 4294967192, %v18588_v45 }
 0x42e   : > { %v4580_v49 = vmul.f32 %v11916_v50, %v11819_v15  ;;  %18595 = vst [vmem:[#allocation119_spill] sm:$0xff] %v15227_v43  ;;  %18596 = vst [vmem:[#allocation120_spill] sm:$0xff] %v15230_v6  ;;  %v15234_v15 = vsub.s32 %v4776_v57, %v18589_v63 }
 0x42f   : > { %v4687_v12 = vsel %vm17976_vm7, %v4596_v22, 0.0 }
 0x430   : > { %v11821_v61 = vpop.eup %11820  ;;  %v4639_v14 = vsel %vm17976_vm7, %v4580_v49, 0.0  ;;  %4688 = vadd.xlane.f32.xlu0 %v4687_v12  ;;  %18597 = vst [vmem:[#allocation112_spill] sm:$0xff] %v15234_v15  ;;  %v4825_v49 = vadd.s32 4294967184, %v18588_v45 }
 0x431   : > { %v11823_v33 = vpop.eup %11822  ;;  %4640 = vadd.xlane.f32.xlu1 %v4639_v14  ;;  %v4597_v10 = vmul.f32 %v11916_v50, %v11821_v61  ;;  %v15245_v61 = vsub.s32 %v4790_v32, %v18589_v63  ;;  %v15248_v14 = vsub.s32 %v4797_v21, %v18589_v63 }
 0x432   : > { %v4581_v18 = vmul.f32 %v11916_v50, %v11823_v33 }
 0x433   : > { %v4690_v34 = vsel %vm17976_vm7, %v4597_v10, 0.0  ;;  %v11825_v28 = vpop.eup %11824  ;;  %18599 = vst [vmem:[#allocation122_spill] sm:$0xff] %v15245_v61  ;;  %18600 = vst [vmem:[#allocation125_spill] sm:$0xff] %v15248_v14  ;;  %v4832_v10 = vadd.s32 4294967176, %v18588_v45 }
 0x434   : > { %v4642_v31 = vsel %vm17976_vm7, %v4581_v18, 0.0  ;;  %4691 = vadd.xlane.f32.xlu0 %v4690_v34  ;;  %v11827_v25 = vpop.eup %11826  ;;  %v4598_v11 = vmul.f32 %v11916_v50, %v11825_v28  ;;  %v15258_v28 = vsub.s32 %v4804_v60, %v18589_v63 }
 0x435   : > { %4643 = vadd.xlane.f32.xlu1 %v4642_v31  ;;  %v4582_v29 = vmul.f32 %v11916_v50, %v11827_v25  ;;  %v15237_v50 = vsub.s32 %v4783_v13, %v18589_v63  ;;  %v15261_v31 = vsub.s32 %v4811_v40, %v18589_v63 }
 0x436   : > { %v4693_v36 = vsel %vm17976_vm7, %v4598_v11, 0.0  ;;  %18601 = vst [vmem:[#allocation123_spill] sm:$0xff] %v15258_v28 }
 0x437   : > { %v4645_v24 = vsel %vm17976_vm7, %v4582_v29, 0.0  ;;  %18598 = vst [vmem:[#allocation121_spill] sm:$0xff] %v15237_v50  ;;  %vm17983_vm7 = vcmask 654912   ;;  %18602 = vst [vmem:[#allocation124_spill] sm:$0xff] %v15261_v31 }
 0x438   : > { %4694 = vadd.xlane.f32.xlu0 %v4693_v36  ;;  %v15270_v36 = vsub.s32 %v4818_v47, %v18589_v63 }
 0x439   : > { %4646 = vadd.xlane.f32.xlu1 %v4645_v24 }
 0x43a   : > { %18603 = vst [vmem:[#allocation126_spill] sm:$0xff] %v15270_v36 }
 0x44e   : > { %5446 = vrot.lane.b32.xlu0 %v18586_v35, %s12315_s4 }
 0x452   : > { %6467 = vrot.lane.b32.xlu0 %v18587_v7, %s12318_s18 }
 0x456   : > { %6877 = vrot.lane.b32.xlu0 %v18587_v7, %s12321_s22 }
 0x45d   : > { %v15154_v44 = vpop.xlane.xlu0 %4601 }
 0x45e   : > { %v4733_v24 = vrot.slane %v15154_v44, %v15199_v8 }
 0x461   : > { %v15156_v56 = vpop.xlane.xlu0 %4649 }
 0x462   : > { %v15160_v54 = vpop.xlane.xlu1 %4604  ;;  %v4842_v25 = vrot.slane %v15156_v56, %v15199_v8 }
 0x463   : > { %v4738_v18 = vrot.slane %v15160_v54, %v15203_v26 }
 0x465   : > { %v15158_v16 = vpop.xlane.xlu0 %4652 }
 0x466   : > { %v15164_v52 = vpop.xlane.xlu1 %4607  ;;  %v4846_v12 = vrot.slane %v15158_v16, %v15203_v26 }
 0x467   : > { %v4745_v11 = vrot.slane %v15164_v52, %v15208_v30 }
 0x468   : > { %v4847_v52 = vsel %vm4739_vm8, %v4846_v12, %v4842_v25 }
 0x469   : > { %v15162_v59 = vpop.xlane.xlu0 %4655 }
 0x46a   : > { %v15168_v42 = vpop.xlane.xlu1 %4610  ;;  %v4851_v34 = vrot.slane %v15162_v59, %v15208_v30  ;;  %v15279_v59 = vsub.s32 %v4825_v49, %v18589_v63 }
 0x46b   : > { %v4752_v16 = vrot.slane %v15168_v42, %v15215_v27  ;;  %v15287_v42 = vsub.s32 %v4832_v10, %v18589_v63 }
 0x46c   : > { %18604 = vst [vmem:[#allocation127_spill] sm:$0xff] %v15279_v59  ;;  %v4852_v48 = vsel %vm4746_vm9, %v4851_v34, %v4847_v52 }
 0x46d   : > { %v15166_v23 = vpop.xlane.xlu0 %4658  ;;  %18605 = vst [vmem:[#allocation128_spill] sm:$0xff] %v15287_v42 }
 0x46e   : > { %v15172_v17 = vpop.xlane.xlu1 %4613  ;;  %v4856_v29 = vrot.slane %v15166_v23, %v15215_v27 }
 0x46f   : > { %v4759_v23 = vrot.slane %v15172_v17, %v15222_v9 }
 0x471   : > { %v15170_v38 = vpop.xlane.xlu0 %4661 }
 0x472   : > { %v15176_v37 = vpop.xlane.xlu1 %4616  ;;  %v4861_v54 = vrot.slane %v15170_v38, %v15222_v9  ;;  %v4740_v38 = vsel %vm4739_vm8, %v4738_v18, %v4733_v24 }
 0x473   : > { %v4766_v51 = vrot.slane %v15176_v37, %v15227_v43  ;;  %v4747_v17 = vsel %vm4746_vm9, %v4745_v11, %v4740_v38  ;;  %v4696_v38 = vld [vmem:[#allocation7] sm:$0x3] }
 0x474   : > { %v4754_v55 = vsel %vm4753_vm10, %v4752_v16, %v4747_v17 }
 0x475   : > { %v15174_v1 = vpop.xlane.xlu0 %4664  ;;  %v4761_v13 = vsel %vm4760_vm11, %v4759_v23, %v4754_v55 }
 0x476   : > { %v15180_v4 = vpop.xlane.xlu1 %4619  ;;  %v4866_v45 = vrot.slane %v15174_v1, %v15227_v43  ;;  %v4857_v1 = vsel %vm4753_vm10, %v4856_v29, %v4852_v48  ;;  %v4768_v60 = vsel %vm4767_vm12, %v4766_v51, %v4761_v13 }
 0x477   : > { %v4773_v46 = vrot.slane %v15180_v4, %v15230_v6  ;;  %v4862_v5 = vsel %vm4760_vm11, %v4861_v54, %v4857_v1 }
 0x478   : > { %v4867_v32 = vsel %vm4767_vm12, %v4866_v45, %v4862_v5 }
 0x479   : > { %v15178_v58 = vpop.xlane.xlu0 %4667  ;;  %v4775_v47 = vsel %vm4774_vm13, %v4773_v46, %v4768_v60  ;;  %v18607_v60 = vld [vmem:[#allocation50_spill] sm:$0xff] }
 0x47a   : > { %v15184_v2 = vpop.xlane.xlu1 %4622  ;;  %v4871_v20 = vrot.slane %v15178_v58, %v15230_v6 }
 0x47b   : > { %v4780_v37 = vrot.slane %v15184_v2, %v15234_v15 }
 0x47c   : > { %v4872_v40 = vsel %vm4774_vm13, %v4871_v20, %v4867_v32 }
 0x47d   : > { %v15182_v3 = vpop.xlane.xlu0 %4670  ;;  %v4782_v12 = vsel %vm4781_vm14, %v4780_v37, %v4775_v47  ;;  %v18608_v47 = vld [vmem:[#allocation53_spill] sm:$0xff] }
 0x47e   : > { %v4876_v63 = vrot.slane %v15182_v3, %v15234_v15 }
 0x480   : > { %v4877_v49 = vsel %vm4781_vm14, %v4876_v63, %v4872_v40 }
 0x486   : > { %v15186_v62 = vpop.xlane.xlu0 %4673 }
 0x487   : > { %v15188_v0 = vpop.xlane.xlu1 %4625  ;;  %v4881_v58 = vrot.slane %v15186_v62, %v15237_v50 }
 0x488   : > { %v4787_v4 = vrot.slane %v15188_v0, %v15237_v50  ;;  %v18621_v50 = vld [vmem:[#allocation72_spill] sm:$0xff] }
 0x489   : > { %v4882_v10 = vsel %vm17982_vm15, %v4881_v58, %v4877_v49 }
 0x48a   : > { %v4789_v34 = vsel %vm17982_vm15, %v4787_v4, %v4782_v12  ;;  %vm4830_vm15 = vcmask 982912  }
 0x495   : > { %v15192_v39 = vpop.xlane.xlu0 %4676 }
 0x496   : > { %v15195_v41 = vpop.xlane.xlu1 %4628  ;;  %v4886_v3 = vrot.slane %v15192_v39, %v15245_v61 }
 0x497   : > { %v4794_v2 = vrot.slane %v15195_v41, %v15245_v61 }
 0x498   : > { %v4887_v25 = vsel %vm17983_vm7, %v4886_v3, %v4882_v10  ;;  %v2218_v3 = vld [vmem:[%s18610_s10 + $0x38] sm:$0xff]  ;;  %v2219_v10 = vld [vmem:[%s18610_s10 + $0x40] sm:$0xff] }
 0x4a1   : > { %v15212_v19 = vpop.xlane.xlu0 %4679 }
 0x4a2   : > { %v15219_v53 = vpop.xlane.xlu1 %4631  ;;  %v4891_v62 = vrot.slane %v15212_v19, %v15248_v14 }
 0x4a3   : > { %v4801_v0 = vrot.slane %v15219_v53, %v15248_v14 }
 0x4a4   : > { %v4892_v24 = vsel %vm17985_vm6, %v4891_v62, %v4887_v25 }
 0x4ad   : > { %v15239_v22 = vpop.xlane.xlu0 %4682 }
 0x4ae   : > { %v4896_v39 = vrot.slane %v15239_v22, %v15258_v28  ;;  %v4796_v22 = vsel %vm17983_vm7, %v4794_v2, %v4789_v34  ;;  %vm4837_vm7 = vcmask 1048512  }
 0x4af   : > { %v15250_v33 = vpop.xlane.xlu1 %4634  ;;  %v4803_v54 = vsel %vm17985_vm6, %v4801_v0, %v4796_v22  ;;  %vm18027_vm6 = vcmask 1041408  }
 0x4b0   : > { %v4808_v41 = vrot.slane %v15250_v33, %v15258_v28 }
 0x4b2   : > { %v4810_v23 = vsel %vm17984_vm0, %v4808_v41, %v4803_v54 }
 0x4b5   : > { %v4686_v56 = vpop.xlane.xlu0 %4685 }
 0x4b6   : > { %v4638_v44 = vpop.xlane.xlu1 %4637  ;;  %v4901_v18 = vrot.slane %v4686_v56, %v15261_v31  ;;  %v4897_v56 = vsel %vm17984_vm0, %v4896_v39, %v4892_v24  ;;  %vm4697_vm0 = vcmp.gt.f32.partialorder %v4696_v38, 0.5  ;;  %v2213_v38 = vld [vmem:[%s18610_s10 + $0x10] sm:$0xff] }
 0x4b7   : > { %v4815_v11 = vrot.slane %v4638_v44, %v15261_v31 }
 0x4b8   : > { %v4902_v45 = vsel %vm4816_vm1, %v4901_v18, %v4897_v56 }
 0x4b9   : > { %v4817_v48 = vsel %vm4816_vm1, %v4815_v11, %v4810_v23  ;;  %v2228_v23 = vld [vmem:[%s18610_s10 + $0x88] sm:$0xff] }
 0x4bd   : > { %v4689_v57 = vpop.xlane.xlu0 %4688 }
 0x4be   : > { %v4641_v21 = vpop.xlane.xlu1 %4640  ;;  %v4906_v53 = vrot.slane %v4689_v57, %v15270_v36 }
 0x4bf   : > { %v4822_v16 = vrot.slane %v4641_v21, %v15270_v36 }
 0x4c0   : > { %v4907_v51 = vsel %vm4823_vm5, %v4906_v53, %v4902_v45  ;;  %v18611_v45 = vmov 0.0|0.0  }
 0x4c1   : > { %v4692_v19 = vpop.xlane.xlu0 %4691  ;;  %v4824_v1 = vsel %vm4823_vm5, %v4822_v16, %v4817_v48  ;;  %v2211_v16 = vld [vmem:[%s18610_s10] sm:$0xff]  ;;  %v2214_v48 = vld [vmem:[%s18610_s10 + $0x18] sm:$0xff] }
 0x4c2   : > { %v4644_v29 = vpop.xlane.xlu1 %4643  ;;  %v4911_v33 = vrot.slane %v4692_v19, %v15279_v59 }
 0x4c3   : > { %v4829_v52 = vrot.slane %v4644_v29, %v15279_v59 }
 0x4c4   : > { %v4912_v46 = vsel %vm4830_vm15, %v4911_v33, %v4907_v51  ;;  %v2212_v33 = vld [vmem:[%s18610_s10 + $0x8] sm:$0xff]  ;;  %v11244_v51 = vpack.c.bf16 %v2214_v48, %v2213_v38  ;;  %v2223_v38 = vld [vmem:[%s18610_s10 + $0x60] sm:$0xff] }
 0x4c5   : > { %v4695_v44 = vpop.xlane.xlu0 %4694  ;;  %v4831_v55 = vsel %vm4830_vm15, %v4829_v52, %v4824_v1  ;;  %v11241_v54 = vpack.c.bf16 %v2212_v33, %v2211_v16  ;;  %v2227_v52 = vld [vmem:[%s18610_s10 + $0x80] sm:$0xff]  ;;  %v15458_v1 = vrot.slane %v18587_v7, %v18607_v60  ;;  %v2221_v16 = vld [vmem:[%s18610_s10 + $0x50] sm:$0xff]  ;;  %v2222_v33 = vld [vmem:[%s18610_s10 + $0x58] sm:$0xff] }
 0x4c6   : > { %v4647_v20 = vpop.xlane.xlu1 %4646  ;;  %v4916_v17 = vrot.slane %v4695_v44, %v15287_v42  ;;  %v11265_v44 = vpack.c.bf16 %v2228_v23, %v2227_v52  ;;  %v2237_v52 = vld [vmem:[%s18610_s10 + $0xd0] sm:$0xff]  ;;  %v2238_v23 = vld [vmem:[%s18610_s10 + $0xd8] sm:$0xff]  ;;  %v2224_v48 = vld [vmem:[%s18610_s10 + $0x68] sm:$0xff] }
 0x4c7   : > { %v4836_v63 = vrot.slane %v4647_v20, %v15287_v42  ;;  %11242 = vmatpush3.bf16.msra.mxu1 %v11241_v54  ;;  %v2229_v20 = vld [vmem:[%s18610_s10 + $0x90] sm:$0xff]  ;;  %v11256_v54 = vpack.c.bf16 %v2222_v33, %v2221_v16  ;;  %v15554_v16 = vrot.slane %v18586_v35, %v18607_v60 }
 0x4c8   : > { %v4917_v5 = vsel %vm4837_vm7, %v4916_v17, %v4912_v46  ;;  %11243 = vmatprep.subr.bf16.mxu1 %v18611_v45  ;;  %11266 = vmatpush3.bf16.msra.mxu0 %v11265_v44  ;;  %v2230_v17 = vld [vmem:[%s18610_s10 + $0x98] sm:$0xff]  ;;  %v11280_v44 = vpack.c.bf16 %v2238_v23, %v2237_v52  ;;  %v15564_v52 = vrot.slane %v18586_v35, %v18608_v47 }
 0x4c9   : > { %v4838_v37 = vsel %vm4837_vm7, %v4836_v63, %v4831_v55  ;;  %v5447_v2 = vpop.permute.xlu0 %5446  ;;  %11267 = vmatprep.subr.bf16.mxu0 %v18611_v45  ;;  %v11268_v46 = vpack.c.bf16 %v2230_v17, %v2229_v20  ;;  %v2215_v63 = vld [vmem:[%s18610_s10 + $0x20] sm:$0xff]  ;;  %v2216_v55 = vld [vmem:[%s18610_s10 + $0x28] sm:$0xff] }
 0x4ca   : > { %v4918_v58 = vsel %vm18028_vm2, %v4917_v5, %v4838_v37  ;;  %v5448_v62 = vsel %vm2357_vm3, %v5447_v2, 0.0  ;;  %v11247_v5 = vpack.c.bf16 %v2216_v55, %v2215_v63  ;;  %v2233_v2 = vld [vmem:[%s18610_s10 + $0xb0] sm:$0xff]  ;;  %v2239_v17 = vld [vmem:[%s18610_s10 + $0xe0] sm:$0xff] }
 0x4cb   : > { %v15353_v57 = vsel %vm4697_vm0, %v4918_v58, -1e+09  ;;  %v15382_v0 = vrot.slane %v5448_v62, %v18607_v60  ;;  %v15387_v39 = vrot.slane %v5448_v62, %v18608_v47  ;;  %11245 = vmatpush3.bf16.msra.mxu1 %v11244_v51  ;;  %v2231_v58 = vld [vmem:[%s18610_s10 + $0xa0] sm:$0xff]  ;;  %v2234_v62 = vld [vmem:[%s18610_s10 + $0xb8] sm:$0xff]  ;;  %v11259_v51 = vpack.c.bf16 %v2224_v48, %v2223_v38  ;;  %v2225_v55 = vld [vmem:[%s18610_s10 + $0x70] sm:$0xff] }
 0x4cc   : > { %v4922_v13 = vsel %vm18027_vm6, %v15353_v57, -inf  ;;  %11246 = vmatprep.subr.bf16.mxu1 %v18611_v45  ;;  %11269 = vmatpush3.bf16.msra.mxu0 %v11268_v46  ;;  %v2240_v46 = vld [vmem:[%s18610_s10 + $0xe8] sm:$0xff]  ;;  %vm18622_vm0 = vcmp.lt.s32.totalorder %v18621_v50, 128 }
 0x4cd   : > { %4923 = vmax.xlane.f32.xlu1 %v4922_v13  ;;  %11270 = vmatprep.subr.bf16.mxu0 %v18611_v45  ;;  %v15471_v13 = vrot.slane %v18587_v7, %v18608_v47  ;;  %v11283_v63 = vpack.c.bf16 %v2240_v46, %v2239_v17 }
 0x4cf   : > { %11248 = vmatpush3.bf16.msra.mxu1 %v11247_v5  ;;  %v2226_v5 = vld [vmem:[%s18610_s10 + $0x78] sm:$0xff] }
 0x4d0   : > { %11249 = vmatprep.subr.bf16.mxu1 %v18611_v45 }
 0x4de   : > { %5241 = vrot.lane.b32.xlu1 %v18587_v7, %s12315_s4  ;;  %s19139_s4 = sld [smem:[#allocation32_spill]] }
 0x4e2   : > { %5651 = vrot.lane.b32.xlu1 %v18587_v7, %s12316_s3 }
 0x4e6   : > { %5856 = vrot.lane.b32.xlu1 %v18586_v35, %s12316_s3  ;;  %s9748_s3 = scalar_lea.vmem [#allocation17], %s12701_s23 }
 0x4ea   : > { %6672 = vrot.lane.b32.xlu1 %v18586_v35, %s12318_s18  ;;  %s19142_s18 = sld [smem:[#allocation28_spill]] }
 0x4ee   : > { %7082 = vrot.lane.b32.xlu1 %v18586_v35, %s12321_s22  ;;  %s19144_s22 = sld [smem:[#allocation29_spill]] }
 0x55a   : > { %v4924_v32 = vpop.xlane.xlu1 %4923 }
 0x55b   : > { %v4925_v29 = vsub.f32 %v15353_v57, %v4924_v32  ;;  %v2232_v57 = vld [vmem:[%s18610_s10 + $0xa8] sm:$0xff] }
 0x55c   : > { %v11271_v32 = vpack.c.bf16 %v2232_v57, %v2231_v58  ;;  %v11262_v58 = vpack.c.bf16 %v2226_v5, %v2225_v55 }
 0x55d   : > { %v4926_v22 = vmul.f32 1.442695, %v4925_v29  ;;  %v2236_v29 = vld [vmem:[%s18610_s10 + $0xc8] sm:$0xff] }
 0x55e   : > { %v5242_v4 = vpop.permute.xlu1 %5241  ;;  %11272 = vmatpush3.bf16.msra.mxu0 %v11271_v32  ;;  %v2241_v32 = vld [vmem:[%s18610_s10 + $0xf0] sm:$0xff] }
 0x55f   : > { %v5243_v21 = vsel %vm2357_vm3, %v5242_v4, 0.0  ;;  %11828 = vpow2.f32 %v4926_v22  ;;  %v2217_v4 = vld [vmem:[%s18610_s10 + $0x30] sm:$0xff]  ;;  %11273 = vmatprep.subr.bf16.mxu0 %v18611_v45  ;;  %vm18646_vm3 = vmmov 0  }
 0x560   : > { %v15370_v40 = vrot.slane %v5243_v21, %v18607_v60  ;;  %v15377_v49 = vrot.slane %v5243_v21, %v18608_v47  ;;  %v11250_v21 = vpack.c.bf16 %v2218_v3, %v2217_v4  ;;  %v2242_v4 = vld [vmem:[%s18610_s10 + $0xf8] sm:$0xff]  ;;  %v15518_v3 = vpop.permute.xlu0 %6467 }
 0x561   : > { %v6469_v15 = vsel %vm18622_vm0, %v15518_v3, 0.0 }
 0x562   : > { %5253 = vbcast.lane.b32.xlu1 %v15370_v40, 264  ;;  %5249 = vbcast.lane.b32.xlu0 %v15370_v40, 256  ;;  %v5652_v12 = vpop.permute.xlu1 %5651  ;;  %v15642_v6 = vrot.slane %v6469_v15, %v18607_v60  ;;  %v15651_v27 = vrot.slane %v6469_v15, %v18608_v47 }
 0x563   : > { %v5653_v41 = vsel %vm2773_vm4, %v5652_v12, 0.0  ;;  %11251 = vmatpush3.bf16.msra.mxu1 %v11250_v21  ;;  %v11274_v12 = vpack.c.bf16 %v2234_v62, %v2233_v2  ;;  %v11286_v21 = vpack.c.bf16 %v2242_v4, %v2241_v32 }
 0x564   : > { %v15400_v18 = vrot.slane %v5653_v41, %v18607_v60  ;;  %v15407_v19 = vrot.slane %v5653_v41, %v18608_v47  ;;  %11252 = vmatprep.subr.bf16.mxu1 %v18611_v45  ;;  %v2220_v41 = vld [vmem:[%s18610_s10 + $0x48] sm:$0xff]  ;;  %v15528_v62 = vpop.permute.xlu0 %6877 }
 0x565   : > { %11275 = vmatpush3.bf16.msra.mxu0 %v11274_v12 }
 0x566   : > { %5320 = vbcast.lane.b32.xlu1 %v15377_v49, 264  ;;  %5316 = vbcast.lane.b32.xlu0 %v15377_v49, 256  ;;  %v5857_v34 = vpop.permute.xlu1 %5856 }
 0x567   : > { %v5858_v25 = vsel %vm2773_vm4, %v5857_v34, 0.0  ;;  %v11253_v34 = vpack.c.bf16 %v2220_v41, %v2219_v10  ;;  %11276 = vmatprep.subr.bf16.mxu0 %v18611_v45  ;;  %vm18649_vm4 = vcmask 261120  }
 0x568   : > { %v15424_v11 = vrot.slane %v5858_v25, %v18607_v60  ;;  %v15431_v53 = vrot.slane %v5858_v25, %v18608_v47  ;;  %v2235_v25 = vld [vmem:[%s18610_s10 + $0xc0] sm:$0xff] }
 0x569   : > { %v15440_v24 = vpop.eup %11828  ;;  %11254 = vmatpush3.bf16.msra.mxu1 %v11253_v34  ;;  %v11277_v22 = vpack.c.bf16 %v2236_v29, %v2235_v25 }
 0x56a   : > { %5458 = vbcast.lane.b32.xlu1 %v15382_v0, 264  ;;  %5454 = vbcast.lane.b32.xlu0 %v15382_v0, 256  ;;  %v4928_v56 = vsel %vm18027_vm6, %v15440_v24, 0.0  ;;  %v15464_v37 = vpop.permute.xlu1 %6672 }
 0x56b   : > { %11255 = vmatprep.subr.bf16.mxu1 %v18611_v45  ;;  %11278 = vmatpush3.bf16.msra.mxu0 %v11277_v22 }
 0x56c   : > { %11279 = vmatprep.subr.bf16.mxu0 %v18611_v45 }
 0x56d   : > { %11257 = vmatpush3.bf16.msra.mxu1 %v11256_v54 }
 0x56e   : > { %5525 = vbcast.lane.b32.xlu1 %v15387_v39, 264  ;;  %5521 = vbcast.lane.b32.xlu0 %v15387_v39, 256  ;;  %v15481_v7 = vpop.permute.xlu1 %7082 }
 0x56f   : > { %11258 = vmatprep.subr.bf16.mxu1 %v18611_v45  ;;  %11281 = vmatpush3.bf16.msra.mxu0 %v11280_v44 }
 0x570   : > { %11282 = vmatprep.subr.bf16.mxu0 %v18611_v45 }
 0x571   : > { %11260 = vmatpush3.bf16.msra.mxu1 %v11259_v51 }
 0x572   : > { %5324 = vbcast.lane.b32.xlu1 %v15377_v49, 272  ;;  %5257 = vbcast.lane.b32.xlu0 %v15370_v40, 272 }
 0x573   : > { %11261 = vmatprep.subr.bf16.mxu1 %v18611_v45  ;;  %11284 = vmatpush3.bf16.msra.mxu0 %v11283_v63 }
 0x574   : > { %11285 = vmatprep.subr.bf16.mxu0 %v18611_v45 }
 0x575   : > { %11263 = vmatpush3.bf16.msra.mxu1 %v11262_v58 }
 0x576   : > { %5529 = vbcast.lane.b32.xlu1 %v15387_v39, 272  ;;  %5462 = vbcast.lane.b32.xlu0 %v15382_v0, 272 }
 0x577   : > { %11288 = vmatprep.subr.bf16.mxu1 %v18611_v45  ;;  %11287 = vmatpush3.bf16.msra.mxu0 %v11286_v21 }
 0x578   : > { %11294 = vmatprep.subr.bf16.mxu0 %v18611_v45 }
 0x57a   : > { %5328 = vbcast.lane.b32.xlu1 %v15377_v49, 280  ;;  %5261 = vbcast.lane.b32.xlu0 %v15370_v40, 280 }
 0x57e   : > { %5533 = vbcast.lane.b32.xlu1 %v15387_v39, 280  ;;  %5466 = vbcast.lane.b32.xlu0 %v15382_v0, 280 }
 0x582   : > { %5663 = vbcast.lane.b32.xlu1 %v15400_v18, 264  ;;  %5659 = vbcast.lane.b32.xlu0 %v15400_v18, 256 }
 0x586   : > { %5730 = vbcast.lane.b32.xlu1 %v15407_v19, 264  ;;  %5726 = vbcast.lane.b32.xlu0 %v15407_v19, 256 }
 0x58a   : > { %5332 = vbcast.lane.b32.xlu1 %v15377_v49, 288  ;;  %5265 = vbcast.lane.b32.xlu0 %v15370_v40, 288 }
 0x58e   : > { %5537 = vbcast.lane.b32.xlu1 %v15387_v39, 288  ;;  %5470 = vbcast.lane.b32.xlu0 %v15382_v0, 288 }
 0x592   : > { %5734 = vbcast.lane.b32.xlu1 %v15407_v19, 272  ;;  %5667 = vbcast.lane.b32.xlu0 %v15400_v18, 272 }
 0x596   : > { %5336 = vbcast.lane.b32.xlu1 %v15377_v49, 296  ;;  %5269 = vbcast.lane.b32.xlu0 %v15370_v40, 296 }
 0x59a   : > { %5541 = vbcast.lane.b32.xlu1 %v15387_v39, 296  ;;  %5474 = vbcast.lane.b32.xlu0 %v15382_v0, 296 }
 0x59e   : > { %5738 = vbcast.lane.b32.xlu1 %v15407_v19, 280  ;;  %5671 = vbcast.lane.b32.xlu0 %v15400_v18, 280 }
 0x5a2   : > { %5868 = vbcast.lane.b32.xlu1 %v15424_v11, 264  ;;  %5864 = vbcast.lane.b32.xlu0 %v15424_v11, 256 }
 0x5a6   : > { %5935 = vbcast.lane.b32.xlu1 %v15431_v53, 264 }
 0x5aa   : > { %5340 = vbcast.lane.b32.xlu1 %v15377_v49, 304 }
 0x5ae   : > { %5545 = vbcast.lane.b32.xlu1 %v15387_v39, 304 }
 0x5b2   : > { %5742 = vbcast.lane.b32.xlu1 %v15407_v19, 288 }
 0x5b6   : > { %5939 = vbcast.lane.b32.xlu1 %v15431_v53, 272 }
 0x5ba   : > { %5344 = vbcast.lane.b32.xlu1 %v15377_v49, 312 }
 0x5be   : > { %5549 = vbcast.lane.b32.xlu1 %v15387_v39, 312 }
 0x5c1   : > { %4929 = vadd.xlane.f32.xlu0 %v4928_v56 }
 0x5c2   : > { %5746 = vbcast.lane.b32.xlu1 %v15407_v19, 296 }
 0x5c6   : > { %5943 = vbcast.lane.b32.xlu1 %v15431_v53, 280 }
 0x5ca   : > { %6071 = vbcast.lane.b32.xlu1 %v15458_v1, 264 }
 0x5ce   : > { %6138 = vbcast.lane.b32.xlu1 %v15471_v13, 264 }
 0x5d2   : > { %5348 = vbcast.lane.b32.xlu1 %v15377_v49, 320 }
 0x5d4   : > { %v15493_v56 = vpop.permute.xlu1 %5253  ;;  %v15536_v41 = vpop.permute.xlu0 %5249 }
 0x5d6   : > { %5553 = vbcast.lane.b32.xlu1 %v15387_v39, 320 }
 0x5d7   : > { %5931 = vbcast.lane.b32.xlu0 %v15431_v53, 256 }
 0x5d8   : > { %v15503_v20 = vpop.permute.xlu1 %5320  ;;  %v15544_v25 = vpop.permute.xlu0 %5316 }
 0x5da   : > { %5750 = vbcast.lane.b32.xlu1 %v15407_v19, 304 }
 0x5db   : > { %5273 = vbcast.lane.b32.xlu0 %v15370_v40, 304 }
 0x5dc   : > { %v15513_v57 = vpop.permute.xlu1 %5458  ;;  %v15556_v33 = vpop.permute.xlu0 %5454 }
 0x5de   : > { %5947 = vbcast.lane.b32.xlu1 %v15431_v53, 288 }
 0x5df   : > { %5478 = vbcast.lane.b32.xlu0 %v15382_v0, 304 }
 0x5e0   : > { %v15523_v2 = vpop.permute.xlu1 %5525  ;;  %v15568_v23 = vpop.permute.xlu0 %5521 }
 0x5e2   : > { %6142 = vbcast.lane.b32.xlu1 %v15471_v13, 272 }
 0x5e3   : > { %5675 = vbcast.lane.b32.xlu0 %v15400_v18, 288 }
 0x5e4   : > { %v15530_v12 = vpop.permute.xlu1 %5324  ;;  %v15576_v48 = vpop.permute.xlu0 %5257 }
 0x5e6   : > { %5352 = vbcast.lane.b32.xlu1 %v15377_v49, 328 }
 0x5e7   : > { %5872 = vbcast.lane.b32.xlu0 %v15424_v11, 272 }
 0x5e8   : > { %v15534_v10 = vpop.permute.xlu1 %5529  ;;  %v15584_v17 = vpop.permute.xlu0 %5462 }
 0x5ea   : > { %5557 = vbcast.lane.b32.xlu1 %v15387_v39, 328 }
 0x5eb   : > { %5277 = vbcast.lane.b32.xlu0 %v15370_v40, 312 }
 0x5ec   : > { %v15540_v34 = vpop.permute.xlu1 %5328  ;;  %v15592_v55 = vpop.permute.xlu0 %5261 }
 0x5ee   : > { %5754 = vbcast.lane.b32.xlu1 %v15407_v19, 312 }
 0x5ef   : > { %5482 = vbcast.lane.b32.xlu0 %v15382_v0, 312 }
 0x5f0   : > { %v15546_v29 = vpop.permute.xlu1 %5533  ;;  %v15600_v58 = vpop.permute.xlu0 %5466 }
 0x5f2   : > { %5951 = vbcast.lane.b32.xlu1 %v15431_v53, 296 }
 0x5f3   : > { %5679 = vbcast.lane.b32.xlu0 %v15400_v18, 296 }
 0x5f4   : > { %v15550_v22 = vpop.permute.xlu1 %5663  ;;  %v15608_v21 = vpop.permute.xlu0 %5659 }
 0x5f6   : > { %6146 = vbcast.lane.b32.xlu1 %v15471_v13, 280 }
 0x5f7   : > { %5876 = vbcast.lane.b32.xlu0 %v15424_v11, 280 }
 0x5f8   : > { %v15560_v54 = vpop.permute.xlu1 %5730  ;;  %v15616_v42 = vpop.permute.xlu0 %5726 }
 0x5fa   : > { %6274 = vbcast.lane.b32.xlu1 %v15554_v16, 264 }
 0x5fb   : > { %6067 = vbcast.lane.b32.xlu0 %v15458_v1, 256 }
 0x5fc   : > { %v15570_v44 = vpop.permute.xlu1 %5332  ;;  %v15624_v31 = vpop.permute.xlu0 %5265 }
 0x5fe   : > { %6341 = vbcast.lane.b32.xlu1 %v15564_v52, 264 }
 0x5ff   : > { %6134 = vbcast.lane.b32.xlu0 %v15471_v13, 256 }
 0x600   : > { %v15574_v38 = vpop.permute.xlu1 %5537  ;;  %v15632_v14 = vpop.permute.xlu0 %5470 }
 0x602   : > { %5356 = vbcast.lane.b32.xlu1 %v15377_v49, 336 }
 0x603   : > { %5281 = vbcast.lane.b32.xlu0 %v15370_v40, 320 }
 0x604   : > { %v15580_v51 = vpop.permute.xlu1 %5734  ;;  %v15646_v9 = vpop.permute.xlu0 %5667 }
 0x606   : > { %5561 = vbcast.lane.b32.xlu1 %v15387_v39, 336 }
 0x607   : > { %5486 = vbcast.lane.b32.xlu0 %v15382_v0, 320 }
 0x608   : > { %v15586_v46 = vpop.permute.xlu1 %5336  ;;  %v15657_v3 = vpop.permute.xlu0 %5269 }
 0x609   : > { %18612 = vst [vmem:[#allocation129_spill] sm:$0xff] %v15586_v46  ;;  %18625 = vst [vmem:[#allocation135_spill] sm:$0xff] %v15657_v3 }
 0x60a   : > { %5758 = vbcast.lane.b32.xlu1 %v15407_v19, 320 }
 0x60b   : > { %5683 = vbcast.lane.b32.xlu0 %v15400_v18, 304 }
 0x60c   : > { %v15590_v63 = vpop.permute.xlu1 %5541 }
 0x60e   : > { %5955 = vbcast.lane.b32.xlu1 %v15431_v53, 304 }
 0x60f   : > { %5880 = vbcast.lane.b32.xlu0 %v15424_v11, 288 }
 0x610   : > { %v15596_v5 = vpop.permute.xlu1 %5738 }
 0x611   : > { %18613 = vst [vmem:[#allocation130_spill] sm:$0xff] %v15596_v5  ;;  %v5167_v5 = vld [vmem:[%s18634_s5 + $0x18] sm:$0xff] }
 0x612   : > { %6150 = vbcast.lane.b32.xlu1 %v15471_v13, 288 }
 0x613   : > { %6075 = vbcast.lane.b32.xlu0 %v15458_v1, 272 }
 0x614   : > { %v15602_v32 = vpop.permute.xlu1 %5868 }
 0x615   : > { %18614 = vst [vmem:[#allocation61_spill] sm:$0xff] %v15602_v32 }
 0x616   : > { %6345 = vbcast.lane.b32.xlu1 %v15564_v52, 272 }
 0x617   : > { %5285 = vbcast.lane.b32.xlu0 %v15370_v40, 328 }
 0x618   : > { %v15606_v4 = vpop.permute.xlu1 %5935 }
 0x619   : > { %18615 = vst [vmem:[#allocation131_spill] sm:$0xff] %v15606_v4 }
 0x61a   : > { %5360 = vbcast.lane.b32.xlu1 %v15377_v49, 344 }
 0x61b   : > { %5490 = vbcast.lane.b32.xlu0 %v15382_v0, 328 }
 0x61c   : > { %v15612_v35 = vpop.permute.xlu1 %5340 }
 0x61d   : > { %18616 = vst [vmem:[#allocation132_spill] sm:$0xff] %v15612_v35 }
 0x61e   : > { %5565 = vbcast.lane.b32.xlu1 %v15387_v39, 344 }
 0x61f   : > { %5687 = vbcast.lane.b32.xlu0 %v15400_v18, 312 }
 0x620   : > { %v15618_v59 = vpop.permute.xlu1 %5545 }
 0x621   : > { %18617 = vst [vmem:[#allocation133_spill] sm:$0xff] %v15618_v59  ;;  %v5164_v59 = vld [vmem:[%s18634_s5] sm:$0xff] }
 0x622   : > { %5762 = vbcast.lane.b32.xlu1 %v15407_v19, 328 }
 0x623   : > { %5884 = vbcast.lane.b32.xlu0 %v15424_v11, 296 }
 0x624   : > { %v15622_v36 = vpop.permute.xlu1 %5742 }
 0x625   : > { %18618 = vst [vmem:[#allocation137_spill] sm:$0xff] %v15622_v36 }
 0x626   : > { %5959 = vbcast.lane.b32.xlu1 %v15431_v53, 312 }
 0x627   : > { %6079 = vbcast.lane.b32.xlu0 %v15458_v1, 280 }
 0x628   : > { %v15628_v28 = vpop.permute.xlu1 %5939 }
 0x629   : > { %18619 = vst [vmem:[#allocation138_spill] sm:$0xff] %v15628_v28 }
 0x62a   : > { %6154 = vbcast.lane.b32.xlu1 %v15471_v13, 296 }
 0x62b   : > { %6270 = vbcast.lane.b32.xlu0 %v15554_v16, 256 }
 0x62c   : > { %v15634_v61 = vpop.permute.xlu1 %5344 }
 0x62d   : > { %18620 = vst [vmem:[#allocation139_spill] sm:$0xff] %v15634_v61  ;;  %v15665_v61 = vpop.permute.xlu0 %5474 }
 0x62e   : > { %6349 = vbcast.lane.b32.xlu1 %v15564_v52, 280 }
 0x62f   : > { %6337 = vbcast.lane.b32.xlu0 %v15564_v52, 256 }
 0x630   : > { %v15644_v43 = vpop.permute.xlu1 %5549 }
 0x631   : > { %18623 = vst [vmem:[#allocation140_spill] sm:$0xff] %v15644_v43 }
 0x632   : > { %6479 = vbcast.lane.b32.xlu1 %v15642_v6, 264 }
 0x633   : > { %5289 = vbcast.lane.b32.xlu0 %v15370_v40, 336 }
 0x634   : > { %v15653_v30 = vpop.permute.xlu1 %5746 }
 0x635   : > { %18624 = vst [vmem:[#allocation134_spill] sm:$0xff] %v15653_v30  ;;  %v15673_v30 = vpop.permute.xlu0 %5671 }
 0x636   : > { %6546 = vbcast.lane.b32.xlu1 %v15651_v27, 264  ;;  %18629 = vst [vmem:[#allocation248_spill] sm:$0xff] %v15673_v30  ;;  %v5166_v30 = vld [vmem:[%s18634_s5 + $0x10] sm:$0xff] }
 0x637   : > { %5494 = vbcast.lane.b32.xlu0 %v15382_v0, 336 }
 0x638   : > { %v15659_v26 = vpop.permute.xlu1 %5943 }
 0x639   : > { %18626 = vst [vmem:[#allocation141_spill] sm:$0xff] %v15659_v26  ;;  %v15681_v43 = vpop.permute.xlu0 %5864 }
 0x63a   : > { %5364 = vbcast.lane.b32.xlu1 %v15377_v49, 352  ;;  %18632 = vst [vmem:[#allocation146_spill] sm:$0xff] %v15681_v43  ;;  %v11292_v43 = vpack.c.bf16 %v5167_v5, %v5166_v30 }
 0x63b   : > { %5691 = vbcast.lane.b32.xlu0 %v15400_v18, 320 }
 0x63c   : > { %v15663_v8 = vpop.permute.xlu1 %6071 }
 0x63d   : > { %18627 = vst [vmem:[#allocation142_spill] sm:$0xff] %v15663_v8 }
 0x63e   : > { %5569 = vbcast.lane.b32.xlu1 %v15387_v39, 352 }
 0x63f   : > { %5888 = vbcast.lane.b32.xlu0 %v15424_v11, 304 }
 0x640   : > { %v15669_v15 = vpop.permute.xlu1 %6138 }
 0x641   : > { %18628 = vst [vmem:[#allocation143_spill] sm:$0xff] %v15669_v15 }
 0x642   : > { %5766 = vbcast.lane.b32.xlu1 %v15407_v19, 336 }
 0x643   : > { %6083 = vbcast.lane.b32.xlu0 %v15458_v1, 288 }
 0x644   : > { %v15675_v26 = vpop.permute.xlu1 %5348 }
 0x645   : > { %18630 = vst [vmem:[#allocation144_spill] sm:$0xff] %v15675_v26 }
 0x646   : > { %5963 = vbcast.lane.b32.xlu1 %v15431_v53, 320 }
 0x647   : > { %6278 = vbcast.lane.b32.xlu0 %v15554_v16, 272 }
 0x648   : > { %v15679_v8 = vpop.permute.xlu1 %5553 }
 0x649   : > { %18631 = vst [vmem:[#allocation145_spill] sm:$0xff] %v15679_v8 }
 0x64a   : > { %6158 = vbcast.lane.b32.xlu1 %v15471_v13, 304 }
 0x64b   : > { %5293 = vbcast.lane.b32.xlu0 %v15370_v40, 344 }
 0x64c   : > { %v15685_v15 = vpop.permute.xlu1 %5750 }
 0x64d   : > { %18633 = vst [vmem:[#allocation147_spill] sm:$0xff] %v15685_v15 }
 0x64e   : > { %6353 = vbcast.lane.b32.xlu1 %v15564_v52, 288  ;;  %v4930_v28 = vpop.xlane.xlu0 %4929 }
 0x64f   : > { %11830 = vrcp.f32 %v4930_v28  ;;  %5498 = vbcast.lane.b32.xlu0 %v15382_v0, 344 }
 0x650   : > { %v15689_v26 = vpop.permute.xlu1 %5947 }
 0x651   : > { %18635 = vst [vmem:[#allocation148_spill] sm:$0xff] %v15689_v26 }
 0x652   : > { %6550 = vbcast.lane.b32.xlu1 %v15651_v27, 272  ;;  %v15692_v8 = vpop.permute.xlu0 %5931 }
 0x653   : > { %18636 = vst [vmem:[#allocation151_spill] sm:$0xff] %v15692_v8  ;;  %5695 = vbcast.lane.b32.xlu0 %v15400_v18, 328 }
 0x654   : > { %v15695_v36 = vpop.permute.xlu1 %6142 }
 0x655   : > { %18637 = vst [vmem:[#allocation152_spill] sm:$0xff] %v15695_v36  ;;  %v5165_v36 = vld [vmem:[%s18634_s5 + $0x8] sm:$0xff] }
 0x656   : > { %5368 = vbcast.lane.b32.xlu1 %v15377_v49, 360  ;;  %v15698_v15 = vpop.permute.xlu0 %5273  ;;  %v11289_v4 = vpack.c.bf16 %v5165_v36, %v5164_v59 }
 0x657   : > { %18638 = vst [vmem:[#allocation149_spill] sm:$0xff] %v15698_v15  ;;  %5892 = vbcast.lane.b32.xlu0 %v15424_v11, 312  ;;  %v18642_v15 = vld [vmem:[#allocation46_spill] sm:$0xff] }
 0x658   : > { %v15701_v28 = vpop.permute.xlu1 %5352 }
 0x659   : > { %18639 = vst [vmem:[#allocation153_spill] sm:$0xff] %v15701_v28  ;;  %v11831_v35 = vpop.eup %11830 }
 0x65a   : > { %v15704_v26 = vmul.f32 %v11831_v35, %v15440_v24   ;;  %5573 = vbcast.lane.b32.xlu1 %v15387_v39, 360  ;;  %v15707_v8 = vpop.permute.xlu0 %5478  ;;  %v18644_v35 = vld [vmem:[#allocation81_spill] sm:$0xff] }
 0x65b   : > { %18641 = vst [vmem:[#allocation150_spill] sm:$0xff] %v15707_v8  ;;  %6087 = vbcast.lane.b32.xlu0 %v15458_v1, 296 }
 0x65c   : > { %18640 = vst [vmem:[#allocation260_spill] sm:$0xff] %v15704_v26  ;;  %v15714_v3 = vadd.f32 %v18642_v15, %v15704_v26   ;;  %9747 = vst [vmem:[%s9746_s9] sm:$0x3] %v15704_v26  ;;  %v15718_v28 = vpop.permute.xlu1 %5557  ;;  %v4940_v24 = vrot.slane %v15704_v26, %v18644_v35  ;;  %v18645_v26 = vmov 0.0   ;;  %s19168_s9 = sld [smem:[#allocation39_spill]] }
 0x65e   : > { %18643 = vst [vmem:[#allocation261_spill] sm:$0xff] %v15714_v3  ;;  %5770 = vbcast.lane.b32.xlu1 %v15407_v19, 344  ;;  %v15723_v8 = vpop.permute.xlu0 %5675  ;;  %v4948_v32 = vrot.slane %v4940_v24, %v18644_v35  ;;  %v4941_v46 = vcombine.high %v4940_v24, %v4940_v24 }
 0x65f   : > { %6282 = vbcast.lane.b32.xlu0 %v15554_v16, 280 }
 0x660   : > { %v15729_v3 = vpop.permute.xlu1 %5754  ;;  %10719 = vmatmul.mubr.f32.vlgmr.msra.gmra.mrb[8].mxu1 %v4948_v32  ;;  %v4955_v15 = vrot.slane %v4941_v46, %v18644_v35  ;;  %v18648_v46 = vld [vmem:[#allocation253_spill] sm:$0xff] }
 0x661   : > { %11290 = vmatpush3.bf16.msra.mxu1 %v11289_v4  ;;  %10764 = vmatprep.mubr.msk.f32.mxu1 %vm18646_vm3, %v18645_v26  ;;  %v6674_v4 = vsel %vm18622_vm0, %v15464_v37, 0.0 }
 0x662   : > { %5967 = vbcast.lane.b32.xlu1 %v15431_v53, 328  ;;  %10754 = vmatmul.mubr.f32.vlgmr.msra.gmra.mrb[10].mxu0 %v4955_v15  ;;  %v15735_v36 = vpop.permute.xlu0 %5872  ;;  %v15768_v15 = vrot.slane %v6674_v4, %v18607_v60  ;;  %v15777_v50 = vrot.slane %v6674_v4, %v18608_v47 }
 0x663   : > { %6475 = vbcast.lane.b32.xlu0 %v15642_v6, 256  ;;  %11291 = vmatprep.subr.bf16.mxu1 %v18611_v45 }
 0x664   : > { %v15739_v59 = vpop.permute.xlu1 %5951  ;;  %10799 = vmatprep.mubr.msk.f32.mxu0 %vm18646_vm3, %v18645_v26 }
 0x665   : > { %11293 = vmatpush3.bf16.msra.mxu1 %v11292_v43 }
 0x666   : > { %6162 = vbcast.lane.b32.xlu1 %v15471_v13, 312  ;;  %v15744_v30 = vpop.permute.xlu0 %5277  ;;  %11318 = vmatprep.subr.bf16.mxu1 %v18611_v45 }
 0x667   : > { %18647 = vst [vmem:[#allocation154_spill] sm:$0xff] %v15744_v30  ;;  %6542 = vbcast.lane.b32.xlu0 %v15651_v27, 256 }
 0x668   : > { %10765 = vmatmul.mubr.msk.f32.vlgmr.msra.gmra.mrb[10].mxu1 %vm18649_vm4, %v18648_v46  ;;  %v15750_v5 = vpop.permute.xlu1 %6146 }
 0x669   : > { %10834 = vmatprep.mubr.msk.f32.mxu1 %vm18646_vm3, %v18645_v26 }
 0x66a   : > { %6357 = vbcast.lane.b32.xlu1 %v15564_v52, 296  ;;  %v15755_v32 = vpop.permute.xlu0 %5482 }
 0x66b   : > { %18650 = vst [vmem:[#allocation169_spill] sm:$0xff] %v15755_v32  ;;  %5297 = vbcast.lane.b32.xlu0 %v15370_v40, 352 }
 0x66c   : > { %v15758_v43 = vpop.permute.xlu1 %6274 }
 0x66d   : > { %18651 = vst [vmem:[#allocation155_spill] sm:$0xff] %v15758_v43 }
 0x66e   : > { %6554 = vbcast.lane.b32.xlu1 %v15651_v27, 280  ;;  %v15764_v24 = vpop.permute.xlu0 %5679 }
 0x66f   : > { %18652 = vst [vmem:[#allocation156_spill] sm:$0xff] %v15764_v24  ;;  %5502 = vbcast.lane.b32.xlu0 %v15382_v0, 352 }
 0x670   : > { %v15770_v46 = vpop.permute.xlu1 %6341 }
 0x671   : > { %18653 = vst [vmem:[#allocation157_spill] sm:$0xff] %v15770_v46 }
 0x672   : > { %6684 = vbcast.lane.b32.xlu1 %v15768_v15, 264  ;;  %v15773_v26 = vpop.permute.xlu0 %5876 }
 0x673   : > { %18654 = vst [vmem:[#allocation158_spill] sm:$0xff] %v15773_v26  ;;  %5699 = vbcast.lane.b32.xlu0 %v15400_v18, 336 }
 0x674   : > { %v15779_v37 = vpop.permute.xlu1 %5356 }
 0x675   : > { %18655 = vst [vmem:[#allocation159_spill] sm:$0xff] %v15779_v37 }
 0x676   : > { %6751 = vbcast.lane.b32.xlu1 %v15777_v50, 264  ;;  %v15782_v45 = vpop.permute.xlu0 %6067 }
 0x677   : > { %18656 = vst [vmem:[#allocation160_spill] sm:$0xff] %v15782_v45  ;;  %5896 = vbcast.lane.b32.xlu0 %v15424_v11, 320 }
 0x678   : > { %v15785_v30 = vpop.permute.xlu1 %5561 }
 0x679   : > { %18657 = vst [vmem:[#allocation161_spill] sm:$0xff] %v15785_v30 }
 0x67a   : > { %5372 = vbcast.lane.b32.xlu1 %v15377_v49, 368  ;;  %v15788_v46 = vpop.permute.xlu0 %6134 }
 0x67b   : > { %18658 = vst [vmem:[#allocation162_spill] sm:$0xff] %v15788_v46  ;;  %6091 = vbcast.lane.b32.xlu0 %v15458_v1, 304 }
 0x67c   : > { %v15791_v26 = vpop.permute.xlu1 %5758 }
 0x67d   : > { %18659 = vst [vmem:[#allocation163_spill] sm:$0xff] %v15791_v26 }
 0x67e   : > { %5577 = vbcast.lane.b32.xlu1 %v15387_v39, 368  ;;  %v15794_v4 = vpop.permute.xlu0 %5281 }
 0x67f   : > { %18660 = vst [vmem:[#allocation164_spill] sm:$0xff] %v15794_v4  ;;  %6286 = vbcast.lane.b32.xlu0 %v15554_v16, 288 }
 0x680   : > { %v15797_v37 = vpop.permute.xlu1 %5955 }
 0x681   : > { %18661 = vst [vmem:[#allocation165_spill] sm:$0xff] %v15797_v37 }
 0x682   : > { %5774 = vbcast.lane.b32.xlu1 %v15407_v19, 352  ;;  %v15800_v45 = vpop.permute.xlu0 %5486 }
 0x683   : > { %18662 = vst [vmem:[#allocation166_spill] sm:$0xff] %v15800_v45  ;;  %6483 = vbcast.lane.b32.xlu0 %v15642_v6, 272 }
 0x684   : > { %v15803_v30 = vpop.permute.xlu1 %6150 }
 0x685   : > { %18663 = vst [vmem:[#allocation170_spill] sm:$0xff] %v15803_v30 }
 0x686   : > { %5971 = vbcast.lane.b32.xlu1 %v15431_v53, 336  ;;  %v15806_v46 = vpop.permute.xlu0 %5683 }
 0x687   : > { %18664 = vst [vmem:[#allocation171_spill] sm:$0xff] %v15806_v46  ;;  %5301 = vbcast.lane.b32.xlu0 %v15370_v40, 360 }
 0x688   : > { %v15809_v26 = vpop.permute.xlu1 %6345 }
 0x689   : > { %18665 = vst [vmem:[#allocation167_spill] sm:$0xff] %v15809_v26 }
 0x68a   : > { %6166 = vbcast.lane.b32.xlu1 %v15471_v13, 320  ;;  %v15812_v4 = vpop.permute.xlu0 %5880 }
 0x68b   : > { %18666 = vst [vmem:[#allocation168_spill] sm:$0xff] %v15812_v4  ;;  %5506 = vbcast.lane.b32.xlu0 %v15382_v0, 360 }
 0x68c   : > { %v15815_v37 = vpop.permute.xlu1 %5360 }
 0x68d   : > { %18667 = vst [vmem:[#allocation172_spill] sm:$0xff] %v15815_v37 }
 0x68e   : > { %6361 = vbcast.lane.b32.xlu1 %v15564_v52, 304  ;;  %v15818_v45 = vpop.permute.xlu0 %6075 }
 0x68f   : > { %18668 = vst [vmem:[#allocation173_spill] sm:$0xff] %v15818_v45  ;;  %5703 = vbcast.lane.b32.xlu0 %v15400_v18, 344 }
 0x690   : > { %v15821_v30 = vpop.permute.xlu1 %5565 }
 0x691   : > { %18669 = vst [vmem:[#allocation174_spill] sm:$0xff] %v15821_v30 }
 0x692   : > { %6558 = vbcast.lane.b32.xlu1 %v15651_v27, 288  ;;  %v15824_v46 = vpop.permute.xlu0 %5285 }
 0x693   : > { %18670 = vst [vmem:[#allocation175_spill] sm:$0xff] %v15824_v46  ;;  %5900 = vbcast.lane.b32.xlu0 %v15424_v11, 328 }
 0x694   : > { %v15827_v26 = vpop.permute.xlu1 %5762 }
 0x695   : > { %18671 = vst [vmem:[#allocation178_spill] sm:$0xff] %v15827_v26 }
 0x696   : > { %6755 = vbcast.lane.b32.xlu1 %v15777_v50, 272  ;;  %v15830_v4 = vpop.permute.xlu0 %5490 }
 0x697   : > { %18672 = vst [vmem:[#allocation179_spill] sm:$0xff] %v15830_v4  ;;  %6095 = vbcast.lane.b32.xlu0 %v15458_v1, 312 }
 0x698   : > { %v15833_v37 = vpop.permute.xlu1 %5959 }
 0x699   : > { %18673 = vst [vmem:[#allocation201_spill] sm:$0xff] %v15833_v37 }
 0x69a   : > { %5376 = vbcast.lane.b32.xlu1 %v15377_v49, 376  ;;  %v15836_v45 = vpop.permute.xlu0 %5687 }
 0x69b   : > { %18674 = vst [vmem:[#allocation180_spill] sm:$0xff] %v15836_v45  ;;  %6290 = vbcast.lane.b32.xlu0 %v15554_v16, 296 }
 0x69c   : > { %v15839_v30 = vpop.permute.xlu1 %6154 }
 0x69e   : > { %5581 = vbcast.lane.b32.xlu1 %v15387_v39, 376  ;;  %v15842_v46 = vpop.permute.xlu0 %5884 }
 0x69f   : > { %18675 = vst [vmem:[#allocation181_spill] sm:$0xff] %v15842_v46  ;;  %6487 = vbcast.lane.b32.xlu0 %v15642_v6, 280 }
 0x6a0   : > { %v15845_v26 = vpop.permute.xlu1 %6349 }
 0x6a1   : > { %18676 = vst [vmem:[#allocation233_spill] sm:$0xff] %v15845_v26 }
 0x6a2   : > { %5778 = vbcast.lane.b32.xlu1 %v15407_v19, 360  ;;  %v15848_v4 = vpop.permute.xlu0 %6079 }
 0x6a3   : > { %18677 = vst [vmem:[#allocation176_spill] sm:$0xff] %v15848_v4  ;;  %6680 = vbcast.lane.b32.xlu0 %v15768_v15, 256 }
 0x6a4   : > { %v15851_v49 = vpop.permute.xlu1 %6479 }
 0x6a5   : > { %18678 = vst [vmem:[#allocation182_spill] sm:$0xff] %v15851_v49 }
 0x6a6   : > { %5975 = vbcast.lane.b32.xlu1 %v15431_v53, 344  ;;  %v15854_v45 = vpop.permute.xlu0 %6270 }
 0x6a7   : > { %18679 = vst [vmem:[#allocation183_spill] sm:$0xff] %v15854_v45  ;;  %6747 = vbcast.lane.b32.xlu0 %v15777_v50, 256 }
 0x6a8   : > { %v15857_v39 = vpop.permute.xlu1 %6546 }
 0x6a9   : > { %18680 = vst [vmem:[#allocation200_spill] sm:$0xff] %v15857_v39 }
 0x6aa   : > { %6170 = vbcast.lane.b32.xlu1 %v15471_v13, 328  ;;  %v15860_v46 = vpop.permute.xlu0 %6337 }
 0x6ab   : > { %18681 = vst [vmem:[#allocation194_spill] sm:$0xff] %v15860_v46  ;;  %5305 = vbcast.lane.b32.xlu0 %v15370_v40, 368  ;;  %v18687_v46 = vld [vmem:[#allocation136_spill] sm:$0xff] }
 0x6ac   : > { %v15863_v26 = vpop.permute.xlu1 %5364  ;;  %vm18688_vm4 = vcmp.lt.s32.totalorder %v18687_v46, 128 }
 0x6ad   : > { %18682 = vst [vmem:[#allocation195_spill] sm:$0xff] %v15863_v26  ;;  %v6879_v26 = vsel %vm18688_vm4, %v15528_v62, 0.0  ;;  %vm18720_vm0 = vmmov %vm18688_vm4  ;;  %vm18957_vm4 = vcmask 130048  }
 0x6ae   : > { %6365 = vbcast.lane.b32.xlu1 %v15564_v52, 312  ;;  %v15866_v37 = vpop.permute.xlu0 %5289 }
 0x6af   : > { %18683 = vst [vmem:[#allocation196_spill] sm:$0xff] %v15866_v37  ;;  %5510 = vbcast.lane.b32.xlu0 %v15382_v0, 368  ;;  %v15885_v37 = vrot.slane %v6879_v26, %v18607_v60 }
 0x6b0   : > { %v15869_v4 = vpop.permute.xlu1 %5569 }
 0x6b1   : > { %18684 = vst [vmem:[#allocation197_spill] sm:$0xff] %v15869_v4 }
 0x6b2   : > { %6562 = vbcast.lane.b32.xlu1 %v15651_v27, 296  ;;  %v15872_v45 = vpop.permute.xlu0 %5494 }
 0x6b3   : > { %18685 = vst [vmem:[#allocation232_spill] sm:$0xff] %v15872_v45  ;;  %5707 = vbcast.lane.b32.xlu0 %v15400_v18, 352 }
 0x6b4   : > { %v15875_v39 = vpop.permute.xlu1 %5766 }
 0x6b5   : > { %18686 = vst [vmem:[#allocation198_spill] sm:$0xff] %v15875_v39  ;;  %v15894_v39 = vrot.slane %v6879_v26, %v18608_v47 }
 0x6b6   : > { %6759 = vbcast.lane.b32.xlu1 %v15777_v50, 280  ;;  %v15881_v49 = vpop.permute.xlu0 %5691 }
 0x6b7   : > { %18689 = vst [vmem:[#allocation203_spill] sm:$0xff] %v15881_v49  ;;  %5904 = vbcast.lane.b32.xlu0 %v15424_v11, 336 }
 0x6b8   : > { %v15887_v4 = vpop.permute.xlu1 %5963 }
 0x6b9   : > { %18690 = vst [vmem:[#allocation199_spill] sm:$0xff] %v15887_v4 }
 0x6ba   : > { %6889 = vbcast.lane.b32.xlu1 %v15885_v37, 264  ;;  %v15890_v45 = vpop.permute.xlu0 %5888 }
 0x6bb   : > { %18691 = vst [vmem:[#allocation202_spill] sm:$0xff] %v15890_v45  ;;  %6099 = vbcast.lane.b32.xlu0 %v15458_v1, 320 }
 0x6bc   : > { %v15896_v62 = vpop.permute.xlu1 %6158 }
 0x6bd   : > { %18692 = vst [vmem:[#allocation235_spill] sm:$0xff] %v15896_v62 }
 0x6be   : > { %6956 = vbcast.lane.b32.xlu1 %v15894_v39, 264  ;;  %v15899_v49 = vpop.permute.xlu0 %6083 }
 0x6bf   : > { %18693 = vst [vmem:[#allocation217_spill] sm:$0xff] %v15899_v49  ;;  %6294 = vbcast.lane.b32.xlu0 %v15554_v16, 304 }
 0x6c0   : > { %v15902_v24 = vpop.permute.xlu1 %6353 }
 0x6c1   : > { %18694 = vst [vmem:[#allocation234_spill] sm:$0xff] %v15902_v24 }
 0x6c2   : > { %5782 = vbcast.lane.b32.xlu1 %v15407_v19, 368  ;;  %v15905_v4 = vpop.permute.xlu0 %6278 }
 0x6c3   : > { %18695 = vst [vmem:[#allocation212_spill] sm:$0xff] %v15905_v4  ;;  %6491 = vbcast.lane.b32.xlu0 %v15642_v6, 288 }
 0x6c4   : > { %v15908_v45 = vpop.permute.xlu1 %6550 }
 0x6c5   : > { %18696 = vst [vmem:[#allocation213_spill] sm:$0xff] %v15908_v45 }
 0x6c6   : > { %5979 = vbcast.lane.b32.xlu1 %v15431_v53, 352  ;;  %v15911_v26 = vpop.permute.xlu0 %5293 }
 0x6c7   : > { %18697 = vst [vmem:[#allocation214_spill] sm:$0xff] %v15911_v26  ;;  %6688 = vbcast.lane.b32.xlu0 %v15768_v15, 272 }
 0x6c8   : > { %v15914_v62 = vpop.permute.xlu1 %5368 }
 0x6c9   : > { %18698 = vst [vmem:[#allocation252_spill] sm:$0xff] %v15914_v62 }
 0x6ca   : > { %6174 = vbcast.lane.b32.xlu1 %v15471_v13, 336  ;;  %v15917_v49 = vpop.permute.xlu0 %5498 }
 0x6cb   : > { %18699 = vst [vmem:[#allocation215_spill] sm:$0xff] %v15917_v49  ;;  %5309 = vbcast.lane.b32.xlu0 %v15370_v40, 376 }
 0x6cc   : > { %v15920_v24 = vpop.permute.xlu1 %5573 }
 0x6cd   : > { %18700 = vst [vmem:[#allocation216_spill] sm:$0xff] %v15920_v24 }
 0x6ce   : > { %6369 = vbcast.lane.b32.xlu1 %v15564_v52, 320  ;;  %v15923_v4 = vpop.permute.xlu0 %5695 }
 0x6cf   : > { %18701 = vst [vmem:[#allocation231_spill] sm:$0xff] %v15923_v4  ;;  %5514 = vbcast.lane.b32.xlu0 %v15382_v0, 376 }
 0x6d0   : > { %v15926_v45 = vpop.permute.xlu1 %5770 }
 0x6d1   : > { %18702 = vst [vmem:[#allocation251_spill] sm:$0xff] %v15926_v45 }
 0x6d2   : > { %6566 = vbcast.lane.b32.xlu1 %v15651_v27, 304  ;;  %v15929_v26 = vpop.permute.xlu0 %5892 }
 0x6d3   : > { %18703 = vst [vmem:[#allocation66_spill] sm:$0xff] %v15929_v26  ;;  %5711 = vbcast.lane.b32.xlu0 %v15400_v18, 360 }
 0x6d4   : > { %v15932_v62 = vpop.permute.xlu1 %5967 }
 0x6d5   : > { %18704 = vst [vmem:[#allocation226_spill] sm:$0xff] %v15932_v62 }
 0x6d6   : > { %6763 = vbcast.lane.b32.xlu1 %v15777_v50, 288  ;;  %v15935_v40 = vpop.permute.xlu0 %6087 }
 0x6d7   : > { %18705 = vst [vmem:[#allocation230_spill] sm:$0xff] %v15935_v40  ;;  %5908 = vbcast.lane.b32.xlu0 %v15424_v11, 344 }
 0x6d8   : > { %v15938_v49 = vpop.permute.xlu1 %6162 }
 0x6d9   : > { %18706 = vst [vmem:[#allocation228_spill] sm:$0xff] %v15938_v49 }
 0x6da   : > { %6960 = vbcast.lane.b32.xlu1 %v15894_v39, 272  ;;  %v15941_v0 = vpop.permute.xlu0 %6282 }
 0x6db   : > { %18707 = vst [vmem:[#allocation250_spill] sm:$0xff] %v15941_v0  ;;  %6103 = vbcast.lane.b32.xlu0 %v15458_v1, 328 }
 0x6dc   : > { %v15944_v45 = vpop.permute.xlu1 %6357 }
 0x6de   : > { %5786 = vbcast.lane.b32.xlu1 %v15407_v19, 376  ;;  %v15947_v26 = vpop.permute.xlu0 %6475 }
 0x6df   : > { %18708 = vst [vmem:[#allocation59_spill] sm:$0xff] %v15947_v26  ;;  %6298 = vbcast.lane.b32.xlu0 %v15554_v16, 312 }
 0x6e0   : > { %v15950_v62 = vpop.permute.xlu1 %6554 }
 0x6e1   : > { %18709 = vst [vmem:[#allocation227_spill] sm:$0xff] %v15950_v62 }
 0x6e2   : > { %5983 = vbcast.lane.b32.xlu1 %v15431_v53, 360  ;;  %v15953_v40 = vpop.permute.xlu0 %6542 }
 0x6e3   : > { %18710 = vst [vmem:[#allocation229_spill] sm:$0xff] %v15953_v40  ;;  %6495 = vbcast.lane.b32.xlu0 %v15642_v6, 296 }
 0x6e4   : > { %v15956_v4 = vpop.permute.xlu1 %6684 }
 0x6e5   : > { %18711 = vst [vmem:[#allocation249_spill] sm:$0xff] %v15956_v4 }
 0x6e6   : > { %6178 = vbcast.lane.b32.xlu1 %v15471_v13, 344  ;;  %v15959_v24 = vpop.permute.xlu0 %5297 }
 0x6e7   : > { %18712 = vst [vmem:[#allocation246_spill] sm:$0xff] %v15959_v24  ;;  %6692 = vbcast.lane.b32.xlu0 %v15768_v15, 280 }
 0x6e8   : > { %v15962_v19 = vpop.permute.xlu1 %6751 }
 0x6e9   : > { %18713 = vst [vmem:[#allocation63_spill] sm:$0xff] %v15962_v19 }
 0x6ea   : > { %6373 = vbcast.lane.b32.xlu1 %v15564_v52, 328  ;;  %v15965_v26 = vpop.permute.xlu0 %5502 }
 0x6eb   : > { %18714 = vst [vmem:[#allocation62_spill] sm:$0xff] %v15965_v26  ;;  %6885 = vbcast.lane.b32.xlu0 %v15885_v37, 256  ;;  %v7084_v26 = vsel %vm18720_vm0, %v15481_v7, 0.0  ;;  %vm18967_vm0 = vmmov %vm18957_vm4 }
 0x6ec   : > { %v15968_v62 = vpop.permute.xlu1 %5372  ;;  %v15999_v46 = vrot.slane %v7084_v26, %v18608_v47  ;;  %vm19108_vm6 = vmmov %vm18967_vm0 }
 0x6ed   : > { %18715 = vst [vmem:[#allocation245_spill] sm:$0xff] %v15968_v62 }
 0x6ee   : > { %6570 = vbcast.lane.b32.xlu1 %v15651_v27, 312  ;;  %v15971_v40 = vpop.permute.xlu0 %5699 }
 0x6ef   : > { %18716 = vst [vmem:[#allocation60_spill] sm:$0xff] %v15971_v40  ;;  %6952 = vbcast.lane.b32.xlu0 %v15894_v39, 256  ;;  %v15990_v40 = vrot.slane %v7084_v26, %v18607_v60 }
 0x6f0   : > { %v15974_v49 = vpop.permute.xlu1 %5577 }
 0x6f1   : > { %18717 = vst [vmem:[#allocation58_spill] sm:$0xff] %v15974_v49 }
 0x6f2   : > { %6767 = vbcast.lane.b32.xlu1 %v15777_v50, 296  ;;  %v15977_v24 = vpop.permute.xlu0 %5896 }
 0x6f3   : > { %18718 = vst [vmem:[#allocation83_spill] sm:$0xff] %v15977_v24  ;;  %5715 = vbcast.lane.b32.xlu0 %v15400_v18, 368 }
 0x6f4   : > { %v15980_v19 = vpop.permute.xlu1 %5774 }
 0x6f5   : > { %18719 = vst [vmem:[#allocation177_spill] sm:$0xff] %v15980_v19 }
 0x6f6   : > { %6964 = vbcast.lane.b32.xlu1 %v15894_v39, 280  ;;  %v15986_v62 = vpop.permute.xlu0 %6091 }
 0x6f7   : > { %18721 = vst [vmem:[#allocation210_spill] sm:$0xff] %v15986_v62  ;;  %5912 = vbcast.lane.b32.xlu0 %v15424_v11, 352 }
 0x6f8   : > { %v15992_v49 = vpop.permute.xlu1 %5971 }
 0x6f9   : > { %18722 = vst [vmem:[#allocation211_spill] sm:$0xff] %v15992_v49 }
 0x6fa   : > { %7094 = vbcast.lane.b32.xlu1 %v15990_v40, 264  ;;  %v15995_v24 = vpop.permute.xlu0 %6286 }
 0x6fb   : > { %18723 = vst [vmem:[#allocation78_spill] sm:$0xff] %v15995_v24  ;;  %6107 = vbcast.lane.b32.xlu0 %v15458_v1, 336 }
 0x6fc   : > { %v16001_v7 = vpop.permute.xlu1 %6166 }
 0x6fd   : > { %18724 = vst [vmem:[#allocation184_spill] sm:$0xff] %v16001_v7 }
 0x6fe   : > { %7161 = vbcast.lane.b32.xlu1 %v15999_v46, 264  ;;  %v16004_v62 = vpop.permute.xlu0 %6483 }
 0x6ff   : > { %18725 = vst [vmem:[#allocation185_spill] sm:$0xff] %v16004_v62  ;;  %6302 = vbcast.lane.b32.xlu0 %v15554_v16, 320 }
 0x700   : > { %v16007_v19 = vpop.permute.xlu1 %6361 }
 0x701   : > { %18726 = vst [vmem:[#allocation186_spill] sm:$0xff] %v16007_v19 }
 0x702   : > { %5987 = vbcast.lane.b32.xlu1 %v15431_v53, 368  ;;  %v16010_v49 = vpop.permute.xlu0 %5301 }
 0x703   : > { %18727 = vst [vmem:[#allocation243_spill] sm:$0xff] %v16010_v49  ;;  %6499 = vbcast.lane.b32.xlu0 %v15642_v6, 304 }
 0x704   : > { %v16013_v24 = vpop.permute.xlu1 %6558 }
 0x705   : > { %18728 = vst [vmem:[#allocation244_spill] sm:$0xff] %v16013_v24 }
 0x706   : > { %6182 = vbcast.lane.b32.xlu1 %v15471_v13, 352  ;;  %v16016_v26 = vpop.permute.xlu0 %5506 }
 0x707   : > { %18729 = vst [vmem:[#allocation187_spill] sm:$0xff] %v16016_v26  ;;  %6696 = vbcast.lane.b32.xlu0 %v15768_v15, 288 }
 0x708   : > { %v16019_v7 = vpop.permute.xlu1 %6755 }
 0x709   : > { %18730 = vst [vmem:[#allocation188_spill] sm:$0xff] %v16019_v7 }
 0x70a   : > { %6377 = vbcast.lane.b32.xlu1 %v15564_v52, 336  ;;  %v16022_v0 = vpop.permute.xlu0 %5703 }
 0x70b   : > { %18731 = vst [vmem:[#allocation189_spill] sm:$0xff] %v16022_v0  ;;  %6893 = vbcast.lane.b32.xlu0 %v15885_v37, 272 }
 0x70c   : > { %v16025_v19 = vpop.permute.xlu1 %5376 }
 0x70d   : > { %18732 = vst [vmem:[#allocation69_spill] sm:$0xff] %v16025_v19 }
 0x70e   : > { %6574 = vbcast.lane.b32.xlu1 %v15651_v27, 320  ;;  %v16028_v49 = vpop.permute.xlu0 %5900 }
 0x70f   : > { %18733 = vst [vmem:[#allocation75_spill] sm:$0xff] %v16028_v49  ;;  %5719 = vbcast.lane.b32.xlu0 %v15400_v18, 376 }
 0x710   : > { %v16031_v24 = vpop.permute.xlu1 %5581 }
 0x711   : > { %18734 = vst [vmem:[#allocation190_spill] sm:$0xff] %v16031_v24 }
 0x712   : > { %6771 = vbcast.lane.b32.xlu1 %v15777_v50, 304  ;;  %v16034_v26 = vpop.permute.xlu0 %6095 }
 0x713   : > { %18735 = vst [vmem:[#allocation106_spill] sm:$0xff] %v16034_v26  ;;  %5916 = vbcast.lane.b32.xlu0 %v15424_v11, 360 }
 0x714   : > { %v16037_v7 = vpop.permute.xlu1 %5778 }
 0x715   : > { %18736 = vst [vmem:[#allocation86_spill] sm:$0xff] %v16037_v7 }
 0x716   : > { %6968 = vbcast.lane.b32.xlu1 %v15894_v39, 288  ;;  %v16040_v0 = vpop.permute.xlu0 %6290 }
 0x717   : > { %18737 = vst [vmem:[#allocation191_spill] sm:$0xff] %v16040_v0  ;;  %6111 = vbcast.lane.b32.xlu0 %v15458_v1, 344 }
 0x718   : > { %v16043_v19 = vpop.permute.xlu1 %5975 }
 0x719   : > { %18738 = vst [vmem:[#allocation89_spill] sm:$0xff] %v16043_v19 }
 0x71a   : > { %7165 = vbcast.lane.b32.xlu1 %v15999_v46, 272  ;;  %v16046_v18 = vpop.permute.xlu0 %6487 }
 0x71b   : > { %18739 = vst [vmem:[#allocation90_spill] sm:$0xff] %v16046_v18  ;;  %6306 = vbcast.lane.b32.xlu0 %v15554_v16, 328 }
 0x71c   : > { %v16049_v49 = vpop.permute.xlu1 %6170 }
 0x71d   : > { %18740 = vst [vmem:[#allocation192_spill] sm:$0xff] %v16049_v49 }
 0x71e   : > { %5991 = vbcast.lane.b32.xlu1 %v15431_v53, 376  ;;  %v16052_v26 = vpop.permute.xlu0 %6680 }
 0x71f   : > { %18741 = vst [vmem:[#allocation193_spill] sm:$0xff] %v16052_v26  ;;  %6503 = vbcast.lane.b32.xlu0 %v15642_v6, 312 }
 0x720   : > { %v16055_v7 = vpop.permute.xlu1 %6365 }
 0x721   : > { %18742 = vst [vmem:[#allocation91_spill] sm:$0xff] %v16055_v7 }
 0x722   : > { %6186 = vbcast.lane.b32.xlu1 %v15471_v13, 360  ;;  %v16058_v24 = vpop.permute.xlu0 %6747 }
 0x723   : > { %18743 = vst [vmem:[#allocation204_spill] sm:$0xff] %v16058_v24  ;;  %6700 = vbcast.lane.b32.xlu0 %v15768_v15, 296 }
 0x724   : > { %v16061_v19 = vpop.permute.xlu1 %6562 }
 0x726   : > { %6381 = vbcast.lane.b32.xlu1 %v15564_v52, 344  ;;  %v16064_v0 = vpop.permute.xlu0 %5305 }
 0x727   : > { %18744 = vst [vmem:[#allocation205_spill] sm:$0xff] %v16064_v0  ;;  %6897 = vbcast.lane.b32.xlu0 %v15885_v37, 280 }
 0x728   : > { %v16067_v53 = vpop.permute.xlu1 %6759 }
 0x729   : > { %18745 = vst [vmem:[#allocation206_spill] sm:$0xff] %v16067_v53 }
 0x72a   : > { %6578 = vbcast.lane.b32.xlu1 %v15651_v27, 328  ;;  %v16070_v49 = vpop.permute.xlu0 %5510 }
 0x72b   : > { %18746 = vst [vmem:[#allocation92_spill] sm:$0xff] %v16070_v49  ;;  %7090 = vbcast.lane.b32.xlu0 %v15990_v40, 256 }
 0x72c   : > { %v16073_v26 = vpop.permute.xlu1 %6889 }
 0x72d   : > { %18747 = vst [vmem:[#allocation93_spill] sm:$0xff] %v16073_v26 }
 0x72e   : > { %6775 = vbcast.lane.b32.xlu1 %v15777_v50, 312  ;;  %v16076_v24 = vpop.permute.xlu0 %5707 }
 0x72f   : > { %18748 = vst [vmem:[#allocation94_spill] sm:$0xff] %v16076_v24  ;;  %7157 = vbcast.lane.b32.xlu0 %v15999_v46, 256 }
 0x730   : > { %v16079_v7 = vpop.permute.xlu1 %6956 }
 0x731   : > { %18749 = vst [vmem:[#allocation95_spill] sm:$0xff] %v16079_v7 }
 0x732   : > { %6972 = vbcast.lane.b32.xlu1 %v15894_v39, 296  ;;  %v16082_v0 = vpop.permute.xlu0 %5904 }
 0x733   : > { %18750 = vst [vmem:[#allocation96_spill] sm:$0xff] %v16082_v0  ;;  %v16084_v53 = vpop.f32.mrb[8].mxu1   ;;  %5920 = vbcast.lane.b32.xlu0 %v15424_v11, 368 }
 0x734   : > { %18751 = vst [vmem:[#allocation262_spill] sm:$0xff] %v16084_v53  ;;  %v16087_v49 = vpop.permute.xlu1 %5782  ;;  %v10720_v18 = vpop.f32.mrb[9].mxu1 }
 0x735   : > { %18752 = vst [vmem:[#allocation207_spill] sm:$0xff] %v16087_v49  ;;  %v16089_v26 = vpop.f32.mrb[10].mxu0  }
 0x736   : > { %18753 = vst [vmem:[#allocation263_spill] sm:$0xff] %v16089_v26  ;;  %v8090_v62 = vrot.slane %v16089_v26, 7  ;;  %7169 = vbcast.lane.b32.xlu1 %v15999_v46, 280  ;;  %v16093_v24 = vpop.permute.xlu0 %6099  ;;  %v10755_v7 = vpop.f32.mrb[11].mxu0 }
 0x737   : > { %18754 = vst [vmem:[#allocation208_spill] sm:$0xff] %v16093_v24  ;;  %6115 = vbcast.lane.b32.xlu0 %v15458_v1, 352 }
 0x738   : > { %v16098_v0 = vsel %vm18028_vm2, %v8090_v62, %v16084_v53  ;;  %v16100_v4 = vpop.permute.xlu1 %5979  ;;  %vm19109_vm2 = vmmov %vm18967_vm0 }
 0x739   : > { %18755 = vst [vmem:[#allocation224_spill] sm:$0xff] %v16098_v0  ;;  %18756 = vst [vmem:[#allocation225_spill] sm:$0xff] %v16100_v4 }
 0x73a   : > { %6190 = vbcast.lane.b32.xlu1 %v15471_v13, 368  ;;  %v16103_v18 = vpop.permute.xlu0 %6294 }
 0x73b   : > { %18757 = vst [vmem:[#allocation209_spill] sm:$0xff] %v16103_v18  ;;  %v16105_v49 = vpop.f32.mrb[10].mxu1  ;;  %6310 = vbcast.lane.b32.xlu0 %v15554_v16, 336 }
 0x73c   : > { %v10766_v26 = vpop.f32.mrb[11].mxu1  ;;  %v16108_v43 = vpop.permute.xlu1 %6174 }
 0x73d   : > { %18758 = vst [vmem:[#allocation218_spill] sm:$0xff] %v16108_v43 }
 0x73e   : > { %6385 = vbcast.lane.b32.xlu1 %v15564_v52, 352  ;;  %v16111_v7 = vpop.permute.xlu0 %6491 }
 0x73f   : > { %18759 = vst [vmem:[#allocation55_spill] sm:$0xff] %v16111_v7  ;;  %6507 = vbcast.lane.b32.xlu0 %v15642_v6, 320 }
 0x740   : > { %v16114_v62 = vpop.permute.xlu1 %6369 }
 0x741   : > { %18760 = vst [vmem:[#allocation56_spill] sm:$0xff] %v16114_v62 }
 0x742   : > { %6582 = vbcast.lane.b32.xlu1 %v15651_v27, 336  ;;  %v16117_v53 = vpop.permute.xlu0 %6688 }
 0x743   : > { %18761 = vst [vmem:[#allocation219_spill] sm:$0xff] %v16117_v53  ;;  %6704 = vbcast.lane.b32.xlu0 %v15768_v15, 304 }
 0x744   : > { %v16120_v0 = vpop.permute.xlu1 %6566 }
 0x745   : > { %18762 = vst [vmem:[#allocation220_spill] sm:$0xff] %v16120_v0 }
 0x746   : > { %6779 = vbcast.lane.b32.xlu1 %v15777_v50, 320  ;;  %v16123_v26 = vpop.permute.xlu0 %5309 }
 0x747   : > { %18763 = vst [vmem:[#allocation221_spill] sm:$0xff] %v16123_v26  ;;  %6901 = vbcast.lane.b32.xlu0 %v15885_v37, 288 }
 0x748   : > { %v16126_v4 = vpop.permute.xlu1 %6763 }
 0x749   : > { %18764 = vst [vmem:[#allocation222_spill] sm:$0xff] %v16126_v4 }
 0x74a   : > { %6976 = vbcast.lane.b32.xlu1 %v15894_v39, 304  ;;  %v16129_v24 = vpop.permute.xlu0 %5514 }
 0x74b   : > { %18765 = vst [vmem:[#allocation87_spill] sm:$0xff] %v16129_v24  ;;  %7098 = vbcast.lane.b32.xlu0 %v15990_v40, 272 }
 0x74c   : > { %v16132_v43 = vpop.permute.xlu1 %6960 }
 0x74d   : > { %18766 = vst [vmem:[#allocation88_spill] sm:$0xff] %v16132_v43 }
 0x74e   : > { %7173 = vbcast.lane.b32.xlu1 %v15999_v46, 288  ;;  %v16135_v18 = vpop.permute.xlu0 %5711 }
 0x74f   : > { %18767 = vst [vmem:[#allocation99_spill] sm:$0xff] %v16135_v18  ;;  %5924 = vbcast.lane.b32.xlu0 %v15424_v11, 376 }
 0x750   : > { %v16138_v62 = vpop.permute.xlu1 %5786 }
 0x751   : > { %18768 = vst [vmem:[#allocation100_spill] sm:$0xff] %v16138_v62 }
 0x752   : > { %6194 = vbcast.lane.b32.xlu1 %v15471_v13, 376  ;;  %v16141_v26 = vpop.permute.xlu0 %5908 }
 0x753   : > { %18769 = vst [vmem:[#allocation101_spill] sm:$0xff] %v16141_v26  ;;  %6119 = vbcast.lane.b32.xlu0 %v15458_v1, 360 }
 0x754   : > { %v16144_v4 = vpop.permute.xlu1 %5983 }
 0x755   : > { %18770 = vst [vmem:[#allocation223_spill] sm:$0xff] %v16144_v4 }
 0x756   : > { %6389 = vbcast.lane.b32.xlu1 %v15564_v52, 360  ;;  %v16147_v24 = vpop.permute.xlu0 %6103 }
 0x757   : > { %18771 = vst [vmem:[#allocation236_spill] sm:$0xff] %v16147_v24  ;;  %6314 = vbcast.lane.b32.xlu0 %v15554_v16, 344 }
 0x758   : > { %v16150_v43 = vpop.permute.xlu1 %6178 }
 0x759   : > { %18772 = vst [vmem:[#allocation237_spill] sm:$0xff] %v16150_v43 }
 0x75a   : > { %6586 = vbcast.lane.b32.xlu1 %v15651_v27, 344  ;;  %v16153_v11 = vpop.permute.xlu0 %6298 }
 0x75b   : > { %18773 = vst [vmem:[#allocation238_spill] sm:$0xff] %v16153_v11  ;;  %6511 = vbcast.lane.b32.xlu0 %v15642_v6, 328 }
 0x75c   : > { %v16156_v13 = vpop.permute.xlu1 %6373 }
 0x75d   : > { %18774 = vst [vmem:[#allocation239_spill] sm:$0xff] %v16156_v13 }
 0x75e   : > { %6783 = vbcast.lane.b32.xlu1 %v15777_v50, 328  ;;  %v16159_v18 = vpop.permute.xlu0 %6495 }
 0x75f   : > { %18775 = vst [vmem:[#allocation240_spill] sm:$0xff] %v16159_v18  ;;  %6708 = vbcast.lane.b32.xlu0 %v15768_v15, 312 }
 0x760   : > { %v16162_v26 = vpop.permute.xlu1 %6570 }
 0x761   : > { %18776 = vst [vmem:[#allocation241_spill] sm:$0xff] %v16162_v26 }
 0x762   : > { %6980 = vbcast.lane.b32.xlu1 %v15894_v39, 312  ;;  %v16165_v24 = vpop.permute.xlu0 %6692 }
 0x763   : > { %18777 = vst [vmem:[#allocation74_spill] sm:$0xff] %v16165_v24  ;;  %6905 = vbcast.lane.b32.xlu0 %v15885_v37, 296  ;;  %v16288_v24 = vld [vmem:[%s18809_s29 + $0x8] sm:$0x1f] }
 0x764   : > { %v16168_v62 = vpop.permute.xlu1 %6767 }
 0x765   : > { %18778 = vst [vmem:[#allocation68_spill] sm:$0xff] %v16168_v62 }
 0x766   : > { %7177 = vbcast.lane.b32.xlu1 %v15999_v46, 296  ;;  %v16171_v11 = vpop.permute.xlu0 %6885 }
 0x767   : > { %18779 = vst [vmem:[#allocation98_spill] sm:$0xff] %v16171_v11  ;;  %7102 = vbcast.lane.b32.xlu0 %v15990_v40, 280 }
 0x768   : > { %v16174_v4 = vpop.permute.xlu1 %6964 }
 0x769   : > { %18780 = vst [vmem:[#allocation105_spill] sm:$0xff] %v16174_v4 }
 0x76a   : > { %6393 = vbcast.lane.b32.xlu1 %v15564_v52, 368  ;;  %v16177_v43 = vpop.permute.xlu0 %6952 }
 0x76b   : > { %18781 = vst [vmem:[#allocation254_spill] sm:$0xff] %v16177_v43  ;;  %6123 = vbcast.lane.b32.xlu0 %v15458_v1, 368 }
 0x76c   : > { %v16180_v13 = vpop.permute.xlu1 %7094 }
 0x76d   : > { %18782 = vst [vmem:[#allocation255_spill] sm:$0xff] %v16180_v13 }
 0x76e   : > { %6590 = vbcast.lane.b32.xlu1 %v15651_v27, 352  ;;  %v16183_v18 = vpop.permute.xlu0 %5715 }
 0x76f   : > { %18783 = vst [vmem:[#allocation256_spill] sm:$0xff] %v16183_v18  ;;  %6318 = vbcast.lane.b32.xlu0 %v15554_v16, 352 }
 0x770   : > { %v16186_v26 = vpop.permute.xlu1 %7161 }
 0x771   : > { %18784 = vst [vmem:[#allocation257_spill] sm:$0xff] %v16186_v26 }
 0x772   : > { %6787 = vbcast.lane.b32.xlu1 %v15777_v50, 336  ;;  %v16189_v11 = vpop.permute.xlu0 %5912 }
 0x773   : > { %18785 = vst [vmem:[#allocation258_spill] sm:$0xff] %v16189_v11  ;;  %6515 = vbcast.lane.b32.xlu0 %v15642_v6, 336 }
 0x774   : > { %v16192_v4 = vpop.permute.xlu1 %5987 }
 0x775   : > { %18786 = vst [vmem:[#allocation259_spill] sm:$0xff] %v16192_v4 }
 0x776   : > { %6984 = vbcast.lane.b32.xlu1 %v15894_v39, 320  ;;  %v16195_v43 = vpop.permute.xlu0 %6107 }
 0x777   : > { %18787 = vst [vmem:[#allocation67_spill] sm:$0xff] %v16195_v43  ;;  %6712 = vbcast.lane.b32.xlu0 %v15768_v15, 320 }
 0x778   : > { %v16198_v7 = vpop.permute.xlu1 %6182 }
 0x779   : > { %18788 = vst [vmem:[#allocation70_spill] sm:$0xff] %v16198_v7 }
 0x77a   : > { %7181 = vbcast.lane.b32.xlu1 %v15999_v46, 304  ;;  %v16201_v18 = vpop.permute.xlu0 %6302 }
 0x77b   : > { %18789 = vst [vmem:[#allocation84_spill] sm:$0xff] %v16201_v18  ;;  %6909 = vbcast.lane.b32.xlu0 %v15885_v37, 304 }
 0x77c   : > { %v16204_v26 = vpop.permute.xlu1 %6377 }
 0x77d   : > { %18790 = vst [vmem:[#allocation85_spill] sm:$0xff] %v16204_v26 }
 0x77e   : > { %6397 = vbcast.lane.b32.xlu1 %v15564_v52, 376  ;;  %v16207_v11 = vpop.permute.xlu0 %6499 }
 0x77f   : > { %18791 = vst [vmem:[#allocation71_spill] sm:$0xff] %v16207_v11  ;;  %7106 = vbcast.lane.b32.xlu0 %v15990_v40, 288 }
 0x780   : > { %v16210_v4 = vpop.permute.xlu1 %6574 }
 0x781   : > { %18792 = vst [vmem:[#allocation73_spill] sm:$0xff] %v16210_v4 }
 0x782   : > { %6594 = vbcast.lane.b32.xlu1 %v15651_v27, 360  ;;  %v16213_v43 = vpop.permute.xlu0 %6696 }
 0x783   : > { %18793 = vst [vmem:[#allocation79_spill] sm:$0xff] %v16213_v43  ;;  %6127 = vbcast.lane.b32.xlu0 %v15458_v1, 376 }
 0x784   : > { %v16216_v7 = vpop.permute.xlu1 %6771 }
 0x785   : > { %18794 = vst [vmem:[#allocation80_spill] sm:$0xff] %v16216_v7 }
 0x786   : > { %6791 = vbcast.lane.b32.xlu1 %v15777_v50, 344  ;;  %v16219_v18 = vpop.permute.xlu0 %6893 }
 0x787   : > { %18795 = vst [vmem:[#allocation77_spill] sm:$0xff] %v16219_v18  ;;  %6322 = vbcast.lane.b32.xlu0 %v15554_v16, 360  ;;  %v16318_v18 = vrot.slane %v16288_v24, %v18608_v47 }
 0x788   : > { %v16222_v52 = vpop.permute.xlu1 %6968 }
 0x789   : > { %18796 = vst [vmem:[#allocation82_spill] sm:$0xff] %v16222_v52 }
 0x78a   : > { %6988 = vbcast.lane.b32.xlu1 %v15894_v39, 328  ;;  %v16225_v26 = vpop.permute.xlu0 %5719 }
 0x78b   : > { %18797 = vst [vmem:[#allocation102_spill] sm:$0xff] %v16225_v26  ;;  %6519 = vbcast.lane.b32.xlu0 %v15642_v6, 344 }
 0x78c   : > { %v16228_v11 = vpop.permute.xlu1 %7165 }
 0x78d   : > { %18798 = vst [vmem:[#allocation103_spill] sm:$0xff] %v16228_v11 }
 0x78e   : > { %7185 = vbcast.lane.b32.xlu1 %v15999_v46, 312  ;;  %v16231_v1 = vpop.permute.xlu0 %5916 }
 0x78f   : > { %18799 = vst [vmem:[#allocation104_spill] sm:$0xff] %v16231_v1  ;;  %6716 = vbcast.lane.b32.xlu0 %v15768_v15, 328 }
 0x790   : > { %v16234_v4 = vpop.permute.xlu1 %5991 }
 0x791   : > { %18800 = vst [vmem:[#allocation97_spill] sm:$0xff] %v16234_v4 }
 0x792   : > { %6598 = vbcast.lane.b32.xlu1 %v15651_v27, 368  ;;  %v16237_v43 = vpop.permute.xlu0 %6111 }
 0x793   : > { %18801 = vst [vmem:[#allocation107_spill] sm:$0xff] %v16237_v43  ;;  %6913 = vbcast.lane.b32.xlu0 %v15885_v37, 312 }
 0x794   : > { %v16240_v52 = vpop.permute.xlu1 %6186 }
 0x795   : > { %18802 = vst [vmem:[#allocation108_spill] sm:$0xff] %v16240_v52 }
 0x796   : > { %6795 = vbcast.lane.b32.xlu1 %v15777_v50, 352  ;;  %v16243_v26 = vpop.permute.xlu0 %6306 }
 0x797   : > { %18803 = vst [vmem:[#allocation110_spill] sm:$0xff] %v16243_v26  ;;  %7110 = vbcast.lane.b32.xlu0 %v15990_v40, 296 }
 0x798   : > { %v16246_v11 = vpop.permute.xlu1 %6381 }
 0x799   : > { %18804 = vst [vmem:[#allocation109_spill] sm:$0xff] %v16246_v11 }
 0x79a   : > { %6992 = vbcast.lane.b32.xlu1 %v15894_v39, 336  ;;  %v16249_v1 = vpop.permute.xlu0 %6503 }
 0x79b   : > { %18805 = vst [vmem:[#allocation113_spill] sm:$0xff] %v16249_v1  ;;  %6326 = vbcast.lane.b32.xlu0 %v15554_v16, 368 }
 0x79c   : > { %v16252_v4 = vpop.permute.xlu1 %6578 }
 0x79d   : > { %18806 = vst [vmem:[#allocation111_spill] sm:$0xff] %v16252_v4 }
 0x79e   : > { %7189 = vbcast.lane.b32.xlu1 %v15999_v46, 320  ;;  %v16255_v43 = vpop.permute.xlu0 %6700 }
 0x79f   : > { %18807 = vst [vmem:[#allocation45_spill] sm:$0xff] %v16255_v43  ;;  %6523 = vbcast.lane.b32.xlu0 %v15642_v6, 352 }
 0x7a0   : > { %v16258_v52 = vpop.permute.xlu1 %6775 }
 0x7a1   : > { %18808 = vst [vmem:[#allocation51_spill] sm:$0xff] %v16258_v52 }
 0x7a2   : > { %6602 = vbcast.lane.b32.xlu1 %v15651_v27, 376  ;;  %v16261_v26 = vpop.permute.xlu0 %6897 }
 0x7a3   : > { %18810 = vst [vmem:[#allocation49_spill] sm:$0xff] %v16261_v26  ;;  %6720 = vbcast.lane.b32.xlu0 %v15768_v15, 336 }
 0x7a4   : > { %v16264_v1 = vpop.permute.xlu1 %6972 }
 0x7a5   : > { %18811 = vst [vmem:[#allocation52_spill] sm:$0xff] %v16264_v1 }
 0x7a6   : > { %6799 = vbcast.lane.b32.xlu1 %v15777_v50, 360  ;;  %v16267_v11 = vpop.permute.xlu0 %7090 }
 0x7a7   : > { %18812 = vst [vmem:[#allocation53_spill] sm:$0xff] %v16267_v11  ;;  %6917 = vbcast.lane.b32.xlu0 %v15885_v37, 320  ;;  %v16285_v11 = vld [vmem:[%s18809_s29] sm:$0x1f] }
 0x7a8   : > { %v16270_v4 = vpop.permute.xlu1 %7169 }
 0x7a9   : > { %18813 = vst [vmem:[#allocation54_spill] sm:$0xff] %v16270_v4 }
 0x7aa   : > { %6996 = vbcast.lane.b32.xlu1 %v15894_v39, 344  ;;  %v16273_v43 = vpop.permute.xlu0 %7157 }
 0x7ab   : > { %18814 = vst [vmem:[#allocation72_spill] sm:$0xff] %v16273_v43  ;;  %7114 = vbcast.lane.b32.xlu0 %v15990_v40, 304  ;;  %v16296_v43 = vrot.slane %v16285_v11, %v18607_v60 }
 0x7ac   : > { %v16276_v27 = vpop.permute.xlu1 %6190 }
 0x7ad   : > { %18815 = vst [vmem:[#allocation46_spill] sm:$0xff] %v16276_v27  ;;  %v16309_v27 = vrot.slane %v16285_v11, %v18608_v47  ;;  %v5382_v13 = vmul.f32 %v16296_v43, %v15536_v41  ;;  %v5399_v53 = vmul.f32 %v16296_v43, %v15503_v20  ;;  %v5398_v47 = vmul.f32 %v16296_v43, %v15544_v25 }
 0x7ae   : > { %7193 = vbcast.lane.b32.xlu1 %v15999_v46, 328  ;;  %v16279_v52 = vpop.permute.xlu0 %5920 }
 0x7af   : > { %18816 = vst [vmem:[#allocation136_spill] sm:$0xff] %v16279_v52  ;;  %6330 = vbcast.lane.b32.xlu0 %v15554_v16, 376  ;;  %v16300_v52 = vrot.slane %v16288_v24, %v18607_v60  ;;  %v5793_v25 = vmul.f32 %v16309_v27, %v15550_v22  ;;  %v5401_v22 = vmul.f32 %v16296_v43, %v15540_v34 }
 0x7b0   : > { %v16282_v26 = vpop.permute.xlu1 %6385 }
 0x7b1   : > { %18817 = vst [vmem:[#allocation264_spill] sm:$0xff] %v16282_v26  ;;  %v5588_v7 = vmul.f32 %v16300_v52, %v15513_v57  ;;  %v5604_v57 = vmul.f32 %v16300_v52, %v15523_v2  ;;  %v5603_v60 = vmul.f32 %v16300_v52, %v15568_v23  ;;  %v5589_v41 = vmul.f32 %v16300_v52, %v15584_v17 }
 0x7b2   : > { %6803 = vbcast.lane.b32.xlu1 %v15777_v50, 368  ;;  %v16291_v4 = vpop.permute.xlu0 %6115  ;;  %v5590_v2 = vmul.f32 %v16300_v52, %v15600_v58  ;;  %v5792_v23 = vmul.f32 %v16309_v27, %v15608_v21  ;;  %v5400_v17 = vmul.f32 %v16296_v43, %v15530_v12  ;;  %v5385_v21 = vmul.f32 %v16296_v43, %v15592_v55 }
 0x7b3   : > { %18818 = vst [vmem:[#allocation265_spill] sm:$0xff] %v16291_v4  ;;  %6527 = vbcast.lane.b32.xlu0 %v15642_v6, 360  ;;  %v5383_v4 = vmul.f32 %v16296_v43, %v15493_v56  ;;  %v5587_v56 = vmul.f32 %v16300_v52, %v15556_v33  ;;  %v5606_v33 = vmul.f32 %v16300_v52, %v15546_v29 }
 0x7b4   : > { %v16302_v16 = vpop.permute.xlu1 %6582  ;;  %v5809_v29 = vmul.f32 %v16309_v27, %v15560_v54  ;;  %v5636_v32 = vadd.f32 %v5604_v57, %v5399_v53  ;;  %v5402_v55 = vmul.f32 %v16296_v43, %v15570_v44  ;;  %v5810_v57 = vmul.f32 %v16309_v27, %v15580_v51 }
 0x7b5   : > { %18819 = vst [vmem:[#allocation266_spill] sm:$0xff] %v16302_v16  ;;  %v18821_v16 = vld [vmem:[#allocation247_spill] sm:$0xff]  ;;  %v5619_v58 = vadd.f32 %v5587_v56, %v5382_v13  ;;  %v5622_v13 = vadd.f32 %v5590_v2, %v5385_v21  ;;  %v5386_v44 = vmul.f32 %v16296_v43, %v15624_v31 }
 0x7b6   : > { %7000 = vbcast.lane.b32.xlu1 %v15894_v39, 352  ;;  %v16305_v26 = vpop.permute.xlu0 %6310  ;;  %v16322_v0 = vrot.slane %v16285_v11, %v18821_v16  ;;  %v16368_v12 = vrot.slane %v16288_v24, %v18821_v16  ;;  %v5841_v34 = vadd.f32 %v5809_v29, %v5636_v32  ;;  %v5794_v32 = vmul.f32 %v16309_v27, %v15646_v9  ;;  %v18830_v9 = vld [vmem:[#allocation129_spill] sm:$0xff]  ;;  %v18832_v31 = vld [vmem:[#allocation146_spill] sm:$0xff]  ;;  %v18834_v29 = vld [vmem:[#allocation135_spill] sm:$0xff] }
 0x7b7   : > { %18820 = vst [vmem:[#allocation267_spill] sm:$0xff] %v16305_v26  ;;  %6724 = vbcast.lane.b32.xlu0 %v15768_v15, 344  ;;  %v5824_v56 = vadd.f32 %v5792_v23, %v5619_v58  ;;  %v5387_v58 = vmul.f32 %v16296_v43, %v18834_v29 }
 0x7b8   : > { %v16324_v26 = vpop.permute.xlu1 %6779 }
 0x7b9   : > { %18822 = vst [vmem:[#allocation247_spill] sm:$0xff] %v16324_v26  ;;  %v5605_v26 = vmul.f32 %v16300_v52, %v15534_v10  ;;  %v5620_v10 = vadd.f32 %v5588_v7, %v5383_v4  ;;  %v5635_v4 = vadd.f32 %v5603_v60, %v5398_v47  ;;  %v5808_v60 = vmul.f32 %v16309_v27, %v15616_v42  ;;  %v18827_v47 = vld [vmem:[#allocation130_spill] sm:$0xff] }
 0x7ba   : > { %7197 = vbcast.lane.b32.xlu1 %v15999_v46, 336  ;;  %v16343_v20 = vpop.permute.xlu0 %6507  ;;  %v5608_v42 = vmul.f32 %v16300_v52, %v15590_v63  ;;  %v18831_v63 = vld [vmem:[#allocation61_spill] sm:$0xff] }
 0x7bb   : > { %18823 = vst [vmem:[#allocation268_spill] sm:$0xff] %v16343_v20  ;;  %6921 = vbcast.lane.b32.xlu0 %v15885_v37, 328  ;;  %v5384_v20 = vmul.f32 %v16296_v43, %v15576_v48  ;;  %v5637_v7 = vadd.f32 %v5605_v26, %v5400_v17  ;;  %v5638_v48 = vadd.f32 %v5606_v33, %v5401_v22  ;;  %v18835_v22 = vld [vmem:[#allocation133_spill] sm:$0xff] }
 0x7bc   : > { %v16360_v1 = vpop.permute.xlu1 %6976  ;;  %v5825_v53 = vadd.f32 %v5793_v25, %v5620_v10  ;;  %v5607_v26 = vmul.f32 %v16300_v52, %v15574_v38  ;;  %v5592_v38 = vmul.f32 %v16300_v52, %v15665_v61  ;;  %v5403_v33 = vmul.f32 %v16296_v43, %v18830_v9  ;;  %v18833_v61 = vld [vmem:[#allocation131_spill] sm:$0xff] }
 0x7bd   : > { %18824 = vst [vmem:[#allocation269_spill] sm:$0xff] %v16360_v1  ;;  %v5621_v62 = vadd.f32 %v5589_v41, %v5384_v20  ;;  %v5811_v41 = vmul.f32 %v16309_v27, %v18827_v47  ;;  %v18828_v20 = vld [vmem:[#allocation248_spill] sm:$0xff]  ;;  %v5998_v2 = vmul.f32 %v16318_v18, %v18831_v63  ;;  %v5997_v25 = vmul.f32 %v16318_v18, %v18832_v31 }
 0x7be   : > { %6807 = vbcast.lane.b32.xlu1 %v15777_v50, 376  ;;  %v16371_v54 = vpop.permute.xlu0 %6704  ;;  %v5591_v50 = vmul.f32 %v16300_v52, %v15632_v14  ;;  %v5795_v14 = vmul.f32 %v16309_v27, %v18828_v20  ;;  %v6014_v23 = vmul.f32 %v16318_v18, %v18833_v61  ;;  %v5840_v10 = vadd.f32 %v5808_v60, %v5635_v4  ;;  %v18837_v4 = vld [vmem:[#allocation132_spill] sm:$0xff] }
 0x7bf   : > { %18825 = vst [vmem:[#allocation270_spill] sm:$0xff] %v16371_v54  ;;  %7118 = vbcast.lane.b32.xlu0 %v15990_v40, 312  ;;  %v5639_v17 = vadd.f32 %v5607_v26, %v5402_v55  ;;  %v5609_v21 = vmul.f32 %v16300_v52, %v18835_v22  ;;  %v5842_v9 = vadd.f32 %v5810_v57, %v5637_v7  ;;  %v18840_v7 = vld [vmem:[#allocation137_spill] sm:$0xff] }
 0x7c0   : > { %v16380_v16 = vpop.permute.xlu1 %7173  ;;  %v16416_v20 = vadd.f32 %v5591_v50, %v5386_v44  ;;  %v16418_v63 = vadd.f32 %v5794_v32, %v5621_v62  ;;  %v5640_v31 = vadd.f32 %v5608_v42, %v5403_v33  ;;  %v5843_v61 = vadd.f32 %v5811_v41, %v5638_v48  ;;  %v18841_v48 = vld [vmem:[#allocation138_spill] sm:$0xff]  ;;  %v18842_v32 = vld [vmem:[#allocation140_spill] sm:$0xff]  ;;  %v18843_v44 = vld [vmem:[#allocation65_spill] sm:$0xff] }
 0x7c1   : > { %18826 = vst [vmem:[#allocation271_spill] sm:$0xff] %v16380_v16  ;;  %v16420_v16 = vadd.f32 %v5592_v38, %v5387_v58  ;;  %v16422_v54 = vadd.f32 %v5795_v14, %v5622_v13  ;;  %v5404_v60 = vmul.f32 %v16296_v43, %v18837_v4  ;;  %v6030_v26 = vadd.f32 %v5998_v2, %v5825_v53  ;;  %v18846_v41 = vld [vmem:[#allocation134_spill] sm:$0xff]  ;;  %v18847_v33 = vld [vmem:[#allocation141_spill] sm:$0xff]  ;;  %v18849_v58 = vld [vmem:[#allocation143_spill] sm:$0xff] }
 0x7c2   : > { %7004 = vbcast.lane.b32.xlu1 %v15894_v39, 360  ;;  %v16399_v51 = vpop.permute.xlu0 %6901  ;;  %v16429_v29 = vadd.f32 %v5997_v25, %v5824_v56  ;;  %v6046_v50 = vadd.f32 %v6014_v23, %v5841_v34  ;;  %v5812_v62 = vmul.f32 %v16309_v27, %v18840_v7  ;;  %v6015_v13 = vmul.f32 %v16318_v18, %v18841_v48  ;;  %v18845_v56 = vld [vmem:[#allocation139_spill] sm:$0xff]  ;;  %v18848_v25 = vld [vmem:[#allocation142_spill] sm:$0xff]  ;;  %v18852_v48 = vld [vmem:[#allocation148_spill] sm:$0xff] }
 0x7c3   : > { %18829 = vst [vmem:[#allocation130_spill] sm:$0xff] %v16399_v51  ;;  %6531 = vbcast.lane.b32.xlu0 %v15642_v6, 368  ;;  %v5641_v57 = vadd.f32 %v5609_v21, %v5404_v60  ;;  %v5610_v42 = vmul.f32 %v16300_v52, %v18842_v32  ;;  %v16440_v38 = vrot.slane %v16285_v11, %v18843_v44  ;;  %v18850_v21 = vld [vmem:[#allocation145_spill] sm:$0xff]  ;;  %v18851_v60 = vld [vmem:[#allocation147_spill] sm:$0xff]  ;;  %v18856_v51 = vld [vmem:[#allocation152_spill] sm:$0xff] }
 0x7c4   : > { %v16414_v47 = vpop.permute.xlu1 %6194  ;;  %18839 = vst [vmem:[#allocation61_spill] sm:$0xff] %v16429_v29  ;;  %v5405_v34 = vmul.f32 %v16296_v43, %v18845_v56  ;;  %v5813_v14 = vmul.f32 %v16309_v27, %v18846_v41  ;;  %v6016_v2 = vmul.f32 %v16318_v18, %v18847_v33  ;;  %v6201_v23 = vmul.f32 %v16322_v0, %v18848_v25  ;;  %v18854_v33 = vld [vmem:[#allocation151_spill] sm:$0xff] }
 0x7c5   : > { %18836 = vst [vmem:[#allocation248_spill] sm:$0xff] %v16414_v47  ;;  %v6217_v22 = vmul.f32 %v16322_v0, %v18849_v58  ;;  %v5611_v4 = vmul.f32 %v16300_v52, %v18850_v21  ;;  %v5814_v7 = vmul.f32 %v16309_v27, %v18851_v60  ;;  %v6017_v32 = vmul.f32 %v16318_v18, %v18852_v48  ;;  %v18855_v48 = vld [vmem:[#allocation144_spill] sm:$0xff] }
 0x7c6   : > { %7201 = vbcast.lane.b32.xlu1 %v15999_v46, 344  ;;  %v16427_v55 = vpop.permute.xlu0 %7098  ;;  %v5844_v41 = vadd.f32 %v5812_v62, %v5639_v17  ;;  %v6013_v25 = vmul.f32 %v16318_v18, %v18854_v33  ;;  %v6018_v58 = vmul.f32 %v16318_v18, %v15739_v59  ;;  %v16469_v21 = vrot.slane %v16105_v49, %v18644_v35 }
 0x7c7   : > { %18838 = vst [vmem:[#allocation129_spill] sm:$0xff] %v16427_v55  ;;  %6728 = vbcast.lane.b32.xlu0 %v15768_v15, 352  ;;  %v6047_v60 = vadd.f32 %v6015_v13, %v5842_v9  ;;  %v5642_v47 = vadd.f32 %v5610_v42, %v5405_v34  ;;  %v6218_v17 = vmul.f32 %v16322_v0, %v18856_v51  ;;  %v18861_v34 = vld [vmem:[#allocation149_spill] sm:$0xff] }
 0x7c8   : > { %v16442_v53 = vpop.permute.xlu1 %6389  ;;  %v5845_v33 = vadd.f32 %v5813_v14, %v5640_v31  ;;  %v6233_v1 = vadd.f32 %v6201_v23, %v6030_v26  ;;  %v6221_v59 = vmul.f32 %v16322_v0, %v15839_v30  ;;  %v6249_v49 = vadd.f32 %v6217_v22, %v6046_v50  ;;  %v18859_v26 = vld [vmem:[#allocation150_spill] sm:$0xff]  ;;  %v18862_v22 = vld [vmem:[#allocation153_spill] sm:$0xff] }
 0x7c9   : > { %18844 = vst [vmem:[#allocation146_spill] sm:$0xff] %v16442_v53  ;;  %v5406_v53 = vmul.f32 %v16296_v43, %v18855_v48  ;;  %v16482_v29 = vadd.f32 %v5814_v7, %v5641_v57  ;;  %v16484_v9 = vadd.f32 %v6017_v32, %v5844_v41  ;;  %v16489_v51 = vadd.f32 %v6013_v25, %v5840_v10  ;;  %v18864_v41 = vld [vmem:[#allocation76_spill] sm:$0xff] }
 0x7ca   : > { %7008 = vbcast.lane.b32.xlu1 %v15894_v39, 368  ;;  %v16461_v56 = vpop.permute.xlu0 %5924  ;;  %v6050_v42 = vadd.f32 %v6018_v58, %v5845_v33  ;;  %v6424_v31 = vmul.f32 %v16368_v12, %v15944_v45  ;;  %v7295_v30 = vcombine.high %v16469_v21, %v16469_v21  ;;  %v5593_v50 = vmul.f32 %v16300_v52, %v18859_v26  ;;  %v18865_v58 = vld [vmem:[#allocation68_spill] sm:$0xff] }
 0x7cb   : > { %18853 = vst [vmem:[#allocation131_spill] sm:$0xff] %v16461_v56  ;;  %6925 = vbcast.lane.b32.xlu0 %v15885_v37, 336  ;;  %v6048_v56 = vadd.f32 %v6016_v2, %v5843_v61  ;;  %v16480_v55 = vadd.f32 %v5611_v4, %v5406_v53  ;;  %v16496_v61 = vadd.f32 %v6218_v17, %v6047_v60 }
 0x7cc   : > { %v16476_v62 = vpop.permute.xlu1 %6586  ;;  %v5612_v57 = vmul.f32 %v16300_v52, %v15718_v28  ;;  %v5796_v10 = vmul.f32 %v16309_v27, %v15723_v8  ;;  %v5388_v45 = vmul.f32 %v16296_v43, %v18861_v34  ;;  %v6253_v14 = vadd.f32 %v6221_v59, %v6050_v42  ;;  %v18868_v59 = vld [vmem:[#allocation156_spill] sm:$0xff] }
 0x7cd   : > { %18857 = vst [vmem:[#allocation135_spill] sm:$0xff] %v16476_v62  ;;  %v16510_v2 = vrot.slane %v16288_v24, %v18843_v44  ;;  %v6629_v23 = vmul.f32 %v16440_v38, %v16061_v19  ;;  %v5407_v4 = vmul.f32 %v16296_v43, %v18862_v22  ;;  %v5815_v28 = vmul.f32 %v16309_v27, %v15729_v3  ;;  %v5132_v62 = vld [vmem:[%s18870_s11 + $0x10] sm:$0xff] }
 0x7ce   : > { %7205 = vbcast.lane.b32.xlu1 %v15999_v46, 352  ;;  %v16487_v13 = vpop.permute.xlu0 %6119  ;;  %v5999_v8 = vmul.f32 %v16318_v18, %v15735_v36  ;;  %v6219_v7 = vmul.f32 %v16322_v0, %v15750_v5  ;;  %v6456_v44 = vadd.f32 %v6424_v31, %v6253_v14  ;;  %v16527_v19 = vrot.slane %v16285_v11, %v18864_v41  ;;  %v18867_v11 = vld [vmem:[#allocation155_spill] sm:$0xff] }
 0x7cf   : > { %18858 = vst [vmem:[#allocation133_spill] sm:$0xff] %v16487_v13  ;;  %7122 = vbcast.lane.b32.xlu0 %v15990_v40, 320  ;;  %v7309_v25 = vrot.slane %v7295_v30, %v18644_v35  ;;  %v6834_v3 = vmul.f32 %v16510_v2, %v18865_v58  ;;  %v16533_v36 = vadd.f32 %v5593_v50, %v5388_v45  ;;  %v18871_v50 = vld [vmem:[#allocation154_spill] sm:$0xff]  ;;  %v18897_v13 = vld [vmem:[#allocation185_spill] sm:$0xff] }
 0x7d0   : > { %v16504_v53 = vpop.permute.xlu1 %6783  ;;  %v16535_v60 = vadd.f32 %v5612_v57, %v5407_v4  ;;  %v16538_v5 = vadd.f32 %v5796_v10, %v16416_v20  ;;  %v6404_v33 = vmul.f32 %v16368_v12, %v18867_v11  ;;  %v5797_v42 = vmul.f32 %v16309_v27, %v18868_v59  ;;  %v18872_v10 = vld [vmem:[#allocation157_spill] sm:$0xff]  ;;  %v18878_v59 = vld [vmem:[#allocation159_spill] sm:$0xff] }
 0x7d1   : > { %18860 = vst [vmem:[#allocation132_spill] sm:$0xff] %v16504_v53  ;;  %v6661_v31 = vadd.f32 %v6629_v23, %v6456_v44  ;;  %v16550_v26 = vadd.f32 %v5815_v28, %v5642_v47  ;;  %v6031_v20 = vadd.f32 %v5999_v8, %v16418_v63  ;;  %v5389_v57 = vmul.f32 %v16296_v43, %v18871_v50  ;;  %v18874_v23 = vld [vmem:[#allocation50_spill] sm:$0xff]  ;;  %v18875_v28 = vld [vmem:[#allocation158_spill] sm:$0xff]  ;;  %v18876_v44 = vld [vmem:[#allocation160_spill] sm:$0xff] }
 0x7d2   : > { %7012 = vbcast.lane.b32.xlu1 %v15894_v39, 376  ;;  %v16523_v32 = vpop.permute.xlu0 %6314  ;;  %v18866_v39 = vld [vmem:[#allocation169_spill] sm:$0xff]  ;;  %v6420_v34 = vmul.f32 %v16368_v12, %v18872_v10  ;;  %v16560_v14 = vadd.f32 %v6219_v7, %v6048_v56  ;;  %v16563_v22 = vrot.slane %v7309_v25, %v18874_v23  ;;  %v16567_v47 = vrot.slane %v16288_v24, %v18864_v41  ;;  %v5151_v25 = vld [vmem:[%s18870_s11 + $0xa8] sm:$0xff] }
 0x7d3   : > { %18863 = vst [vmem:[#allocation137_spill] sm:$0xff] %v16523_v32  ;;  %6535 = vbcast.lane.b32.xlu0 %v15642_v6, 376  ;;  %v5594_v48 = vmul.f32 %v16300_v52, %v18866_v39  ;;  %v18869_v6 = vld [vmem:[#allocation52_spill] sm:$0xff]  ;;  %v6866_v4 = vadd.f32 %v6834_v3, %v6661_v31  ;;  %v6000_v8 = vmul.f32 %v16318_v18, %v18875_v28 }
 0x7d4   : > { %v16542_v17 = vpop.permute.xlu1 %6980  ;;  %v7039_v30 = vmul.f32 %v16527_v19, %v18869_v6  ;;  %v6200_v58 = vmul.f32 %v16322_v0, %v18876_v44  ;;  %v18877_v56 = vld [vmem:[#allocation161_spill] sm:$0xff]  ;;  %v6436_v3 = vadd.f32 %v6404_v33, %v6233_v1  ;;  %v16580_v11 = vadd.f32 %v5797_v42, %v16420_v16  ;;  %v18879_v6 = vld [vmem:[#allocation162_spill] sm:$0xff] }
 0x7d5   : > { %v16570_v63 = vadd.f32 %v5594_v48, %v5389_v57  ;;  %v5613_v7 = vmul.f32 %v16300_v52, %v18877_v56  ;;  %v16583_v48 = vadd.f32 %v6420_v34, %v6249_v49  ;;  %v5408_v31 = vmul.f32 %v16296_v43, %v18878_v59  ;;  %v18880_v57 = vld [vmem:[#allocation163_spill] sm:$0xff]  ;;  %v18882_v16 = vld [vmem:[#allocation165_spill] sm:$0xff]  ;;  %v18883_v42 = vld [vmem:[#allocation166_spill] sm:$0xff] }
 0x7d6   : > { %7209 = vbcast.lane.b32.xlu1 %v15999_v46, 360  ;;  %v16558_v45 = vpop.permute.xlu0 %6511  ;;  %v7071_v24 = vadd.f32 %v7039_v30, %v6866_v4  ;;  %v6216_v50 = vmul.f32 %v16322_v0, %v18879_v6  ;;  %v5816_v10 = vmul.f32 %v16309_v27, %v18880_v57  ;;  %v6019_v33 = vmul.f32 %v16318_v18, %v18882_v16  ;;  %v18884_v28 = vld [vmem:[#allocation61_spill] sm:$0xff]  ;;  %v18886_v57 = vld [vmem:[#allocation164_spill] sm:$0xff] }
 0x7d7   : > { %18873 = vst [vmem:[#allocation138_spill] sm:$0xff] %v16558_v45  ;;  %6732 = vbcast.lane.b32.xlu0 %v15768_v15, 360  ;;  %v5595_v49 = vmul.f32 %v16300_v52, %v18883_v42  ;;  %v7341_v34 = vadd.f32 %v16563_v22, %v5151_v25  ;;  %v6032_v4 = vadd.f32 %v6000_v8, %v16422_v54  ;;  %v18923_v53 = vld [vmem:[#allocation181_spill] sm:$0xff] }
 0x7d8   : > { %v7178_v39 = vpop.permute.xlu1 %7177  ;;  %v16602_v44 = vadd.f32 %v6200_v58, %v18884_v28  ;;  %v16604_v56 = vadd.f32 %v5613_v7, %v5408_v31  ;;  %v5390_v16 = vmul.f32 %v16296_v43, %v18886_v57  ;;  %v16619_v8 = vadd.f32 %v6216_v50, %v16489_v51  ;;  %v18890_v7 = vld [vmem:[#allocation171_spill] sm:$0xff]  ;;  %v18891_v28 = vld [vmem:[#allocation212_spill] sm:$0xff] }
 0x7d9   : > { %v7244_v41 = vmul.f32 %v16567_v47, %v7178_v39  ;;  %v18885_v39 = vld [vmem:[#allocation173_spill] sm:$0xff]  ;;  %v16622_v58 = vadd.f32 %v5816_v10, %v16480_v55  ;;  %v5798_v31 = vmul.f32 %v16309_v27, %v18890_v7  ;;  %v18894_v50 = vld [vmem:[#allocation249_spill] sm:$0xff]  ;;  %v7302_v32 = vrot.slane %v16469_v21, %v18644_v35 }
 0x7da   : > { %7213 = vbcast.lane.b32.xlu1 %v15999_v46, 368  ;;  %v16592_v1 = vpop.permute.xlu0 %6708  ;;  %v6202_v59 = vmul.f32 %v16322_v0, %v18885_v39  ;;  %v6405_v39 = vmul.f32 %v16368_v12, %v18891_v28  ;;  %v6814_v55 = vmul.f32 %v16510_v2, %v18894_v50  ;;  %v18895_v10 = vld [vmem:[#allocation168_spill] sm:$0xff]  ;;  %v18896_v28 = vld [vmem:[#allocation235_spill] sm:$0xff] }
 0x7db   : > { %18881 = vst [vmem:[#allocation140_spill] sm:$0xff] %v16592_v1  ;;  %v7276_v30 = vadd.f32 %v7244_v41, %v7071_v24  ;;  %6929 = vbcast.lane.b32.xlu0 %v15885_v37, 344  ;;  %v18887_v24 = vld [vmem:[#allocation170_spill] sm:$0xff]  ;;  %v18908_v35 = vld [vmem:[#allocation172_spill] sm:$0xff] }
 0x7dc   : > { %v16608_v6 = vpop.permute.xlu1 %6393  ;;  %v6220_v25 = vmul.f32 %v16322_v0, %v18887_v24  ;;  %v18888_v41 = vld [vmem:[#allocation182_spill] sm:$0xff]  ;;  %v6051_v24 = vadd.f32 %v6019_v33, %v16482_v29  ;;  %v6234_v7 = vadd.f32 %v6202_v59, %v6031_v20  ;;  %v6610_v29 = vmul.f32 %v16440_v38, %v18897_v13  ;;  %v18900_v59 = vld [vmem:[#allocation176_spill] sm:$0xff] }
 0x7dd   : > { %v6609_v42 = vmul.f32 %v16440_v38, %v18888_v41  ;;  %v16616_v54 = vadd.f32 %v7341_v34, %v7276_v30  ;;  %v16632_v30 = vadd.f32 %v5595_v49, %v5390_v16  ;;  %v18893_v34 = vld [vmem:[#allocation167_spill] sm:$0xff]  ;;  %v6001_v41 = vmul.f32 %v16318_v18, %v18895_v10  ;;  %v18901_v13 = vld [vmem:[#allocation186_spill] sm:$0xff] }
 0x7de   : > { %7217 = vbcast.lane.b32.xlu1 %v15999_v46, 376  ;;  %v16629_v57 = vpop.permute.xlu0 %6905  ;;  %v6421_v51 = vmul.f32 %v16368_v12, %v18893_v34  ;;  %v6222_v46 = vmul.f32 %v16322_v0, %v18896_v28  ;;  %v16648_v49 = vadd.f32 %v6220_v25, %v16484_v9  ;;  %v18899_v34 = vld [vmem:[#allocation93_spill] sm:$0xff]  ;;  %v16655_v20 = vadd.f32 %v5798_v31, %v16533_v36  ;;  %v18902_v25 = vld [vmem:[#allocation219_spill] sm:$0xff]  ;;  %v18917_v1 = vld [vmem:[#allocation178_spill] sm:$0xff] }
 0x7df   : > { %18889 = vst [vmem:[#allocation65_spill] sm:$0xff] %v16616_v54  ;;  %18892 = vst [vmem:[#allocation139_spill] sm:$0xff] %v16629_v57  ;;  %7126 = vbcast.lane.b32.xlu0 %v15990_v40, 328  ;;  %v6641_v16 = vadd.f32 %v6609_v42, %v6436_v3  ;;  %v7019_v50 = vmul.f32 %v16527_v19, %v18899_v34  ;;  %v6203_v10 = vmul.f32 %v16322_v0, %v18900_v59  ;;  %v18903_v34 = vld [vmem:[#allocation255_spill] sm:$0xff]  ;;  %v18918_v54 = vld [vmem:[#allocation179_spill] sm:$0xff] }
 0x7e0   : > { %v16645_v33 = vpop.permute.xlu1 %6590  ;;  %v6437_v28 = vadd.f32 %v6405_v39, %v6234_v7  ;;  %v6425_v45 = vmul.f32 %v16368_v12, %v18901_v13  ;;  %v16662_v9 = vadd.f32 %v6421_v51, %v16496_v61  ;;  %v6815_v42 = vmul.f32 %v16510_v2, %v18902_v25  ;;  %v18904_v39 = vld [vmem:[#allocation250_spill] sm:$0xff] }
 0x7e1   : > { %18898 = vst [vmem:[#allocation134_spill] sm:$0xff] %v16645_v33  ;;  %v6846_v3 = vadd.f32 %v6814_v55, %v6641_v16  ;;  %v7224_v21 = vmul.f32 %v16567_v47, %v18903_v34  ;;  %v16670_v36 = vadd.f32 %v6001_v41, %v16538_v5  ;;  %v6254_v31 = vadd.f32 %v6222_v46, %v6051_v24  ;;  %v18906_v16 = vld [vmem:[#allocation220_spill] sm:$0xff]  ;;  %v18907_v25 = vld [vmem:[#allocation77_spill] sm:$0xff]  ;;  %v18909_v46 = vld [vmem:[#allocation90_spill] sm:$0xff] }
 0x7e2   : > { %v7103_v33 = vpop.permute.xlu0 %7102  ;;  %v6406_v7 = vmul.f32 %v16368_v12, %v18904_v39  ;;  %v6642_v59 = vadd.f32 %v6610_v29, %v6437_v28  ;;  %v16677_v55 = vrot.slane %v7302_v32, %v18874_v23  ;;  %v6630_v13 = vmul.f32 %v16440_v38, %v18906_v16  ;;  %v5131_v28 = vld [vmem:[%s18870_s11 + $0x8] sm:$0xff]  ;;  %v18912_v16 = vld [vmem:[#allocation129_spill] sm:$0xff] }
 0x7e3   : > { %6736 = vbcast.lane.b32.xlu0 %v15768_v15, 368  ;;  %v7051_v51 = vadd.f32 %v7019_v50, %v6846_v3  ;;  %v7020_v34 = vmul.f32 %v16527_v19, %v18907_v25  ;;  %v5409_v5 = vmul.f32 %v16296_v43, %v18908_v35  ;;  %v6235_v24 = vadd.f32 %v6203_v10, %v6032_v4  ;;  %v18911_v23 = vld [vmem:[#allocation80_spill] sm:$0xff]  ;;  %v18913_v35 = vld [vmem:[#allocation174_spill] sm:$0xff]  ;;  %v18914_v4 = vld [vmem:[#allocation175_spill] sm:$0xff] }
 0x7e4   : > { %v16674_v61 = vpop.permute.xlu1 %6787  ;;  %v6457_v41 = vadd.f32 %v6425_v45, %v6254_v31  ;;  %v6611_v29 = vmul.f32 %v16440_v38, %v18909_v46  ;;  %v6847_v50 = vadd.f32 %v6815_v42, %v6642_v59  ;;  %v6835_v3 = vmul.f32 %v16510_v2, %v18911_v23  ;;  %v18915_v46 = vld [vmem:[#allocation74_spill] sm:$0xff] }
 0x7e5   : > { %18905 = vst [vmem:[#allocation141_spill] sm:$0xff] %v16674_v61  ;;  %v7256_v32 = vadd.f32 %v7224_v21, %v7051_v51  ;;  %v7225_v25 = vmul.f32 %v16567_v47, %v18912_v16  ;;  %v5614_v45 = vmul.f32 %v16300_v52, %v18913_v35  ;;  %v5391_v10 = vmul.f32 %v16296_v43, %v18914_v4 }
 0x7e6   : > { %v16688_v39 = vpop.permute.xlu0 %6123  ;;  %v6438_v31 = vadd.f32 %v6406_v7, %v6235_v24  ;;  %v6816_v42 = vmul.f32 %v16510_v2, %v18915_v46  ;;  %v6662_v59 = vadd.f32 %v6630_v13, %v6457_v41  ;;  %v7321_v51 = vadd.f32 %v16677_v55, %v5131_v28  ;;  %v18919_v24 = vld [vmem:[#allocation49_spill] sm:$0xff]  ;;  %v18921_v13 = vld [vmem:[#allocation201_spill] sm:$0xff] }
 0x7e7   : > { %18910 = vst [vmem:[#allocation142_spill] sm:$0xff] %v16688_v39  ;;  %6933 = vbcast.lane.b32.xlu0 %v15885_v37, 352  ;;  %v7052_v23 = vadd.f32 %v7020_v34, %v6847_v50  ;;  %v18916_v39 = vld [vmem:[#allocation269_spill] sm:$0xff]  ;;  %v5817_v35 = vmul.f32 %v16309_v27, %v18917_v1  ;;  %v5596_v4 = vmul.f32 %v16300_v52, %v18918_v54 }
 0x7e8   : > { %v16701_v21 = vpop.permute.xlu1 %6984  ;;  %v7040_v16 = vmul.f32 %v16527_v19, %v18916_v39  ;;  %v6643_v7 = vadd.f32 %v6611_v29, %v6438_v31  ;;  %v7021_v46 = vmul.f32 %v16527_v19, %v18919_v24  ;;  %v6020_v34 = vmul.f32 %v16318_v18, %v18921_v13  ;;  %v18922_v50 = vld [vmem:[#allocation180_spill] sm:$0xff]  ;;  %v5152_v24 = vld [vmem:[%s18870_s11 + $0xb0] sm:$0xff] }
 0x7e9   : > { %v7353_v41 = vadd.f32 %v7321_v51, %v7256_v32  ;;  %v6867_v28 = vadd.f32 %v6835_v3, %v6662_v59  ;;  %v7257_v39 = vadd.f32 %v7225_v25, %v7052_v23  ;;  %v5799_v1 = vmul.f32 %v16309_v27, %v18922_v50  ;;  %v18924_v51 = vld [vmem:[#allocation217_spill] sm:$0xff] }
 0x7ea   : > { %v16713_v61 = vpop.permute.xlu0 %6318  ;;  %v6002_v54 = vmul.f32 %v16318_v18, %v18923_v53  ;;  %v6848_v29 = vadd.f32 %v6816_v42, %v6643_v7  ;;  %v7226_v31 = vmul.f32 %v16567_v47, %v7103_v33  ;;  %v16724_v57 = vadd.f32 %v5614_v45, %v5409_v5  ;;  %v5133_v5 = vld [vmem:[%s18870_s11 + $0x18] sm:$0xff]  ;;  %v18932_v50 = vld [vmem:[#allocation197_spill] sm:$0xff] }
 0x7eb   : > { %18920 = vst [vmem:[#allocation143_spill] sm:$0xff] %v16713_v61  ;;  %7130 = vbcast.lane.b32.xlu0 %v15990_v40, 336  ;;  %v7072_v13 = vadd.f32 %v7040_v16, %v6867_v28  ;;  %v7322_v32 = vadd.f32 %v16677_v55, %v5132_v62  ;;  %v16729_v25 = vadd.f32 %v5817_v35, %v16535_v60  ;;  %11832 = vtanh.f32 %v7353_v41  ;;  %v18929_v28 = vld [vmem:[#allocation78_spill] sm:$0xff] }
 0x7ec   : > { %v7182_v61 = vpop.permute.xlu1 %7181  ;;  %v16731_v59 = vadd.f32 %v5596_v4, %v5391_v10  ;;  %v6204_v53 = vmul.f32 %v16322_v0, %v18924_v51  ;;  %v7053_v42 = vadd.f32 %v7021_v46, %v6848_v29  ;;  %v7342_v16 = vadd.f32 %v16563_v22, %v5152_v24  ;;  %v18927_v4 = vld [vmem:[#allocation233_spill] sm:$0xff]  ;;  %v18928_v46 = vld [vmem:[#allocation183_spill] sm:$0xff] }
 0x7ed   : > { %v7245_v3 = vmul.f32 %v16567_v47, %v7182_v61  ;;  %v7354_v33 = vadd.f32 %v7322_v32, %v7257_v39  ;;  %v6052_v62 = vadd.f32 %v6020_v34, %v16550_v26  ;;  %v16742_v60 = vadd.f32 %v5799_v1, %v16570_v63  ;;  %v18930_v26 = vld [vmem:[#allocation200_spill] sm:$0xff]  ;;  %v18931_v34 = vld [vmem:[#allocation194_spill] sm:$0xff]  ;;  %v18936_v51 = vld [vmem:[#allocation195_spill] sm:$0xff] }
 0x7ee   : > { %v16735_v23 = vpop.permute.xlu0 %6515  ;;  %v16745_v61 = vadd.f32 %v6002_v54, %v16580_v11  ;;  %v7258_v10 = vadd.f32 %v7226_v31, %v7053_v42  ;;  %v6422_v7 = vmul.f32 %v16368_v12, %v18927_v4  ;;  %v6403_v41 = vmul.f32 %v16368_v12, %v18928_v46  ;;  %v18934_v31 = vld [vmem:[#allocation198_spill] sm:$0xff]  ;;  %v18935_v32 = vld [vmem:[#allocation55_spill] sm:$0xff] }
 0x7ef   : > { %18925 = vst [vmem:[#allocation145_spill] sm:$0xff] %v16735_v23  ;;  %v7277_v45 = vadd.f32 %v7245_v3, %v7072_v13  ;;  %6740 = vbcast.lane.b32.xlu0 %v15768_v15, 376  ;;  %v6407_v15 = vmul.f32 %v16368_v12, %v18929_v28  ;;  %v6625_v63 = vmul.f32 %v16440_v38, %v18930_v26  ;;  %11834 = vtanh.f32 %v7354_v33 }
 0x7f0   : > { %v16747_v35 = vpop.permute.xlu1 %6397  ;;  %v6419_v11 = vmul.f32 %v16368_v12, %v18931_v34  ;;  %v5615_v1 = vmul.f32 %v16300_v52, %v18932_v50  ;;  %v7323_v54 = vadd.f32 %v16677_v55, %v5133_v5  ;;  %v5818_v24 = vmul.f32 %v16309_v27, %v18934_v31  ;;  %v18938_v5 = vld [vmem:[#allocation199_spill] sm:$0xff] }
 0x7f1   : > { %18926 = vst [vmem:[#allocation147_spill] sm:$0xff] %v16747_v35  ;;  %v16755_v39 = vadd.f32 %v7342_v16, %v7277_v45  ;;  %v6236_v13 = vadd.f32 %v6204_v53, %v16670_v36  ;;  %v6612_v3 = vmul.f32 %v16440_v38, %v18935_v32  ;;  %v5410_v42 = vmul.f32 %v16296_v43, %v18936_v51  ;;  %v18937_v45 = vld [vmem:[#allocation203_spill] sm:$0xff]  ;;  %v18939_v53 = vld [vmem:[#allocation228_spill] sm:$0xff] }
 0x7f2   : > { %v16764_v29 = vpop.permute.xlu0 %6712  ;;  %v5800_v16 = vmul.f32 %v16309_v27, %v18937_v45  ;;  %v6021_v4 = vmul.f32 %v16318_v18, %v18938_v5  ;;  %v7355_v46 = vadd.f32 %v7323_v54, %v7258_v10  ;;  %v16781_v36 = vadd.f32 %v6422_v7, %v16560_v14  ;;  %v18940_v34 = vld [vmem:[#allocation79_spill] sm:$0xff]  ;;  %v18946_v45 = vld [vmem:[#allocation241_spill] sm:$0xff] }
 0x7f3   : > { %18933 = vst [vmem:[#allocation148_spill] sm:$0xff] %v16764_v29  ;;  %6937 = vbcast.lane.b32.xlu0 %v15885_v37, 360  ;;  %v6223_v33 = vmul.f32 %v16322_v0, %v18939_v53  ;;  %v6439_v26 = vadd.f32 %v6407_v15, %v6236_v13  ;;  %v6817_v50 = vmul.f32 %v16510_v2, %v18940_v34  ;;  %v18942_v15 = vld [vmem:[#allocation91_spill] sm:$0xff]  ;;  %v18953_v29 = vld [vmem:[#allocation259_spill] sm:$0xff] }
 0x7f4   : > { %v16778_v28 = vpop.permute.xlu1 %6594  ;;  %v16788_v31 = vadd.f32 %v6403_v41, %v16602_v44  ;;  %v16791_v32 = vadd.f32 %v6625_v63, %v16583_v48  ;;  %v16794_v10 = vadd.f32 %v6419_v11, %v16619_v8  ;;  %v16796_v54 = vadd.f32 %v5615_v1, %v5410_v42  ;;  %v18943_v44 = vld [vmem:[#allocation130_spill] sm:$0xff] }
 0x7f5   : > { %v16801_v7 = vadd.f32 %v5818_v24, %v16604_v56  ;;  %v6426_v13 = vmul.f32 %v16368_v12, %v18942_v15  ;;  %v6644_v51 = vadd.f32 %v6612_v3, %v6439_v26  ;;  %v7022_v41 = vmul.f32 %v16527_v19, %v18943_v44  ;;  %v18944_v63 = vld [vmem:[#allocation58_spill] sm:$0xff]  ;;  %v11833_v1 = vpop.eup %11832  ;;  %v18950_v15 = vld [vmem:[#allocation207_spill] sm:$0xff] }
 0x7f6   : > { %v16798_v14 = vpop.permute.xlu0 %6909  ;;  %v16809_v48 = vadd.f32 %v5800_v16, %v16632_v30  ;;  %v16812_v8 = vadd.f32 %v6021_v4, %v16622_v58  ;;  %v5617_v56 = vmul.f32 %v16300_v52, %v18944_v63  ;;  %11836 = vtanh.f32 %v7355_v46  ;;  %v18945_v24 = vld [vmem:[#allocation202_spill] sm:$0xff]  ;;  %v16823_v30 = vld [vmem:[%s18941_s15] ss:$0 sm:$0xff]  ;;  %v18948_v4 = vld [vmem:[#allocation213_spill] sm:$0xff] }
 0x7f7   : > { %7134 = vbcast.lane.b32.xlu0 %v15990_v40, 344  ;;  %v6003_v3 = vmul.f32 %v16318_v18, %v18945_v24  ;;  %v6255_v42 = vadd.f32 %v6223_v33, %v6052_v62  ;;  %v6631_v5 = vmul.f32 %v16440_v38, %v18946_v45  ;;  %v6849_v53 = vadd.f32 %v6817_v50, %v6644_v51  ;;  %v18947_v16 = vld [vmem:[#allocation234_spill] sm:$0xff]  ;;  %v18949_v46 = vld [vmem:[#allocation245_spill] sm:$0xff]  ;;  %v5134_v63 = vld [vmem:[%s18870_s11 + $0x20] sm:$0xff] }
 0x7f8   : > { %v16816_v11 = vpop.permute.xlu1 %6791  ;;  %v6423_v58 = vmul.f32 %v16368_v12, %v18947_v16  ;;  %v6626_v26 = vmul.f32 %v16440_v38, %v18948_v4  ;;  %v5412_v34 = vmul.f32 %v16296_v43, %v18949_v46  ;;  %v5822_v44 = vmul.f32 %v16309_v27, %v18950_v15  ;;  %v18951_v24 = vld [vmem:[#allocation51_spill] sm:$0xff] }
 0x7f9   : > { %v6458_v33 = vadd.f32 %v6426_v13, %v6255_v42  ;;  %v6836_v50 = vmul.f32 %v16510_v2, %v18951_v24  ;;  %v7054_v51 = vadd.f32 %v7022_v41, %v6849_v53  ;;  %v18952_v16 = vld [vmem:[#allocation216_spill] sm:$0xff]  ;;  %v6027_v46 = vmul.f32 %v16318_v18, %v18953_v29  ;;  %v11835_v13 = vpop.eup %11834  ;;  %v18954_v29 = vld [vmem:[#allocation252_spill] sm:$0xff] }
 0x7fa   : > { %v7107_v62 = vpop.permute.xlu0 %7106  ;;  %v5616_v4 = vmul.f32 %v16300_v52, %v18952_v16  ;;  %v5649_v23 = vadd.f32 %v5617_v56, %v5412_v34  ;;  %v7424_v15 = vmul.f32 %v11833_v1, %v16823_v30  ;;  %v7041_v41 = vmul.f32 %v16527_v19, %v16542_v17  ;;  %v18956_v17 = vld [vmem:[#allocation46_spill] sm:$0xff] }
 0x7fb   : > { %v7227_v45 = vmul.f32 %v16567_v47, %v7107_v62  ;;  %6941 = vbcast.lane.b32.xlu0 %v15885_v37, 368  ;;  %v6663_v42 = vadd.f32 %v6631_v5, %v6458_v33  ;;  %v7324_v53 = vadd.f32 %v16677_v55, %v5134_v63  ;;  %v16849_v24 = vadd.f32 %v6003_v3, %v16655_v20  ;;  %v5153_v3 = vld [vmem:[%s18870_s11 + $0xb8] sm:$0xff] }
 0x7fc   : > { %v16842_v35 = vpop.permute.xlu1 %6988  ;;  %v16852_v56 = vadd.f32 %v6423_v58, %v16648_v49  ;;  %v5411_v34 = vmul.f32 %v16296_v43, %v18954_v29  ;;  %v5854_v16 = vadd.f32 %v5822_v44, %v5649_v23  ;;  %v16859_v5 = vadd.f32 %v6626_v26, %v16662_v9 }
 0x7fd   : > { %v7259_v62 = vadd.f32 %v7227_v45, %v7054_v51  ;;  %v6868_v33 = vadd.f32 %v6836_v50, %v6663_v42  ;;  %v6230_v63 = vmul.f32 %v16322_v0, %v18956_v17  ;;  %v7458_v45 = vsel %vm18957_vm4, %v7424_v15, 0.0  ;;  %v18958_v42 = vld [vmem:[#allocation231_spill] sm:$0xff]  ;;  %v18961_v15 = vld [vmem:[#allocation226_spill] sm:$0xff]  ;;  %vm18977_vm4 = vmmov %vm18967_vm0 }
 0x7fe   : > { %v16856_v1 = vpop.permute.xlu0 %6127  ;;  %v16864_v20 = vadd.f32 %v5616_v4, %v5411_v34  ;;  %v6059_v49 = vadd.f32 %v6027_v46, %v5854_v16  ;;  %v7425_v23 = vmul.f32 %v11835_v13, %v16823_v30  ;;  %v6433_v9 = vmul.f32 %v16368_v12, %v16608_v6  ;;  %v18959_v4 = vld [vmem:[#allocation251_spill] sm:$0xff] }
 0x7ff   : > { %18955 = vst [vmem:[#allocation151_spill] sm:$0xff] %v16856_v1  ;;  %v7356_v51 = vadd.f32 %v7324_v53, %v7259_v62  ;;  %7138 = vbcast.lane.b32.xlu0 %v15990_v40, 352  ;;  %v7073_v44 = vadd.f32 %v7041_v41, %v6868_v33  ;;  %v5801_v53 = vmul.f32 %v16309_v27, %v18958_v42  ;;  %v18960_v62 = vld [vmem:[#allocation66_spill] sm:$0xff]  ;;  %v18965_v42 = vld [vmem:[#allocation227_spill] sm:$0xff] }
 0x800   : > { %v7186_v58 = vpop.permute.xlu1 %7185  ;;  %v11837_v50 = vpop.eup %11836  ;;  %v5819_v46 = vmul.f32 %v16309_v27, %v18959_v4  ;;  %v6004_v29 = vmul.f32 %v16318_v18, %v18960_v62  ;;  %v6022_v13 = vmul.f32 %v16318_v18, %v18961_v15  ;;  %v18963_v6 = vld [vmem:[#allocation230_spill] sm:$0xff]  ;;  %v6262_v16 = vadd.f32 %v6230_v63, %v6059_v49  ;;  %v18966_v62 = vld [vmem:[#allocation184_spill] sm:$0xff] }
 0x801   : > { %11838 = vtanh.f32 %v7356_v51  ;;  %v7246_v26 = vmul.f32 %v16567_v47, %v7186_v58  ;;  %v6205_v34 = vmul.f32 %v16322_v0, %v18963_v6  ;;  %v7343_v17 = vadd.f32 %v16563_v22, %v5153_v3  ;;  %v18964_v51 = vld [vmem:[#allocation59_spill] sm:$0xff] }
 0x802   : > { %7459 = vadd.xlane.f32.xlu1 %v7458_v45  ;;  %v16880_v41 = vpop.permute.xlu0 %6322  ;;  %v6608_v58 = vmul.f32 %v16440_v38, %v18964_v51  ;;  %v6627_v4 = vmul.f32 %v16440_v38, %v18965_v42  ;;  %v6224_v45 = vmul.f32 %v16322_v0, %v18966_v62  ;;  %v7461_v1 = vsel %vm18967_vm0, %v7425_v23, 0.0 }
 0x803   : > { %18962 = vst [vmem:[#allocation144_spill] sm:$0xff] %v16880_v41  ;;  %v7278_v33 = vadd.f32 %v7246_v26, %v7073_v44  ;;  %6945 = vbcast.lane.b32.xlu0 %v15885_v37, 376  ;;  %v6465_v41 = vadd.f32 %v6433_v9, %v6262_v16  ;;  %v7426_v49 = vmul.f32 %v11837_v50, %v16823_v30  ;;  %v18969_v26 = vld [vmem:[#allocation229_spill] sm:$0xff]  ;;  %v18971_v9 = vld [vmem:[#allocation63_spill] sm:$0xff] }
 0x804   : > { %v6599_v15 = vpop.permute.xlu1 %6598  ;;  %v16898_v37 = vadd.f32 %v5801_v53, %v16731_v59  ;;  %v16901_v3 = vadd.f32 %v5819_v46, %v16724_v57  ;;  %v16904_v44 = vadd.f32 %v6004_v29, %v16742_v60  ;;  %v6624_v51 = vmul.f32 %v16440_v38, %v18969_v26  ;;  %v18973_v59 = vld [vmem:[#allocation56_spill] sm:$0xff]  ;;  %v18975_v29 = vld [vmem:[#allocation191_spill] sm:$0xff]  ;;  %v18980_v26 = vld [vmem:[#allocation240_spill] sm:$0xff] }
 0x805   : > { %v16893_v6 = vadd.f32 %v7343_v17, %v7278_v33  ;;  %v6638_v63 = vmul.f32 %v16440_v38, %v6599_v15  ;;  %v6830_v16 = vmul.f32 %v16510_v2, %v18971_v9  ;;  %v18972_v33 = vld [vmem:[#allocation83_spill] sm:$0xff]  ;;  %v6427_v53 = vmul.f32 %v16368_v12, %v18973_v59  ;;  %v18976_v15 = vld [vmem:[#allocation73_spill] sm:$0xff] }
 0x806   : > { %18968 = vst [vmem:[#allocation152_spill] sm:$0xff] %v16898_v37  ;;  %7462 = vadd.xlane.f32.xlu1 %v7461_v1  ;;  %v16908_v23 = vpop.permute.xlu0 %6519  ;;  %v6005_v50 = vmul.f32 %v16318_v18, %v18972_v33  ;;  %v16920_v60 = vadd.f32 %v6022_v13, %v16729_v25  ;;  %v6237_v1 = vadd.f32 %v6205_v34, %v16745_v61  ;;  %v7464_v25 = vsel %vm18977_vm4, %v7426_v49, 0.0  ;;  %v18978_v61 = vld [vmem:[#allocation177_spill] sm:$0xff]  ;;  %v18982_v49 = vld [vmem:[#allocation247_spill] sm:$0xff]  ;;  %vm19023_vm4 = vmmov %vm18967_vm0 }
 0x807   : > { %18970 = vst [vmem:[#allocation150_spill] sm:$0xff] %v16908_v23  ;;  %v16916_v57 = vadd.f32 %v6638_v63, %v6465_v41  ;;  %7142 = vbcast.lane.b32.xlu0 %v15990_v40, 360  ;;  %v6640_v46 = vadd.f32 %v6608_v58, %v16788_v31  ;;  %v6408_v17 = vmul.f32 %v16368_v12, %v18975_v29  ;;  %v18979_v34 = vld [vmem:[#allocation193_spill] sm:$0xff]  ;;  %v18983_v33 = vld [vmem:[#allocation210_spill] sm:$0xff]  ;;  %v18984_v29 = vld [vmem:[#allocation211_spill] sm:$0xff] }
 0x808   : > { %v16926_v42 = vpop.permute.xlu1 %6795  ;;  %v16929_v62 = vadd.f32 %v6627_v4, %v16781_v36  ;;  %v6256_v41 = vadd.f32 %v6224_v45, %v16812_v8  ;;  %v6632_v63 = vmul.f32 %v16440_v38, %v18976_v15  ;;  %v6656_v13 = vadd.f32 %v6624_v51, %v16794_v10  ;;  %v5135_v23 = vld [vmem:[%s18870_s11 + $0x28] sm:$0xff] }
 0x809   : > { %18974 = vst [vmem:[#allocation149_spill] sm:$0xff] %v16916_v57  ;;  %v5820_v31 = vmul.f32 %v16309_v27, %v18978_v61  ;;  %v6813_v58 = vmul.f32 %v16510_v2, %v18979_v34  ;;  %v6613_v9 = vmul.f32 %v16440_v38, %v18980_v26  ;;  %v16945_v4 = vadd.f32 %v6830_v16, %v16791_v32 }
 0x80a   : > { %7465 = vadd.xlane.f32.xlu1 %v7464_v25  ;;  %v16942_v36 = vpop.permute.xlu0 %6716  ;;  %v16948_v45 = vadd.f32 %v6005_v50, %v16809_v48  ;;  %v6459_v10 = vadd.f32 %v6427_v53, %v6256_v41  ;;  %v6837_v51 = vmul.f32 %v16510_v2, %v18982_v49  ;;  %v6206_v59 = vmul.f32 %v16322_v0, %v18983_v33  ;;  %v18985_v48 = vld [vmem:[#allocation98_spill] sm:$0xff] }
 0x80b   : > { %18981 = vst [vmem:[#allocation153_spill] sm:$0xff] %v16942_v36  ;;  %v11839_v8 = vpop.eup %11838  ;;  %7146 = vbcast.lane.b32.xlu0 %v15990_v40, 368  ;;  %v6023_v15 = vmul.f32 %v16318_v18, %v18984_v29  ;;  %v6440_v25 = vadd.f32 %v6408_v17, %v6237_v1  ;;  %v7018_v16 = vmul.f32 %v16527_v19, %v18985_v48  ;;  %v18986_v53 = vld [vmem:[#allocation45_spill] sm:$0xff] }
 0x80c   : > { %v16957_v61 = vpop.permute.xlu1 %6992  ;;  %v7427_v32 = vmul.f32 %v11839_v8, %v16823_v30  ;;  %v6664_v50 = vadd.f32 %v6632_v63, %v6459_v10  ;;  %v6818_v41 = vmul.f32 %v16510_v2, %v18986_v53  ;;  %v7042_v34 = vmul.f32 %v16527_v19, %v16701_v21  ;;  %v18987_v8 = vld [vmem:[#allocation53_spill] sm:$0xff]  ;;  %v18988_v63 = vld [vmem:[#allocation139_spill] sm:$0xff] }
 0x80d   : > { %v16967_v26 = vadd.f32 %v5820_v31, %v16796_v54  ;;  %v6845_v49 = vadd.f32 %v6813_v58, %v6640_v46  ;;  %v6645_v1 = vadd.f32 %v6613_v9, %v6440_v25  ;;  %v7223_v29 = vmul.f32 %v16567_v47, %v18987_v8  ;;  %v5154_v21 = vld [vmem:[%s18870_s11 + $0xc0] sm:$0xff]  ;;  %v18990_v9 = vld [vmem:[#allocation204_spill] sm:$0xff] }
 0x80e   : > { %v16969_v17 = vpop.permute.xlu0 %6913  ;;  %v7467_v33 = vsel %vm18967_vm0, %v7427_v32, 0.0  ;;  %v6869_v48 = vadd.f32 %v6837_v51, %v6664_v50  ;;  %v7023_v10 = vmul.f32 %v16527_v19, %v18988_v63  ;;  %v16979_v54 = vadd.f32 %v6206_v59, %v16849_v24  ;;  %v18989_v31 = vld [vmem:[#allocation244_spill] sm:$0xff]  ;;  %v18992_v24 = vld [vmem:[#allocation190_spill] sm:$0xff] }
 0x80f   : > { %7150 = vbcast.lane.b32.xlu0 %v15990_v40, 376  ;;  %7468 = vadd.xlane.f32.xlu1 %v7467_v33  ;;  %v16982_v46 = vadd.f32 %v6023_v15, %v16801_v7  ;;  %v6628_v58 = vmul.f32 %v16440_v38, %v18989_v31  ;;  %v6829_v51 = vmul.f32 %v16510_v2, %v18990_v9  ;;  %v18991_v33 = vld [vmem:[#allocation188_spill] sm:$0xff]  ;;  %v18993_v7 = vld [vmem:[#allocation254_spill] sm:$0xff]  ;;  %v5130_v63 = vld [vmem:[%s18870_s11] sm:$0xff] }
 0x810   : > { %v7190_v25 = vpop.permute.xlu1 %7189  ;;  %v7050_v32 = vadd.f32 %v7018_v16, %v6845_v49  ;;  %v6850_v50 = vadd.f32 %v6818_v41, %v6645_v1  ;;  %v7074_v53 = vadd.f32 %v7042_v34, %v6869_v48  ;;  %v6831_v8 = vmul.f32 %v16510_v2, %v18991_v33  ;;  %v18994_v49 = vld [vmem:[#allocation69_spill] sm:$0xff]  ;;  %v18995_v48 = vld [vmem:[#allocation192_spill] sm:$0xff] }
 0x811   : > { %v7247_v40 = vmul.f32 %v16567_v47, %v7190_v25  ;;  %v5618_v59 = vmul.f32 %v16300_v52, %v18992_v24  ;;  %v7034_v15 = vmul.f32 %v16527_v19, %v18993_v7  ;;  %v7344_v31 = vadd.f32 %v16563_v22, %v5154_v21  ;;  %v18996_v24 = vld [vmem:[#allocation72_spill] sm:$0xff] }
 0x812   : > { %v7111_v9 = vpop.permute.xlu0 %7110  ;;  %v7255_v36 = vadd.f32 %v7223_v29, %v7050_v32  ;;  %v7055_v16 = vadd.f32 %v7023_v10, %v6850_v50  ;;  %v5413_v1 = vmul.f32 %v16296_v43, %v18994_v49  ;;  %v6225_v25 = vmul.f32 %v16322_v0, %v18995_v48  ;;  %v19000_v48 = vld [vmem:[#allocation239_spill] sm:$0xff] }
 0x813   : > { %v7279_v41 = vadd.f32 %v7247_v40, %v7074_v53  ;;  %v7228_v34 = vmul.f32 %v16567_v47, %v7111_v9  ;;  %v6861_v33 = vadd.f32 %v6829_v51, %v6656_v13  ;;  %v7239_v7 = vmul.f32 %v16567_v47, %v18996_v24  ;;  %v18998_v40 = vld [vmem:[#allocation95_spill] sm:$0xff] }
 0x814   : > { %v17005_v37 = vpop.permute.xlu1 %6602  ;;  %v7320_v21 = vadd.f32 %v16677_v55, %v5130_v63  ;;  %v7325_v10 = vadd.f32 %v16677_v55, %v5135_v23  ;;  %v6660_v50 = vadd.f32 %v6628_v58, %v16852_v56  ;;  %v6863_v53 = vadd.f32 %v6831_v8, %v16859_v5  ;;  %v19002_v5 = vld [vmem:[#allocation257_spill] sm:$0xff] }
 0x815   : > { %18997 = vst [vmem:[#allocation76_spill] sm:$0xff] %v17005_v37  ;;  %v17008_v29 = vadd.f32 %v7344_v31, %v7279_v41  ;;  %v7260_v32 = vadd.f32 %v7228_v34, %v7055_v16  ;;  %v7035_v9 = vmul.f32 %v16527_v19, %v18998_v40  ;;  %v7066_v13 = vadd.f32 %v7034_v15, %v6861_v33  ;;  %v5146_v41 = vld [vmem:[%s18870_s11 + $0x80] sm:$0xff]  ;;  %v19001_v16 = vld [vmem:[#allocation88_spill] sm:$0xff] }
 0x816   : > { %v17015_v51 = vpop.permute.xlu0 %6326  ;;  %v17017_v49 = vadd.f32 %v5618_v59, %v5413_v1  ;;  %v6428_v63 = vmul.f32 %v16368_v12, %v19000_v48  ;;  %v7352_v31 = vadd.f32 %v7320_v21, %v7255_v36  ;;  %v6257_v23 = vadd.f32 %v6225_v25, %v16920_v60  ;;  %v19004_v59 = vld [vmem:[#allocation206_spill] sm:$0xff]  ;;  %v19005_v1 = vld [vmem:[#allocation209_spill] sm:$0xff]  ;;  %v19006_v33 = vld [vmem:[#allocation111_spill] sm:$0xff] }
 0x817   : > { %v7357_v24 = vadd.f32 %v7325_v10, %v7260_v32  ;;  %v7036_v56 = vmul.f32 %v16527_v19, %v19001_v16  ;;  %v7240_v58 = vmul.f32 %v16567_v47, %v19002_v5  ;;  %v7271_v8 = vadd.f32 %v7239_v7, %v7066_v13  ;;  %v19007_v25 = vld [vmem:[#allocation106_spill] sm:$0xff]  ;;  %v19008_v7 = vld [vmem:[#allocation103_spill] sm:$0xff] }
 0x818   : > { %18999 = vst [vmem:[#allocation68_spill] sm:$0xff] %v17017_v49  ;;  %v17027_v15 = vpop.permute.xlu1 %6799  ;;  %v6832_v34 = vmul.f32 %v16510_v2, %v19004_v59  ;;  %v6409_v36 = vmul.f32 %v16368_v12, %v19005_v1  ;;  %v6633_v60 = vmul.f32 %v16440_v38, %v19006_v33  ;;  %v17037_v21 = vmul.f32 %v16322_v0, %v19007_v25  ;;  %v19010_v48 = vld [vmem:[#allocation86_spill] sm:$0xff]  ;;  %v19011_v59 = vld [vmem:[#allocation132_spill] sm:$0xff]  ;;  %v19020_v49 = vld [vmem:[#allocation85_spill] sm:$0xff] }
 0x819   : > { %19003 = vst [vmem:[#allocation169_spill] sm:$0xff] %v17027_v15  ;;  %11840 = vtanh.f32 %v7357_v24  ;;  %v7067_v10 = vadd.f32 %v7035_v9, %v16945_v4  ;;  %v7241_v32 = vmul.f32 %v16567_v47, %v19008_v7  ;;  %v7336_v40 = vadd.f32 %v16563_v22, %v5146_v41  ;;  %v5147_v24 = vld [vmem:[%s18870_s11 + $0x88] sm:$0xff]  ;;  %v19012_v4 = vld [vmem:[#allocation105_spill] sm:$0xff] }
 0x81a   : > { %v17043_v13 = vpop.permute.xlu0 %6523  ;;  %v17047_v16 = vmul.f32 %v16309_v27, %v19010_v48  ;;  %v6460_v5 = vadd.f32 %v6428_v63, %v6257_v23  ;;  %11842 = vtanh.f32 %v7352_v31  ;;  %v6838_v1 = vmul.f32 %v16510_v2, %v19011_v59  ;;  %v5148_v7 = vld [vmem:[%s18870_s11 + $0x90] sm:$0xff]  ;;  %v5155_v31 = vld [vmem:[%s18870_s11 + $0xc8] sm:$0xff]  ;;  %v19013_v23 = vld [vmem:[#allocation222_spill] sm:$0xff] }
 0x81b   : > { %19009 = vst [vmem:[#allocation155_spill] sm:$0xff] %v17043_v13  ;;  %v7068_v33 = vadd.f32 %v7036_v56, %v6863_v53  ;;  %v7037_v9 = vmul.f32 %v16527_v19, %v19012_v4  ;;  %v7272_v25 = vadd.f32 %v7240_v58, %v7067_v10  ;;  %v7368_v41 = vadd.f32 %v7336_v40, %v7271_v8  ;;  %v19014_v10 = vld [vmem:[#allocation54_spill] sm:$0xff] }
 0x81c   : > { %v17055_v57 = vpop.permute.xlu1 %6996  ;;  %v6864_v13 = vadd.f32 %v6832_v34, %v16929_v62  ;;  %v6441_v48 = vadd.f32 %v6409_v36, %v16979_v54  ;;  %v6665_v37 = vadd.f32 %v6633_v60, %v6460_v5  ;;  %v7043_v63 = vmul.f32 %v16527_v19, %v16842_v35  ;;  %v19016_v62 = vld [vmem:[#allocation218_spill] sm:$0xff]  ;;  %v19017_v34 = vld [vmem:[#allocation71_spill] sm:$0xff] }
 0x81d   : > { %v6833_v53 = vmul.f32 %v16510_v2, %v19013_v23  ;;  %v7337_v56 = vadd.f32 %v16563_v22, %v5147_v24  ;;  %v7273_v58 = vadd.f32 %v7241_v32, %v7068_v33  ;;  %v7242_v8 = vmul.f32 %v16567_v47, %v19014_v10  ;;  %v19018_v24 = vld [vmem:[#allocation82_spill] sm:$0xff]  ;;  %v19019_v10 = vld [vmem:[#allocation270_spill] sm:$0xff] }
 0x81e   : > { %v17067_v40 = vpop.permute.xlu0 %6720  ;;  %v6226_v54 = vmul.f32 %v16322_v0, %v19016_v62  ;;  %v6614_v36 = vmul.f32 %v16440_v38, %v19017_v34  ;;  %v7338_v35 = vadd.f32 %v16563_v22, %v5148_v7  ;;  %v6870_v60 = vadd.f32 %v6838_v1, %v6665_v37  ;;  %v5149_v23 = vld [vmem:[%s18870_s11 + $0x98] sm:$0xff] }
 0x81f   : > { %19015 = vst [vmem:[#allocation156_spill] sm:$0xff] %v17067_v40  ;;  %v7069_v5 = vadd.f32 %v7037_v9, %v6864_v13  ;;  %v7369_v59 = vadd.f32 %v7337_v56, %v7272_v25  ;;  %11844 = vtanh.f32 %v7368_v41  ;;  %v7345_v32 = vadd.f32 %v16563_v22, %v5155_v31  ;;  %v19021_v41 = vld [vmem:[#allocation271_spill] sm:$0xff] }
 0x820   : > { %v7194_v4 = vpop.permute.xlu1 %7193  ;;  %v7038_v33 = vmul.f32 %v16527_v19, %v19018_v24  ;;  %v6819_v40 = vmul.f32 %v16510_v2, %v19019_v10  ;;  %v7075_v62 = vadd.f32 %v7043_v63, %v6870_v60  ;;  %v6865_v34 = vadd.f32 %v6833_v53, %v6660_v50 }
 0x821   : > { %v7248_v15 = vmul.f32 %v16567_v47, %v7194_v4  ;;  %v6429_v37 = vmul.f32 %v16368_v12, %v19020_v49  ;;  %v7370_v13 = vadd.f32 %v7338_v35, %v7273_v58  ;;  %v7274_v1 = vadd.f32 %v7242_v8, %v7069_v5  ;;  %v5150_v5 = vld [vmem:[%s18870_s11 + $0xa0] sm:$0xff] }
 0x822   : > { %v17083_v9 = vpop.permute.xlu0 %6917  ;;  %v6646_v7 = vadd.f32 %v6614_v36, %v6441_v48  ;;  %v7243_v31 = vmul.f32 %v16567_v47, %v19021_v41  ;;  %v7024_v56 = vmul.f32 %v16527_v19, %v16798_v14  ;;  %v6258_v50 = vadd.f32 %v6226_v54, %v16982_v46  ;;  %v19022_v48 = vld [vmem:[#allocation266_spill] sm:$0xff] }
 0x823   : > { %v11841_v25 = vpop.eup %11840  ;;  %v7280_v63 = vadd.f32 %v7248_v15, %v7075_v62  ;;  %11846 = vtanh.f32 %v7369_v59  ;;  %v7339_v49 = vadd.f32 %v16563_v22, %v5149_v23  ;;  %v7070_v35 = vadd.f32 %v7038_v33, %v6865_v34  ;;  %v5136_v46 = vld [vmem:[%s18870_s11 + $0x30] sm:$0xff] }
 0x824   : > { %v17091_v53 = vpop.permute.xlu1 %6803  ;;  %v7428_v58 = vmul.f32 %v11841_v25, %v16823_v30  ;;  %v11843_v8 = vpop.eup %11842  ;;  %v6634_v36 = vmul.f32 %v16440_v38, %v19022_v48  ;;  %v6851_v60 = vadd.f32 %v6819_v40, %v6646_v7  ;;  %v6461_v14 = vadd.f32 %v6429_v37, %v6258_v50  ;;  %v19024_v23 = vld [vmem:[#allocation141_spill] sm:$0xff] }
 0x825   : > { %v17097_v4 = vadd.f32 %v7345_v32, %v7280_v63  ;;  %11848 = vtanh.f32 %v7370_v13  ;;  %v7371_v15 = vadd.f32 %v7339_v49, %v7274_v1  ;;  %v7275_v24 = vadd.f32 %v7243_v31, %v7070_v35  ;;  %v19025_v32 = vld [vmem:[#allocation89_spill] sm:$0xff]  ;;  %v19027_v63 = vld [vmem:[#allocation208_spill] sm:$0xff] }
 0x826   : > { %v7115_v54 = vpop.permute.xlu0 %7114  ;;  %v7470_v59 = vsel %vm19023_vm4, %v7428_v58, 0.0  ;;  %v6839_v10 = vmul.f32 %v16510_v2, %v19024_v23  ;;  %v7056_v62 = vadd.f32 %v7024_v56, %v6851_v60  ;;  %v17106_v40 = vadd.f32 %v17037_v21, %v16904_v44  ;;  %v19026_v44 = vld [vmem:[#allocation92_spill] sm:$0xff]  ;;  %v19028_v49 = vld [vmem:[#allocation225_spill] sm:$0xff]  ;;  %vm19036_vm4 = vmmov %vm18967_vm0 }
 0x827   : > { %v7229_v33 = vmul.f32 %v16567_v47, %v7115_v54  ;;  %7471 = vadd.xlane.f32.xlu1 %v7470_v59  ;;  %v6024_v34 = vmul.f32 %v16318_v18, %v19025_v32  ;;  %v7340_v37 = vadd.f32 %v16563_v22, %v5150_v5  ;;  %v7423_v1 = vmul.f32 %v11843_v8, %v16823_v30  ;;  %v5156_v60 = vld [vmem:[%s18870_s11 + $0xd0] sm:$0xff] }
 0x828   : > { %v17111_v13 = vpop.permute.xlu1 %7000  ;;  %v6666_v25 = vadd.f32 %v6634_v36, %v6461_v14  ;;  %v7044_v7 = vmul.f32 %v16527_v19, %v16957_v61  ;;  %v7326_v41 = vadd.f32 %v16677_v55, %v5136_v46  ;;  %v5601_v21 = vmul.f32 %v16300_v52, %v19026_v44  ;;  %v19029_v14 = vld [vmem:[#allocation205_spill] sm:$0xff] }
 0x829   : > { %v7261_v31 = vadd.f32 %v7229_v33, %v7056_v62  ;;  %v11845_v56 = vpop.eup %11844  ;;  %v6208_v50 = vmul.f32 %v16322_v0, %v19027_v63  ;;  %v6025_v58 = vmul.f32 %v16318_v18, %v19028_v49  ;;  %11850 = vtanh.f32 %v7371_v15  ;;  %v19030_v54 = vld [vmem:[#allocation237_spill] sm:$0xff]  ;;  %v5157_v62 = vld [vmem:[%s18870_s11 + $0xd8] sm:$0xff]  ;;  %v19034_v49 = vld [vmem:[#allocation256_spill] sm:$0xff] }
 0x82a   : > { %v17123_v8 = vpop.permute.xlu0 %6330  ;;  %v5853_v61 = vadd.f32 %v17047_v16, %v16864_v20  ;;  %v7372_v35 = vadd.f32 %v7340_v37, %v7275_v24  ;;  %v6871_v48 = vadd.f32 %v6839_v10, %v6666_v25  ;;  %v6056_v5 = vadd.f32 %v6024_v34, %v16901_v3  ;;  %v19033_v63 = vld [vmem:[#allocation238_spill] sm:$0xff] }
 0x82b   : > { %v7358_v36 = vadd.f32 %v7326_v41, %v7261_v31  ;;  %v5396_v46 = vmul.f32 %v16296_v43, %v19029_v14  ;;  %v6227_v59 = vmul.f32 %v16322_v0, %v19030_v54  ;;  %v7455_v15 = vsel %vm18967_vm0, %v7423_v1, 0.0  ;;  %v19031_v1 = vld [vmem:[#allocation109_spill] sm:$0xff]  ;;  %v5137_v31 = vld [vmem:[%s18870_s11 + $0x38] sm:$0xff] }
 0x82c   : > { %v7198_v23 = vpop.permute.xlu1 %7197  ;;  %v7076_v33 = vadd.f32 %v7044_v7, %v6871_v48  ;;  %v7439_v16 = vmul.f32 %v11845_v56, %v16823_v30  ;;  %v17138_v10 = vadd.f32 %v6208_v50, %v16948_v45  ;;  %v6057_v32 = vadd.f32 %v6025_v58, %v16967_v26  ;;  %v5158_v56 = vld [vmem:[%s18870_s11 + $0xe0] sm:$0xff]  ;;  %v19037_v54 = vld [vmem:[#allocation70_spill] sm:$0xff] }
 0x82d   : > { %11852 = vtanh.f32 %v7358_v36  ;;  %v7249_v20 = vmul.f32 %v16567_v47, %v7198_v23  ;;  %v11847_v24 = vpop.eup %11846  ;;  %v5633_v3 = vadd.f32 %v5601_v21, %v5396_v46  ;;  %v7346_v34 = vadd.f32 %v16563_v22, %v5156_v60  ;;  %v19032_v45 = vld [vmem:[#allocation223_spill] sm:$0xff] }
 0x82e   : > { %7456 = vadd.xlane.f32.xlu0 %v7455_v15  ;;  %v17142_v37 = vpop.permute.xlu0 %6527  ;;  %v6430_v25 = vmul.f32 %v16368_v12, %v19031_v1  ;;  %11854 = vtanh.f32 %v7372_v35  ;;  %v17147_v41 = vadd.f32 %v16563_v22, %v5157_v62  ;;  %v6026_v21 = vmul.f32 %v16318_v18, %v19032_v45  ;;  %v19035_v35 = vld [vmem:[#allocation135_spill] sm:$0xff] }
 0x82f   : > { %v7281_v7 = vadd.f32 %v7249_v20, %v7076_v33  ;;  %v11849_v44 = vpop.eup %11848  ;;  %v6259_v26 = vadd.f32 %v6227_v59, %v6056_v5  ;;  %v6410_v50 = vmul.f32 %v16368_v12, %v19033_v63  ;;  %v5806_v58 = vmul.f32 %v16309_v27, %v19034_v49  ;;  %v19038_v59 = vld [vmem:[#allocation113_spill] sm:$0xff]  ;;  %v19041_v49 = vld [vmem:[#allocation140_spill] sm:$0xff] }
 0x830   : > { %v17157_v48 = vpop.permute.xlu1 %6807  ;;  %v6635_v36 = vmul.f32 %v16440_v38, %v19035_v35  ;;  %v7503_v14 = vsel %vm19036_vm4, %v7439_v16, 0.0  ;;  %v7440_v46 = vmul.f32 %v11847_v24, %v16823_v30  ;;  %v6228_v5 = vmul.f32 %v16322_v0, %v19037_v54  ;;  %vm19044_vm4 = vmmov %vm18967_vm0 }
 0x831   : > { %v17161_v60 = vadd.f32 %v7346_v34, %v7281_v7  ;;  %v6615_v23 = vmul.f32 %v16440_v38, %v19038_v59  ;;  %v17172_v62 = vadd.f32 %v16677_v55, %v5137_v31  ;;  %v17175_v33 = vadd.f32 %v16563_v22, %v5158_v56  ;;  %v19039_v34 = vld [vmem:[#allocation65_spill] sm:$0xff]  ;;  %v19040_v7 = vld [vmem:[#allocation100_spill] sm:$0xff] }
 0x832   : > { %7504 = vadd.xlane.f32.xlu0 %v7503_v14  ;;  %v17169_v15 = vpop.permute.xlu0 %6724  ;;  %v6462_v20 = vadd.f32 %v6430_v25, %v6259_v26  ;;  %11856 = vtanh.f32 %v19039_v34  ;;  %v6840_v16 = vmul.f32 %v16510_v2, %v16816_v11  ;;  %v7441_v24 = vmul.f32 %v11849_v44, %v16823_v30  ;;  %v19042_v59 = vld [vmem:[#allocation136_spill] sm:$0xff] }
 0x833   : > { %v11851_v1 = vpop.eup %11850  ;;  %v17183_v45 = vmul.f32 %v16309_v27, %v19040_v7  ;;  %v6058_v63 = vadd.f32 %v6026_v21, %v5853_v61  ;;  %v6442_v31 = vadd.f32 %v6410_v50, %v17106_v40  ;;  %v6820_v56 = vmul.f32 %v16510_v2, %v19041_v49  ;;  %v19043_v61 = vld [vmem:[#allocation264_spill] sm:$0xff] }
 0x834   : > { %v17188_v35 = vpop.permute.xlu1 %7004  ;;  %v5838_v25 = vadd.f32 %v5806_v58, %v5633_v3  ;;  %v6667_v26 = vadd.f32 %v6635_v36, %v6462_v20  ;;  %v7045_v11 = vmul.f32 %v16527_v19, %v17055_v57  ;;  %v7506_v44 = vsel %vm18967_vm0, %v7440_v46, 0.0  ;;  %v19045_v36 = vld [vmem:[#allocation134_spill] sm:$0xff] }
 0x835   : > { %v6260_v14 = vadd.f32 %v6228_v5, %v6057_v32  ;;  %v6647_v54 = vadd.f32 %v6615_v23, %v6442_v31  ;;  %v6011_v34 = vmul.f32 %v16318_v18, %v19042_v59  ;;  %v6431_v40 = vmul.f32 %v16368_v12, %v19043_v61  ;;  %v19046_v31 = vld [vmem:[#allocation142_spill] sm:$0xff] }
 0x836   : > { %7507 = vadd.xlane.f32.xlu0 %v7506_v44  ;;  %v17197_v21 = vpop.permute.xlu0 %6921  ;;  %v6872_v7 = vadd.f32 %v6840_v16, %v6667_v26  ;;  %v7025_v3 = vmul.f32 %v16527_v19, %v16969_v17  ;;  %v7509_v57 = vsel %vm19044_vm4, %v7441_v24, 0.0  ;;  %v7442_v58 = vmul.f32 %v11851_v1, %v16823_v30  ;;  %vm19048_vm4 = vmmov %vm18967_vm0 }
 0x837   : > { %v11853_v50 = vpop.eup %11852  ;;  %v6852_v32 = vadd.f32 %v6820_v56, %v6647_v54  ;;  %v6636_v46 = vmul.f32 %v16440_v38, %v19045_v36  ;;  %11858 = vtanh.f32 %v16755_v39  ;;  %v6214_v16 = vmul.f32 %v16322_v0, %v19046_v31  ;;  %v19050_v36 = vld [vmem:[#allocation97_spill] sm:$0xff] }
 0x838   : > { %v7202_v5 = vpop.permute.xlu1 %7201  ;;  %v7429_v23 = vmul.f32 %v11853_v50, %v16823_v30  ;;  %v11855_v20 = vpop.eup %11854  ;;  %11860 = vtanh.f32 %v16893_v6  ;;  %v7077_v17 = vadd.f32 %v7045_v11, %v6872_v7  ;;  %v6043_v49 = vadd.f32 %v6011_v34, %v5838_v25  ;;  %v19047_v6 = vld [vmem:[#allocation108_spill] sm:$0xff] }
 0x839   : > { %v7250_v24 = vmul.f32 %v16567_v47, %v7202_v5  ;;  %v6463_v1 = vadd.f32 %v6431_v40, %v6260_v14  ;;  %v6841_v56 = vmul.f32 %v16510_v2, %v16926_v42  ;;  %v7057_v44 = vadd.f32 %v7025_v3, %v6852_v32  ;;  %v19051_v5 = vld [vmem:[#allocation146_spill] sm:$0xff] }
 0x83a   : > { %7510 = vadd.xlane.f32.xlu0 %v7509_v57  ;;  %v7119_v26 = vpop.permute.xlu0 %7118  ;;  %v7473_v39 = vsel %vm18967_vm0, %v7429_v23, 0.0  ;;  %v6417_v54 = vmul.f32 %v16368_v12, %v17015_v51  ;;  %v6229_v11 = vmul.f32 %v16322_v0, %v19047_v6  ;;  %v7512_v34 = vsel %vm19048_vm4, %v7442_v58, 0.0  ;;  %v19049_v57 = vld [vmem:[#allocation84_spill] sm:$0xff]  ;;  %vm19058_vm4 = vmmov %vm18967_vm0 }
 0x83b   : > { %v7282_v59 = vadd.f32 %v7250_v24, %v7077_v17  ;;  %v7230_v61 = vmul.f32 %v16567_v47, %v7119_v26  ;;  %7474 = vadd.xlane.f32.xlu1 %v7473_v39  ;;  %v6668_v25 = vadd.f32 %v6636_v46, %v6463_v1  ;;  %v7443_v42 = vmul.f32 %v11855_v20, %v16823_v30 }
 0x83c   : > { %v7009_v14 = vpop.permute.xlu1 %7008  ;;  %v11857_v40 = vpop.eup %11856  ;;  %v6246_v50 = vadd.f32 %v6214_v16, %v6043_v49  ;;  %v7046_v7 = vmul.f32 %v16527_v19, %v17111_v13  ;;  %v6411_v32 = vmul.f32 %v16368_v12, %v19049_v57  ;;  %v6028_v46 = vmul.f32 %v16318_v18, %v19050_v36 }
 0x83d   : > { %v17224_v51 = vadd.f32 %v17147_v41, %v7282_v59  ;;  %v7262_v3 = vadd.f32 %v7230_v61, %v7057_v44  ;;  %v6432_v58 = vmul.f32 %v16368_v12, %v19051_v5  ;;  %v6873_v23 = vadd.f32 %v6841_v56, %v6668_v25  ;;  %v19052_v44 = vld [vmem:[#allocation68_spill] sm:$0xff]  ;;  %v19054_v59 = vld [vmem:[#allocation248_spill] sm:$0xff] }
 0x83e   : > { %7513 = vadd.xlane.f32.xlu0 %v7512_v34  ;;  %v6532_v20 = vpop.permute.xlu0 %6531  ;;  %11862 = vtanh.f32 %v17008_v29  ;;  %v6449_v31 = vadd.f32 %v6417_v54, %v6246_v50  ;;  %v6261_v16 = vadd.f32 %v6229_v11, %v6058_v63  ;;  %v6637_v17 = vmul.f32 %v16440_v38, %v16778_v28  ;;  %v19053_v54 = vld [vmem:[#allocation268_spill] sm:$0xff]  ;;  %v19055_v34 = vld [vmem:[#allocation169_spill] sm:$0xff] }
 0x83f   : > { %v7359_v13 = vadd.f32 %v17172_v62, %v7262_v3  ;;  %v6622_v41 = vmul.f32 %v16440_v38, %v6532_v20  ;;  %v7515_v49 = vsel %vm18967_vm0, %v7443_v42, 0.0  ;;  %v7444_v1 = vmul.f32 %v11857_v40, %v16823_v30  ;;  %v19059_v20 = vld [vmem:[#allocation76_spill] sm:$0xff] }
 0x840   : > { %v7206_v24 = vpop.permute.xlu1 %7205  ;;  %v7078_v26 = vadd.f32 %v7046_v7, %v6873_v23  ;;  %v5855_v62 = vadd.f32 %v17183_v45, %v19052_v44  ;;  %v6443_v63 = vadd.f32 %v6411_v32, %v17138_v10  ;;  %v6616_v28 = vmul.f32 %v16440_v38, %v19053_v54  ;;  %v19056_v10 = vld [vmem:[#allocation147_spill] sm:$0xff]  ;;  %v19057_v7 = vld [vmem:[#allocation148_spill] sm:$0xff] }
 0x841   : > { %11864 = vtanh.f32 %v7359_v13  ;;  %v17239_v56 = vadd.f32 %v6622_v41, %v6449_v31  ;;  %v7251_v29 = vmul.f32 %v16567_v47, %v7206_v24  ;;  %v11859_v39 = vpop.eup %11858  ;;  %v6231_v61 = vmul.f32 %v16322_v0, %v19054_v59  ;;  %v5159_v23 = vld [vmem:[%s18870_s11 + $0xe8] sm:$0xff] }
 0x842   : > { %7516 = vadd.xlane.f32.xlu0 %v7515_v49  ;;  %v17249_v6 = vpop.permute.xlu0 %6728  ;;  %v11861_v11 = vpop.eup %11860  ;;  %v6464_v25 = vadd.f32 %v6432_v58, %v6261_v16  ;;  %v6842_v42 = vmul.f32 %v16510_v2, %v19055_v34  ;;  %11866 = vtanh.f32 %v17097_v4  ;;  %v6060_v40 = vadd.f32 %v6028_v46, %v5855_v62 }
 0x843   : > { %v7283_v45 = vadd.f32 %v7251_v29, %v7078_v26  ;;  %v6434_v50 = vmul.f32 %v16368_v12, %v19056_v10  ;;  %v6821_v3 = vmul.f32 %v16510_v2, %v19057_v7  ;;  %v7518_v32 = vsel %vm19058_vm4, %v7444_v1, 0.0  ;;  %v5138_v1 = vld [vmem:[%s18870_s11 + $0x40] sm:$0xff]  ;;  %vm19062_vm4 = vmmov %vm18967_vm0 }
 0x844   : > { %v7013_v57 = vpop.permute.xlu1 %7012  ;;  %v6669_v36 = vadd.f32 %v6637_v17, %v6464_v25  ;;  %v7047_v5 = vmul.f32 %v16527_v19, %v17188_v35  ;;  %v7445_v4 = vmul.f32 %v11859_v39, %v16823_v30  ;;  %v6263_v46 = vadd.f32 %v6231_v61, %v6060_v40  ;;  %v19060_v17 = vld [vmem:[#allocation75_spill] sm:$0xff]  ;;  %v19061_v61 = vld [vmem:[#allocation149_spill] sm:$0xff] }
 0x845   : > { %v7380_v58 = vadd.f32 %v17175_v33, %v7283_v45  ;;  %v6639_v31 = vmul.f32 %v16440_v38, %v19059_v20  ;;  %v6843_v13 = vmul.f32 %v16510_v2, %v17091_v53  ;;  %v7446_v16 = vmul.f32 %v11861_v11, %v16823_v30 }
 0x846   : > { %7519 = vadd.xlane.f32.xlu0 %v7518_v32  ;;  %v17268_v41 = vpop.permute.xlu0 %6925  ;;  %v6006_v35 = vmul.f32 %v16318_v18, %v19060_v17  ;;  %v6648_v24 = vadd.f32 %v6616_v28, %v6443_v63  ;;  %v6874_v33 = vadd.f32 %v6842_v42, %v6669_v36  ;;  %v7026_v49 = vmul.f32 %v16527_v19, %v17083_v9 }
 0x847   : > { %v6466_v26 = vadd.f32 %v6434_v50, %v6263_v46  ;;  %11868 = vtanh.f32 %v17161_v60  ;;  %v7048_v29 = vmul.f32 %v16527_v19, %v7009_v14  ;;  %v7349_v39 = vadd.f32 %v16563_v22, %v5159_v23  ;;  %v5160_v50 = vld [vmem:[%s18870_s11 + $0xf0] sm:$0xff]  ;;  %v19063_v46 = vld [vmem:[#allocation152_spill] sm:$0xff] }
 0x848   : > { %v7210_v53 = vpop.permute.xlu1 %7209  ;;  %v11863_v44 = vpop.eup %11862  ;;  %v6853_v62 = vadd.f32 %v6821_v3, %v6648_v24  ;;  %v7079_v54 = vadd.f32 %v7047_v5, %v6874_v33  ;;  %v7521_v63 = vsel %vm18967_vm0, %v7445_v4, 0.0  ;;  %v6875_v9 = vadd.f32 %v6843_v13, %v19061_v61 }
 0x849   : > { %v7252_v59 = vmul.f32 %v16567_v47, %v7210_v53  ;;  %v6671_v28 = vadd.f32 %v6639_v31, %v6466_v26  ;;  %v7328_v11 = vadd.f32 %v16677_v55, %v5138_v1  ;;  %v7524_v14 = vsel %vm19062_vm4, %v7446_v16, 0.0  ;;  %v19064_v31 = vld [vmem:[#allocation236_spill] sm:$0xff]  ;;  %v5161_v26 = vld [vmem:[%s18870_s11 + $0xf8] sm:$0xff]  ;;  %vm19066_vm4 = vmmov %vm18967_vm0 }
 0x84a   : > { %7522 = vadd.xlane.f32.xlu0 %v7521_v63  ;;  %v7123_v60 = vpop.permute.xlu0 %7122  ;;  %v7058_v34 = vadd.f32 %v7026_v49, %v6853_v62  ;;  %v6844_v42 = vmul.f32 %v16510_v2, %v17157_v48  ;;  %11870 = vtanh.f32 %v17224_v51  ;;  %v7080_v10 = vadd.f32 %v7048_v29, %v6875_v9  ;;  %v19065_v49 = vld [vmem:[#allocation110_spill] sm:$0xff] }
 0x84b   : > { %v11865_v25 = vpop.eup %11864  ;;  %v7284_v45 = vadd.f32 %v7252_v59, %v7079_v54  ;;  %v7231_v40 = vmul.f32 %v16567_v47, %v7123_v60  ;;  %v7447_v32 = vmul.f32 %v11863_v44, %v16823_v30  ;;  %v7049_v5 = vmul.f32 %v16527_v19, %v7013_v57 }
 0x84c   : > { %v7214_v7 = vpop.permute.xlu1 %7213  ;;  %v7430_v3 = vmul.f32 %v11865_v25, %v16823_v30  ;;  %v11867_v36 = vpop.eup %11866  ;;  %v6038_v20 = vadd.f32 %v6006_v35, %v19063_v46  ;;  %v6209_v51 = vmul.f32 %v16322_v0, %v19064_v31  ;;  %v6876_v17 = vadd.f32 %v6844_v42, %v6671_v28  ;;  %v19067_v28 = vld [vmem:[#allocation138_spill] sm:$0xff]  ;;  %v19069_v25 = vld [vmem:[#allocation153_spill] sm:$0xff] }
 0x84d   : > { %v7381_v23 = vadd.f32 %v7349_v39, %v7284_v45  ;;  %v7263_v4 = vadd.f32 %v7231_v40, %v7058_v34  ;;  %v7253_v48 = vmul.f32 %v16567_v47, %v7214_v7  ;;  %v7350_v57 = vadd.f32 %v16563_v22, %v5160_v50  ;;  %v19070_v50 = vld [vmem:[#allocation196_spill] sm:$0xff] }
 0x84e   : > { %7525 = vadd.xlane.f32.xlu0 %v7524_v14  ;;  %v17296_v13 = vpop.permute.xlu0 %6535  ;;  %v7476_v16 = vsel %vm18967_vm0, %v7430_v3, 0.0  ;;  %v6412_v1 = vmul.f32 %v16368_v12, %v19065_v49  ;;  %11872 = vtanh.f32 %v7380_v58  ;;  %v7527_v29 = vsel %vm19066_vm4, %v7447_v32, 0.0  ;;  %v19071_v3 = vld [vmem:[#allocation60_spill] sm:$0xff]  ;;  %vm19073_vm4 = vmmov %vm18967_vm0 }
 0x84f   : > { %v7360_v24 = vadd.f32 %v7328_v11, %v7263_v4  ;;  %v7285_v33 = vadd.f32 %v7253_v48, %v7080_v10  ;;  %7477 = vadd.xlane.f32.xlu1 %v7476_v16  ;;  %v7448_v53 = vmul.f32 %v11867_v36, %v16823_v30  ;;  %v7081_v39 = vadd.f32 %v7049_v5, %v6876_v17  ;;  %v19068_v11 = vld [vmem:[#allocation232_spill] sm:$0xff]  ;;  %v19074_v17 = vld [vmem:[#allocation67_spill] sm:$0xff] }
 0x850   : > { %v7218_v35 = vpop.permute.xlu1 %7217  ;;  %v6241_v59 = vadd.f32 %v6209_v51, %v6038_v20  ;;  %v6617_v61 = vmul.f32 %v16440_v38, %v19067_v28  ;;  %v7351_v9 = vadd.f32 %v16563_v22, %v5161_v26  ;;  %v5597_v60 = vmul.f32 %v16300_v52, %v19068_v11  ;;  %v19072_v4 = vld [vmem:[#allocation96_spill] sm:$0xff] }
 0x851   : > { %11874 = vtanh.f32 %v7360_v24  ;;  %v7382_v44 = vadd.f32 %v7350_v57, %v7285_v33  ;;  %v7254_v62 = vmul.f32 %v16567_v47, %v7218_v35  ;;  %v11869_v54 = vpop.eup %11868  ;;  %v6822_v34 = vmul.f32 %v16510_v2, %v19069_v25  ;;  %v5139_v33 = vld [vmem:[%s18870_s11 + $0x48] sm:$0xff]  ;;  %v19075_v35 = vld [vmem:[#allocation267_spill] sm:$0xff] }
 0x852   : > { %7528 = vadd.xlane.f32.xlu0 %v7527_v29  ;;  %v17306_v63 = vpop.permute.xlu0 %6732  ;;  %v6444_v14 = vadd.f32 %v6412_v1, %v6241_v59  ;;  %11876 = vtanh.f32 %v7381_v23  ;;  %v7530_v45 = vsel %vm18967_vm0, %v7448_v53, 0.0  ;;  %v7449_v40 = vmul.f32 %v11869_v54, %v16823_v30 }
 0x853   : > { %v7286_v58 = vadd.f32 %v7254_v62, %v7081_v39  ;;  %v5392_v7 = vmul.f32 %v16296_v43, %v19070_v50  ;;  %v5802_v22 = vmul.f32 %v16309_v27, %v19071_v3  ;;  %v7027_v5 = vmul.f32 %v16527_v19, %v17197_v21 }
 0x854   : > { %v11871_v10 = vpop.eup %11870  ;;  %v6649_v36 = vadd.f32 %v6617_v61, %v6444_v14  ;;  %v6007_v48 = vmul.f32 %v16318_v18, %v19072_v4  ;;  %11878 = vtanh.f32 %v7382_v44  ;;  %v7533_v20 = vsel %vm19073_vm4, %v7449_v40, 0.0  ;;  %vm19076_vm4 = vmmov %vm18967_vm0  ;;  %v19078_v14 = vld [vmem:[#allocation215_spill] sm:$0xff] }
 0x855   : > { %v7383_v42 = vadd.f32 %v7351_v9, %v7286_v58  ;;  %v5629_v23 = vadd.f32 %v5597_v60, %v5392_v7  ;;  %v7450_v31 = vmul.f32 %v11871_v10, %v16823_v30  ;;  %v6210_v24 = vmul.f32 %v16322_v0, %v19074_v17  ;;  %v19077_v9 = vld [vmem:[#allocation145_spill] sm:$0xff]  ;;  %v19080_v7 = vld [vmem:[#allocation214_spill] sm:$0xff] }
 0x856   : > { %7531 = vadd.xlane.f32.xlu0 %v7530_v45  ;;  %v17321_v32 = vpop.permute.xlu0 %6929  ;;  %v6854_v46 = vadd.f32 %v6822_v34, %v6649_v36  ;;  %v6413_v29 = vmul.f32 %v16368_v12, %v19075_v35  ;;  %v7329_v39 = vadd.f32 %v16677_v55, %v5139_v33  ;;  %v6618_v11 = vmul.f32 %v16440_v38, %v19077_v9 }
 0x857   : > { %v5834_v16 = vadd.f32 %v5802_v22, %v5629_v23  ;;  %11880 = vtanh.f32 %v7383_v42  ;;  %v7536_v62 = vsel %vm18967_vm0, %v7450_v31, 0.0  ;;  %v5598_v25 = vmul.f32 %v16300_v52, %v19078_v14  ;;  %v19079_v42 = vld [vmem:[#allocation156_spill] sm:$0xff]  ;;  %v19081_v22 = vld [vmem:[#allocation189_spill] sm:$0xff] }
 0x858   : > { %v11873_v51 = vpop.eup %11872  ;;  %v7059_v21 = vadd.f32 %v7027_v5, %v6854_v46  ;;  %v6823_v45 = vmul.f32 %v16510_v2, %v19079_v42  ;;  %v5393_v3 = vmul.f32 %v16296_v43, %v19080_v7  ;;  %v5803_v36 = vmul.f32 %v16309_v27, %v19081_v22  ;;  %v19082_v46 = vld [vmem:[#allocation101_spill] sm:$0xff] }
 0x859   : > { %v6039_v26 = vadd.f32 %v6007_v48, %v5834_v16  ;;  %v7451_v54 = vmul.f32 %v11873_v51, %v16823_v30  ;;  %v7028_v4 = vmul.f32 %v16527_v19, %v17268_v41  ;;  %v5140_v51 = vld [vmem:[%s18870_s11 + $0x50] sm:$0xff]  ;;  %v17363_v16 = vld [vmem:[%s18941_s15] ss:$0 sm:$0xff]  ;;  %v6824_v22 = vmul.f32 %v16510_v2, %v17169_v15 }
 0x85a   : > { %7534 = vadd.xlane.f32.xlu0 %v7533_v20  ;;  %v7127_v57 = vpop.permute.xlu0 %7126  ;;  %v5630_v48 = vadd.f32 %v5598_v25, %v5393_v3  ;;  %v6008_v20 = vmul.f32 %v16318_v18, %v19082_v46  ;;  %v19092_v46 = vld [vmem:[#allocation265_spill] sm:$0xff] }
 0x85b   : > { %v11875_v49 = vpop.eup %11874  ;;  %v7232_v1 = vmul.f32 %v16567_v47, %v7127_v57  ;;  %v6242_v28 = vadd.f32 %v6210_v24, %v6039_v26  ;;  %v7539_v40 = vsel %vm18967_vm0, %v7451_v54, 0.0  ;;  %v19085_v26 = vld [vmem:[#allocation62_spill] sm:$0xff] }
 0x85c   : > { %v7431_v53 = vmul.f32 %v11875_v49, %v16823_v30  ;;  %v11877_v59 = vpop.eup %11876  ;;  %v5835_v33 = vadd.f32 %v5803_v36, %v5630_v48  ;;  %v19084_v49 = vld [vmem:[#allocation107_spill] sm:$0xff]  ;;  %v5599_v35 = vmul.f32 %v16300_v52, %v19085_v26 }
 0x85d   : > { %v7264_v44 = vadd.f32 %v7232_v1, %v7059_v21  ;;  %v6445_v34 = vadd.f32 %v6413_v29, %v6242_v28  ;;  %v7452_v10 = vmul.f32 %v11877_v59, %v16823_v30  ;;  %v6211_v21 = vmul.f32 %v16322_v0, %v19084_v49  ;;  %v19087_v28 = vld [vmem:[#allocation246_spill] sm:$0xff]  ;;  %v5141_v49 = vld [vmem:[%s18870_s11 + $0x58] sm:$0xff] }
 0x85e   : > { %7537 = vadd.xlane.f32.xlu0 %v7536_v62  ;;  %v17339_v61 = vpop.permute.xlu0 %6736  ;;  %v7479_v58 = vsel %vm19076_vm4, %v7431_v53, 0.0  ;;  %v11879_v50 = vpop.eup %11878  ;;  %vm19083_vm4 = vmmov %vm18967_vm0  ;;  %v6040_v29 = vadd.f32 %v6008_v20, %v5835_v33  ;;  %v7330_v53 = vadd.f32 %v16677_v55, %v5140_v51  ;;  %v6212_v20 = vmul.f32 %v16322_v0, %v19092_v46  ;;  %v19093_v51 = vld [vmem:[#allocation187_spill] sm:$0xff]  ;;  %v19102_v46 = vld [vmem:[#allocation221_spill] sm:$0xff] }
 0x85f   : > { %v7361_v60 = vadd.f32 %v7329_v39, %v7264_v44  ;;  %7480 = vadd.xlane.f32.xlu1 %v7479_v58  ;;  %v6650_v23 = vadd.f32 %v6618_v11, %v6445_v34  ;;  %v7542_v30 = vsel %vm19083_vm4, %v7452_v10, 0.0  ;;  %v7453_v17 = vmul.f32 %v17363_v16, %v11879_v50  ;;  %v19086_v39 = vld [vmem:[#allocation137_spill] sm:$0xff]  ;;  %v19089_v34 = vld [vmem:[#allocation150_spill] sm:$0xff]  ;;  %vm19091_vm4 = vmmov %vm18967_vm0 }
 0x860   : > { %v6414_v44 = vmul.f32 %v16368_v12, %v19086_v39  ;;  %v5394_v58 = vmul.f32 %v16296_v43, %v19087_v28  ;;  %v6243_v25 = vadd.f32 %v6211_v21, %v6040_v29  ;;  %v6619_v42 = vmul.f32 %v16440_v38, %v19089_v34  ;;  %v19090_v10 = vld [vmem:[#allocation258_spill] sm:$0xff]  ;;  %v19095_v21 = vld [vmem:[#allocation243_spill] sm:$0xff] }
 0x861   : > { %11882 = vtanh.f32 %v7361_v60  ;;  %v6855_v31 = vadd.f32 %v6823_v45, %v6650_v23  ;;  %v11881_v24 = vpop.eup %11880  ;;  %v7545_v54 = vsel %vm18967_vm0, %v7453_v17, 0.0  ;;  %v19088_v60 = vld [vmem:[#allocation94_spill] sm:$0xff]  ;;  %v6009_v50 = vmul.f32 %v16318_v18, %v19090_v10 }
 0x862   : > { %7540 = vadd.xlane.f32.xlu0 %v7539_v40  ;;  %v17354_v5 = vpop.permute.xlu0 %6933  ;;  %v7454_v59 = vmul.f32 %v17363_v16, %v11881_v24  ;;  %v5804_v14 = vmul.f32 %v16309_v27, %v19088_v60  ;;  %v5631_v40 = vadd.f32 %v5599_v35, %v5394_v58  ;;  %v6446_v3 = vadd.f32 %v6414_v44, %v6243_v25  ;;  %v19094_v24 = vld [vmem:[#allocation143_spill] sm:$0xff] }
 0x863   : > { %v7060_v41 = vadd.f32 %v7028_v4, %v6855_v31  ;;  %v5600_v17 = vmul.f32 %v16300_v52, %v19093_v51  ;;  %v6415_v33 = vmul.f32 %v16368_v12, %v19094_v24  ;;  %v7030_v10 = vmul.f32 %v16527_v19, %v17354_v5  ;;  %v5142_v51 = vld [vmem:[%s18870_s11 + $0x60] sm:$0xff] }
 0x864   : > { %v7548_v36 = vsel %vm19091_vm4, %v7454_v59, 0.0  ;;  %v5836_v48 = vadd.f32 %v5804_v14, %v5631_v40  ;;  %v6651_v31 = vadd.f32 %v6619_v42, %v6446_v3  ;;  %v19098_v59 = vld [vmem:[#allocation104_spill] sm:$0xff]  ;;  %v19099_v42 = vld [vmem:[#allocation133_spill] sm:$0xff]  ;;  %vm19104_vm4 = vmmov %vm18967_vm0 }
 0x865   : > { %v6010_v28 = vmul.f32 %v16318_v18, %v19098_v59  ;;  %v6623_v59 = vmul.f32 %v16440_v38, %v17296_v13 }
 0x866   : > { %7543 = vadd.xlane.f32.xlu0 %v7542_v30  ;;  %v7131_v57 = vpop.permute.xlu0 %7130  ;;  %v7029_v30 = vmul.f32 %v16527_v19, %v17321_v32  ;;  %v6041_v15 = vadd.f32 %v6009_v50, %v5836_v48 }
 0x867   : > { %v7233_v1 = vmul.f32 %v16567_v47, %v7131_v57  ;;  %v6856_v57 = vadd.f32 %v6824_v22, %v6651_v31  ;;  %v19103_v31 = vld [vmem:[#allocation102_spill] sm:$0xff] }
 0x868   : > { %v6244_v29 = vadd.f32 %v6212_v20, %v6041_v15  ;;  %v5397_v20 = vmul.f32 %v16296_v43, %v19102_v46 }
 0x869   : > { %v7265_v62 = vadd.f32 %v7233_v1, %v7060_v41  ;;  %v5395_v41 = vmul.f32 %v16296_v43, %v19095_v21  ;;  %v19096_v1 = vld [vmem:[#allocation99_spill] sm:$0xff]  ;;  %v7061_v39 = vadd.f32 %v7029_v30, %v6856_v57  ;;  %v5807_v30 = vmul.f32 %v16309_v27, %v19103_v31 }
 0x86a   : > { %7546 = vadd.xlane.f32.xlu0 %v7545_v54  ;;  %v17378_v9 = vpop.permute.xlu0 %6740  ;;  %v5805_v26 = vmul.f32 %v16309_v27, %v19096_v1  ;;  %v7331_v54 = vadd.f32 %v16677_v55, %v5141_v49  ;;  %v6447_v58 = vadd.f32 %v6415_v33, %v6244_v29  ;;  %v19105_v49 = vld [vmem:[#allocation131_spill] sm:$0xff]  ;;  %v6826_v27 = vmul.f32 %v16510_v2, %v17306_v63 }
 0x86b   : > { %v11883_v11 = vpop.eup %11882  ;;  %v7362_v45 = vadd.f32 %v7330_v53, %v7265_v62  ;;  %v19097_v53 = vld [vmem:[#allocation155_spill] sm:$0xff]  ;;  %v5632_v62 = vadd.f32 %v5600_v17, %v5395_v41  ;;  %v6012_v21 = vmul.f32 %v16318_v18, %v19105_v49  ;;  %v7332_v41 = vadd.f32 %v16677_v55, %v5142_v51 }
 0x86c   : > { %v7432_v7 = vmul.f32 %v17363_v16, %v11883_v11  ;;  %v6620_v32 = vmul.f32 %v16440_v38, %v19097_v53  ;;  %v6825_v11 = vmul.f32 %v16510_v2, %v17249_v6  ;;  %v19101_v6 = vld [vmem:[#allocation144_spill] sm:$0xff]  ;;  %v6418_v18 = vmul.f32 %v16368_v12, %v17123_v8 }
 0x86d   : > { %11884 = vtanh.f32 %v7362_v45  ;;  %v5837_v14 = vadd.f32 %v5805_v26, %v5632_v62  ;;  %v6213_v45 = vmul.f32 %v16322_v0, %v19099_v42  ;;  %v6827_v63 = vmul.f32 %v16510_v2, %v17339_v61  ;;  %v5144_v42 = vld [vmem:[%s18870_s11 + $0x70] sm:$0xff] }
 0x86e   : > { %7549 = vadd.xlane.f32.xlu0 %v7548_v36  ;;  %v6938_v23 = vpop.permute.xlu0 %6937  ;;  %v7482_v4 = vsel %vm18967_vm0, %v7432_v7, 0.0  ;;  %v6652_v40 = vadd.f32 %v6620_v32, %v6447_v58  ;;  %v19100_v7 = vld [vmem:[#allocation87_spill] sm:$0xff]  ;;  %v6828_v61 = vmul.f32 %v16510_v2, %v17378_v9  ;;  %v7334_v2 = vadd.f32 %v16677_v55, %v5144_v42  ;;  %v19113_v42 = vld [vmem:[#allocation117_spill] sm:$0xff] }
 0x86f   : > { %7483 = vadd.xlane.f32.xlu1 %v7482_v4  ;;  %v5602_v3 = vmul.f32 %v16300_v52, %v19100_v7  ;;  %v6042_v36 = vadd.f32 %v6010_v28, %v5837_v14  ;;  %v6416_v4 = vmul.f32 %v16368_v12, %v19101_v6  ;;  %v6621_v52 = vmul.f32 %v16440_v38, %v17142_v37 }
 0x870   : > { %v6857_v48 = vadd.f32 %v6825_v11, %v6652_v40  ;;  %v7031_v32 = vmul.f32 %v16527_v19, %v6938_v23  ;;  %v6859_v8 = vadd.f32 %v6827_v63, %v17239_v56 }
 0x871   : > { %v6245_v15 = vadd.f32 %v6213_v45, %v6042_v36  ;;  %v5634_v57 = vadd.f32 %v5602_v3, %v5397_v20  ;;  %v5145_v3 = vld [vmem:[%s18870_s11 + $0x78] sm:$0xff] }
 0x872   : > { %v7135_v35 = vpop.permute.xlu0 %7134  ;;  %v7062_v24 = vadd.f32 %v7030_v10, %v6857_v48 }
 0x873   : > { %v7234_v44 = vmul.f32 %v16567_v47, %v7135_v35  ;;  %v6448_v43 = vadd.f32 %v6416_v4, %v6245_v15  ;;  %v5839_v26 = vadd.f32 %v5807_v30, %v5634_v57  ;;  %v19106_v35 = vld [vmem:[#allocation151_spill] sm:$0xff] }
 0x874   : > { %v6215_v37 = vmul.f32 %v16322_v0, %v19106_v35  ;;  %v5143_v0 = vld [vmem:[%s18870_s11 + $0x68] sm:$0xff] }
 0x875   : > { %v7266_v60 = vadd.f32 %v7234_v44, %v7061_v39  ;;  %v6653_v53 = vadd.f32 %v6621_v52, %v6448_v43  ;;  %v6044_v44 = vadd.f32 %v6012_v21, %v5839_v26 }
 0x876   : > { %v6942_v25 = vpop.permute.xlu0 %6941 }
 0x877   : > { %v11885_v34 = vpop.eup %11884  ;;  %v7363_v50 = vadd.f32 %v7331_v54, %v7266_v60  ;;  %v6858_v62 = vadd.f32 %v6826_v27, %v6653_v53  ;;  %v6247_v54 = vadd.f32 %v6215_v37, %v6044_v44  ;;  %v7032_v23 = vmul.f32 %v16527_v19, %v6942_v25 }
 0x878   : > { %v7433_v22 = vmul.f32 %v17363_v16, %v11885_v34  ;;  %v7333_v34 = vadd.f32 %v16677_v55, %v5143_v0 }
 0x879   : > { %11886 = vtanh.f32 %v7363_v50  ;;  %v7063_v11 = vadd.f32 %v7031_v32, %v6858_v62  ;;  %v6450_v14 = vadd.f32 %v6418_v18, %v6247_v54  ;;  %v7064_v25 = vadd.f32 %v7032_v23, %v6859_v8  ;;  %v19111_v23 = vld [vmem:[#allocation115_spill] sm:$0xff]  ;;  %v19112_v8 = vld [vmem:[#allocation116_spill] sm:$0xff] }
 0x87a   : > { %v7139_v5 = vpop.permute.xlu0 %7138  ;;  %v7485_v17 = vsel %vm19104_vm4, %v7433_v22, 0.0  ;;  %vm19107_vm4 = vmmov %vm18967_vm0 }
 0x87b   : > { %v7235_v33 = vmul.f32 %v16567_v47, %v7139_v5  ;;  %7486 = vadd.xlane.f32.xlu1 %v7485_v17  ;;  %v6655_v13 = vadd.f32 %v6623_v59, %v6450_v14 }
 0x87d   : > { %v7267_v1 = vadd.f32 %v7235_v33, %v7062_v24  ;;  %v6860_v56 = vadd.f32 %v6828_v61, %v6655_v13 }
 0x87e   : > { %v6946_v29 = vpop.permute.xlu0 %6945 }
 0x87f   : > { %v7364_v39 = vadd.f32 %v7332_v41, %v7267_v1  ;;  %v7033_v10 = vmul.f32 %v16527_v19, %v6946_v29  ;;  %v7335_v19 = vadd.f32 %v16677_v55, %v5145_v3 }
 0x881   : > { %11888 = vtanh.f32 %v7364_v39  ;;  %v7065_v6 = vadd.f32 %v7033_v10, %v6860_v56  ;;  %v19114_v56 = vld [vmem:[#allocation118_spill] sm:$0xff] }
 0x882   : > { %v7143_v28 = vpop.permute.xlu0 %7142 }
 0x883   : > { %v11887_v58 = vpop.eup %11886  ;;  %v7236_v60 = vmul.f32 %v16567_v47, %v7143_v28  ;;  %v19110_v28 = vld [vmem:[#allocation114_spill] sm:$0xff] }
 0x884   : > { %v7434_v12 = vmul.f32 %v17363_v16, %v11887_v58 }
 0x885   : > { %v7268_v38 = vadd.f32 %v7236_v60, %v7063_v11 }
 0x886   : > { %v7147_v45 = vpop.permute.xlu0 %7146  ;;  %v7488_v40 = vsel %vm18967_vm0, %v7434_v12, 0.0 }
 0x887   : > { %v7365_v50 = vadd.f32 %v7333_v34, %v7268_v38  ;;  %v7237_v7 = vmul.f32 %v16567_v47, %v7147_v45  ;;  %7489 = vadd.xlane.f32.xlu1 %v7488_v40 }
 0x889   : > { %11890 = vtanh.f32 %v7365_v50  ;;  %v7269_v9 = vadd.f32 %v7237_v7, %v7064_v25 }
 0x88a   : > { %v7151_v22 = vpop.permute.xlu0 %7150 }
 0x88b   : > { %v11889_v36 = vpop.eup %11888  ;;  %v7366_v4 = vadd.f32 %v7334_v2, %v7269_v9  ;;  %v7238_v48 = vmul.f32 %v16567_v47, %v7151_v22 }
 0x88c   : > { %v7435_v46 = vmul.f32 %v17363_v16, %v11889_v36  ;;  %v19115_v36 = vld [vmem:[#allocation119_spill] sm:$0xff] }
 0x88d   : > { %11892 = vtanh.f32 %v7366_v4  ;;  %v7270_v20 = vadd.f32 %v7238_v48, %v7065_v6 }
 0x88e   : > { %v7491_v31 = vsel %vm19107_vm4, %v7435_v46, 0.0  ;;  %v19116_v46 = vld [vmem:[#allocation120_spill] sm:$0xff]  ;;  %vm19136_vm4 = vcmask 1041408  }
 0x88f   : > { %v7367_v30 = vadd.f32 %v7335_v19, %v7270_v20  ;;  %7492 = vadd.xlane.f32.xlu1 %v7491_v31  ;;  %v7460_v26 = vpop.xlane.xlu1 %7459 }
 0x890   : > { %v7592_v60 = vrot.slane %v7460_v26, %v19111_v23  ;;  %v19120_v26 = vld [vmem:[#allocation125_spill] sm:$0xff] }
 0x891   : > { %11894 = vtanh.f32 %v7367_v30 }
 0x893   : > { %v11891_v51 = vpop.eup %11890  ;;  %v7463_v37 = vpop.xlane.xlu1 %7462 }
 0x894   : > { %v7436_v5 = vmul.f32 %v17363_v16, %v11891_v51  ;;  %v7597_v61 = vrot.slane %v7463_v37, %v19112_v8 }
 0x896   : > { %v7494_v17 = vsel %vm18967_vm0, %v7436_v5, 0.0  ;;  %v19117_v5 = vld [vmem:[#allocation112_spill] sm:$0xff] }
 0x897   : > { %v11893_v15 = vpop.eup %11892  ;;  %7495 = vadd.xlane.f32.xlu1 %v7494_v17  ;;  %v7466_v53 = vpop.xlane.xlu1 %7465 }
 0x898   : > { %v7437_v47 = vmul.f32 %v17363_v16, %v11893_v15  ;;  %v7602_v45 = vrot.slane %v7466_v53, %v19113_v42 }
 0x89a   : > { %v7497_v52 = vsel %vm19108_vm6, %v7437_v47, 0.0 }
 0x89b   : > { %v11895_v24 = vpop.eup %11894  ;;  %7498 = vadd.xlane.f32.xlu1 %v7497_v52  ;;  %v19118_v52 = vld [vmem:[#allocation121_spill] sm:$0xff] }
 0x89c   : > { %v7438_v55 = vmul.f32 %v17363_v16, %v11895_v24  ;;  %v7469_v39 = vpop.xlane.xlu1 %7468 }
 0x89d   : > { %v7607_v2 = vrot.slane %v7469_v39, %v19114_v56 }
 0x89e   : > { %v7500_v33 = vsel %vm19109_vm2, %v7438_v55, 0.0  ;;  %vm19122_vm2 = vcmask 589312  }
 0x89f   : > { %7501 = vadd.xlane.f32.xlu1 %v7500_v33  ;;  %vm19123_vm6 = vmmov %vm19122_vm2 }
 0x8b4   : > { %v7472_v44 = vpop.xlane.xlu1 %7471 }
 0x8b5   : > { %v7612_v30 = vrot.slane %v7472_v44, %v19115_v36 }
 0x8bb   : > { %v7457_v57 = vpop.xlane.xlu0 %7456 }
 0x8bc   : > { %v7588_v58 = vrot.slane %v7457_v57, %v19110_v28 }
 0x8be   : > { %v7593_v12 = vsel %vm4739_vm8, %v7592_v60, %v7588_v58 }
 0x8bf   : > { %v7505_v49 = vpop.xlane.xlu0 %7504  ;;  %v7598_v34 = vsel %vm4746_vm9, %v7597_v61, %v7593_v12 }
 0x8c0   : > { %v7603_v10 = vsel %vm4753_vm10, %v7602_v45, %v7598_v34  ;;  %v7667_v50 = vrot.slane %v7505_v49, %v19110_v28 }
 0x8c1   : > { %v7608_v48 = vsel %vm4760_vm11, %v7607_v2, %v7603_v10 }
 0x8c2   : > { %v7613_v57 = vsel %vm4767_vm12, %v7612_v30, %v7608_v48  ;;  %v5115_v30 = vld [vmem:[%s19134_s16 + $0x88] sm:$0xff] }
 0x8c3   : > { %v7508_v21 = vpop.xlane.xlu0 %7507 }
 0x8c4   : > { %v7671_v40 = vrot.slane %v7508_v21, %v19111_v23  ;;  %v19119_v21 = vld [vmem:[#allocation122_spill] sm:$0xff] }
 0x8c5   : > { %v19126_v23 = vld [vmem:[#allocation126_spill] sm:$0xff] }
 0x8c6   : > { %v7672_v22 = vsel %vm4739_vm8, %v7671_v40, %v7667_v50  ;;  %vm19125_vm8 = vcmask 654912  }
 0x8c7   : > { %v7511_v43 = vpop.xlane.xlu0 %7510 }
 0x8c8   : > { %v7475_v16 = vpop.xlane.xlu1 %7474  ;;  %v7676_v25 = vrot.slane %v7511_v43, %v19112_v8  ;;  %v19129_v8 = vld [vmem:[#allocation127_spill] sm:$0xff] }
 0x8c9   : > { %v7617_v19 = vrot.slane %v7475_v16, %v19116_v46 }
 0x8ca   : > { %v7677_v4 = vsel %vm4746_vm9, %v7676_v25, %v7672_v22  ;;  %vm19127_vm9 = vmmov %vm19125_vm8  ;;  %v7551_v25 = vld [vmem:[#allocation8] sm:$0x3] }
 0x8cb   : > { %v7514_v27 = vpop.xlane.xlu0 %7513 }
 0x8cc   : > { %v7681_v7 = vrot.slane %v7514_v27, %v19113_v42  ;;  %v19132_v42 = vld [vmem:[#allocation128_spill] sm:$0xff] }
 0x8ce   : > { %v7682_v51 = vsel %vm4753_vm10, %v7681_v7, %v7677_v4  ;;  %vm19128_vm10 = vcmask 720512  }
 0x8cf   : > { %v7517_v41 = vpop.xlane.xlu0 %7516 }
 0x8d0   : > { %v7686_v9 = vrot.slane %v7517_v41, %v19114_v56  ;;  %v7618_v41 = vsel %vm4774_vm13, %v7617_v19, %v7613_v57  ;;  %v5099_v19 = vld [vmem:[%s19134_s16 + $0x8] sm:$0xff] }
 0x8d1   : > { %v5103_v57 = vld [vmem:[%s19134_s16 + $0x28] sm:$0xff] }
 0x8d2   : > { %v7687_v47 = vsel %vm4760_vm11, %v7686_v9, %v7682_v51  ;;  %vm19130_vm11 = vmmov %vm19128_vm10  ;;  %v5100_v51 = vld [vmem:[%s19134_s16 + $0x10] sm:$0xff] }
 0x8d3   : > { %v7520_v1 = vpop.xlane.xlu0 %7519 }
 0x8d4   : > { %v7691_v6 = vrot.slane %v7520_v1, %v19115_v36 }
 0x8d6   : > { %v7692_v49 = vsel %vm4767_vm12, %v7691_v6, %v7687_v47  ;;  %vm19131_vm12 = vcmask 786112   ;;  %v5117_v47 = vld [vmem:[%s19134_s16 + $0x98] sm:$0xff] }
 0x8d7   : > { %v7523_v35 = vpop.xlane.xlu0 %7522 }
 0x8d8   : > { %v7696_v20 = vrot.slane %v7523_v35, %v19116_v46  ;;  %v5098_v46 = vld [vmem:[%s19134_s16] sm:$0xff] }
 0x8da   : > { %v7697_v1 = vsel %vm4774_vm13, %v7696_v20, %v7692_v49  ;;  %vm19133_vm13 = vmmov %vm19131_vm12  ;;  %v5114_v20 = vld [vmem:[%s19134_s16 + $0x80] sm:$0xff] }
 0x8db   : > { %v7526_v29 = vpop.xlane.xlu0 %7525  ;;  %v5118_v49 = vld [vmem:[%s19134_s16 + $0xa0] sm:$0xff] }
 0x8dc   : > { %v7478_v63 = vpop.xlane.xlu1 %7477  ;;  %v7701_v17 = vrot.slane %v7526_v29, %v19117_v5 }
 0x8dd   : > { %v7622_v15 = vrot.slane %v7478_v63, %v19117_v5  ;;  %v19124_v63 = vld [vmem:[#allocation124_spill] sm:$0xff]  ;;  %v5101_v5 = vld [vmem:[%s19134_s16 + $0x18] sm:$0xff] }
 0x8de   : > { %v7702_v29 = vsel %vm4781_vm14, %v7701_v17, %v7697_v1  ;;  %v11319_v17 = vpack.c.bf16 %v5115_v30, %v5114_v20  ;;  %v5105_v1 = vld [vmem:[%s19134_s16 + $0x38] sm:$0xff]  ;;  %v7927_v30 = vld [vmem:[%s19139_s4 + $0x10] sm:$0xff] }
 0x8df   : > { %v7529_v32 = vpop.xlane.xlu0 %7528  ;;  %v7623_v53 = vsel %vm4781_vm14, %v7622_v15, %v7618_v41  ;;  %vm7552_vm14 = vcmp.gt.f32.partialorder %v7551_v25, 0.5  ;;  %v5116_v15 = vld [vmem:[%s19134_s16 + $0x90] sm:$0xff] }
 0x8e0   : > { %v7706_v24 = vrot.slane %v7529_v32, %v19118_v52  ;;  %v19121_v32 = vld [vmem:[#allocation123_spill] sm:$0xff]  ;;  %11320 = vmatpush3.bf16.msra.mxu1 %v11319_v17  ;;  %v5104_v41 = vld [vmem:[%s19134_s16 + $0x30] sm:$0xff] }
 0x8e1   : > { %v5128_v25 = vld [vmem:[%s19134_s16 + $0xf0] sm:$0xff] }
 0x8e3   : > { %v7532_v18 = vpop.xlane.xlu0 %7531 }
 0x8e4   : > { %v7711_v43 = vrot.slane %v7532_v18, %v19119_v21  ;;  %v7707_v18 = vsel %vm19122_vm2, %v7706_v24, %v7702_v29  ;;  %v19137_v24 = vmov 0.0|0.0  }
 0x8e5   : > { %11321 = vmatprep.subr.bf16.mxu1 %v19137_v24 }
 0x8e6   : > { %v7712_v58 = vsel %vm19125_vm8, %v7711_v43, %v7707_v18 }
 0x8e7   : > { %v7535_v62 = vpop.xlane.xlu0 %7534 }
 0x8e8   : > { %v7716_v35 = vrot.slane %v7535_v62, %v19120_v26 }
 0x8ea   : > { %v7717_v12 = vsel %vm19128_vm10, %v7716_v35, %v7712_v58  ;;  %v5121_v35 = vld [vmem:[%s19134_s16 + $0xb8] sm:$0xff]  ;;  %v5108_v58 = vld [vmem:[%s19134_s16 + $0x50] sm:$0xff] }
 0x8eb   : > { %v17468_v54 = vpop.xlane.xlu0 %7537 }
 0x8ec   : > { %v7481_v59 = vpop.xlane.xlu1 %7480  ;;  %v7721_v39 = vrot.slane %v17468_v54, %v19121_v32 }
 0x8ed   : > { %v7627_v55 = vrot.slane %v7481_v59, %v19118_v52  ;;  %v11298_v52 = vpack.c.bf16 %v5101_v5, %v5100_v51  ;;  %v7928_v51 = vld [vmem:[%s19139_s4 + $0x18] sm:$0xff] }
 0x8ef   : > { %v17471_v11 = vpop.xlane.xlu0 %7540  ;;  %v7628_v16 = vsel %vm19123_vm6, %v7627_v55, %v7623_v53  ;;  %v11322_v55 = vpack.c.bf16 %v5117_v47, %v5116_v15  ;;  %v10016_v15 = vld [vmem:[%s19139_s4 + $0x30] sm:$0xff]  ;;  %v10017_v47 = vld [vmem:[%s19139_s4 + $0x38] sm:$0xff] }
 0x8f0   : > { %v7726_v59 = vrot.slane %v17471_v11, %v19124_v63 }
 0x8f1   : > { %11323 = vmatpush3.bf16.msra.mxu1 %v11322_v55  ;;  %v19143_v55 = vmov 0.0  }
 0x8f2   : > { %11324 = vmatprep.subr.bf16.mxu1 %v19137_v24 }
 0x8f3   : > { %v7544_v38 = vpop.xlane.xlu0 %7543 }
 0x8f4   : > { %v7731_v60 = vrot.slane %v7544_v38, %v19126_v23 }
 0x8f7   : > { %v7547_v31 = vpop.xlane.xlu0 %7546 }
 0x8f8   : > { %v7736_v61 = vrot.slane %v7547_v31, %v19129_v8  ;;  %v11295_v31 = vpack.c.bf16 %v5099_v19, %v5098_v46  ;;  %v10015_v46 = vld [vmem:[%s19139_s4 + $0x28] sm:$0xff] }
 0x8fa   : > { %11296 = vmatpush3.bf16.msra.mxu0 %v11295_v31 }
 0x8fb   : > { %11297 = vmatprep.subr.bf16.mxu0 %v19137_v24 }
 0x8fc   : > { %v7484_v0 = vpop.xlane.xlu1 %7483 }
 0x8fd   : > { %v7632_v27 = vrot.slane %v7484_v0, %v19119_v21  ;;  %v7550_v0 = vpop.xlane.xlu0 %7549  ;;  %v5119_v21 = vld [vmem:[%s19134_s16 + $0xa8] sm:$0xff] }
 0x8fe   : > { %v7741_v45 = vrot.slane %v7550_v0, %v19132_v42  ;;  %11299 = vmatpush3.bf16.msra.mxu0 %v11298_v52  ;;  %v5122_v0 = vld [vmem:[%s19134_s16 + $0xc0] sm:$0xff]  ;;  %v11346_v52 = vpack.c.bf16 %v7928_v51, %v7927_v30  ;;  %v10042_v30 = vld [vmem:[%s19139_s4 + $0x48] sm:$0xff] }
 0x8ff   : > { %11300 = vmatprep.subr.bf16.mxu0 %v19137_v24  ;;  %v10067_v51 = vld [vmem:[%s19139_s4 + $0x60] sm:$0xff] }
 0x908   : > { %v7487_v14 = vpop.xlane.xlu1 %7486 }
 0x909   : > { %v7637_v37 = vrot.slane %v7487_v14, %v19120_v26  ;;  %v7633_v14 = vsel %vm19127_vm9, %v7632_v27, %v7628_v16  ;;  %v11325_v27 = vpack.c.bf16 %v5119_v21, %v5118_v49  ;;  %v5120_v26 = vld [vmem:[%s19134_s16 + $0xb0] sm:$0xff]  ;;  %v5106_v16 = vld [vmem:[%s19134_s16 + $0x40] sm:$0xff]  ;;  %v11376_v49 = vpack.c.bf16 %v10017_v47, %v10016_v15 }
 0x90a   : > { %v11328_v29 = vpack.c.bf16 %v5121_v35, %v5120_v26  ;;  %v10020_v21 = vld [vmem:[%s19142_s18 + $0x20] sm:$0xff]  ;;  %v19145_v35 = vld [vmem:[#allocation48_spill] sm:$0xff] }
 0x90b   : > { %v7638_v34 = vsel %vm19130_vm11, %v7637_v37, %v7633_v14  ;;  %v11304_v37 = vpack.c.bf16 %v5105_v1, %v5104_v41  ;;  %11326 = vmatpush3.bf16.msra.mxu1 %v11325_v27  ;;  %v8011_v41 = vld [vmem:[%s19142_s18 + $0x10] sm:$0xff]  ;;  %v8012_v1 = vld [vmem:[%s19142_s18 + $0x18] sm:$0xff] }
 0x90c   : > { %11327 = vmatprep.subr.bf16.mxu1 %v19137_v24 }
 0x90f   : > { %11329 = vmatpush3.bf16.msra.mxu1 %v11328_v29  ;;  %v10023_v29 = vld [vmem:[%s19142_s18 + $0x38] sm:$0xff] }
 0x910   : > { %11330 = vmatprep.subr.bf16.mxu1 %v19137_v24 }
 0x914   : > { %v7490_v13 = vpop.xlane.xlu1 %7489 }
 0x915   : > { %v7642_v44 = vrot.slane %v7490_v13, %v19121_v32  ;;  %v7722_v13 = vsel %vm19131_vm12, %v7721_v39, %v7717_v12  ;;  %v5110_v12 = vld [vmem:[%s19134_s16 + $0x60] sm:$0xff] }
 0x916   : > { %v7727_v38 = vsel %vm4816_vm1, %v7726_v59, %v7722_v13 }
 0x917   : > { %v7643_v40 = vsel %vm19133_vm13, %v7642_v44, %v7638_v34  ;;  %v7732_v7 = vsel %vm4823_vm5, %v7731_v60, %v7727_v38  ;;  %v5124_v60 = vld [vmem:[%s19134_s16 + $0xd0] sm:$0xff]  ;;  %v5126_v34 = vld [vmem:[%s19134_s16 + $0xe0] sm:$0xff]  ;;  %v5129_v38 = vld [vmem:[%s19134_s16 + $0xf8] sm:$0xff] }
 0x918   : > { %v7737_v9 = vsel %vm4830_vm15, %v7736_v61, %v7732_v7 }
 0x919   : > { %v7742_v22 = vsel %vm4837_vm7, %v7741_v45, %v7737_v9  ;;  %v5113_v45 = vld [vmem:[%s19134_s16 + $0x78] sm:$0xff]  ;;  %v7926_v9 = vld [vmem:[%s19139_s4 + $0x8] sm:$0xff] }
 0x91c   : > { %v7493_v3 = vpop.xlane.xlu1 %7492 }
 0x91d   : > { %v7647_v62 = vrot.slane %v7493_v3, %v19124_v63  ;;  %v5107_v63 = vld [vmem:[%s19134_s16 + $0x48] sm:$0xff] }
 0x91e   : > { %v11307_v59 = vpack.c.bf16 %v5107_v63, %v5106_v16  ;;  %v10026_v16 = vld [vmem:[%s19144_s22 + $0x28] sm:$0xff] }
 0x91f   : > { %v7648_v10 = vsel %vm4816_vm1, %v7647_v62, %v7643_v40  ;;  %vm19135_vm1 = vcmask 1041409   ;;  %v5123_v62 = vld [vmem:[%s19134_s16 + $0xc8] sm:$0xff] }
 0x920   : > { %vm19159_vm11 = vmmov %vm19135_vm1 }
 0x924   : > { %v7496_v33 = vpop.xlane.xlu1 %7495 }
 0x925   : > { %v7652_v54 = vrot.slane %v7496_v33, %v19126_v23  ;;  %v5102_v33 = vld [vmem:[%s19134_s16 + $0x20] sm:$0xff]  ;;  %v5109_v23 = vld [vmem:[%s19134_s16 + $0x58] sm:$0xff] }
 0x926   : > { %v11301_v43 = vpack.c.bf16 %v5103_v57, %v5102_v33  ;;  %v11310_v14 = vpack.c.bf16 %v5109_v23, %v5108_v58  ;;  %v8009_v33 = vld [vmem:[%s19142_s18] sm:$0xff]  ;;  %v8010_v57 = vld [vmem:[%s19142_s18 + $0x8] sm:$0xff]  ;;  %v10028_v58 = vld [vmem:[%s19144_s22 + $0x38] sm:$0xff] }
 0x927   : > { %v7653_v56 = vsel %vm4823_vm5, %v7652_v54, %v7648_v10  ;;  %vm19138_vm5 = vmmov %vm19136_vm4  ;;  %v5125_v54 = vld [vmem:[%s19134_s16 + $0xd8] sm:$0xff]  ;;  %v11349_v27 = vpack.c.bf16 %v8010_v57, %v8009_v33  ;;  %v10043_v57 = vld [vmem:[%s19139_s4 + $0x50] sm:$0xff] }
 0x928   : > { %v7499_v28 = vpop.xlane.xlu1 %7498  ;;  %11302 = vmatpush3.bf16.msra.mxu0 %v11301_v43  ;;  %v11334_v61 = vpack.c.bf16 %v5125_v54, %v5124_v60  ;;  %v10021_v43 = vld [vmem:[%s19142_s18 + $0x28] sm:$0xff]  ;;  %v8165_v60 = vld [vmem:[%s19148_s20] sm:$0xff] }
 0x929   : > { %v7657_v11 = vrot.slane %v7499_v28, %v19129_v8  ;;  %11303 = vmatprep.subr.bf16.mxu0 %v19137_v24  ;;  %v11331_v28 = vpack.c.bf16 %v5123_v62, %v5122_v0  ;;  %v5111_v8 = vld [vmem:[%s19134_s16 + $0x68] sm:$0xff]  ;;  %v11379_v26 = vpack.c.bf16 %v10021_v43, %v10020_v21  ;;  %v8087_v0 = vld [vmem:[%s19144_s22 + $0x18] sm:$0xff]  ;;  %v10069_v21 = vld [vmem:[%s19139_s4 + $0x70] sm:$0xff] }
 0x92a   : > { %v11313_v13 = vpack.c.bf16 %v5111_v8, %v5110_v12  ;;  %v10030_v12 = vld [vmem:[%s19148_s20 + $0x20] sm:$0xff]  ;;  %v10031_v8 = vld [vmem:[%s19148_s20 + $0x28] sm:$0xff]  ;;  %v10070_v43 = vld [vmem:[%s19139_s4 + $0x78] sm:$0xff] }
 0x92b   : > { %v7658_v3 = vsel %vm4830_vm15, %v7657_v11, %v7653_v56  ;;  %11332 = vmatpush3.bf16.msra.mxu1 %v11331_v28  ;;  %v5127_v11 = vld [vmem:[%s19134_s16 + $0xe8] sm:$0xff]  ;;  %v10027_v28 = vld [vmem:[%s19144_s22 + $0x30] sm:$0xff] }
 0x92c   : > { %v7502_v50 = vpop.xlane.xlu1 %7501  ;;  %11305 = vmatpush3.bf16.msra.mxu0 %v11304_v37  ;;  %11333 = vmatprep.subr.bf16.mxu1 %v19137_v24  ;;  %v11337_v40 = vpack.c.bf16 %v5127_v11, %v5126_v34  ;;  %v10022_v37 = vld [vmem:[%s19142_s18 + $0x30] sm:$0xff]  ;;  %v11388_v54 = vpack.c.bf16 %v10028_v58, %v10027_v28  ;;  %v8168_v11 = vld [vmem:[%s19148_s20 + $0x18] sm:$0xff]  ;;  %v10052_v58 = vld [vmem:[%s19144_s22 + $0x40] sm:$0xff] }
 0x92d   : > { %v7662_v2 = vrot.slane %v7502_v50, %v19132_v42  ;;  %11306 = vmatprep.subr.bf16.mxu0 %v19137_v24  ;;  %v5112_v42 = vld [vmem:[%s19134_s16 + $0x70] sm:$0xff]  ;;  %v11340_v50 = vpack.c.bf16 %v5129_v38, %v5128_v25  ;;  %v10033_v25 = vld [vmem:[%s19148_s20 + $0x38] sm:$0xff] }
 0x92e   : > { %v11316_v10 = vpack.c.bf16 %v5113_v45, %v5112_v42  ;;  %v8167_v34 = vld [vmem:[%s19148_s20 + $0x10] sm:$0xff]  ;;  %v11391_v42 = vpack.c.bf16 %v10031_v8, %v10030_v12  ;;  %v19153_v45 = vld [vmem:[#allocation224_spill] sm:$0xff]  ;;  %v10055_v8 = vld [vmem:[%s19144_s22 + $0x58] sm:$0xff] }
 0x92f   : > { %v7663_v36 = vsel %vm4837_vm7, %v7662_v2, %v7658_v3  ;;  %11335 = vmatpush3.bf16.msra.mxu1 %v11334_v61  ;;  %v7925_v2 = vld [vmem:[%s19139_s4] sm:$0xff]  ;;  %vm19146_vm7 = vcmask 261120   ;;  %v11364_v38 = vpack.c.bf16 %v8168_v11, %v8167_v34  ;;  %v19156_v11 = vld [vmem:[#allocation253_spill] sm:$0xff]  ;;  %v10054_v12 = vld [vmem:[%s19144_s22 + $0x50] sm:$0xff] }
 0x930   : > { %v7743_v6 = vsel %vm19135_vm1, %v7742_v22, %v7663_v36  ;;  %11308 = vmatpush3.bf16.msra.mxu0 %v11307_v59  ;;  %11336 = vmatprep.subr.bf16.mxu1 %v19137_v24  ;;  %v19140_v22 = vld [vmem:[#allocation44_spill] sm:$0xff]  ;;  %v11343_v19 = vpack.c.bf16 %v7926_v9, %v7925_v2  ;;  %vm19147_vm15 = vmmov %vm19146_vm7  ;;  %v10036_v2 = vld [vmem:[%s19152_s0 + $0x28] sm:$0xff] }
 0x931   : > { %v7745_v4 = vsel %vm7552_vm14, %v7743_v6, -1e+09  ;;  %11309 = vmatprep.subr.bf16.mxu0 %v19137_v24  ;;  %v19141_v6 = vld [vmem:[#allocation81_spill] sm:$0xff]  ;;  %vm19150_vm0 = vmmov %vm19146_vm7  ;;  %v10081_v34 = vld [vmem:[%s19144_s22 + $0x78] sm:$0xff] }
 0x932   : > { %v7746_v48 = vsel %vm19136_vm4, %v7745_v4, -inf  ;;  %v8086_v59 = vld [vmem:[%s19144_s22 + $0x10] sm:$0xff]  ;;  %vm19151_vm2 = vmmov %vm19150_vm0 }
 0x933   : > { %7747 = vmax.xlane.f32.xlu1 %v7746_v48  ;;  %11338 = vmatpush3.bf16.msra.mxu1 %v11337_v40  ;;  %v10014_v48 = vld [vmem:[%s19139_s4 + $0x20] sm:$0xff]  ;;  %v11358_v23 = vpack.c.bf16 %v8087_v0, %v8086_v59  ;;  %vm19154_vm6 = vmmov %vm19150_vm0  ;;  %v10032_v40 = vld [vmem:[%s19148_s20 + $0x30] sm:$0xff] }
 0x934   : > { %11311 = vmatpush3.bf16.msra.mxu0 %v11310_v14  ;;  %11339 = vmatprep.subr.bf16.mxu1 %v19137_v24  ;;  %v11373_v5 = vpack.c.bf16 %v10015_v46, %v10014_v48  ;;  %v8166_v14 = vld [vmem:[%s19148_s20 + $0x8] sm:$0xff]  ;;  %vm19155_vm8 = vmmov %vm19150_vm0  ;;  %v10037_v48 = vld [vmem:[%s19152_s0 + $0x30] sm:$0xff] }
 0x935   : > { %11312 = vmatprep.subr.bf16.mxu0 %v19137_v24  ;;  %v11361_v61 = vpack.c.bf16 %v8166_v14, %v8165_v60  ;;  %vm19157_vm9 = vmmov %vm19150_vm0  ;;  %v10076_v59 = vld [vmem:[%s19142_s18 + $0x78] sm:$0xff]  ;;  %v10078_v60 = vld [vmem:[%s19144_s22 + $0x60] sm:$0xff] }
 0x936   : > { %vm19158_vm10 = vmmov %vm19150_vm0  ;;  %v10079_v14 = vld [vmem:[%s19144_s22 + $0x68] sm:$0xff] }
 0x937   : > { %11341 = vmatpush3.bf16.msra.mxu1 %v11340_v50  ;;  %v8241_v50 = vld [vmem:[%s19152_s0 + $0x8] sm:$0xff]  ;;  %vm19160_vm12 = vmmov %vm19150_vm0 }
 0x938   : > { %11314 = vmatpush3.bf16.msra.mxu0 %v11313_v13  ;;  %11372 = vmatprep.subr.bf16.mxu1 %v19137_v24  ;;  %v19149_v13 = vld [vmem:[#allocation64_spill] sm:$0xff]  ;;  %vm19161_vm13 = vmmov %vm19150_vm0 }
 0x939   : > { %11315 = vmatprep.subr.bf16.mxu0 %v19137_v24  ;;  %vm19162_vm14 = vmmov %vm19150_vm0 }
 0x93a   : > { %vm19163_vm1 = vmmov %vm19150_vm0 }
 0x93b   : > { %vm19164_vm4 = vmmov %vm19150_vm0 }
 0x93c   : > { %11317 = vmatpush3.bf16.msra.mxu0 %v11316_v10  ;;  %v8240_v10 = vld [vmem:[%s19152_s0] sm:$0xff] }
 0x93d   : > { %11342 = vmatprep.subr.bf16.mxu0 %v19137_v24  ;;  %v11367_v9 = vpack.c.bf16 %v8241_v50, %v8240_v10  ;;  %v10083_v10 = vld [vmem:[%s19148_s20 + $0x60] sm:$0xff]  ;;  %v10084_v50 = vld [vmem:[%s19148_s20 + $0x68] sm:$0xff] }
 0x9c0   : > { %v7748_v53 = vpop.xlane.xlu1 %7747 }
 0x9c1   : > { %v7749_v32 = vsub.f32 %v7745_v4, %v7748_v53  ;;  %v11352_v53 = vpack.c.bf16 %v8012_v1, %v8011_v41 }
 0x9c3   : > { %v7750_v39 = vmul.f32 1.442695, %v7749_v32  ;;  %v8084_v32 = vld [vmem:[%s19144_s22] sm:$0xff] }
 0x9c5   : > { %11896 = vpow2.f32 %v7750_v39  ;;  %v8085_v39 = vld [vmem:[%s19144_s22 + $0x8] sm:$0xff] }
 0x9c6   : > { %v11355_v63 = vpack.c.bf16 %v8085_v39, %v8084_v32  ;;  %v10074_v32 = vld [vmem:[%s19142_s18 + $0x68] sm:$0xff] }
 0x9cf   : > { %v11897_v44 = vpop.eup %11896 }
 0x9d0   : > { %v7752_v18 = vsel %vm19138_vm5, %v11897_v44, 0.0  ;;  %vm19165_vm5 = vmmov %vm19150_vm0 }
 0x9d1   : > { %7753 = vadd.xlane.f32.xlu0 %v7752_v18  ;;  %v10025_v18 = vld [vmem:[%s19144_s22 + $0x20] sm:$0xff] }
 0x9d2   : > { %v11385_v62 = vpack.c.bf16 %v10026_v16, %v10025_v18  ;;  %v10049_v18 = vld [vmem:[%s19142_s18 + $0x50] sm:$0xff]  ;;  %v10050_v16 = vld [vmem:[%s19142_s18 + $0x58] sm:$0xff] }
 0xa5e   : > { %v7754_v7 = vpop.xlane.xlu0 %7753 }
 0xa5f   : > { %11898 = vrcp.f32 %v7754_v7  ;;  %v11394_v7 = vpack.c.bf16 %v10033_v25, %v10032_v40  ;;  %v10057_v25 = vld [vmem:[%s19148_s20 + $0x40] sm:$0xff] }
 0xa69   : > { %v11899_v56 = vpop.eup %11898 }
 0xa6a   : > { %v17587_v3 = vmul.f32 %v11899_v56, %v11897_v44   ;;  %v11382_v44 = vpack.c.bf16 %v10023_v29, %v10022_v37  ;;  %v10035_v56 = vld [vmem:[%s19152_s0 + $0x20] sm:$0xff]  ;;  %v10048_v29 = vld [vmem:[%s19142_s18 + $0x48] sm:$0xff] }
 0xa6b   : > { %v10047_v37 = vld [vmem:[%s19142_s18 + $0x40] sm:$0xff] }
 0xa6c   : > { %v17593_v36 = vadd.f32 %v19140_v22, %v17587_v3   ;;  %9749 = vst [vmem:[%s9748_s3] sm:$0x3] %v17587_v3  ;;  %v7764_v4 = vrot.slane %v17587_v3, %v19141_v6  ;;  %v11397_v22 = vpack.c.bf16 %v10036_v2, %v10035_v56  ;;  %v11409_v39 = vpack.c.bf16 %v10048_v29, %v10047_v37  ;;  %v10059_v2 = vld [vmem:[%s19148_s20 + $0x50] sm:$0xff]  ;;  %s19170_s3 = sld [smem:[#allocation40_spill]] }
 0xa6d   : > { %v11451_v56 = vpack.c.bf16 %v10084_v50, %v10083_v10 }
 0xa6e   : > { %v7772_v20 = vrot.slane %v7764_v4, %v19141_v6  ;;  %v7765_v31 = vcombine.high %v7764_v4, %v7764_v4  ;;  %v8243_v4 = vld [vmem:[%s19152_s0 + $0x18] sm:$0xff] }
 0xa70   : > { %10800 = vmatmul.mubr.f32.vlgmr.msra.gmra.mrb[12].mxu0 %v7772_v20  ;;  %v7779_v17 = vrot.slane %v7765_v31, %v19141_v6  ;;  %v8242_v6 = vld [vmem:[%s19152_s0 + $0x10] sm:$0xff]  ;;  %v10041_v31 = vld [vmem:[%s19139_s4 + $0x40] sm:$0xff] }
 0xa71   : > { %11344 = vmatpush3.bf16.msra.mxu0 %v11343_v19  ;;  %10845 = vmatprep.mubr.msk.f32.mxu0 %vm18646_vm3, %v19143_v55  ;;  %v11370_v46 = vpack.c.bf16 %v8243_v4, %v8242_v6  ;;  %v10038_v19 = vld [vmem:[%s19152_s0 + $0x38] sm:$0xff] }
 0xa72   : > { %10835 = vmatmul.mubr.f32.vlgmr.msra.gmra.mrb[12].mxu1 %v7779_v17  ;;  %11345 = vmatprep.subr.bf16.mxu0 %v19137_v24  ;;  %v11400_v20 = vpack.c.bf16 %v10038_v19, %v10037_v48  ;;  %v10086_v6 = vld [vmem:[%s19148_s20 + $0x78] sm:$0xff]  ;;  %v10063_v19 = vld [vmem:[%s19152_s0 + $0x48] sm:$0xff]  ;;  %v9660_v37 = vld [vmem:[%s19170_s3] sm:$0xff] }
 0xa73   : > { %11374 = vmatpush3.bf16.msra.mxu1 %v11373_v5  ;;  %10900 = vmatprep.mubr.msk.f32.mxu1 %vm18646_vm3, %v19143_v55  ;;  %v10068_v5 = vld [vmem:[%s19139_s4 + $0x68] sm:$0xff] }
 0xa74   : > { %11375 = vmatprep.subr.bf16.mxu1 %v19137_v24  ;;  %v11433_v33 = vpack.c.bf16 %v10068_v5, %v10067_v51  ;;  %v10064_v5 = vld [vmem:[%s19152_s0 + $0x50] sm:$0xff]  ;;  %v9661_v29 = vld [vmem:[%s19170_s3 + $0x8] sm:$0xff] }
 0xa75   : > { %11347 = vmatpush3.bf16.msra.mxu0 %v11346_v52  ;;  %v11403_v52 = vpack.c.bf16 %v10042_v30, %v10041_v31  ;;  %v10089_v31 = vld [vmem:[%s19152_s0 + $0x68] sm:$0xff] }
 0xa76   : > { %11348 = vmatprep.subr.bf16.mxu0 %v19137_v24 }
 0xa77   : > { %11377 = vmatpush3.bf16.msra.mxu1 %v11376_v49  ;;  %v10044_v49 = vld [vmem:[%s19139_s4 + $0x58] sm:$0xff] }
 0xa78   : > { %10846 = vmatmul.mubr.msk.f32.vlgmr.msra.gmra.mrb[14].mxu0 %vm19146_vm7, %v19145_v35  ;;  %11378 = vmatprep.subr.bf16.mxu1 %v19137_v24  ;;  %v11406_v41 = vpack.c.bf16 %v10044_v49, %v10043_v57  ;;  %vm19166_vm7 = vmmov %vm19150_vm0  ;;  %v9513_v57 = vld [vmem:[%s19168_s9] sm:$0xff]  ;;  %v9514_v49 = vld [vmem:[%s19168_s9 + $0x8] sm:$0xff] }
 0xa79   : > { %11350 = vmatpush3.bf16.msra.mxu0 %v11349_v27  ;;  %10856 = vmatprep.mubr.msk.f32.mxu0 %vm18646_vm3, %v19143_v55 }
 0xa7a   : > { %10901 = vmatmul.mubr.msk.f32.vlgmr.msra.gmra.mrb[14].mxu1 %vm19147_vm15, %v19145_v35  ;;  %11351 = vmatprep.subr.bf16.mxu0 %v19137_v24  ;;  %vm19167_vm15 = vmmov %vm19150_vm0 }
 0xa7b   : > { %11380 = vmatpush3.bf16.msra.mxu1 %v11379_v26  ;;  %10911 = vmatprep.mubr.msk.f32.mxu1 %vm18646_vm3, %v19143_v55  ;;  %v11436_v26 = vpack.c.bf16 %v10070_v43, %v10069_v21  ;;  %v11463_v21 = vpack.c.bf16 %v9514_v49, %v9513_v57  ;;  %v9515_v43 = vld [vmem:[%s19168_s9 + $0x10] sm:$0xff]  ;;  %v10097_v49 = vld [vmem:[%s12489_s25] ss:$0 sm:$0xff] }
 0xa7c   : > { %11381 = vmatprep.subr.bf16.mxu1 %v19137_v24 }
 0xa7d   : > { %11353 = vmatpush3.bf16.msra.mxu0 %v11352_v53  ;;  %v10073_v53 = vld [vmem:[%s19142_s18 + $0x60] sm:$0xff] }
 0xa7e   : > { %11354 = vmatprep.subr.bf16.mxu0 %v19137_v24 }
 0xa7f   : > { %11383 = vmatpush3.bf16.msra.mxu1 %v11382_v44  ;;  %v11439_v44 = vpack.c.bf16 %v10074_v32, %v10073_v53  ;;  %v11475_v53 = vpack.c.bf16 %v9661_v29, %v9660_v37  ;;  %v9662_v32 = vld [vmem:[%s19170_s3 + $0x10] sm:$0xff] }
 0xa80   : > { %10857 = vmatmul.mubr.msk.f32.vlgmr.msra.gmra.mrb[14].mxu0 %vm19150_vm0, %v19149_v13  ;;  %11384 = vmatprep.subr.bf16.mxu1 %v19137_v24 }
 0xa81   : > { %11356 = vmatpush3.bf16.msra.mxu0 %v11355_v63  ;;  %10867 = vmatprep.mubr.msk.f32.mxu0 %vm18646_vm3, %v19143_v55  ;;  %v10075_v63 = vld [vmem:[%s19142_s18 + $0x70] sm:$0xff] }
 0xa82   : > { %10912 = vmatmul.mubr.msk.f32.vlgmr.msra.gmra.mrb[14].mxu1 %vm19151_vm2, %v19149_v13  ;;  %11357 = vmatprep.subr.bf16.mxu0 %v19137_v24  ;;  %v11442_v28 = vpack.c.bf16 %v10076_v59, %v10075_v63  ;;  %vm19169_vm2 = vmmov %vm19150_vm0  ;;  %v9511_v63 = vld [vmem:[%s19173_s26 + $0x10] sm:$0xff] }
 0xa83   : > { %11386 = vmatpush3.bf16.msra.mxu1 %v11385_v62  ;;  %10922 = vmatprep.mubr.msk.f32.mxu1 %vm18646_vm3, %v19143_v55  ;;  %v11412_v62 = vpack.c.bf16 %v10050_v16, %v10049_v18  ;;  %v9509_v18 = vld [vmem:[%s19173_s26] sm:$0xff]  ;;  %v9510_v16 = vld [vmem:[%s19173_s26 + $0x8] sm:$0xff] }
 0xa84   : > { %11387 = vmatprep.subr.bf16.mxu1 %v19137_v24  ;;  %v11469_v59 = vpack.c.bf16 %v9510_v16, %v9509_v18 }
 0xa85   : > { %11359 = vmatpush3.bf16.msra.mxu0 %v11358_v23  ;;  %v10053_v23 = vld [vmem:[%s19144_s22 + $0x48] sm:$0xff] }
 0xa86   : > { %11360 = vmatprep.subr.bf16.mxu0 %v19137_v24 }
 0xa87   : > { %11389 = vmatpush3.bf16.msra.mxu1 %v11388_v54  ;;  %v11445_v54 = vpack.c.bf16 %v10079_v14, %v10078_v60  ;;  %v10019_v60 = vld [vmem:[#allocation13 + $0x1] ss:$0 sm:$0xff]  ;;  %v10008_v14 = vld [vmem:[#allocation13] ss:$0 sm:$0xff] }
 0xa88   : > { %10868 = vmatmul.mubr.msk.f32.vlgmr.msra.gmra.mrb[14].mxu0 %vm19154_vm6, %v19153_v45  ;;  %11390 = vmatprep.subr.bf16.mxu1 %v19137_v24  ;;  %vm19171_vm6 = vmmov %vm19150_vm0 }
 0xa89   : > { %11362 = vmatpush3.bf16.msra.mxu0 %v11361_v61  ;;  %10878 = vmatprep.mubr.msk.f32.mxu0 %vm18646_vm3, %v19143_v55  ;;  %v10080_v61 = vld [vmem:[%s19144_s22 + $0x70] sm:$0xff] }
 0xa8a   : > { %10923 = vmatmul.mubr.msk.f32.vlgmr.msra.gmra.mrb[14].mxu1 %vm19155_vm8, %v19153_v45  ;;  %11363 = vmatprep.subr.bf16.mxu0 %v19137_v24  ;;  %v11448_v40 = vpack.c.bf16 %v10081_v34, %v10080_v61  ;;  %vm19172_vm8 = vmmov %vm19150_vm0 }
 0xa8b   : > { %11392 = vmatpush3.bf16.msra.mxu1 %v11391_v42  ;;  %10933 = vmatprep.mubr.msk.f32.mxu1 %vm18646_vm3, %v19143_v55  ;;  %v11418_v42 = vpack.c.bf16 %v10055_v8, %v10054_v12 }
 0xa8c   : > { %11393 = vmatprep.subr.bf16.mxu1 %v19137_v24 }
 0xa8d   : > { %11365 = vmatpush3.bf16.msra.mxu0 %v11364_v38  ;;  %v10058_v38 = vld [vmem:[%s19148_s20 + $0x48] sm:$0xff] }
 0xa8e   : > { %11366 = vmatprep.subr.bf16.mxu0 %v19137_v24 }
 0xa8f   : > { %11395 = vmatpush3.bf16.msra.mxu1 %v11394_v7  ;;  %v11421_v7 = vpack.c.bf16 %v10058_v38, %v10057_v25  ;;  %v10072_v25 = vld [vmem:[#allocation13 + $0x3] ss:$0 sm:$0xff] }
 0xa90   : > { %10879 = vmatmul.mubr.msk.f32.vlgmr.msra.gmra.mrb[14].mxu0 %vm19157_vm9, %v19156_v11  ;;  %11396 = vmatprep.subr.bf16.mxu1 %v19137_v24  ;;  %vm19174_vm9 = vmmov %vm19150_vm0 }
 0xa91   : > { %11368 = vmatpush3.bf16.msra.mxu0 %v11367_v9  ;;  %10889 = vmatprep.mubr.msk.f32.mxu0 %vm18646_vm3, %v19143_v55  ;;  %v10060_v9 = vld [vmem:[%s19148_s20 + $0x58] sm:$0xff] }
 0xa92   : > { %10934 = vmatmul.mubr.msk.f32.vlgmr.msra.gmra.mrb[14].mxu1 %vm19158_vm10, %v19156_v11  ;;  %11369 = vmatprep.subr.bf16.mxu0 %v19137_v24  ;;  %v11424_v4 = vpack.c.bf16 %v10060_v9, %v10059_v2  ;;  %vm19175_vm10 = vmmov %vm19150_vm0 }
 0xa93   : > { %11398 = vmatpush3.bf16.msra.mxu1 %v11397_v22  ;;  %10944 = vmatprep.mubr.msk.f32.mxu1 %vm18646_vm3, %v19143_v55  ;;  %v10085_v22 = vld [vmem:[%s19148_s20 + $0x70] sm:$0xff] }
 0xa94   : > { %11399 = vmatprep.subr.bf16.mxu1 %v19137_v24  ;;  %v11454_v48 = vpack.c.bf16 %v10086_v6, %v10085_v22 }
 0xa95   : > { %11371 = vmatpush3.bf16.msra.mxu0 %v11370_v46  ;;  %v10062_v46 = vld [vmem:[%s19152_s0 + $0x40] sm:$0xff] }
 0xa96   : > { %11402 = vmatprep.subr.bf16.mxu0 %v19137_v24  ;;  %v11427_v30 = vpack.c.bf16 %v10063_v19, %v10062_v46  ;;  %v19176_v46 = vld [vmem:[#allocation47_spill] sm:$0xff] }
 0xa97   : > { %11401 = vmatpush3.bf16.msra.mxu1 %v11400_v20  ;;  %v10088_v20 = vld [vmem:[%s19152_s0 + $0x60] sm:$0xff] }
 0xa98   : > { %11432 = vmatprep.subr.bf16.mxu1 %v19137_v24  ;;  %v11457_v51 = vpack.c.bf16 %v10089_v31, %v10088_v20 }
 0xb43   : > { %v17696_v1 = vpop.f32.mrb[12].mxu0  }
 0xb44   : > { %v10801_v17 = vpop.f32.mrb[13].mxu0 }
 0xb45   : > { %v17701_v0 = vpop.f32.mrb[12].mxu1   ;;  %v10065_v17 = vld [vmem:[%s19152_s0 + $0x58] sm:$0xff] }
 0xb46   : > { %v8246_v15 = vrot.slane %v17701_v0, 7  ;;  %v10836_v47 = vpop.f32.mrb[13].mxu1 }
 0xb47   : > { %v10091_v47 = vld [vmem:[%s19152_s0 + $0x78] sm:$0xff] }
 0xb48   : > { %v17710_v27 = vsel %vm19159_vm11, %v8246_v15, %v17696_v1  ;;  %v10090_v15 = vld [vmem:[%s19152_s0 + $0x70] sm:$0xff]  ;;  %vm9744_vm11 = vcmask 66560  }
 0xb49   : > { %10890 = vmatmul.mubr.msk.f32.vlgmr.msra.gmra.mrb[14].mxu0 %vm19160_vm12, %v17710_v27  ;;  %10945 = vmatmul.mubr.msk.f32.vlgmr.msra.gmra.mrb[14].mxu1 %vm19161_vm13, %v17710_v27 }
 0xb4a   : > { %11404 = vmatpush3.bf16.msra.mxu0 %v11403_v52  ;;  %11434 = vmatpush3.bf16.msra.mxu1 %v11433_v33  ;;  %v11430_v52 = vpack.c.bf16 %v10065_v17, %v10064_v5  ;;  %v11460_v33 = vpack.c.bf16 %v10091_v47, %v10090_v15 }
 0xb4b   : > { %11405 = vmatprep.subr.bf16.mxu0 %v19137_v24  ;;  %11435 = vmatprep.subr.bf16.mxu1 %v19137_v24 }
 0xb4c   : > { %10955 = vmatprep.mubr.msk.f32.mxu0 %vm18646_vm3, %v19143_v55  ;;  %11010 = vmatprep.mubr.msk.f32.mxu1 %vm18646_vm3, %v19143_v55 }
 0xb4e   : > { %11407 = vmatpush3.bf16.msra.mxu0 %v11406_v41  ;;  %11437 = vmatpush3.bf16.msra.mxu1 %v11436_v26  ;;  %v9516_v41 = vld [vmem:[%s19168_s9 + $0x18] sm:$0xff] }
 0xb4f   : > { %11408 = vmatprep.subr.bf16.mxu0 %v19137_v24  ;;  %11438 = vmatprep.subr.bf16.mxu1 %v19137_v24  ;;  %v11466_v26 = vpack.c.bf16 %v9516_v41, %v9515_v43 }
 0xb51   : > { %10956 = vmatmul.mubr.msk.f32.vlgmr.msra.gmra.mrb[16].mxu0 %vm19162_vm14, %v19145_v35  ;;  %11011 = vmatmul.mubr.msk.f32.vlgmr.msra.gmra.mrb[16].mxu1 %vm19163_vm1, %v19145_v35  ;;  %v11415_v35 = vpack.c.bf16 %v10053_v23, %v10052_v58 }
 0xb52   : > { %11410 = vmatpush3.bf16.msra.mxu0 %v11409_v39  ;;  %11440 = vmatpush3.bf16.msra.mxu1 %v11439_v44  ;;  %v9663_v39 = vld [vmem:[%s19170_s3 + $0x18] sm:$0xff] }
 0xb53   : > { %11411 = vmatprep.subr.bf16.mxu0 %v19137_v24  ;;  %11441 = vmatprep.subr.bf16.mxu1 %v19137_v24  ;;  %v11478_v44 = vpack.c.bf16 %v9663_v39, %v9662_v32 }
 0xb54   : > { %10966 = vmatprep.mubr.msk.f32.mxu0 %vm18646_vm3, %v19143_v55  ;;  %11021 = vmatprep.mubr.msk.f32.mxu1 %vm18646_vm3, %v19143_v55 }
 0xb56   : > { %11413 = vmatpush3.bf16.msra.mxu0 %v11412_v62  ;;  %11443 = vmatpush3.bf16.msra.mxu1 %v11442_v28  ;;  %v9512_v62 = vld [vmem:[%s19173_s26 + $0x18] sm:$0xff] }
 0xb57   : > { %11414 = vmatprep.subr.bf16.mxu0 %v19137_v24  ;;  %11444 = vmatprep.subr.bf16.mxu1 %v19137_v24  ;;  %v11472_v28 = vpack.c.bf16 %v9512_v62, %v9511_v63 }
 0xb59   : > { %10967 = vmatmul.mubr.msk.f32.vlgmr.msra.gmra.mrb[16].mxu0 %vm19164_vm4, %v19149_v13  ;;  %11022 = vmatmul.mubr.msk.f32.vlgmr.msra.gmra.mrb[16].mxu1 %vm19165_vm5, %v19149_v13 }
 0xb5a   : > { %11416 = vmatpush3.bf16.msra.mxu0 %v11415_v35  ;;  %11446 = vmatpush3.bf16.msra.mxu1 %v11445_v54 }
 0xb5b   : > { %11417 = vmatprep.subr.bf16.mxu0 %v19137_v24  ;;  %11447 = vmatprep.subr.bf16.mxu1 %v19137_v24 }
 0xb5c   : > { %10977 = vmatprep.mubr.msk.f32.mxu0 %vm18646_vm3, %v19143_v55  ;;  %11032 = vmatprep.mubr.msk.f32.mxu1 %vm18646_vm3, %v19143_v55 }
 0xb5e   : > { %11419 = vmatpush3.bf16.msra.mxu0 %v11418_v42  ;;  %11449 = vmatpush3.bf16.msra.mxu1 %v11448_v40  ;;  %v10046_v40 = vld [vmem:[#allocation13 + $0x2] ss:$0 sm:$0xff] }
 0xb5f   : > { %11420 = vmatprep.subr.bf16.mxu0 %v19137_v24  ;;  %11450 = vmatprep.subr.bf16.mxu1 %v19137_v24 }
 0xb61   : > { %10978 = vmatmul.mubr.msk.f32.vlgmr.msra.gmra.mrb[16].mxu0 %vm19166_vm7, %v19153_v45  ;;  %11033 = vmatmul.mubr.msk.f32.vlgmr.msra.gmra.mrb[16].mxu1 %vm19167_vm15, %v19153_v45 }
 0xb62   : > { %11422 = vmatpush3.bf16.msra.mxu0 %v11421_v7  ;;  %11452 = vmatpush3.bf16.msra.mxu1 %v11451_v56 }
 0xb63   : > { %11423 = vmatprep.subr.bf16.mxu0 %v19137_v24  ;;  %11453 = vmatprep.subr.bf16.mxu1 %v19137_v24 }
 0xb64   : > { %10988 = vmatprep.mubr.msk.f32.mxu0 %vm18646_vm3, %v19143_v55  ;;  %11043 = vmatprep.mubr.msk.f32.mxu1 %vm18646_vm3, %v19143_v55 }
 0xb66   : > { %11425 = vmatpush3.bf16.msra.mxu0 %v11424_v4  ;;  %11455 = vmatpush3.bf16.msra.mxu1 %v11454_v48 }
 0xb67   : > { %11426 = vmatprep.subr.bf16.mxu0 %v19137_v24  ;;  %11456 = vmatprep.subr.bf16.mxu1 %v19137_v24 }
 0xb69   : > { %10989 = vmatmul.mubr.msk.f32.vlgmr.msra.gmra.mrb[16].mxu0 %vm19150_vm0, %v19156_v11  ;;  %11044 = vmatmul.mubr.msk.f32.vlgmr.msra.gmra.mrb[16].mxu1 %vm19169_vm2, %v19156_v11 }
 0xb6a   : > { %11428 = vmatpush3.bf16.msra.mxu0 %v11427_v30  ;;  %11458 = vmatpush3.bf16.msra.mxu1 %v11457_v51 }
 0xb6b   : > { %11429 = vmatprep.subr.bf16.mxu0 %v19137_v24  ;;  %11459 = vmatprep.subr.bf16.mxu1 %v19137_v24 }
 0xb6c   : > { %10999 = vmatprep.mubr.msk.f32.mxu0 %vm18646_vm3, %v19143_v55  ;;  %11054 = vmatprep.mubr.msk.f32.mxu1 %vm18646_vm3, %v19143_v55 }
 0xb6e   : > { %11431 = vmatpush3.bf16.msra.mxu0 %v11430_v52  ;;  %11461 = vmatpush3.bf16.msra.mxu1 %v11460_v33 }
 0xb6f   : > { %11462 = vmatprep.subr.bf16.mxu0 %v19137_v24  ;;  %11468 = vmatprep.subr.bf16.mxu1 %v19137_v24 }
 0xb71   : > { %11000 = vmatmul.mubr.msk.f32.vlgmr.msra.gmra.mrb[16].mxu0 %vm19171_vm6, %v17710_v27  ;;  %11055 = vmatmul.mubr.msk.f32.vlgmr.msra.gmra.mrb[16].mxu1 %vm19172_vm8, %v17710_v27 }
 0xb72   : > { %11464 = vmatpush3.bf16.msra.mxu0 %v11463_v21  ;;  %11065 = vmatprep.mubr.msk.f32.mxu0 %vm18646_vm3, %v19143_v55 }
 0xb73   : > { %11465 = vmatprep.subr.bf16.mxu0 %v19137_v24  ;;  %11076 = vmatprep.mubr.msk.f32.mxu1 %vm18646_vm3, %v19143_v55 }
 0xb74   : > { %11470 = vmatpush3.bf16.msra.mxu1 %v11469_v59 }
 0xb75   : > { %11471 = vmatprep.subr.bf16.mxu1 %v19137_v24 }
 0xb76   : > { %11467 = vmatpush3.bf16.msra.mxu0 %v11466_v26 }
 0xb77   : > { %11474 = vmatprep.subr.bf16.mxu0 %v19137_v24 }
 0xb78   : > { %11473 = vmatpush3.bf16.msra.mxu1 %v11472_v28 }
 0xb79   : > { %11066 = vmatmul.mubr.msk.f32.vlgmr.msra.gmra.mrb[18].mxu0 %vm19174_vm9, %v19153_v45 }
 0xb7a   : > { %11476 = vmatpush3.bf16.msra.mxu0 %v11475_v53  ;;  %11087 = vmatprep.mubr.msk.f32.mxu0 %vm18646_vm3, %v19143_v55  ;;  %vm19177_vm3 = vmmov %vm19150_vm0 }
 0xb7b   : > { %11477 = vmatprep.subr.bf16.mxu0 %v19137_v24 }
 0xb7e   : > { %11479 = vmatpush3.bf16.msra.mxu0 %v11478_v44 }
 0xb81   : > { %11088 = vmatmul.mubr.msk.f32.vlgmr.msra.gmra.mrb[20].mxu0 %vm19175_vm10, %v17710_v27 }
 0xc1c   : > { %v8316_v45 = vpop.f32.mrb[14].mxu0  ;;  %v8710_v58 = vpop.f32.mrb[14].mxu1 }
 0xc1d   : > { %v10891_v23 = vpop.f32.mrb[15].mxu0  ;;  %v10946_v55 = vpop.f32.mrb[15].mxu1  ;;  %v11489_v35 = vadd.f32 %v10019_v60, %v8710_v58  ;;  %v11488_v54 = vadd.f32 %v10008_v14, %v8316_v45 }
 0xc1f   : > { %v10040_v12 = vmul.f32 -1.442695, %v11489_v35  ;;  %v10013_v27 = vmul.f32 -1.442695, %v11488_v54 }
 0xc21   : > { %11900 = vpow2.f32 %v10040_v12  ;;  %v19186_v12 = vld [vmem:[#allocation57_spill] sm:$0xff] }
 0xc22   : > { %11902 = vpow2.f32 %v10013_v27 }
 0xc2b   : > { %v11901_v8 = vpop.eup %11900 }
 0xc2c   : > { %v11903_v61 = vpop.eup %11902  ;;  %v8718_v34 = vadd.f32 1.0, %v11901_v8 }
 0xc2d   : > { %v8324_v42 = vadd.f32 1.0, %v11903_v61 }
 0xc2e   : > { %11904 = vrcp.f32 %v8718_v34 }
 0xc2f   : > { %11906 = vrcp.f32 %v8324_v42 }
 0xc38   : > { %v11905_v6 = vpop.eup %11904 }
 0xc39   : > { %v11907_v4 = vpop.eup %11906  ;;  %v9504_v19 = vmul.f32 %v19176_v46, %v11905_v6  ;;  %v19182_v6 = vld [vmem:[#allocation261_spill] sm:$0xff] }
 0xc44   : > { %v9104_v24 = vpop.f32.mrb[16].mxu0  ;;  %v9493_v38 = vpop.f32.mrb[16].mxu1 }
 0xc45   : > { %v11490_v10 = vadd.f32 %v10046_v40, %v9104_v24  ;;  %v11491_v50 = vadd.f32 %v10072_v25, %v9493_v38  ;;  %v11001_v7 = vpop.f32.mrb[17].mxu0  ;;  %v11056_v56 = vpop.f32.mrb[17].mxu1 }
 0xc46   : > { %v19183_v7 = vld [vmem:[#allocation260_spill] sm:$0xff] }
 0xc47   : > { %11908 = vtanh.f32 %v11490_v10  ;;  %v10093_v2 = vmul.f32 -1.442695, %v11491_v50  ;;  %v19185_v10 = vld [vmem:[#allocation242_spill] sm:$0xff] }
 0xc49   : > { %11910 = vpow2.f32 %v10093_v2  ;;  %v19179_v2 = vmov %v17593_v36 }
 0xc4c   : > { %v9583_v9 = vpop.f32.mrb[18].mxu0 }
 0xc4d   : > { %v11067_v22 = vpop.f32.mrb[19].mxu0 }
 0xc51   : > { %v11909_v48 = vpop.eup %11908 }
 0xc52   : > { %v9505_v20 = vmul.f32 %v11909_v48, %v11907_v4  ;;  %v19180_v4 = vld [vmem:[#allocation263_spill] sm:$0xff] }
 0xc53   : > { %v11911_v31 = vpop.eup %11910 }
 0xc54   : > { %v9506_v8 = vadd.f32 %v9505_v20, %v9504_v19   ;;  %v9501_v30 = vadd.f32 1.0, %v11911_v31  ;;  %v9730_v51 = vpop.f32.mrb[20].mxu0 }
 0xc55   : > { %v11089_v5 = vpop.f32.mrb[21].mxu0 }
 0xc56   : > { %11912 = vtanh.f32 %v9506_v8  ;;  %v19181_v5 = vld [vmem:[#allocation262_spill] sm:$0xff] }
 0xc57   : > { %11914 = vrcp.f32 %v9501_v30 }
 0xc60   : > { %v11913_v17 = vpop.eup %11912 }
 0xc61   : > { %v11915_v15 = vpop.eup %11914 }
 0xc62   : > { %v9508_v47 = vmul.f32 %v11915_v15, %v11913_v17  }
 0xc64   : > { %11077 = vmatmul.mubr.msk.f32.vlgmr.msra.gmra.mrb[18].mxu1 %vm19177_vm3, %v9508_v47 }
 0xd37   : > { %v9656_v52 = vpop.f32.mrb[18].mxu1 }
 0xd38   : > { %v9657_v33 = vadd.f32 %v9656_v52, %v9583_v9  ;;  %v11078_v57 = vpop.f32.mrb[19].mxu1  ;;  %v19184_v9 = vmov %v9508_v47  ;;  %236 = sbr.rel (!%p17839_p0) target bundleno = 193 (0xc1), region = 280 }
 0xd3a   : > { %v9734_v21 = vadd.f32 %v9730_v51, %v9657_v33 }
 0xd3c   : > { %v9742_v43 = vadd.f32 %v10097_v49, %v9734_v21 }
 0xd3e   : > { %9745 = vst.msk [vmem:[%s9743_s28] sm:$0x3] %vm9744_vm11, %v9742_v43  ;;  %s12323_s28 = smov (%p17839_p0), [#allocation15]  }
 0xd3f   :  { %s9767_s23 = sshll.u32 %s12323_s28, 4  ;;  %s9768_s23 = int_to_ptr.vmem [resolvable:$true] %s9767_s23 }
 0xd40   :  { %s12072_s13 = scalar_lea.vmem %s9768_s23, 256  ;;  %p12077_p2 = scmp.lt.s32.totalorder %s9768_s23, %s9768_s23 }
 0xd41   :  { %p12073_p1 = scmp.ne.s32.totalorder %s9768_s23, %s12072_s13  ;;  %p12078_p3 = scmp.lt.s32.totalorder %s12072_s13, %s12072_s13 }
 0xd43   :  { %p12079_p4 = por %p12078_p3, %p12077_p2 }
 0xd45   :  { %p12080_p5 = pnand %p12079_p4, %p12073_p1 }
 0xd47   :  { %12083 = shalt.err (!%p12080_p5)
}
 0xd48   :  { %s19187_s24 = sld [smem:[#allocation42_spill]] }
 0xd4e   :  { %s12084_s0 = scalar_lea.hbm %s19187_s24, 256 }
 0xd4f   :  { %p12085_p6 = scmp.ne.s32.totalorder %s19187_s24, %s12084_s0  ;;  %p12088_p7 = scmp.lt.u32.totalorder %s12084_s0, %s19187_s24 }
 0xd51   :  { %p12090_p8 = pnand %p12088_p7, %p12085_p6 }
 0xd53   :  { %12093 = shalt.err (!%p12090_p8)
}
 0xd54   :  { %s19188_s21 = smov 2   ;;  %s19189_s17 = smov 32  }
 0xd55   :  { %9773 = dma.vmem_to_hbm [thread:$0]  %s9768_s23, 256, %s19187_s24, [#allocation16], %s19189_s17, %s19189_s17, %s19188_s21  }
 0xd56   :  { %s12094_s13 = scalar_lea.vmem %s17887_s27, 256  ;;  %p12099_p10 = scmp.lt.s32.totalorder %s17887_s27, %s17887_s27 }
 0xd57   :  { %p12095_p9 = scmp.ne.s32.totalorder %s17887_s27, %s12094_s13  ;;  %p12100_p11 = scmp.lt.s32.totalorder %s12094_s13, %s12094_s13 }
 0xd59   :  { %p12101_p12 = por %p12100_p11, %p12099_p10 }
 0xd5b   :  { %p12102_p13 = pnand %p12101_p12, %p12095_p9 }
 0xd5d   :  { %12105 = shalt.err (!%p12102_p13)
}
 0xd5e   :  { %s19190_s25 = sld [smem:[#allocation41_spill]] }
 0xd64   :  { %s12106_s8 = scalar_lea.hbm %s19190_s25, 256 }
 0xd65   :  { %p12107_p0 = scmp.ne.s32.totalorder %s19190_s25, %s12106_s8  ;;  %p12110_p1 = scmp.lt.u32.totalorder %s12106_s8, %s19190_s25 }
 0xd67   :  { %p12112_p2 = pnand %p12110_p1, %p12107_p0 }
 0xd69   :  { %12115 = shalt.err (!%p12112_p2)
}
 0xd6a   :  { %9761 = dma.vmem_to_hbm [thread:$0]  %s17887_s27, 256, %s19190_s25, [#allocation4], %s19189_s17, %s19189_s17, %s19188_s21  }
 0xd6b   :  { %s12325_s14 = smov [#allocation17]  }
 0xd6c   :  { %s9779_s19 = sshll.u32 %s12325_s14, 4  ;;  %s9780_s19 = int_to_ptr.vmem [resolvable:$true] %s9779_s19 }
 0xd6d   :  { %s12116_s30 = scalar_lea.vmem %s9780_s19, 256  ;;  %p12121_p4 = scmp.lt.s32.totalorder %s9780_s19, %s9780_s19 }
 0xd6e   :  { %p12117_p3 = scmp.ne.s32.totalorder %s9780_s19, %s12116_s30  ;;  %p12122_p5 = scmp.lt.s32.totalorder %s12116_s30, %s12116_s30 }
 0xd70   :  { %p12123_p6 = por %p12122_p5, %p12121_p4 }
 0xd72   :  { %p12124_p7 = pnand %p12123_p6, %p12117_p3 }
 0xd74   :  { %12127 = shalt.err (!%p12124_p7)
}
 0xd75   :  { %s19191_s6 = sld [smem:[#allocation43_spill]] }
 0xd7b   :  { %s12128_s12 = scalar_lea.hbm %s19191_s6, 256 }
 0xd7c   :  { %p12129_p8 = scmp.ne.s32.totalorder %s19191_s6, %s12128_s12  ;;  %p12132_p9 = scmp.lt.u32.totalorder %s12128_s12, %s19191_s6 }
 0xd7e   :  { %p12134_p10 = pnand %p12132_p9, %p12129_p8 }
 0xd80   :  { %12137 = shalt.err (!%p12134_p10)
}
 0xd81   :  { %9785 = dma.vmem_to_hbm [thread:$0]  %s9780_s19, 256, %s19191_s6, [#allocation16], %s19189_s17, %s19189_s17, %s19188_s21  }
 0xd82   :  { %12206 = dma.done.wait [#allocation4], 256  }
 0xd83   :  { %12207 = vsyncadd [#allocation4], 4294967040 }
 0xd84   :  { %12208 = dma.done.wait [#allocation16], 512  }
 0xd85   :  { %12209 = vsyncadd [#allocation16], 4294966784 }
 0xd86   :  { %9795 = vsyncpa [#allocation3], 1 }
 0xd87   :  { %9796 = vsyncpa [#allocation6], 1 }
 0xd88   :  { %9797 = vsyncpa [#allocation9], 1 }
 0xd89   :  { %9798 = vsyncpa [#allocation12], 1 }
 0xd8a   :  { %9799 = vsyncpa [#allocation4], 1 }
 0xd8b   :  { %9800 = vsyncpa [#allocation16], 1 }

</bundles_post_ra>
